<compile_context>
chip_gen: v5e
topology: v5e:2x2
jax: 0.10.0
libtpu: 0.0.40
codegen_flags: <defaults>
</compile_context>

<pallas_src>
import functools

import jax
import jax.numpy as jnp
from jax.experimental import pallas as pl
from jax.experimental.pallas import tpu as pltpu

PAD_IDX, SOS_IDX, EOS_IDX = 0, 1, 2

VMEM = pltpu.MemorySpace.VMEM


def _specs(n):
    return [pl.BlockSpec(memory_space=VMEM) for _ in range(n)]


def _mxdot(a, w):
    # bf16 MXU operands, f32 accumulation.  Elementwise math elsewhere stays f32.
    return jnp.dot(a.astype(jnp.bfloat16), w.astype(jnp.bfloat16),
                   preferred_element_type=jnp.float32)


def _gru_gates(gi, gh, h):
    # PyTorch GRUCell semantics; gate order (r, z, n); gi/gh are (B, 3H) pre-projections.
    H = h.shape[-1]
    r = jax.nn.sigmoid(gi[:, :H] + gh[:, :H])
    z = jax.nn.sigmoid(gi[:, H:2 * H] + gh[:, H:2 * H])
    n = jnp.tanh(gi[:, 2 * H:] + r * gh[:, 2 * H:])
    return (1.0 - z) * n + z * h


# ----------------------------- Pallas kernels -----------------------------
def _encoder_kernel(emb_ref, valid_ref, wih_fb_ref, bih_fb_ref,
                    whh_f_ref, bhh_f_ref, whh_b_ref, bhh_b_ref,
                    fc_w_ref, fc_b_ref,
                    enc_ref, hid_ref):
    """Fused bidirectional GRU (packed-sequence masking) + fc(tanh) projection."""
    S, B, E = emb_ref.shape
    He = whh_f_ref.shape[0]

    # Hoisted input projections for BOTH directions: one matmul, input biases folded in.
    gi_flat = _mxdot(emb_ref[...].reshape(S * B, E), wih_fb_ref[...]) + bih_fb_ref[...]
    gi_f_all = gi_flat[:, :3 * He].reshape(S, B, 3 * He)
    gi_b_all = gi_flat[:, 3 * He:].reshape(S, B, 3 * He)

    whh_f = whh_f_ref[...]; bhh_f = bhh_f_ref[...]
    whh_b = whh_b_ref[...]; bhh_b = bhh_b_ref[...]

    h_f = jnp.zeros((B, He), jnp.float32)
    h_b = jnp.zeros((B, He), jnp.float32)

    # Both directions advance in the same (fully unrolled, S is static) loop:
    # forward consumes position t, backward consumes position S-1-t.
    # Only the h @ whh matmul remains on the serial chain per direction.
    for t in range(S):
        # forward direction
        v = valid_ref[t]                                    # (B, 1), 1.0 where t < src_len
        gh_f = _mxdot(h_f, whh_f) + bhh_f
        hf_new = _gru_gates(gi_f_all[t], gh_f, h_f)
        h_f = v * hf_new + (1.0 - v) * h_f
        enc_ref[t, :, pl.ds(0, He)] = v * hf_new            # padded positions -> 0

        # backward direction
        tb = S - 1 - t
        vb = valid_ref[tb]
        gh_b = _mxdot(h_b, whh_b) + bhh_b
        hb_new = _gru_gates(gi_b_all[tb], gh_b, h_b)
        h_b = vb * hb_new + (1.0 - vb) * h_b
        enc_ref[tb, :, pl.ds(He, He)] = vb * hb_new

    # hidden = tanh([h_fwd_final ; h_bwd_final] @ fc_w + fc_b), fused here too.
    h_cat = jnp.concatenate([h_f, h_b], axis=-1)
    hid_ref[...] = jnp.tanh(_mxdot(h_cat, fc_w_ref[...]) + fc_b_ref[...])


def _decoder_kernel(embt_ref, h0_ref, enc_ref, mask_ref,
                    whid_ref, wae_ref, ba_ref, v_ref,
                    wihe_ref, wihc_ref, bih_ref, bhh_ref,
                    fow_ref, fob_ref, *rest, teacher_force):
    """Fused decoder: (attention -> GRU cell -> [deferred] fc_out) for every timestep."""
    if teacher_force:
        out_ref, att_ref, rows_ref = rest
        embdec_ref = None
    else:
        embdec_ref, out_ref, att_ref = rest
        rows_ref = None

    T = embt_ref.shape[0]
    S, B, E2 = enc_ref.shape                  # enc layout: (S, B, 2*He)
    E = embt_ref.shape[2]
    Hd = h0_ref.shape[-1]
    V = fow_ref.shape[-1]

    enc = enc_ref[...]                        # VMEM-resident for the whole loop
    mask = mask_ref[...]                      # (S, B)
    whid = whid_ref[...]                      # (Hd, Hd + 3*Hd): [attn_w_hid | whh_d] fused
    wihc = wihc_ref[...]                      # (2*He, 3*Hd)
    bih = bih_ref[...]; bhh = bhh_ref[...]
    v_row = v_ref[...].reshape(1, 1, Hd)

    # Loop-invariant attention projection (attn bias folded in), computed once.
    e_e = (_mxdot(enc.reshape(S * B, E2), wae_ref[...]) + ba_ref[...]).reshape(S, B, Hd)

    hidden = h0_ref[...]                      # (B, Hd)
    if teacher_force:
        # Input-side GRU projection for all target steps at once (input bias folded in).
        wihe = wihe_ref[...]
        gi_emb_all = (_mxdot(embt_ref[...].reshape(T * B, E), wihe)
                      + bih).reshape(T, B, 3 * Hd)
        emb_cur = None
        gi_emb_cur = None
    else:
        wihe = wihe_ref[...]
        emb_cur = embt_ref[0].astype(jnp.float32)              # input = trg[0]  (<sos>)
        gi_emb_cur = _mxdot(emb_cur, wihe) + bih

    out_ref[0] = jnp.zeros((B, V), jnp.float32)
    att_ref[0] = jnp.zeros((S, B), jnp.float32)

    for t in range(1, T):
        # --- additive attention with masked softmax over src positions ---
        # ONE matmul with `hidden` as LHS covers both the attention hidden projection
        # and the GRU hidden-to-hidden gates.
        hcat = _mxdot(hidden, whid)                            # (B, 4*Hd)
        e_h = hcat[:, :Hd]
        gh = hcat[:, Hd:] + bhh

        energy = jnp.tanh(e_e + e_h[None, :, :])               # (S, B, Hd)
        score = jnp.sum(energy * v_row, axis=-1)               # VPU/XLU reduce -> (S, B)
        score = jnp.where(mask > 0.5, score, -1e10)
        score = score - jnp.max(score, axis=0, keepdims=True)
        p = jnp.exp(score)
        inv = pl.reciprocal(jnp.sum(p, axis=0, keepdims=True), approx=True)   # EUP slot
        a = p * inv                                            # (S, B)
        weighted = jnp.sum(a[:, :, None] * enc, axis=0)        # (B, 2*He)
        att_ref[t] = a

        # --- decoder GRU cell ---
        if teacher_force:
            gi = gi_emb_all[t - 1] + _mxdot(weighted, wihc)
            emb_f32 = embt_ref[t - 1].astype(jnp.float32)
        else:
            gi = gi_emb_cur + _mxdot(weighted, wihc)
            emb_f32 = emb_cur
        hidden = _gru_gates(gi, gh, hidden)

        row = jnp.concatenate([hidden, weighted, emb_f32], axis=-1)   # (B, Hd+2He+E)
        if teacher_force:
            # Defer fc_out: stash the row, do one batched matmul after the loop.
            rows_ref[t - 1] = row
        else:
            # Greedy feedback needs the prediction now.
            pred = _mxdot(row, fow_ref[...]) + fob_ref[...]
            out_ref[t] = pred
            if t < T - 1:
                # greedy argmax feedback (first-max index), one-hot @ embedding table.
                # TODO(synk): replace with an integer-argmax row gather from embdec.
                m = jnp.max(pred, axis=-1, keepdims=True)
                iota = jax.lax.broadcasted_iota(jnp.int32, (B, V), 1)
                idx = jnp.min(jnp.where(pred >= m, iota, V), axis=-1, keepdims=True)
                onehot = (iota == idx).astype(jnp.float32)
                emb_cur = _mxdot(onehot, embdec_ref[...])      # (B, E)
                gi_emb_cur = _mxdot(emb_cur, wihe) + bih

    if teacher_force and T > 1:
        # One well-shaped fc_out matmul + one slab store for all timesteps.
        D = Hd + E2 + E
        rows = rows_ref[...].reshape((T - 1) * B, D)
        preds = _mxdot(rows, fow_ref[...]) + fob_ref[...]      # ((T-1)*B, V)
        out_ref[pl.ds(1, T - 1), :, :] = preds.reshape(T - 1, B, V)


# ----------------------------- parameters -----------------------------
def init_params(key, vocab, emb, enc_hid, dec_hid):
    ks = iter(jax.random.split(key, 24))

    def u(shape, fan_in):
        b = 1.0 / float(fan_in) ** 0.5
        return jax.random.uniform(next(ks), shape, jnp.float32, -b, b)

    p = {}
    p["emb_enc"] = u((vocab, emb), emb)
    p["emb_dec"] = u((vocab, emb), emb)
    # encoder bidirectional GRU (weights stored transposed: (in_dim, 3H))
    p["wih_f"] = u((emb, 3 * enc_hid), enc_hid)
    p["whh_f"] = u((enc_hid, 3 * enc_hid), enc_hid)
    p["bih_f"] = u((3 * enc_hid,), enc_hid)
    p["bhh_f"] = u((3 * enc_hid,), enc_hid)
    p["wih_b"] = u((emb, 3 * enc_hid), enc_hid)
    p["whh_b"] = u((enc_hid, 3 * enc_hid), enc_hid)
    p["bih_b"] = u((3 * enc_hid,), enc_hid)
    p["bhh_b"] = u((3 * enc_hid,), enc_hid)
    # encoder fc: Linear(2*enc_hid, dec_hid)
    p["fc_w"] = u((2 * enc_hid, dec_hid), 2 * enc_hid)
    p["fc_b"] = u((dec_hid,), 2 * enc_hid)
    # attention: attn = Linear(2*enc_hid + dec_hid, dec_hid) split into [hidden | enc] parts
    p["attn_w_hid"] = u((dec_hid, dec_hid), 2 * enc_hid + dec_hid)
    p["attn_w_enc"] = u((2 * enc_hid, dec_hid), 2 * enc_hid + dec_hid)
    p["attn_b"] = u((dec_hid,), 2 * enc_hid + dec_hid)
    p["attn_v"] = u((dec_hid,), dec_hid)          # Linear(dec_hid, 1, bias=False)
    # decoder GRU: input = [emb ; 2*enc_hid]
    p["wih_d"] = u((emb + 2 * enc_hid, 3 * dec_hid), dec_hid)
    p["whh_d"] = u((dec_hid, 3 * dec_hid), dec_hid)
    p["bih_d"] = u((3 * dec_hid,), dec_hid)
    p["bhh_d"] = u((3 * dec_hid,), dec_hid)
    # fc_out: Linear(dec_hid + 2*enc_hid + emb, vocab), rows ordered [hidden | weighted | emb]
    p["fc_out_w"] = u((2 * enc_hid + dec_hid + emb, vocab), 2 * enc_hid + dec_hid + emb)
    p["fc_out_b"] = u((vocab,), 2 * enc_hid + dec_hid + emb)
    return p


# ----------------------------- model glue -----------------------------
def _bf16(w):
    return w.astype(jnp.bfloat16)


def encoder_forward(p, src, src_len):
    """Returns enc_out (S, B, 2*He) and initial decoder hidden (B, Hd)."""
    S, B = src.shape
    He = p["whh_f"].shape[0]
    Hd = p["fc_w"].shape[1]
    emb = jnp.take(p["emb_enc"], src, axis=0).astype(jnp.bfloat16)             # (S, B, E)
    valid = (jnp.arange(S)[:, None] < src_len[None, :]).astype(jnp.float32)    # (S, B)
    valid = valid[:, :, None]                                                  # (S, B, 1)

    # Fuse both directions' input weights/biases -> one hoisted matmul inside the kernel.
    wih_fb = jnp.concatenate([p["wih_f"], p["wih_b"]], axis=1).astype(jnp.bfloat16)
    bih_fb = jnp.concatenate([p["bih_f"], p["bih_b"]]).reshape(1, -1)

    enc_out, hidden = pl.pallas_call(
        _encoder_kernel,
        out_shape=(jax.ShapeDtypeStruct((S, B, 2 * He), jnp.float32),
                   jax.ShapeDtypeStruct((B, Hd), jnp.float32)),
        in_specs=_specs(10),
        out_specs=(pl.BlockSpec(memory_space=VMEM),
                   pl.BlockSpec(memory_space=VMEM)),
    )(emb, valid, wih_fb, bih_fb,
      _bf16(p["whh_f"]), p["bhh_f"].reshape(1, -1),
      _bf16(p["whh_b"]), p["bhh_b"].reshape(1, -1),
      _bf16(p["fc_w"]), p["fc_b"].reshape(1, -1))
    return enc_out, hidden


def decoder_forward(p, trg, hidden0, enc_out, mask_sb, teacher_force):
    T, B = trg.shape
    S, _, E2 = enc_out.shape
    E = p["emb_dec"].shape[1]
    Hd = hidden0.shape[1]
    V = p["fc_out_w"].shape[1]

    emb_trg = jnp.take(p["emb_dec"], trg, axis=0).astype(jnp.bfloat16)         # (T, B, E)

    # Fuse the two matmuls that share `hidden` as LHS; split wih_d into emb/ctx parts.
    w_hid_fused = jnp.concatenate([p["attn_w_hid"], p["whh_d"]], axis=1).astype(jnp.bfloat16)
    wih_emb = p["wih_d"][:E].astype(jnp.bfloat16)
    wih_ctx = p["wih_d"][E:].astype(jnp.bfloat16)

    args = [emb_trg, hidden0, enc_out, mask_sb,
            w_hid_fused, _bf16(p["attn_w_enc"]),
            p["attn_b"].reshape(1, -1), p["attn_v"].reshape(1, -1),
            wih_emb, wih_ctx,
            p["bih_d"].reshape(1, -1), p["bhh_d"].reshape(1, -1),
            _bf16(p["fc_out_w"]), p["fc_out_b"].reshape(1, -1)]
    if teacher_force:
        # fc_out is deferred; rows scratch holds [hidden, weighted, emb] per step.
        scratch = [pltpu.VMEM((max(T - 1, 1), B, Hd + E2 + E), jnp.float32)]
    else:
        # Only the greedy-feedback path needs the decoder embedding table in VMEM.
        args.append(_bf16(p["emb_dec"]))
        scratch = []

    kern = functools.partial(_decoder_kernel, teacher_force=teacher_force)
    out, att_sb = pl.pallas_call(
        kern,
        out_shape=(jax.ShapeDtypeStruct((T, B, V), jnp.float32),
                   jax.ShapeDtypeStruct((T, S, B), jnp.float32)),
        in_specs=_specs(len(args)),
        out_specs=(pl.BlockSpec(memory_space=VMEM),
                   pl.BlockSpec(memory_space=VMEM)),
        scratch_shapes=scratch,
    )(*args)
    # Kernel keeps attention in the (S, B) src-major layout; present as (T, B, S).
    return out, jnp.transpose(att_sb, (0, 2, 1))


def seq2seq_forward(p, src, src_len, trg, teacher_forcing_ratio=1.0):
    enc_out, hidden = encoder_forward(p, src, src_len)          # (S,B,2He), (B,Hd)
    mask = (src != PAD_IDX).astype(jnp.float32)                 # (S, B) src-major mask
    # TODO(synk): PyTorch draws teacher_force per step with python random.random(); here it
    # is resolved at trace time (ratio >= 1.0 -> always teacher force, else greedy feedback).
    teacher_force = teacher_forcing_ratio >= 1.0
    outputs, attentions = decoder_forward(p, trg, hidden, enc_out, mask, teacher_force)
    return outputs, attentions


# ----------------------------- demo -----------------------------
if __name__ == "__main__":
    VOCAB, EMB, ENC_HID, DEC_HID = 32, 16, 32, 32
    S, T, B = 8, 8, 2

    key = jax.random.PRNGKey(0)
    pkey, skey, tkey = jax.random.split(key, 3)
    params = init_params(pkey, VOCAB, EMB, ENC_HID, DEC_HID)

    src_len = jnp.array([S, 5], dtype=jnp.int32)
    src = jax.random.randint(skey, (S, B), 3, VOCAB, dtype=jnp.int32)
    pos = jnp.arange(S)[:, None]
    src = jnp.where(pos < src_len[None, :], src, PAD_IDX)       # pad the shorter sequence
    trg = jax.random.randint(tkey, (T, B), 3, VOCAB, dtype=jnp.int32)
    trg = trg.at[0].set(SOS_IDX)

    fwd = jax.jit(lambda p, s, sl, tg: seq2seq_forward(p, s, sl, tg, 1.0))
    outputs, attentions = fwd(params, src, src_len, trg)
    jax.block_until_ready((outputs, attentions))

    assert outputs.shape == (T, B, VOCAB)
    assert attentions.shape == (T, B, S)
    assert bool(jnp.all(jnp.isfinite(outputs))) and bool(jnp.all(jnp.isfinite(attentions)))
    # attention rows (t >= 1) are softmaxes -> sum to ~1 (approx EUP reciprocal in normalizer)
    assert bool(jnp.allclose(attentions[1:].sum(-1), 1.0, atol=1e-2))
    print("KERNEL_OK")
</pallas_src>

<mosaic_0001>
module attributes {stable_mosaic.version = 11 : i64} {
  func.func @_encoder_kernel(%arg0: memref<8x2x16xbf16, #tpu.memory_space<vmem>>, %arg1: memref<8x2x1xf32, #tpu.memory_space<vmem>>, %arg2: memref<16x192xbf16, #tpu.memory_space<vmem>>, %arg3: memref<1x192xf32, #tpu.memory_space<vmem>>, %arg4: memref<32x96xbf16, #tpu.memory_space<vmem>>, %arg5: memref<1x96xf32, #tpu.memory_space<vmem>>, %arg6: memref<32x96xbf16, #tpu.memory_space<vmem>>, %arg7: memref<1x96xf32, #tpu.memory_space<vmem>>, %arg8: memref<64x32xbf16, #tpu.memory_space<vmem>>, %arg9: memref<1x32xf32, #tpu.memory_space<vmem>>, %arg10: memref<8x2x64xf32, #tpu.memory_space<vmem>>, %arg11: memref<2x32xf32, #tpu.memory_space<vmem>>) attributes {dimension_semantics = [], scalar_prefetch = 0 : i64, scratch_operands = 0 : i64, tpu.core_type = #tpu.core_type<tc>} {
    %c0 = arith.constant 0 : index
    %c0_0 = arith.constant 0 : index
    %c0_1 = arith.constant 0 : index
    %0 = vector.load %arg0[%c0, %c0_0, %c0_1] : memref<8x2x16xbf16, #tpu.memory_space<vmem>>, vector<8x2x16xbf16>
    %1 = vector.shape_cast %0 : vector<8x2x16xbf16> to vector<16x16xbf16>
    %c0_2 = arith.constant 0 : index
    %c0_3 = arith.constant 0 : index
    %2 = vector.load %arg2[%c0_2, %c0_3] : memref<16x192xbf16, #tpu.memory_space<vmem>>, vector<16x192xbf16>
    %cst = arith.constant dense<0.000000e+00> : vector<16x192xf32>
    %3 = tpu.matmul %1, %2, %cst {dimension_numbers = #tpu.dot_dimension_numbers<[1], [0], [0], [1], [0, 0, 1, 1], [], []>} : vector<16x16xbf16>, vector<16x192xbf16>, vector<16x192xf32> -> vector<16x192xf32>
    %c0_4 = arith.constant 0 : index
    %c0_5 = arith.constant 0 : index
    %4 = vector.load %arg3[%c0_4, %c0_5] : memref<1x192xf32, #tpu.memory_space<vmem>>, vector<1x192xf32>
    %5 = vector.broadcast %4 : vector<1x192xf32> to vector<16x192xf32>
    %6 = arith.addf %3, %5 : vector<16x192xf32>
    %7 = vector.extract_strided_slice %6 {offsets = [0, 0], sizes = [16, 96], strides = [1, 1]} : vector<16x192xf32> to vector<16x96xf32>
    %8 = vector.shape_cast %7 : vector<16x96xf32> to vector<8x2x96xf32>
    %9 = vector.extract_strided_slice %6 {offsets = [0, 96], sizes = [16, 96], strides = [1, 1]} : vector<16x192xf32> to vector<16x96xf32>
    %10 = vector.shape_cast %9 : vector<16x96xf32> to vector<8x2x96xf32>
    %c0_6 = arith.constant 0 : index
    %c0_7 = arith.constant 0 : index
    %11 = vector.load %arg4[%c0_6, %c0_7] : memref<32x96xbf16, #tpu.memory_space<vmem>>, vector<32x96xbf16>
    %c0_8 = arith.constant 0 : index
    %c0_9 = arith.constant 0 : index
    %12 = vector.load %arg5[%c0_8, %c0_9] : memref<1x96xf32, #tpu.memory_space<vmem>>, vector<1x96xf32>
    %c0_10 = arith.constant 0 : index
    %c0_11 = arith.constant 0 : index
    %13 = vector.load %arg6[%c0_10, %c0_11] : memref<32x96xbf16, #tpu.memory_space<vmem>>, vector<32x96xbf16>
    %c0_12 = arith.constant 0 : index
    %c0_13 = arith.constant 0 : index
    %14 = vector.load %arg7[%c0_12, %c0_13] : memref<1x96xf32, #tpu.memory_space<vmem>>, vector<1x96xf32>
    %cst_14 = arith.constant 0.000000e+00 : f32
    %15 = vector.broadcast %cst_14 : f32 to vector<2x32xf32>
    %cst_15 = arith.constant 0.000000e+00 : f32
    %16 = vector.broadcast %cst_15 : f32 to vector<2x32xf32>
    %c0_16 = arith.constant 0 : index
    %c0_17 = arith.constant 0 : index
    %c0_18 = arith.constant 0 : index
    %17 = vector.load %arg1[%c0_16, %c0_17, %c0_18] : memref<8x2x1xf32, #tpu.memory_space<vmem>>, vector<1x2x1xf32>
    %18 = vector.shape_cast %17 : vector<1x2x1xf32> to vector<2x1xf32>
    %19 = arith.truncf %15 : vector<2x32xf32> to vector<2x32xbf16>
    %cst_19 = arith.constant dense<0.000000e+00> : vector<2x96xf32>
    %20 = tpu.matmul %19, %11, %cst_19 {dimension_numbers = #tpu.dot_dimension_numbers<[1], [0], [0], [1], [0, 0, 1, 1], [], []>} : vector<2x32xbf16>, vector<32x96xbf16>, vector<2x96xf32> -> vector<2x96xf32>
    %21 = vector.broadcast %12 : vector<1x96xf32> to vector<2x96xf32>
    %22 = arith.addf %20, %21 : vector<2x96xf32>
    %23 = vector.extract_strided_slice %8 {offsets = [0, 0, 0], sizes = [1, 2, 96], strides = [1, 1, 1]} : vector<8x2x96xf32> to vector<1x2x96xf32>
    %24 = vector.shape_cast %23 : vector<1x2x96xf32> to vector<2x96xf32>
    %25 = vector.extract_strided_slice %24 {offsets = [0, 0], sizes = [2, 32], strides = [1, 1]} : vector<2x96xf32> to vector<2x32xf32>
    %26 = vector.extract_strided_slice %22 {offsets = [0, 0], sizes = [2, 32], strides = [1, 1]} : vector<2x96xf32> to vector<2x32xf32>
    %27 = arith.addf %25, %26 : vector<2x32xf32>
    %28 = arith.negf %27 : vector<2x32xf32>
    %29 = math.exp %28 : vector<2x32xf32>
    %cst_20 = arith.constant 1.000000e+00 : f32
    %30 = vector.broadcast %cst_20 : f32 to vector<2x32xf32>
    %31 = arith.addf %30, %29 : vector<2x32xf32>
    %32 = arith.divf %30, %31 : vector<2x32xf32>
    %33 = vector.extract_strided_slice %24 {offsets = [0, 32], sizes = [2, 32], strides = [1, 1]} : vector<2x96xf32> to vector<2x32xf32>
    %34 = vector.extract_strided_slice %22 {offsets = [0, 32], sizes = [2, 32], strides = [1, 1]} : vector<2x96xf32> to vector<2x32xf32>
    %35 = arith.addf %33, %34 : vector<2x32xf32>
    %36 = arith.negf %35 : vector<2x32xf32>
    %37 = math.exp %36 : vector<2x32xf32>
    %cst_21 = arith.constant 1.000000e+00 : f32
    %38 = vector.broadcast %cst_21 : f32 to vector<2x32xf32>
    %39 = arith.addf %38, %37 : vector<2x32xf32>
    %40 = arith.divf %38, %39 : vector<2x32xf32>
    %41 = vector.extract_strided_slice %24 {offsets = [0, 64], sizes = [2, 32], strides = [1, 1]} : vector<2x96xf32> to vector<2x32xf32>
    %42 = vector.extract_strided_slice %22 {offsets = [0, 64], sizes = [2, 32], strides = [1, 1]} : vector<2x96xf32> to vector<2x32xf32>
    %43 = arith.mulf %32, %42 : vector<2x32xf32>
    %44 = arith.addf %41, %43 : vector<2x32xf32>
    %45 = math.tanh %44 : vector<2x32xf32>
    %cst_22 = arith.constant 1.000000e+00 : f32
    %46 = vector.broadcast %cst_22 : f32 to vector<2x32xf32>
    %47 = arith.subf %46, %40 : vector<2x32xf32>
    %48 = arith.mulf %47, %45 : vector<2x32xf32>
    %49 = arith.mulf %40, %15 : vector<2x32xf32>
    %50 = arith.addf %48, %49 : vector<2x32xf32>
    %51 = vector.broadcast %18 : vector<2x1xf32> to vector<2x32xf32>
    %52 = arith.mulf %51, %50 : vector<2x32xf32>
    %cst_23 = arith.constant 1.000000e+00 : f32
    %53 = vector.broadcast %cst_23 : f32 to vector<2x1xf32>
    %54 = arith.subf %53, %18 : vector<2x1xf32>
    %55 = vector.broadcast %54 : vector<2x1xf32> to vector<2x32xf32>
    %56 = arith.mulf %55, %15 : vector<2x32xf32>
    %57 = arith.addf %52, %56 : vector<2x32xf32>
    %58 = vector.broadcast %18 : vector<2x1xf32> to vector<2x32xf32>
    %59 = arith.mulf %58, %50 : vector<2x32xf32>
    %c0_24 = arith.constant 0 : index
    %c0_25 = arith.constant 0 : index
    %c0_26 = arith.constant 0 : index
    %60 = vector.load %arg10[%c0_24, %c0_25, %c0_26] : memref<8x2x64xf32, #tpu.memory_space<vmem>>, vector<1x2x32xf32>
    %61 = vector.shape_cast %60 : vector<1x2x32xf32> to vector<2x32xf32>
    %62 = vector.shape_cast %59 : vector<2x32xf32> to vector<1x2x32xf32>
    tpu.vector_store %arg10[%c0_24, %c0_25, %c0_26], %62 {strides = array<i32>} : memref<8x2x64xf32, #tpu.memory_space<vmem>>, vector<1x2x32xf32>,
    %c7 = arith.constant 7 : index
    %c0_27 = arith.constant 0 : index
    %c0_28 = arith.constant 0 : index
    %63 = vector.load %arg1[%c7, %c0_27, %c0_28] : memref<8x2x1xf32, #tpu.memory_space<vmem>>, vector<1x2x1xf32>
    %64 = vector.shape_cast %63 : vector<1x2x1xf32> to vector<2x1xf32>
    %65 = arith.truncf %16 : vector<2x32xf32> to vector<2x32xbf16>
    %cst_29 = arith.constant dense<0.000000e+00> : vector<2x96xf32>
    %66 = tpu.matmul %65, %13, %cst_29 {dimension_numbers = #tpu.dot_dimension_numbers<[1], [0], [0], [1], [0, 0, 1, 1], [], []>} : vector<2x32xbf16>, vector<32x96xbf16>, vector<2x96xf32> -> vector<2x96xf32>
    %67 = vector.broadcast %14 : vector<1x96xf32> to vector<2x96xf32>
    %68 = arith.addf %66, %67 : vector<2x96xf32>
    %69 = vector.extract_strided_slice %10 {offsets = [7, 0, 0], sizes = [1, 2, 96], strides = [1, 1, 1]} : vector<8x2x96xf32> to vector<1x2x96xf32>
    %70 = vector.shape_cast %69 : vector<1x2x96xf32> to vector<2x96xf32>
    %71 = vector.extract_strided_slice %70 {offsets = [0, 0], sizes = [2, 32], strides = [1, 1]} : vector<2x96xf32> to vector<2x32xf32>
    %72 = vector.extract_strided_slice %68 {offsets = [0, 0], sizes = [2, 32], strides = [1, 1]} : vector<2x96xf32> to vector<2x32xf32>
    %73 = arith.addf %71, %72 : vector<2x32xf32>
    %74 = arith.negf %73 : vector<2x32xf32>
    %75 = math.exp %74 : vector<2x32xf32>
    %cst_30 = arith.constant 1.000000e+00 : f32
    %76 = vector.broadcast %cst_30 : f32 to vector<2x32xf32>
    %77 = arith.addf %76, %75 : vector<2x32xf32>
    %78 = arith.divf %76, %77 : vector<2x32xf32>
    %79 = vector.extract_strided_slice %70 {offsets = [0, 32], sizes = [2, 32], strides = [1, 1]} : vector<2x96xf32> to vector<2x32xf32>
    %80 = vector.extract_strided_slice %68 {offsets = [0, 32], sizes = [2, 32], strides = [1, 1]} : vector<2x96xf32> to vector<2x32xf32>
    %81 = arith.addf %79, %80 : vector<2x32xf32>
    %82 = arith.negf %81 : vector<2x32xf32>
    %83 = math.exp %82 : vector<2x32xf32>
    %cst_31 = arith.constant 1.000000e+00 : f32
    %84 = vector.broadcast %cst_31 : f32 to vector<2x32xf32>
    %85 = arith.addf %84, %83 : vector<2x32xf32>
    %86 = arith.divf %84, %85 : vector<2x32xf32>
    %87 = vector.extract_strided_slice %70 {offsets = [0, 64], sizes = [2, 32], strides = [1, 1]} : vector<2x96xf32> to vector<2x32xf32>
    %88 = vector.extract_strided_slice %68 {offsets = [0, 64], sizes = [2, 32], strides = [1, 1]} : vector<2x96xf32> to vector<2x32xf32>
    %89 = arith.mulf %78, %88 : vector<2x32xf32>
    %90 = arith.addf %87, %89 : vector<2x32xf32>
    %91 = math.tanh %90 : vector<2x32xf32>
    %cst_32 = arith.constant 1.000000e+00 : f32
    %92 = vector.broadcast %cst_32 : f32 to vector<2x32xf32>
    %93 = arith.subf %92, %86 : vector<2x32xf32>
    %94 = arith.mulf %93, %91 : vector<2x32xf32>
    %95 = arith.mulf %86, %16 : vector<2x32xf32>
    %96 = arith.addf %94, %95 : vector<2x32xf32>
    %97 = vector.broadcast %64 : vector<2x1xf32> to vector<2x32xf32>
    %98 = arith.mulf %97, %96 : vector<2x32xf32>
    %cst_33 = arith.constant 1.000000e+00 : f32
    %99 = vector.broadcast %cst_33 : f32 to vector<2x1xf32>
    %100 = arith.subf %99, %64 : vector<2x1xf32>
    %101 = vector.broadcast %100 : vector<2x1xf32> to vector<2x32xf32>
    %102 = arith.mulf %101, %16 : vector<2x32xf32>
    %103 = arith.addf %98, %102 : vector<2x32xf32>
    %104 = vector.broadcast %64 : vector<2x1xf32> to vector<2x32xf32>
    %105 = arith.mulf %104, %96 : vector<2x32xf32>
    %c7_34 = arith.constant 7 : index
    %c0_35 = arith.constant 0 : index
    %c32 = arith.constant 32 : index
    %106 = vector.load %arg10[%c7_34, %c0_35, %c32] : memref<8x2x64xf32, #tpu.memory_space<vmem>>, vector<1x2x32xf32>
    %107 = vector.shape_cast %106 : vector<1x2x32xf32> to vector<2x32xf32>
    %108 = vector.shape_cast %105 : vector<2x32xf32> to vector<1x2x32xf32>
    tpu.vector_store %arg10[%c7_34, %c0_35, %c32], %108 {strides = array<i32>} : memref<8x2x64xf32, #tpu.memory_space<vmem>>, vector<1x2x32xf32>,
    %c1 = arith.constant 1 : index
    %c0_36 = arith.constant 0 : index
    %c0_37 = arith.constant 0 : index
    %109 = vector.load %arg1[%c1, %c0_36, %c0_37] : memref<8x2x1xf32, #tpu.memory_space<vmem>>, vector<1x2x1xf32>
    %110 = vector.shape_cast %109 : vector<1x2x1xf32> to vector<2x1xf32>
    %111 = arith.truncf %57 : vector<2x32xf32> to vector<2x32xbf16>
    %cst_38 = arith.constant dense<0.000000e+00> : vector<2x96xf32>
    %112 = tpu.matmul %111, %11, %cst_38 {dimension_numbers = #tpu.dot_dimension_numbers<[1], [0], [0], [1], [0, 0, 1, 1], [], []>} : vector<2x32xbf16>, vector<32x96xbf16>, vector<2x96xf32> -> vector<2x96xf32>
    %113 = vector.broadcast %12 : vector<1x96xf32> to vector<2x96xf32>
    %114 = arith.addf %112, %113 : vector<2x96xf32>
    %115 = vector.extract_strided_slice %8 {offsets = [1, 0, 0], sizes = [1, 2, 96], strides = [1, 1, 1]} : vector<8x2x96xf32> to vector<1x2x96xf32>
    %116 = vector.shape_cast %115 : vector<1x2x96xf32> to vector<2x96xf32>
    %117 = vector.extract_strided_slice %116 {offsets = [0, 0], sizes = [2, 32], strides = [1, 1]} : vector<2x96xf32> to vector<2x32xf32>
    %118 = vector.extract_strided_slice %114 {offsets = [0, 0], sizes = [2, 32], strides = [1, 1]} : vector<2x96xf32> to vector<2x32xf32>
    %119 = arith.addf %117, %118 : vector<2x32xf32>
    %120 = arith.negf %119 : vector<2x32xf32>
    %121 = math.exp %120 : vector<2x32xf32>
    %cst_39 = arith.constant 1.000000e+00 : f32
    %122 = vector.broadcast %cst_39 : f32 to vector<2x32xf32>
    %123 = arith.addf %122, %121 : vector<2x32xf32>
    %124 = arith.divf %122, %123 : vector<2x32xf32>
    %125 = vector.extract_strided_slice %116 {offsets = [0, 32], sizes = [2, 32], strides = [1, 1]} : vector<2x96xf32> to vector<2x32xf32>
    %126 = vector.extract_strided_slice %114 {offsets = [0, 32], sizes = [2, 32], strides = [1, 1]} : vector<2x96xf32> to vector<2x32xf32>
    %127 = arith.addf %125, %126 : vector<2x32xf32>
    %128 = arith.negf %127 : vector<2x32xf32>
    %129 = math.exp %128 : vector<2x32xf32>
    %cst_40 = arith.constant 1.000000e+00 : f32
    %130 = vector.broadcast %cst_40 : f32 to vector<2x32xf32>
    %131 = arith.addf %130, %129 : vector<2x32xf32>
    %132 = arith.divf %130, %131 : vector<2x32xf32>
    %133 = vector.extract_strided_slice %116 {offsets = [0, 64], sizes = [2, 32], strides = [1, 1]} : vector<2x96xf32> to vector<2x32xf32>
    %134 = vector.extract_strided_slice %114 {offsets = [0, 64], sizes = [2, 32], strides = [1, 1]} : vector<2x96xf32> to vector<2x32xf32>
    %135 = arith.mulf %124, %134 : vector<2x32xf32>
    %136 = arith.addf %133, %135 : vector<2x32xf32>
    %137 = math.tanh %136 : vector<2x32xf32>
    %cst_41 = arith.constant 1.000000e+00 : f32
    %138 = vector.broadcast %cst_41 : f32 to vector<2x32xf32>
    %139 = arith.subf %138, %132 : vector<2x32xf32>
    %140 = arith.mulf %139, %137 : vector<2x32xf32>
    %141 = arith.mulf %132, %57 : vector<2x32xf32>
    %142 = arith.addf %140, %141 : vector<2x32xf32>
    %143 = vector.broadcast %110 : vector<2x1xf32> to vector<2x32xf32>
    %144 = arith.mulf %143, %142 : vector<2x32xf32>
    %cst_42 = arith.constant 1.000000e+00 : f32
    %145 = vector.broadcast %cst_42 : f32 to vector<2x1xf32>
    %146 = arith.subf %145, %110 : vector<2x1xf32>
    %147 = vector.broadcast %146 : vector<2x1xf32> to vector<2x32xf32>
    %148 = arith.mulf %147, %57 : vector<2x32xf32>
    %149 = arith.addf %144, %148 : vector<2x32xf32>
    %150 = vector.broadcast %110 : vector<2x1xf32> to vector<2x32xf32>
    %151 = arith.mulf %150, %142 : vector<2x32xf32>
    %c1_43 = arith.constant 1 : index
    %c0_44 = arith.constant 0 : index
    %c0_45 = arith.constant 0 : index
    %152 = vector.load %arg10[%c1_43, %c0_44, %c0_45] : memref<8x2x64xf32, #tpu.memory_space<vmem>>, vector<1x2x32xf32>
    %153 = vector.shape_cast %152 : vector<1x2x32xf32> to vector<2x32xf32>
    %154 = vector.shape_cast %151 : vector<2x32xf32> to vector<1x2x32xf32>
    tpu.vector_store %arg10[%c1_43, %c0_44, %c0_45], %154 {strides = array<i32>} : memref<8x2x64xf32, #tpu.memory_space<vmem>>, vector<1x2x32xf32>,
    %c6 = arith.constant 6 : index
    %c0_46 = arith.constant 0 : index
    %c0_47 = arith.constant 0 : index
    %155 = vector.load %arg1[%c6, %c0_46, %c0_47] : memref<8x2x1xf32, #tpu.memory_space<vmem>>, vector<1x2x1xf32>
    %156 = vector.shape_cast %155 : vector<1x2x1xf32> to vector<2x1xf32>
    %157 = arith.truncf %103 : vector<2x32xf32> to vector<2x32xbf16>
    %cst_48 = arith.constant dense<0.000000e+00> : vector<2x96xf32>
    %158 = tpu.matmul %157, %13, %cst_48 {dimension_numbers = #tpu.dot_dimension_numbers<[1], [0], [0], [1], [0, 0, 1, 1], [], []>} : vector<2x32xbf16>, vector<32x96xbf16>, vector<2x96xf32> -> vector<2x96xf32>
    %159 = vector.broadcast %14 : vector<1x96xf32> to vector<2x96xf32>
    %160 = arith.addf %158, %159 : vector<2x96xf32>
    %161 = vector.extract_strided_slice %10 {offsets = [6, 0, 0], sizes = [1, 2, 96], strides = [1, 1, 1]} : vector<8x2x96xf32> to vector<1x2x96xf32>
    %162 = vector.shape_cast %161 : vector<1x2x96xf32> to vector<2x96xf32>
    %163 = vector.extract_strided_slice %162 {offsets = [0, 0], sizes = [2, 32], strides = [1, 1]} : vector<2x96xf32> to vector<2x32xf32>
    %164 = vector.extract_strided_slice %160 {offsets = [0, 0], sizes = [2, 32], strides = [1, 1]} : vector<2x96xf32> to vector<2x32xf32>
    %165 = arith.addf %163, %164 : vector<2x32xf32>
    %166 = arith.negf %165 : vector<2x32xf32>
    %167 = math.exp %166 : vector<2x32xf32>
    %cst_49 = arith.constant 1.000000e+00 : f32
    %168 = vector.broadcast %cst_49 : f32 to vector<2x32xf32>
    %169 = arith.addf %168, %167 : vector<2x32xf32>
    %170 = arith.divf %168, %169 : vector<2x32xf32>
    %171 = vector.extract_strided_slice %162 {offsets = [0, 32], sizes = [2, 32], strides = [1, 1]} : vector<2x96xf32> to vector<2x32xf32>
    %172 = vector.extract_strided_slice %160 {offsets = [0, 32], sizes = [2, 32], strides = [1, 1]} : vector<2x96xf32> to vector<2x32xf32>
    %173 = arith.addf %171, %172 : vector<2x32xf32>
    %174 = arith.negf %173 : vector<2x32xf32>
    %175 = math.exp %174 : vector<2x32xf32>
    %cst_50 = arith.constant 1.000000e+00 : f32
    %176 = vector.broadcast %cst_50 : f32 to vector<2x32xf32>
    %177 = arith.addf %176, %175 : vector<2x32xf32>
    %178 = arith.divf %176, %177 : vector<2x32xf32>
    %179 = vector.extract_strided_slice %162 {offsets = [0, 64], sizes = [2, 32], strides = [1, 1]} : vector<2x96xf32> to vector<2x32xf32>
    %180 = vector.extract_strided_slice %160 {offsets = [0, 64], sizes = [2, 32], strides = [1, 1]} : vector<2x96xf32> to vector<2x32xf32>
    %181 = arith.mulf %170, %180 : vector<2x32xf32>
    %182 = arith.addf %179, %181 : vector<2x32xf32>
    %183 = math.tanh %182 : vector<2x32xf32>
    %cst_51 = arith.constant 1.000000e+00 : f32
    %184 = vector.broadcast %cst_51 : f32 to vector<2x32xf32>
    %185 = arith.subf %184, %178 : vector<2x32xf32>
    %186 = arith.mulf %185, %183 : vector<2x32xf32>
    %187 = arith.mulf %178, %103 : vector<2x32xf32>
    %188 = arith.addf %186, %187 : vector<2x32xf32>
    %189 = vector.broadcast %156 : vector<2x1xf32> to vector<2x32xf32>
    %190 = arith.mulf %189, %188 : vector<2x32xf32>
    %cst_52 = arith.constant 1.000000e+00 : f32
    %191 = vector.broadcast %cst_52 : f32 to vector<2x1xf32>
    %192 = arith.subf %191, %156 : vector<2x1xf32>
    %193 = vector.broadcast %192 : vector<2x1xf32> to vector<2x32xf32>
    %194 = arith.mulf %193, %103 : vector<2x32xf32>
    %195 = arith.addf %190, %194 : vector<2x32xf32>
    %196 = vector.broadcast %156 : vector<2x1xf32> to vector<2x32xf32>
    %197 = arith.mulf %196, %188 : vector<2x32xf32>
    %c6_53 = arith.constant 6 : index
    %c0_54 = arith.constant 0 : index
    %c32_55 = arith.constant 32 : index
    %198 = vector.load %arg10[%c6_53, %c0_54, %c32_55] : memref<8x2x64xf32, #tpu.memory_space<vmem>>, vector<1x2x32xf32>
    %199 = vector.shape_cast %198 : vector<1x2x32xf32> to vector<2x32xf32>
    %200 = vector.shape_cast %197 : vector<2x32xf32> to vector<1x2x32xf32>
    tpu.vector_store %arg10[%c6_53, %c0_54, %c32_55], %200 {strides = array<i32>} : memref<8x2x64xf32, #tpu.memory_space<vmem>>, vector<1x2x32xf32>,
    %c2 = arith.constant 2 : index
    %c0_56 = arith.constant 0 : index
    %c0_57 = arith.constant 0 : index
    %201 = vector.load %arg1[%c2, %c0_56, %c0_57] : memref<8x2x1xf32, #tpu.memory_space<vmem>>, vector<1x2x1xf32>
    %202 = vector.shape_cast %201 : vector<1x2x1xf32> to vector<2x1xf32>
    %203 = arith.truncf %149 : vector<2x32xf32> to vector<2x32xbf16>
    %cst_58 = arith.constant dense<0.000000e+00> : vector<2x96xf32>
    %204 = tpu.matmul %203, %11, %cst_58 {dimension_numbers = #tpu.dot_dimension_numbers<[1], [0], [0], [1], [0, 0, 1, 1], [], []>} : vector<2x32xbf16>, vector<32x96xbf16>, vector<2x96xf32> -> vector<2x96xf32>
    %205 = vector.broadcast %12 : vector<1x96xf32> to vector<2x96xf32>
    %206 = arith.addf %204, %205 : vector<2x96xf32>
    %207 = vector.extract_strided_slice %8 {offsets = [2, 0, 0], sizes = [1, 2, 96], strides = [1, 1, 1]} : vector<8x2x96xf32> to vector<1x2x96xf32>
    %208 = vector.shape_cast %207 : vector<1x2x96xf32> to vector<2x96xf32>
    %209 = vector.extract_strided_slice %208 {offsets = [0, 0], sizes = [2, 32], strides = [1, 1]} : vector<2x96xf32> to vector<2x32xf32>
    %210 = vector.extract_strided_slice %206 {offsets = [0, 0], sizes = [2, 32], strides = [1, 1]} : vector<2x96xf32> to vector<2x32xf32>
    %211 = arith.addf %209, %210 : vector<2x32xf32>
    %212 = arith.negf %211 : vector<2x32xf32>
    %213 = math.exp %212 : vector<2x32xf32>
    %cst_59 = arith.constant 1.000000e+00 : f32
    %214 = vector.broadcast %cst_59 : f32 to vector<2x32xf32>
    %215 = arith.addf %214, %213 : vector<2x32xf32>
    %216 = arith.divf %214, %215 : vector<2x32xf32>
    %217 = vector.extract_strided_slice %208 {offsets = [0, 32], sizes = [2, 32], strides = [1, 1]} : vector<2x96xf32> to vector<2x32xf32>
    %218 = vector.extract_strided_slice %206 {offsets = [0, 32], sizes = [2, 32], strides = [1, 1]} : vector<2x96xf32> to vector<2x32xf32>
    %219 = arith.addf %217, %218 : vector<2x32xf32>
    %220 = arith.negf %219 : vector<2x32xf32>
    %221 = math.exp %220 : vector<2x32xf32>
    %cst_60 = arith.constant 1.000000e+00 : f32
    %222 = vector.broadcast %cst_60 : f32 to vector<2x32xf32>
    %223 = arith.addf %222, %221 : vector<2x32xf32>
    %224 = arith.divf %222, %223 : vector<2x32xf32>
    %225 = vector.extract_strided_slice %208 {offsets = [0, 64], sizes = [2, 32], strides = [1, 1]} : vector<2x96xf32> to vector<2x32xf32>
    %226 = vector.extract_strided_slice %206 {offsets = [0, 64], sizes = [2, 32], strides = [1, 1]} : vector<2x96xf32> to vector<2x32xf32>
    %227 = arith.mulf %216, %226 : vector<2x32xf32>
    %228 = arith.addf %225, %227 : vector<2x32xf32>
    %229 = math.tanh %228 : vector<2x32xf32>
    %cst_61 = arith.constant 1.000000e+00 : f32
    %230 = vector.broadcast %cst_61 : f32 to vector<2x32xf32>
    %231 = arith.subf %230, %224 : vector<2x32xf32>
    %232 = arith.mulf %231, %229 : vector<2x32xf32>
    %233 = arith.mulf %224, %149 : vector<2x32xf32>
    %234 = arith.addf %232, %233 : vector<2x32xf32>
    %235 = vector.broadcast %202 : vector<2x1xf32> to vector<2x32xf32>
    %236 = arith.mulf %235, %234 : vector<2x32xf32>
    %cst_62 = arith.constant 1.000000e+00 : f32
    %237 = vector.broadcast %cst_62 : f32 to vector<2x1xf32>
    %238 = arith.subf %237, %202 : vector<2x1xf32>
    %239 = vector.broadcast %238 : vector<2x1xf32> to vector<2x32xf32>
    %240 = arith.mulf %239, %149 : vector<2x32xf32>
    %241 = arith.addf %236, %240 : vector<2x32xf32>
    %242 = vector.broadcast %202 : vector<2x1xf32> to vector<2x32xf32>
    %243 = arith.mulf %242, %234 : vector<2x32xf32>
    %c2_63 = arith.constant 2 : index
    %c0_64 = arith.constant 0 : index
    %c0_65 = arith.constant 0 : index
    %244 = vector.load %arg10[%c2_63, %c0_64, %c0_65] : memref<8x2x64xf32, #tpu.memory_space<vmem>>, vector<1x2x32xf32>
    %245 = vector.shape_cast %244 : vector<1x2x32xf32> to vector<2x32xf32>
    %246 = vector.shape_cast %243 : vector<2x32xf32> to vector<1x2x32xf32>
    tpu.vector_store %arg10[%c2_63, %c0_64, %c0_65], %246 {strides = array<i32>} : memref<8x2x64xf32, #tpu.memory_space<vmem>>, vector<1x2x32xf32>,
    %c5 = arith.constant 5 : index
    %c0_66 = arith.constant 0 : index
    %c0_67 = arith.constant 0 : index
    %247 = vector.load %arg1[%c5, %c0_66, %c0_67] : memref<8x2x1xf32, #tpu.memory_space<vmem>>, vector<1x2x1xf32>
    %248 = vector.shape_cast %247 : vector<1x2x1xf32> to vector<2x1xf32>
    %249 = arith.truncf %195 : vector<2x32xf32> to vector<2x32xbf16>
    %cst_68 = arith.constant dense<0.000000e+00> : vector<2x96xf32>
    %250 = tpu.matmul %249, %13, %cst_68 {dimension_numbers = #tpu.dot_dimension_numbers<[1], [0], [0], [1], [0, 0, 1, 1], [], []>} : vector<2x32xbf16>, vector<32x96xbf16>, vector<2x96xf32> -> vector<2x96xf32>
    %251 = vector.broadcast %14 : vector<1x96xf32> to vector<2x96xf32>
    %252 = arith.addf %250, %251 : vector<2x96xf32>
    %253 = vector.extract_strided_slice %10 {offsets = [5, 0, 0], sizes = [1, 2, 96], strides = [1, 1, 1]} : vector<8x2x96xf32> to vector<1x2x96xf32>
    %254 = vector.shape_cast %253 : vector<1x2x96xf32> to vector<2x96xf32>
    %255 = vector.extract_strided_slice %254 {offsets = [0, 0], sizes = [2, 32], strides = [1, 1]} : vector<2x96xf32> to vector<2x32xf32>
    %256 = vector.extract_strided_slice %252 {offsets = [0, 0], sizes = [2, 32], strides = [1, 1]} : vector<2x96xf32> to vector<2x32xf32>
    %257 = arith.addf %255, %256 : vector<2x32xf32>
    %258 = arith.negf %257 : vector<2x32xf32>
    %259 = math.exp %258 : vector<2x32xf32>
    %cst_69 = arith.constant 1.000000e+00 : f32
    %260 = vector.broadcast %cst_69 : f32 to vector<2x32xf32>
    %261 = arith.addf %260, %259 : vector<2x32xf32>
    %262 = arith.divf %260, %261 : vector<2x32xf32>
    %263 = vector.extract_strided_slice %254 {offsets = [0, 32], sizes = [2, 32], strides = [1, 1]} : vector<2x96xf32> to vector<2x32xf32>
    %264 = vector.extract_strided_slice %252 {offsets = [0, 32], sizes = [2, 32], strides = [1, 1]} : vector<2x96xf32> to vector<2x32xf32>
    %265 = arith.addf %263, %264 : vector<2x32xf32>
    %266 = arith.negf %265 : vector<2x32xf32>
    %267 = math.exp %266 : vector<2x32xf32>
    %cst_70 = arith.constant 1.000000e+00 : f32
    %268 = vector.broadcast %cst_70 : f32 to vector<2x32xf32>
    %269 = arith.addf %268, %267 : vector<2x32xf32>
    %270 = arith.divf %268, %269 : vector<2x32xf32>
    %271 = vector.extract_strided_slice %254 {offsets = [0, 64], sizes = [2, 32], strides = [1, 1]} : vector<2x96xf32> to vector<2x32xf32>
    %272 = vector.extract_strided_slice %252 {offsets = [0, 64], sizes = [2, 32], strides = [1, 1]} : vector<2x96xf32> to vector<2x32xf32>
    %273 = arith.mulf %262, %272 : vector<2x32xf32>
    %274 = arith.addf %271, %273 : vector<2x32xf32>
    %275 = math.tanh %274 : vector<2x32xf32>
    %cst_71 = arith.constant 1.000000e+00 : f32
    %276 = vector.broadcast %cst_71 : f32 to vector<2x32xf32>
    %277 = arith.subf %276, %270 : vector<2x32xf32>
    %278 = arith.mulf %277, %275 : vector<2x32xf32>
    %279 = arith.mulf %270, %195 : vector<2x32xf32>
    %280 = arith.addf %278, %279 : vector<2x32xf32>
    %281 = vector.broadcast %248 : vector<2x1xf32> to vector<2x32xf32>
    %282 = arith.mulf %281, %280 : vector<2x32xf32>
    %cst_72 = arith.constant 1.000000e+00 : f32
    %283 = vector.broadcast %cst_72 : f32 to vector<2x1xf32>
    %284 = arith.subf %283, %248 : vector<2x1xf32>
    %285 = vector.broadcast %284 : vector<2x1xf32> to vector<2x32xf32>
    %286 = arith.mulf %285, %195 : vector<2x32xf32>
    %287 = arith.addf %282, %286 : vector<2x32xf32>
    %288 = vector.broadcast %248 : vector<2x1xf32> to vector<2x32xf32>
    %289 = arith.mulf %288, %280 : vector<2x32xf32>
    %c5_73 = arith.constant 5 : index
    %c0_74 = arith.constant 0 : index
    %c32_75 = arith.constant 32 : index
    %290 = vector.load %arg10[%c5_73, %c0_74, %c32_75] : memref<8x2x64xf32, #tpu.memory_space<vmem>>, vector<1x2x32xf32>
    %291 = vector.shape_cast %290 : vector<1x2x32xf32> to vector<2x32xf32>
    %292 = vector.shape_cast %289 : vector<2x32xf32> to vector<1x2x32xf32>
    tpu.vector_store %arg10[%c5_73, %c0_74, %c32_75], %292 {strides = array<i32>} : memref<8x2x64xf32, #tpu.memory_space<vmem>>, vector<1x2x32xf32>,
    %c3 = arith.constant 3 : index
    %c0_76 = arith.constant 0 : index
    %c0_77 = arith.constant 0 : index
    %293 = vector.load %arg1[%c3, %c0_76, %c0_77] : memref<8x2x1xf32, #tpu.memory_space<vmem>>, vector<1x2x1xf32>
    %294 = vector.shape_cast %293 : vector<1x2x1xf32> to vector<2x1xf32>
    %295 = arith.truncf %241 : vector<2x32xf32> to vector<2x32xbf16>
    %cst_78 = arith.constant dense<0.000000e+00> : vector<2x96xf32>
    %296 = tpu.matmul %295, %11, %cst_78 {dimension_numbers = #tpu.dot_dimension_numbers<[1], [0], [0], [1], [0, 0, 1, 1], [], []>} : vector<2x32xbf16>, vector<32x96xbf16>, vector<2x96xf32> -> vector<2x96xf32>
    %297 = vector.broadcast %12 : vector<1x96xf32> to vector<2x96xf32>
    %298 = arith.addf %296, %297 : vector<2x96xf32>
    %299 = vector.extract_strided_slice %8 {offsets = [3, 0, 0], sizes = [1, 2, 96], strides = [1, 1, 1]} : vector<8x2x96xf32> to vector<1x2x96xf32>
    %300 = vector.shape_cast %299 : vector<1x2x96xf32> to vector<2x96xf32>
    %301 = vector.extract_strided_slice %300 {offsets = [0, 0], sizes = [2, 32], strides = [1, 1]} : vector<2x96xf32> to vector<2x32xf32>
    %302 = vector.extract_strided_slice %298 {offsets = [0, 0], sizes = [2, 32], strides = [1, 1]} : vector<2x96xf32> to vector<2x32xf32>
    %303 = arith.addf %301, %302 : vector<2x32xf32>
    %304 = arith.negf %303 : vector<2x32xf32>
    %305 = math.exp %304 : vector<2x32xf32>
    %cst_79 = arith.constant 1.000000e+00 : f32
    %306 = vector.broadcast %cst_79 : f32 to vector<2x32xf32>
    %307 = arith.addf %306, %305 : vector<2x32xf32>
    %308 = arith.divf %306, %307 : vector<2x32xf32>
    %309 = vector.extract_strided_slice %300 {offsets = [0, 32], sizes = [2, 32], strides = [1, 1]} : vector<2x96xf32> to vector<2x32xf32>
    %310 = vector.extract_strided_slice %298 {offsets = [0, 32], sizes = [2, 32], strides = [1, 1]} : vector<2x96xf32> to vector<2x32xf32>
    %311 = arith.addf %309, %310 : vector<2x32xf32>
    %312 = arith.negf %311 : vector<2x32xf32>
    %313 = math.exp %312 : vector<2x32xf32>
    %cst_80 = arith.constant 1.000000e+00 : f32
    %314 = vector.broadcast %cst_80 : f32 to vector<2x32xf32>
    %315 = arith.addf %314, %313 : vector<2x32xf32>
    %316 = arith.divf %314, %315 : vector<2x32xf32>
    %317 = vector.extract_strided_slice %300 {offsets = [0, 64], sizes = [2, 32], strides = [1, 1]} : vector<2x96xf32> to vector<2x32xf32>
    %318 = vector.extract_strided_slice %298 {offsets = [0, 64], sizes = [2, 32], strides = [1, 1]} : vector<2x96xf32> to vector<2x32xf32>
    %319 = arith.mulf %308, %318 : vector<2x32xf32>
    %320 = arith.addf %317, %319 : vector<2x32xf32>
    %321 = math.tanh %320 : vector<2x32xf32>
    %cst_81 = arith.constant 1.000000e+00 : f32
    %322 = vector.broadcast %cst_81 : f32 to vector<2x32xf32>
    %323 = arith.subf %322, %316 : vector<2x32xf32>
    %324 = arith.mulf %323, %321 : vector<2x32xf32>
    %325 = arith.mulf %316, %241 : vector<2x32xf32>
    %326 = arith.addf %324, %325 : vector<2x32xf32>
    %327 = vector.broadcast %294 : vector<2x1xf32> to vector<2x32xf32>
    %328 = arith.mulf %327, %326 : vector<2x32xf32>
    %cst_82 = arith.constant 1.000000e+00 : f32
    %329 = vector.broadcast %cst_82 : f32 to vector<2x1xf32>
    %330 = arith.subf %329, %294 : vector<2x1xf32>
    %331 = vector.broadcast %330 : vector<2x1xf32> to vector<2x32xf32>
    %332 = arith.mulf %331, %241 : vector<2x32xf32>
    %333 = arith.addf %328, %332 : vector<2x32xf32>
    %334 = vector.broadcast %294 : vector<2x1xf32> to vector<2x32xf32>
    %335 = arith.mulf %334, %326 : vector<2x32xf32>
    %c3_83 = arith.constant 3 : index
    %c0_84 = arith.constant 0 : index
    %c0_85 = arith.constant 0 : index
    %336 = vector.load %arg10[%c3_83, %c0_84, %c0_85] : memref<8x2x64xf32, #tpu.memory_space<vmem>>, vector<1x2x32xf32>
    %337 = vector.shape_cast %336 : vector<1x2x32xf32> to vector<2x32xf32>
    %338 = vector.shape_cast %335 : vector<2x32xf32> to vector<1x2x32xf32>
    tpu.vector_store %arg10[%c3_83, %c0_84, %c0_85], %338 {strides = array<i32>} : memref<8x2x64xf32, #tpu.memory_space<vmem>>, vector<1x2x32xf32>,
    %c4 = arith.constant 4 : index
    %c0_86 = arith.constant 0 : index
    %c0_87 = arith.constant 0 : index
    %339 = vector.load %arg1[%c4, %c0_86, %c0_87] : memref<8x2x1xf32, #tpu.memory_space<vmem>>, vector<1x2x1xf32>
    %340 = vector.shape_cast %339 : vector<1x2x1xf32> to vector<2x1xf32>
    %341 = arith.truncf %287 : vector<2x32xf32> to vector<2x32xbf16>
    %cst_88 = arith.constant dense<0.000000e+00> : vector<2x96xf32>
    %342 = tpu.matmul %341, %13, %cst_88 {dimension_numbers = #tpu.dot_dimension_numbers<[1], [0], [0], [1], [0, 0, 1, 1], [], []>} : vector<2x32xbf16>, vector<32x96xbf16>, vector<2x96xf32> -> vector<2x96xf32>
    %343 = vector.broadcast %14 : vector<1x96xf32> to vector<2x96xf32>
    %344 = arith.addf %342, %343 : vector<2x96xf32>
    %345 = vector.extract_strided_slice %10 {offsets = [4, 0, 0], sizes = [1, 2, 96], strides = [1, 1, 1]} : vector<8x2x96xf32> to vector<1x2x96xf32>
    %346 = vector.shape_cast %345 : vector<1x2x96xf32> to vector<2x96xf32>
    %347 = vector.extract_strided_slice %346 {offsets = [0, 0], sizes = [2, 32], strides = [1, 1]} : vector<2x96xf32> to vector<2x32xf32>
    %348 = vector.extract_strided_slice %344 {offsets = [0, 0], sizes = [2, 32], strides = [1, 1]} : vector<2x96xf32> to vector<2x32xf32>
    %349 = arith.addf %347, %348 : vector<2x32xf32>
    %350 = arith.negf %349 : vector<2x32xf32>
    %351 = math.exp %350 : vector<2x32xf32>
    %cst_89 = arith.constant 1.000000e+00 : f32
    %352 = vector.broadcast %cst_89 : f32 to vector<2x32xf32>
    %353 = arith.addf %352, %351 : vector<2x32xf32>
    %354 = arith.divf %352, %353 : vector<2x32xf32>
    %355 = vector.extract_strided_slice %346 {offsets = [0, 32], sizes = [2, 32], strides = [1, 1]} : vector<2x96xf32> to vector<2x32xf32>
    %356 = vector.extract_strided_slice %344 {offsets = [0, 32], sizes = [2, 32], strides = [1, 1]} : vector<2x96xf32> to vector<2x32xf32>
    %357 = arith.addf %355, %356 : vector<2x32xf32>
    %358 = arith.negf %357 : vector<2x32xf32>
    %359 = math.exp %358 : vector<2x32xf32>
    %cst_90 = arith.constant 1.000000e+00 : f32
    %360 = vector.broadcast %cst_90 : f32 to vector<2x32xf32>
    %361 = arith.addf %360, %359 : vector<2x32xf32>
    %362 = arith.divf %360, %361 : vector<2x32xf32>
    %363 = vector.extract_strided_slice %346 {offsets = [0, 64], sizes = [2, 32], strides = [1, 1]} : vector<2x96xf32> to vector<2x32xf32>
    %364 = vector.extract_strided_slice %344 {offsets = [0, 64], sizes = [2, 32], strides = [1, 1]} : vector<2x96xf32> to vector<2x32xf32>
    %365 = arith.mulf %354, %364 : vector<2x32xf32>
    %366 = arith.addf %363, %365 : vector<2x32xf32>
    %367 = math.tanh %366 : vector<2x32xf32>
    %cst_91 = arith.constant 1.000000e+00 : f32
    %368 = vector.broadcast %cst_91 : f32 to vector<2x32xf32>
    %369 = arith.subf %368, %362 : vector<2x32xf32>
    %370 = arith.mulf %369, %367 : vector<2x32xf32>
    %371 = arith.mulf %362, %287 : vector<2x32xf32>
    %372 = arith.addf %370, %371 : vector<2x32xf32>
    %373 = vector.broadcast %340 : vector<2x1xf32> to vector<2x32xf32>
    %374 = arith.mulf %373, %372 : vector<2x32xf32>
    %cst_92 = arith.constant 1.000000e+00 : f32
    %375 = vector.broadcast %cst_92 : f32 to vector<2x1xf32>
    %376 = arith.subf %375, %340 : vector<2x1xf32>
    %377 = vector.broadcast %376 : vector<2x1xf32> to vector<2x32xf32>
    %378 = arith.mulf %377, %287 : vector<2x32xf32>
    %379 = arith.addf %374, %378 : vector<2x32xf32>
    %380 = vector.broadcast %340 : vector<2x1xf32> to vector<2x32xf32>
    %381 = arith.mulf %380, %372 : vector<2x32xf32>
    %c4_93 = arith.constant 4 : index
    %c0_94 = arith.constant 0 : index
    %c32_95 = arith.constant 32 : index
    %382 = vector.load %arg10[%c4_93, %c0_94, %c32_95] : memref<8x2x64xf32, #tpu.memory_space<vmem>>, vector<1x2x32xf32>
    %383 = vector.shape_cast %382 : vector<1x2x32xf32> to vector<2x32xf32>
    %384 = vector.shape_cast %381 : vector<2x32xf32> to vector<1x2x32xf32>
    tpu.vector_store %arg10[%c4_93, %c0_94, %c32_95], %384 {strides = array<i32>} : memref<8x2x64xf32, #tpu.memory_space<vmem>>, vector<1x2x32xf32>,
    %c4_96 = arith.constant 4 : index
    %c0_97 = arith.constant 0 : index
    %c0_98 = arith.constant 0 : index
    %385 = vector.load %arg1[%c4_96, %c0_97, %c0_98] : memref<8x2x1xf32, #tpu.memory_space<vmem>>, vector<1x2x1xf32>
    %386 = vector.shape_cast %385 : vector<1x2x1xf32> to vector<2x1xf32>
    %387 = arith.truncf %333 : vector<2x32xf32> to vector<2x32xbf16>
    %cst_99 = arith.constant dense<0.000000e+00> : vector<2x96xf32>
    %388 = tpu.matmul %387, %11, %cst_99 {dimension_numbers = #tpu.dot_dimension_numbers<[1], [0], [0], [1], [0, 0, 1, 1], [], []>} : vector<2x32xbf16>, vector<32x96xbf16>, vector<2x96xf32> -> vector<2x96xf32>
    %389 = vector.broadcast %12 : vector<1x96xf32> to vector<2x96xf32>
    %390 = arith.addf %388, %389 : vector<2x96xf32>
    %391 = vector.extract_strided_slice %8 {offsets = [4, 0, 0], sizes = [1, 2, 96], strides = [1, 1, 1]} : vector<8x2x96xf32> to vector<1x2x96xf32>
    %392 = vector.shape_cast %391 : vector<1x2x96xf32> to vector<2x96xf32>
    %393 = vector.extract_strided_slice %392 {offsets = [0, 0], sizes = [2, 32], strides = [1, 1]} : vector<2x96xf32> to vector<2x32xf32>
    %394 = vector.extract_strided_slice %390 {offsets = [0, 0], sizes = [2, 32], strides = [1, 1]} : vector<2x96xf32> to vector<2x32xf32>
    %395 = arith.addf %393, %394 : vector<2x32xf32>
    %396 = arith.negf %395 : vector<2x32xf32>
    %397 = math.exp %396 : vector<2x32xf32>
    %cst_100 = arith.constant 1.000000e+00 : f32
    %398 = vector.broadcast %cst_100 : f32 to vector<2x32xf32>
    %399 = arith.addf %398, %397 : vector<2x32xf32>
    %400 = arith.divf %398, %399 : vector<2x32xf32>
    %401 = vector.extract_strided_slice %392 {offsets = [0, 32], sizes = [2, 32], strides = [1, 1]} : vector<2x96xf32> to vector<2x32xf32>
    %402 = vector.extract_strided_slice %390 {offsets = [0, 32], sizes = [2, 32], strides = [1, 1]} : vector<2x96xf32> to vector<2x32xf32>
    %403 = arith.addf %401, %402 : vector<2x32xf32>
    %404 = arith.negf %403 : vector<2x32xf32>
    %405 = math.exp %404 : vector<2x32xf32>
    %cst_101 = arith.constant 1.000000e+00 : f32
    %406 = vector.broadcast %cst_101 : f32 to vector<2x32xf32>
    %407 = arith.addf %406, %405 : vector<2x32xf32>
    %408 = arith.divf %406, %407 : vector<2x32xf32>
    %409 = vector.extract_strided_slice %392 {offsets = [0, 64], sizes = [2, 32], strides = [1, 1]} : vector<2x96xf32> to vector<2x32xf32>
    %410 = vector.extract_strided_slice %390 {offsets = [0, 64], sizes = [2, 32], strides = [1, 1]} : vector<2x96xf32> to vector<2x32xf32>
    %411 = arith.mulf %400, %410 : vector<2x32xf32>
    %412 = arith.addf %409, %411 : vector<2x32xf32>
    %413 = math.tanh %412 : vector<2x32xf32>
    %cst_102 = arith.constant 1.000000e+00 : f32
    %414 = vector.broadcast %cst_102 : f32 to vector<2x32xf32>
    %415 = arith.subf %414, %408 : vector<2x32xf32>
    %416 = arith.mulf %415, %413 : vector<2x32xf32>
    %417 = arith.mulf %408, %333 : vector<2x32xf32>
    %418 = arith.addf %416, %417 : vector<2x32xf32>
    %419 = vector.broadcast %386 : vector<2x1xf32> to vector<2x32xf32>
    %420 = arith.mulf %419, %418 : vector<2x32xf32>
    %cst_103 = arith.constant 1.000000e+00 : f32
    %421 = vector.broadcast %cst_103 : f32 to vector<2x1xf32>
    %422 = arith.subf %421, %386 : vector<2x1xf32>
    %423 = vector.broadcast %422 : vector<2x1xf32> to vector<2x32xf32>
    %424 = arith.mulf %423, %333 : vector<2x32xf32>
    %425 = arith.addf %420, %424 : vector<2x32xf32>
    %426 = vector.broadcast %386 : vector<2x1xf32> to vector<2x32xf32>
    %427 = arith.mulf %426, %418 : vector<2x32xf32>
    %c4_104 = arith.constant 4 : index
    %c0_105 = arith.constant 0 : index
    %c0_106 = arith.constant 0 : index
    %428 = vector.load %arg10[%c4_104, %c0_105, %c0_106] : memref<8x2x64xf32, #tpu.memory_space<vmem>>, vector<1x2x32xf32>
    %429 = vector.shape_cast %428 : vector<1x2x32xf32> to vector<2x32xf32>
    %430 = vector.shape_cast %427 : vector<2x32xf32> to vector<1x2x32xf32>
    tpu.vector_store %arg10[%c4_104, %c0_105, %c0_106], %430 {strides = array<i32>} : memref<8x2x64xf32, #tpu.memory_space<vmem>>, vector<1x2x32xf32>,
    %c3_107 = arith.constant 3 : index
    %c0_108 = arith.constant 0 : index
    %c0_109 = arith.constant 0 : index
    %431 = vector.load %arg1[%c3_107, %c0_108, %c0_109] : memref<8x2x1xf32, #tpu.memory_space<vmem>>, vector<1x2x1xf32>
    %432 = vector.shape_cast %431 : vector<1x2x1xf32> to vector<2x1xf32>
    %433 = arith.truncf %379 : vector<2x32xf32> to vector<2x32xbf16>
    %cst_110 = arith.constant dense<0.000000e+00> : vector<2x96xf32>
    %434 = tpu.matmul %433, %13, %cst_110 {dimension_numbers = #tpu.dot_dimension_numbers<[1], [0], [0], [1], [0, 0, 1, 1], [], []>} : vector<2x32xbf16>, vector<32x96xbf16>, vector<2x96xf32> -> vector<2x96xf32>
    %435 = vector.broadcast %14 : vector<1x96xf32> to vector<2x96xf32>
    %436 = arith.addf %434, %435 : vector<2x96xf32>
    %437 = vector.extract_strided_slice %10 {offsets = [3, 0, 0], sizes = [1, 2, 96], strides = [1, 1, 1]} : vector<8x2x96xf32> to vector<1x2x96xf32>
    %438 = vector.shape_cast %437 : vector<1x2x96xf32> to vector<2x96xf32>
    %439 = vector.extract_strided_slice %438 {offsets = [0, 0], sizes = [2, 32], strides = [1, 1]} : vector<2x96xf32> to vector<2x32xf32>
    %440 = vector.extract_strided_slice %436 {offsets = [0, 0], sizes = [2, 32], strides = [1, 1]} : vector<2x96xf32> to vector<2x32xf32>
    %441 = arith.addf %439, %440 : vector<2x32xf32>
    %442 = arith.negf %441 : vector<2x32xf32>
    %443 = math.exp %442 : vector<2x32xf32>
    %cst_111 = arith.constant 1.000000e+00 : f32
    %444 = vector.broadcast %cst_111 : f32 to vector<2x32xf32>
    %445 = arith.addf %444, %443 : vector<2x32xf32>
    %446 = arith.divf %444, %445 : vector<2x32xf32>
    %447 = vector.extract_strided_slice %438 {offsets = [0, 32], sizes = [2, 32], strides = [1, 1]} : vector<2x96xf32> to vector<2x32xf32>
    %448 = vector.extract_strided_slice %436 {offsets = [0, 32], sizes = [2, 32], strides = [1, 1]} : vector<2x96xf32> to vector<2x32xf32>
    %449 = arith.addf %447, %448 : vector<2x32xf32>
    %450 = arith.negf %449 : vector<2x32xf32>
    %451 = math.exp %450 : vector<2x32xf32>
    %cst_112 = arith.constant 1.000000e+00 : f32
    %452 = vector.broadcast %cst_112 : f32 to vector<2x32xf32>
    %453 = arith.addf %452, %451 : vector<2x32xf32>
    %454 = arith.divf %452, %453 : vector<2x32xf32>
    %455 = vector.extract_strided_slice %438 {offsets = [0, 64], sizes = [2, 32], strides = [1, 1]} : vector<2x96xf32> to vector<2x32xf32>
    %456 = vector.extract_strided_slice %436 {offsets = [0, 64], sizes = [2, 32], strides = [1, 1]} : vector<2x96xf32> to vector<2x32xf32>
    %457 = arith.mulf %446, %456 : vector<2x32xf32>
    %458 = arith.addf %455, %457 : vector<2x32xf32>
    %459 = math.tanh %458 : vector<2x32xf32>
    %cst_113 = arith.constant 1.000000e+00 : f32
    %460 = vector.broadcast %cst_113 : f32 to vector<2x32xf32>
    %461 = arith.subf %460, %454 : vector<2x32xf32>
    %462 = arith.mulf %461, %459 : vector<2x32xf32>
    %463 = arith.mulf %454, %379 : vector<2x32xf32>
    %464 = arith.addf %462, %463 : vector<2x32xf32>
    %465 = vector.broadcast %432 : vector<2x1xf32> to vector<2x32xf32>
    %466 = arith.mulf %465, %464 : vector<2x32xf32>
    %cst_114 = arith.constant 1.000000e+00 : f32
    %467 = vector.broadcast %cst_114 : f32 to vector<2x1xf32>
    %468 = arith.subf %467, %432 : vector<2x1xf32>
    %469 = vector.broadcast %468 : vector<2x1xf32> to vector<2x32xf32>
    %470 = arith.mulf %469, %379 : vector<2x32xf32>
    %471 = arith.addf %466, %470 : vector<2x32xf32>
    %472 = vector.broadcast %432 : vector<2x1xf32> to vector<2x32xf32>
    %473 = arith.mulf %472, %464 : vector<2x32xf32>
    %c3_115 = arith.constant 3 : index
    %c0_116 = arith.constant 0 : index
    %c32_117 = arith.constant 32 : index
    %474 = vector.load %arg10[%c3_115, %c0_116, %c32_117] : memref<8x2x64xf32, #tpu.memory_space<vmem>>, vector<1x2x32xf32>
    %475 = vector.shape_cast %474 : vector<1x2x32xf32> to vector<2x32xf32>
    %476 = vector.shape_cast %473 : vector<2x32xf32> to vector<1x2x32xf32>
    tpu.vector_store %arg10[%c3_115, %c0_116, %c32_117], %476 {strides = array<i32>} : memref<8x2x64xf32, #tpu.memory_space<vmem>>, vector<1x2x32xf32>,
    %c5_118 = arith.constant 5 : index
    %c0_119 = arith.constant 0 : index
    %c0_120 = arith.constant 0 : index
    %477 = vector.load %arg1[%c5_118, %c0_119, %c0_120] : memref<8x2x1xf32, #tpu.memory_space<vmem>>, vector<1x2x1xf32>
    %478 = vector.shape_cast %477 : vector<1x2x1xf32> to vector<2x1xf32>
    %479 = arith.truncf %425 : vector<2x32xf32> to vector<2x32xbf16>
    %cst_121 = arith.constant dense<0.000000e+00> : vector<2x96xf32>
    %480 = tpu.matmul %479, %11, %cst_121 {dimension_numbers = #tpu.dot_dimension_numbers<[1], [0], [0], [1], [0, 0, 1, 1], [], []>} : vector<2x32xbf16>, vector<32x96xbf16>, vector<2x96xf32> -> vector<2x96xf32>
    %481 = vector.broadcast %12 : vector<1x96xf32> to vector<2x96xf32>
    %482 = arith.addf %480, %481 : vector<2x96xf32>
    %483 = vector.extract_strided_slice %8 {offsets = [5, 0, 0], sizes = [1, 2, 96], strides = [1, 1, 1]} : vector<8x2x96xf32> to vector<1x2x96xf32>
    %484 = vector.shape_cast %483 : vector<1x2x96xf32> to vector<2x96xf32>
    %485 = vector.extract_strided_slice %484 {offsets = [0, 0], sizes = [2, 32], strides = [1, 1]} : vector<2x96xf32> to vector<2x32xf32>
    %486 = vector.extract_strided_slice %482 {offsets = [0, 0], sizes = [2, 32], strides = [1, 1]} : vector<2x96xf32> to vector<2x32xf32>
    %487 = arith.addf %485, %486 : vector<2x32xf32>
    %488 = arith.negf %487 : vector<2x32xf32>
    %489 = math.exp %488 : vector<2x32xf32>
    %cst_122 = arith.constant 1.000000e+00 : f32
    %490 = vector.broadcast %cst_122 : f32 to vector<2x32xf32>
    %491 = arith.addf %490, %489 : vector<2x32xf32>
    %492 = arith.divf %490, %491 : vector<2x32xf32>
    %493 = vector.extract_strided_slice %484 {offsets = [0, 32], sizes = [2, 32], strides = [1, 1]} : vector<2x96xf32> to vector<2x32xf32>
    %494 = vector.extract_strided_slice %482 {offsets = [0, 32], sizes = [2, 32], strides = [1, 1]} : vector<2x96xf32> to vector<2x32xf32>
    %495 = arith.addf %493, %494 : vector<2x32xf32>
    %496 = arith.negf %495 : vector<2x32xf32>
    %497 = math.exp %496 : vector<2x32xf32>
    %cst_123 = arith.constant 1.000000e+00 : f32
    %498 = vector.broadcast %cst_123 : f32 to vector<2x32xf32>
    %499 = arith.addf %498, %497 : vector<2x32xf32>
    %500 = arith.divf %498, %499 : vector<2x32xf32>
    %501 = vector.extract_strided_slice %484 {offsets = [0, 64], sizes = [2, 32], strides = [1, 1]} : vector<2x96xf32> to vector<2x32xf32>
    %502 = vector.extract_strided_slice %482 {offsets = [0, 64], sizes = [2, 32], strides = [1, 1]} : vector<2x96xf32> to vector<2x32xf32>
    %503 = arith.mulf %492, %502 : vector<2x32xf32>
    %504 = arith.addf %501, %503 : vector<2x32xf32>
    %505 = math.tanh %504 : vector<2x32xf32>
    %cst_124 = arith.constant 1.000000e+00 : f32
    %506 = vector.broadcast %cst_124 : f32 to vector<2x32xf32>
    %507 = arith.subf %506, %500 : vector<2x32xf32>
    %508 = arith.mulf %507, %505 : vector<2x32xf32>
    %509 = arith.mulf %500, %425 : vector<2x32xf32>
    %510 = arith.addf %508, %509 : vector<2x32xf32>
    %511 = vector.broadcast %478 : vector<2x1xf32> to vector<2x32xf32>
    %512 = arith.mulf %511, %510 : vector<2x32xf32>
    %cst_125 = arith.constant 1.000000e+00 : f32
    %513 = vector.broadcast %cst_125 : f32 to vector<2x1xf32>
    %514 = arith.subf %513, %478 : vector<2x1xf32>
    %515 = vector.broadcast %514 : vector<2x1xf32> to vector<2x32xf32>
    %516 = arith.mulf %515, %425 : vector<2x32xf32>
    %517 = arith.addf %512, %516 : vector<2x32xf32>
    %518 = vector.broadcast %478 : vector<2x1xf32> to vector<2x32xf32>
    %519 = arith.mulf %518, %510 : vector<2x32xf32>
    %c5_126 = arith.constant 5 : index
    %c0_127 = arith.constant 0 : index
    %c0_128 = arith.constant 0 : index
    %520 = vector.load %arg10[%c5_126, %c0_127, %c0_128] : memref<8x2x64xf32, #tpu.memory_space<vmem>>, vector<1x2x32xf32>
    %521 = vector.shape_cast %520 : vector<1x2x32xf32> to vector<2x32xf32>
    %522 = vector.shape_cast %519 : vector<2x32xf32> to vector<1x2x32xf32>
    tpu.vector_store %arg10[%c5_126, %c0_127, %c0_128], %522 {strides = array<i32>} : memref<8x2x64xf32, #tpu.memory_space<vmem>>, vector<1x2x32xf32>,
    %c2_129 = arith.constant 2 : index
    %c0_130 = arith.constant 0 : index
    %c0_131 = arith.constant 0 : index
    %523 = vector.load %arg1[%c2_129, %c0_130, %c0_131] : memref<8x2x1xf32, #tpu.memory_space<vmem>>, vector<1x2x1xf32>
    %524 = vector.shape_cast %523 : vector<1x2x1xf32> to vector<2x1xf32>
    %525 = arith.truncf %471 : vector<2x32xf32> to vector<2x32xbf16>
    %cst_132 = arith.constant dense<0.000000e+00> : vector<2x96xf32>
    %526 = tpu.matmul %525, %13, %cst_132 {dimension_numbers = #tpu.dot_dimension_numbers<[1], [0], [0], [1], [0, 0, 1, 1], [], []>} : vector<2x32xbf16>, vector<32x96xbf16>, vector<2x96xf32> -> vector<2x96xf32>
    %527 = vector.broadcast %14 : vector<1x96xf32> to vector<2x96xf32>
    %528 = arith.addf %526, %527 : vector<2x96xf32>
    %529 = vector.extract_strided_slice %10 {offsets = [2, 0, 0], sizes = [1, 2, 96], strides = [1, 1, 1]} : vector<8x2x96xf32> to vector<1x2x96xf32>
    %530 = vector.shape_cast %529 : vector<1x2x96xf32> to vector<2x96xf32>
    %531 = vector.extract_strided_slice %530 {offsets = [0, 0], sizes = [2, 32], strides = [1, 1]} : vector<2x96xf32> to vector<2x32xf32>
    %532 = vector.extract_strided_slice %528 {offsets = [0, 0], sizes = [2, 32], strides = [1, 1]} : vector<2x96xf32> to vector<2x32xf32>
    %533 = arith.addf %531, %532 : vector<2x32xf32>
    %534 = arith.negf %533 : vector<2x32xf32>
    %535 = math.exp %534 : vector<2x32xf32>
    %cst_133 = arith.constant 1.000000e+00 : f32
    %536 = vector.broadcast %cst_133 : f32 to vector<2x32xf32>
    %537 = arith.addf %536, %535 : vector<2x32xf32>
    %538 = arith.divf %536, %537 : vector<2x32xf32>
    %539 = vector.extract_strided_slice %530 {offsets = [0, 32], sizes = [2, 32], strides = [1, 1]} : vector<2x96xf32> to vector<2x32xf32>
    %540 = vector.extract_strided_slice %528 {offsets = [0, 32], sizes = [2, 32], strides = [1, 1]} : vector<2x96xf32> to vector<2x32xf32>
    %541 = arith.addf %539, %540 : vector<2x32xf32>
    %542 = arith.negf %541 : vector<2x32xf32>
    %543 = math.exp %542 : vector<2x32xf32>
    %cst_134 = arith.constant 1.000000e+00 : f32
    %544 = vector.broadcast %cst_134 : f32 to vector<2x32xf32>
    %545 = arith.addf %544, %543 : vector<2x32xf32>
    %546 = arith.divf %544, %545 : vector<2x32xf32>
    %547 = vector.extract_strided_slice %530 {offsets = [0, 64], sizes = [2, 32], strides = [1, 1]} : vector<2x96xf32> to vector<2x32xf32>
    %548 = vector.extract_strided_slice %528 {offsets = [0, 64], sizes = [2, 32], strides = [1, 1]} : vector<2x96xf32> to vector<2x32xf32>
    %549 = arith.mulf %538, %548 : vector<2x32xf32>
    %550 = arith.addf %547, %549 : vector<2x32xf32>
    %551 = math.tanh %550 : vector<2x32xf32>
    %cst_135 = arith.constant 1.000000e+00 : f32
    %552 = vector.broadcast %cst_135 : f32 to vector<2x32xf32>
    %553 = arith.subf %552, %546 : vector<2x32xf32>
    %554 = arith.mulf %553, %551 : vector<2x32xf32>
    %555 = arith.mulf %546, %471 : vector<2x32xf32>
    %556 = arith.addf %554, %555 : vector<2x32xf32>
    %557 = vector.broadcast %524 : vector<2x1xf32> to vector<2x32xf32>
    %558 = arith.mulf %557, %556 : vector<2x32xf32>
    %cst_136 = arith.constant 1.000000e+00 : f32
    %559 = vector.broadcast %cst_136 : f32 to vector<2x1xf32>
    %560 = arith.subf %559, %524 : vector<2x1xf32>
    %561 = vector.broadcast %560 : vector<2x1xf32> to vector<2x32xf32>
    %562 = arith.mulf %561, %471 : vector<2x32xf32>
    %563 = arith.addf %558, %562 : vector<2x32xf32>
    %564 = vector.broadcast %524 : vector<2x1xf32> to vector<2x32xf32>
    %565 = arith.mulf %564, %556 : vector<2x32xf32>
    %c2_137 = arith.constant 2 : index
    %c0_138 = arith.constant 0 : index
    %c32_139 = arith.constant 32 : index
    %566 = vector.load %arg10[%c2_137, %c0_138, %c32_139] : memref<8x2x64xf32, #tpu.memory_space<vmem>>, vector<1x2x32xf32>
    %567 = vector.shape_cast %566 : vector<1x2x32xf32> to vector<2x32xf32>
    %568 = vector.shape_cast %565 : vector<2x32xf32> to vector<1x2x32xf32>
    tpu.vector_store %arg10[%c2_137, %c0_138, %c32_139], %568 {strides = array<i32>} : memref<8x2x64xf32, #tpu.memory_space<vmem>>, vector<1x2x32xf32>,
    %c6_140 = arith.constant 6 : index
    %c0_141 = arith.constant 0 : index
    %c0_142 = arith.constant 0 : index
    %569 = vector.load %arg1[%c6_140, %c0_141, %c0_142] : memref<8x2x1xf32, #tpu.memory_space<vmem>>, vector<1x2x1xf32>
    %570 = vector.shape_cast %569 : vector<1x2x1xf32> to vector<2x1xf32>
    %571 = arith.truncf %517 : vector<2x32xf32> to vector<2x32xbf16>
    %cst_143 = arith.constant dense<0.000000e+00> : vector<2x96xf32>
    %572 = tpu.matmul %571, %11, %cst_143 {dimension_numbers = #tpu.dot_dimension_numbers<[1], [0], [0], [1], [0, 0, 1, 1], [], []>} : vector<2x32xbf16>, vector<32x96xbf16>, vector<2x96xf32> -> vector<2x96xf32>
    %573 = vector.broadcast %12 : vector<1x96xf32> to vector<2x96xf32>
    %574 = arith.addf %572, %573 : vector<2x96xf32>
    %575 = vector.extract_strided_slice %8 {offsets = [6, 0, 0], sizes = [1, 2, 96], strides = [1, 1, 1]} : vector<8x2x96xf32> to vector<1x2x96xf32>
    %576 = vector.shape_cast %575 : vector<1x2x96xf32> to vector<2x96xf32>
    %577 = vector.extract_strided_slice %576 {offsets = [0, 0], sizes = [2, 32], strides = [1, 1]} : vector<2x96xf32> to vector<2x32xf32>
    %578 = vector.extract_strided_slice %574 {offsets = [0, 0], sizes = [2, 32], strides = [1, 1]} : vector<2x96xf32> to vector<2x32xf32>
    %579 = arith.addf %577, %578 : vector<2x32xf32>
    %580 = arith.negf %579 : vector<2x32xf32>
    %581 = math.exp %580 : vector<2x32xf32>
    %cst_144 = arith.constant 1.000000e+00 : f32
    %582 = vector.broadcast %cst_144 : f32 to vector<2x32xf32>
    %583 = arith.addf %582, %581 : vector<2x32xf32>
    %584 = arith.divf %582, %583 : vector<2x32xf32>
    %585 = vector.extract_strided_slice %576 {offsets = [0, 32], sizes = [2, 32], strides = [1, 1]} : vector<2x96xf32> to vector<2x32xf32>
    %586 = vector.extract_strided_slice %574 {offsets = [0, 32], sizes = [2, 32], strides = [1, 1]} : vector<2x96xf32> to vector<2x32xf32>
    %587 = arith.addf %585, %586 : vector<2x32xf32>
    %588 = arith.negf %587 : vector<2x32xf32>
    %589 = math.exp %588 : vector<2x32xf32>
    %cst_145 = arith.constant 1.000000e+00 : f32
    %590 = vector.broadcast %cst_145 : f32 to vector<2x32xf32>
    %591 = arith.addf %590, %589 : vector<2x32xf32>
    %592 = arith.divf %590, %591 : vector<2x32xf32>
    %593 = vector.extract_strided_slice %576 {offsets = [0, 64], sizes = [2, 32], strides = [1, 1]} : vector<2x96xf32> to vector<2x32xf32>
    %594 = vector.extract_strided_slice %574 {offsets = [0, 64], sizes = [2, 32], strides = [1, 1]} : vector<2x96xf32> to vector<2x32xf32>
    %595 = arith.mulf %584, %594 : vector<2x32xf32>
    %596 = arith.addf %593, %595 : vector<2x32xf32>
    %597 = math.tanh %596 : vector<2x32xf32>
    %cst_146 = arith.constant 1.000000e+00 : f32
    %598 = vector.broadcast %cst_146 : f32 to vector<2x32xf32>
    %599 = arith.subf %598, %592 : vector<2x32xf32>
    %600 = arith.mulf %599, %597 : vector<2x32xf32>
    %601 = arith.mulf %592, %517 : vector<2x32xf32>
    %602 = arith.addf %600, %601 : vector<2x32xf32>
    %603 = vector.broadcast %570 : vector<2x1xf32> to vector<2x32xf32>
    %604 = arith.mulf %603, %602 : vector<2x32xf32>
    %cst_147 = arith.constant 1.000000e+00 : f32
    %605 = vector.broadcast %cst_147 : f32 to vector<2x1xf32>
    %606 = arith.subf %605, %570 : vector<2x1xf32>
    %607 = vector.broadcast %606 : vector<2x1xf32> to vector<2x32xf32>
    %608 = arith.mulf %607, %517 : vector<2x32xf32>
    %609 = arith.addf %604, %608 : vector<2x32xf32>
    %610 = vector.broadcast %570 : vector<2x1xf32> to vector<2x32xf32>
    %611 = arith.mulf %610, %602 : vector<2x32xf32>
    %c6_148 = arith.constant 6 : index
    %c0_149 = arith.constant 0 : index
    %c0_150 = arith.constant 0 : index
    %612 = vector.load %arg10[%c6_148, %c0_149, %c0_150] : memref<8x2x64xf32, #tpu.memory_space<vmem>>, vector<1x2x32xf32>
    %613 = vector.shape_cast %612 : vector<1x2x32xf32> to vector<2x32xf32>
    %614 = vector.shape_cast %611 : vector<2x32xf32> to vector<1x2x32xf32>
    tpu.vector_store %arg10[%c6_148, %c0_149, %c0_150], %614 {strides = array<i32>} : memref<8x2x64xf32, #tpu.memory_space<vmem>>, vector<1x2x32xf32>,
    %c1_151 = arith.constant 1 : index
    %c0_152 = arith.constant 0 : index
    %c0_153 = arith.constant 0 : index
    %615 = vector.load %arg1[%c1_151, %c0_152, %c0_153] : memref<8x2x1xf32, #tpu.memory_space<vmem>>, vector<1x2x1xf32>
    %616 = vector.shape_cast %615 : vector<1x2x1xf32> to vector<2x1xf32>
    %617 = arith.truncf %563 : vector<2x32xf32> to vector<2x32xbf16>
    %cst_154 = arith.constant dense<0.000000e+00> : vector<2x96xf32>
    %618 = tpu.matmul %617, %13, %cst_154 {dimension_numbers = #tpu.dot_dimension_numbers<[1], [0], [0], [1], [0, 0, 1, 1], [], []>} : vector<2x32xbf16>, vector<32x96xbf16>, vector<2x96xf32> -> vector<2x96xf32>
    %619 = vector.broadcast %14 : vector<1x96xf32> to vector<2x96xf32>
    %620 = arith.addf %618, %619 : vector<2x96xf32>
    %621 = vector.extract_strided_slice %10 {offsets = [1, 0, 0], sizes = [1, 2, 96], strides = [1, 1, 1]} : vector<8x2x96xf32> to vector<1x2x96xf32>
    %622 = vector.shape_cast %621 : vector<1x2x96xf32> to vector<2x96xf32>
    %623 = vector.extract_strided_slice %622 {offsets = [0, 0], sizes = [2, 32], strides = [1, 1]} : vector<2x96xf32> to vector<2x32xf32>
    %624 = vector.extract_strided_slice %620 {offsets = [0, 0], sizes = [2, 32], strides = [1, 1]} : vector<2x96xf32> to vector<2x32xf32>
    %625 = arith.addf %623, %624 : vector<2x32xf32>
    %626 = arith.negf %625 : vector<2x32xf32>
    %627 = math.exp %626 : vector<2x32xf32>
    %cst_155 = arith.constant 1.000000e+00 : f32
    %628 = vector.broadcast %cst_155 : f32 to vector<2x32xf32>
    %629 = arith.addf %628, %627 : vector<2x32xf32>
    %630 = arith.divf %628, %629 : vector<2x32xf32>
    %631 = vector.extract_strided_slice %622 {offsets = [0, 32], sizes = [2, 32], strides = [1, 1]} : vector<2x96xf32> to vector<2x32xf32>
    %632 = vector.extract_strided_slice %620 {offsets = [0, 32], sizes = [2, 32], strides = [1, 1]} : vector<2x96xf32> to vector<2x32xf32>
    %633 = arith.addf %631, %632 : vector<2x32xf32>
    %634 = arith.negf %633 : vector<2x32xf32>
    %635 = math.exp %634 : vector<2x32xf32>
    %cst_156 = arith.constant 1.000000e+00 : f32
    %636 = vector.broadcast %cst_156 : f32 to vector<2x32xf32>
    %637 = arith.addf %636, %635 : vector<2x32xf32>
    %638 = arith.divf %636, %637 : vector<2x32xf32>
    %639 = vector.extract_strided_slice %622 {offsets = [0, 64], sizes = [2, 32], strides = [1, 1]} : vector<2x96xf32> to vector<2x32xf32>
    %640 = vector.extract_strided_slice %620 {offsets = [0, 64], sizes = [2, 32], strides = [1, 1]} : vector<2x96xf32> to vector<2x32xf32>
    %641 = arith.mulf %630, %640 : vector<2x32xf32>
    %642 = arith.addf %639, %641 : vector<2x32xf32>
    %643 = math.tanh %642 : vector<2x32xf32>
    %cst_157 = arith.constant 1.000000e+00 : f32
    %644 = vector.broadcast %cst_157 : f32 to vector<2x32xf32>
    %645 = arith.subf %644, %638 : vector<2x32xf32>
    %646 = arith.mulf %645, %643 : vector<2x32xf32>
    %647 = arith.mulf %638, %563 : vector<2x32xf32>
    %648 = arith.addf %646, %647 : vector<2x32xf32>
    %649 = vector.broadcast %616 : vector<2x1xf32> to vector<2x32xf32>
    %650 = arith.mulf %649, %648 : vector<2x32xf32>
    %cst_158 = arith.constant 1.000000e+00 : f32
    %651 = vector.broadcast %cst_158 : f32 to vector<2x1xf32>
    %652 = arith.subf %651, %616 : vector<2x1xf32>
    %653 = vector.broadcast %652 : vector<2x1xf32> to vector<2x32xf32>
    %654 = arith.mulf %653, %563 : vector<2x32xf32>
    %655 = arith.addf %650, %654 : vector<2x32xf32>
    %656 = vector.broadcast %616 : vector<2x1xf32> to vector<2x32xf32>
    %657 = arith.mulf %656, %648 : vector<2x32xf32>
    %c1_159 = arith.constant 1 : index
    %c0_160 = arith.constant 0 : index
    %c32_161 = arith.constant 32 : index
    %658 = vector.load %arg10[%c1_159, %c0_160, %c32_161] : memref<8x2x64xf32, #tpu.memory_space<vmem>>, vector<1x2x32xf32>
    %659 = vector.shape_cast %658 : vector<1x2x32xf32> to vector<2x32xf32>
    %660 = vector.shape_cast %657 : vector<2x32xf32> to vector<1x2x32xf32>
    tpu.vector_store %arg10[%c1_159, %c0_160, %c32_161], %660 {strides = array<i32>} : memref<8x2x64xf32, #tpu.memory_space<vmem>>, vector<1x2x32xf32>,
    %c7_162 = arith.constant 7 : index
    %c0_163 = arith.constant 0 : index
    %c0_164 = arith.constant 0 : index
    %661 = vector.load %arg1[%c7_162, %c0_163, %c0_164] : memref<8x2x1xf32, #tpu.memory_space<vmem>>, vector<1x2x1xf32>
    %662 = vector.shape_cast %661 : vector<1x2x1xf32> to vector<2x1xf32>
    %663 = arith.truncf %609 : vector<2x32xf32> to vector<2x32xbf16>
    %cst_165 = arith.constant dense<0.000000e+00> : vector<2x96xf32>
    %664 = tpu.matmul %663, %11, %cst_165 {dimension_numbers = #tpu.dot_dimension_numbers<[1], [0], [0], [1], [0, 0, 1, 1], [], []>} : vector<2x32xbf16>, vector<32x96xbf16>, vector<2x96xf32> -> vector<2x96xf32>
    %665 = vector.broadcast %12 : vector<1x96xf32> to vector<2x96xf32>
    %666 = arith.addf %664, %665 : vector<2x96xf32>
    %667 = vector.extract_strided_slice %8 {offsets = [7, 0, 0], sizes = [1, 2, 96], strides = [1, 1, 1]} : vector<8x2x96xf32> to vector<1x2x96xf32>
    %668 = vector.shape_cast %667 : vector<1x2x96xf32> to vector<2x96xf32>
    %669 = vector.extract_strided_slice %668 {offsets = [0, 0], sizes = [2, 32], strides = [1, 1]} : vector<2x96xf32> to vector<2x32xf32>
    %670 = vector.extract_strided_slice %666 {offsets = [0, 0], sizes = [2, 32], strides = [1, 1]} : vector<2x96xf32> to vector<2x32xf32>
    %671 = arith.addf %669, %670 : vector<2x32xf32>
    %672 = arith.negf %671 : vector<2x32xf32>
    %673 = math.exp %672 : vector<2x32xf32>
    %cst_166 = arith.constant 1.000000e+00 : f32
    %674 = vector.broadcast %cst_166 : f32 to vector<2x32xf32>
    %675 = arith.addf %674, %673 : vector<2x32xf32>
    %676 = arith.divf %674, %675 : vector<2x32xf32>
    %677 = vector.extract_strided_slice %668 {offsets = [0, 32], sizes = [2, 32], strides = [1, 1]} : vector<2x96xf32> to vector<2x32xf32>
    %678 = vector.extract_strided_slice %666 {offsets = [0, 32], sizes = [2, 32], strides = [1, 1]} : vector<2x96xf32> to vector<2x32xf32>
    %679 = arith.addf %677, %678 : vector<2x32xf32>
    %680 = arith.negf %679 : vector<2x32xf32>
    %681 = math.exp %680 : vector<2x32xf32>
    %cst_167 = arith.constant 1.000000e+00 : f32
    %682 = vector.broadcast %cst_167 : f32 to vector<2x32xf32>
    %683 = arith.addf %682, %681 : vector<2x32xf32>
    %684 = arith.divf %682, %683 : vector<2x32xf32>
    %685 = vector.extract_strided_slice %668 {offsets = [0, 64], sizes = [2, 32], strides = [1, 1]} : vector<2x96xf32> to vector<2x32xf32>
    %686 = vector.extract_strided_slice %666 {offsets = [0, 64], sizes = [2, 32], strides = [1, 1]} : vector<2x96xf32> to vector<2x32xf32>
    %687 = arith.mulf %676, %686 : vector<2x32xf32>
    %688 = arith.addf %685, %687 : vector<2x32xf32>
    %689 = math.tanh %688 : vector<2x32xf32>
    %cst_168 = arith.constant 1.000000e+00 : f32
    %690 = vector.broadcast %cst_168 : f32 to vector<2x32xf32>
    %691 = arith.subf %690, %684 : vector<2x32xf32>
    %692 = arith.mulf %691, %689 : vector<2x32xf32>
    %693 = arith.mulf %684, %609 : vector<2x32xf32>
    %694 = arith.addf %692, %693 : vector<2x32xf32>
    %695 = vector.broadcast %662 : vector<2x1xf32> to vector<2x32xf32>
    %696 = arith.mulf %695, %694 : vector<2x32xf32>
    %cst_169 = arith.constant 1.000000e+00 : f32
    %697 = vector.broadcast %cst_169 : f32 to vector<2x1xf32>
    %698 = arith.subf %697, %662 : vector<2x1xf32>
    %699 = vector.broadcast %698 : vector<2x1xf32> to vector<2x32xf32>
    %700 = arith.mulf %699, %609 : vector<2x32xf32>
    %701 = arith.addf %696, %700 : vector<2x32xf32>
    %702 = vector.broadcast %662 : vector<2x1xf32> to vector<2x32xf32>
    %703 = arith.mulf %702, %694 : vector<2x32xf32>
    %c7_170 = arith.constant 7 : index
    %c0_171 = arith.constant 0 : index
    %c0_172 = arith.constant 0 : index
    %704 = vector.load %arg10[%c7_170, %c0_171, %c0_172] : memref<8x2x64xf32, #tpu.memory_space<vmem>>, vector<1x2x32xf32>
    %705 = vector.shape_cast %704 : vector<1x2x32xf32> to vector<2x32xf32>
    %706 = vector.shape_cast %703 : vector<2x32xf32> to vector<1x2x32xf32>
    tpu.vector_store %arg10[%c7_170, %c0_171, %c0_172], %706 {strides = array<i32>} : memref<8x2x64xf32, #tpu.memory_space<vmem>>, vector<1x2x32xf32>,
    %c0_173 = arith.constant 0 : index
    %c0_174 = arith.constant 0 : index
    %c0_175 = arith.constant 0 : index
    %707 = vector.load %arg1[%c0_173, %c0_174, %c0_175] : memref<8x2x1xf32, #tpu.memory_space<vmem>>, vector<1x2x1xf32>
    %708 = vector.shape_cast %707 : vector<1x2x1xf32> to vector<2x1xf32>
    %709 = arith.truncf %655 : vector<2x32xf32> to vector<2x32xbf16>
    %cst_176 = arith.constant dense<0.000000e+00> : vector<2x96xf32>
    %710 = tpu.matmul %709, %13, %cst_176 {dimension_numbers = #tpu.dot_dimension_numbers<[1], [0], [0], [1], [0, 0, 1, 1], [], []>} : vector<2x32xbf16>, vector<32x96xbf16>, vector<2x96xf32> -> vector<2x96xf32>
    %711 = vector.broadcast %14 : vector<1x96xf32> to vector<2x96xf32>
    %712 = arith.addf %710, %711 : vector<2x96xf32>
    %713 = vector.extract_strided_slice %10 {offsets = [0, 0, 0], sizes = [1, 2, 96], strides = [1, 1, 1]} : vector<8x2x96xf32> to vector<1x2x96xf32>
    %714 = vector.shape_cast %713 : vector<1x2x96xf32> to vector<2x96xf32>
    %715 = vector.extract_strided_slice %714 {offsets = [0, 0], sizes = [2, 32], strides = [1, 1]} : vector<2x96xf32> to vector<2x32xf32>
    %716 = vector.extract_strided_slice %712 {offsets = [0, 0], sizes = [2, 32], strides = [1, 1]} : vector<2x96xf32> to vector<2x32xf32>
    %717 = arith.addf %715, %716 : vector<2x32xf32>
    %718 = arith.negf %717 : vector<2x32xf32>
    %719 = math.exp %718 : vector<2x32xf32>
    %cst_177 = arith.constant 1.000000e+00 : f32
    %720 = vector.broadcast %cst_177 : f32 to vector<2x32xf32>
    %721 = arith.addf %720, %719 : vector<2x32xf32>
    %722 = arith.divf %720, %721 : vector<2x32xf32>
    %723 = vector.extract_strided_slice %714 {offsets = [0, 32], sizes = [2, 32], strides = [1, 1]} : vector<2x96xf32> to vector<2x32xf32>
    %724 = vector.extract_strided_slice %712 {offsets = [0, 32], sizes = [2, 32], strides = [1, 1]} : vector<2x96xf32> to vector<2x32xf32>
    %725 = arith.addf %723, %724 : vector<2x32xf32>
    %726 = arith.negf %725 : vector<2x32xf32>
    %727 = math.exp %726 : vector<2x32xf32>
    %cst_178 = arith.constant 1.000000e+00 : f32
    %728 = vector.broadcast %cst_178 : f32 to vector<2x32xf32>
    %729 = arith.addf %728, %727 : vector<2x32xf32>
    %730 = arith.divf %728, %729 : vector<2x32xf32>
    %731 = vector.extract_strided_slice %714 {offsets = [0, 64], sizes = [2, 32], strides = [1, 1]} : vector<2x96xf32> to vector<2x32xf32>
    %732 = vector.extract_strided_slice %712 {offsets = [0, 64], sizes = [2, 32], strides = [1, 1]} : vector<2x96xf32> to vector<2x32xf32>
    %733 = arith.mulf %722, %732 : vector<2x32xf32>
    %734 = arith.addf %731, %733 : vector<2x32xf32>
    %735 = math.tanh %734 : vector<2x32xf32>
    %cst_179 = arith.constant 1.000000e+00 : f32
    %736 = vector.broadcast %cst_179 : f32 to vector<2x32xf32>
    %737 = arith.subf %736, %730 : vector<2x32xf32>
    %738 = arith.mulf %737, %735 : vector<2x32xf32>
    %739 = arith.mulf %730, %655 : vector<2x32xf32>
    %740 = arith.addf %738, %739 : vector<2x32xf32>
    %741 = vector.broadcast %708 : vector<2x1xf32> to vector<2x32xf32>
    %742 = arith.mulf %741, %740 : vector<2x32xf32>
    %cst_180 = arith.constant 1.000000e+00 : f32
    %743 = vector.broadcast %cst_180 : f32 to vector<2x1xf32>
    %744 = arith.subf %743, %708 : vector<2x1xf32>
    %745 = vector.broadcast %744 : vector<2x1xf32> to vector<2x32xf32>
    %746 = arith.mulf %745, %655 : vector<2x32xf32>
    %747 = arith.addf %742, %746 : vector<2x32xf32>
    %748 = vector.broadcast %708 : vector<2x1xf32> to vector<2x32xf32>
    %749 = arith.mulf %748, %740 : vector<2x32xf32>
    %c0_181 = arith.constant 0 : index
    %c0_182 = arith.constant 0 : index
    %c32_183 = arith.constant 32 : index
    %750 = vector.load %arg10[%c0_181, %c0_182, %c32_183] : memref<8x2x64xf32, #tpu.memory_space<vmem>>, vector<1x2x32xf32>
    %751 = vector.shape_cast %750 : vector<1x2x32xf32> to vector<2x32xf32>
    %752 = vector.shape_cast %749 : vector<2x32xf32> to vector<1x2x32xf32>
    tpu.vector_store %arg10[%c0_181, %c0_182, %c32_183], %752 {strides = array<i32>} : memref<8x2x64xf32, #tpu.memory_space<vmem>>, vector<1x2x32xf32>,
    %753 = tpu.concatenate %701, %747 in 1 : vector<2x32xf32>, vector<2x32xf32> -> vector<2x64xf32>
    %c0_184 = arith.constant 0 : index
    %c0_185 = arith.constant 0 : index
    %754 = vector.load %arg8[%c0_184, %c0_185] : memref<64x32xbf16, #tpu.memory_space<vmem>>, vector<64x32xbf16>
    %755 = arith.truncf %753 : vector<2x64xf32> to vector<2x64xbf16>
    %cst_186 = arith.constant dense<0.000000e+00> : vector<2x32xf32>
    %756 = tpu.matmul %755, %754, %cst_186 {dimension_numbers = #tpu.dot_dimension_numbers<[1], [0], [0], [1], [0, 0, 1, 1], [], []>} : vector<2x64xbf16>, vector<64x32xbf16>, vector<2x32xf32> -> vector<2x32xf32>
    %c0_187 = arith.constant 0 : index
    %c0_188 = arith.constant 0 : index
    %757 = vector.load %arg9[%c0_187, %c0_188] : memref<1x32xf32, #tpu.memory_space<vmem>>, vector<1x32xf32>
    %758 = vector.broadcast %757 : vector<1x32xf32> to vector<2x32xf32>
    %759 = arith.addf %756, %758 : vector<2x32xf32>
    %760 = math.tanh %759 : vector<2x32xf32>
    %c0_189 = arith.constant 0 : index
    %c0_190 = arith.constant 0 : index
    %761 = vector.load %arg11[%c0_189, %c0_190] : memref<2x32xf32, #tpu.memory_space<vmem>>, vector<2x32xf32>
    tpu.vector_store %arg11[%c0_189, %c0_190], %760 {strides = array<i32>} : memref<2x32xf32, #tpu.memory_space<vmem>>, vector<2x32xf32>,
    return
  }
}

module attributes {stable_mosaic.version = 11 : i64} {
  func.func @_decoder_kernel(%arg0: memref<8x2x16xbf16, #tpu.memory_space<vmem>>, %arg1: memref<2x32xf32, #tpu.memory_space<vmem>>, %arg2: memref<8x2x64xf32, #tpu.memory_space<vmem>>, %arg3: memref<8x2xf32, #tpu.memory_space<vmem>>, %arg4: memref<32x128xbf16, #tpu.memory_space<vmem>>, %arg5: memref<64x32xbf16, #tpu.memory_space<vmem>>, %arg6: memref<1x32xf32, #tpu.memory_space<vmem>>, %arg7: memref<1x32xf32, #tpu.memory_space<vmem>>, %arg8: memref<16x96xbf16, #tpu.memory_space<vmem>>, %arg9: memref<64x96xbf16, #tpu.memory_space<vmem>>, %arg10: memref<1x96xf32, #tpu.memory_space<vmem>>, %arg11: memref<1x96xf32, #tpu.memory_space<vmem>>, %arg12: memref<112x32xbf16, #tpu.memory_space<vmem>>, %arg13: memref<1x32xf32, #tpu.memory_space<vmem>>, %arg14: memref<8x2x32xf32, #tpu.memory_space<vmem>>, %arg15: memref<8x8x2xf32, #tpu.memory_space<vmem>>, %arg16: memref<7x2x112xf32, #tpu.memory_space<vmem>>) attributes {dimension_semantics = [], scalar_prefetch = 0 : i64, scratch_operands = 1 : i64, tpu.core_type = #tpu.core_type<tc>} {
    %c0 = arith.constant 0 : index
    %c0_0 = arith.constant 0 : index
    %c0_1 = arith.constant 0 : index
    %0 = vector.load %arg2[%c0, %c0_0, %c0_1] : memref<8x2x64xf32, #tpu.memory_space<vmem>>, vector<8x2x64xf32>
    %c0_2 = arith.constant 0 : index
    %c0_3 = arith.constant 0 : index
    %1 = vector.load %arg3[%c0_2, %c0_3] : memref<8x2xf32, #tpu.memory_space<vmem>>, vector<8x2xf32>
    %c0_4 = arith.constant 0 : index
    %c0_5 = arith.constant 0 : index
    %2 = vector.load %arg4[%c0_4, %c0_5] : memref<32x128xbf16, #tpu.memory_space<vmem>>, vector<32x128xbf16>
    %c0_6 = arith.constant 0 : index
    %c0_7 = arith.constant 0 : index
    %3 = vector.load %arg9[%c0_6, %c0_7] : memref<64x96xbf16, #tpu.memory_space<vmem>>, vector<64x96xbf16>
    %c0_8 = arith.constant 0 : index
    %c0_9 = arith.constant 0 : index
    %4 = vector.load %arg10[%c0_8, %c0_9] : memref<1x96xf32, #tpu.memory_space<vmem>>, vector<1x96xf32>
    %c0_10 = arith.constant 0 : index
    %c0_11 = arith.constant 0 : index
    %5 = vector.load %arg11[%c0_10, %c0_11] : memref<1x96xf32, #tpu.memory_space<vmem>>, vector<1x96xf32>
    %c0_12 = arith.constant 0 : index
    %c0_13 = arith.constant 0 : index
    %6 = vector.load %arg7[%c0_12, %c0_13] : memref<1x32xf32, #tpu.memory_space<vmem>>, vector<1x32xf32>
    %7 = vector.shape_cast %6 : vector<1x32xf32> to vector<1x1x32xf32>
    %8 = vector.shape_cast %0 : vector<8x2x64xf32> to vector<16x64xf32>
    %c0_14 = arith.constant 0 : index
    %c0_15 = arith.constant 0 : index
    %9 = vector.load %arg5[%c0_14, %c0_15] : memref<64x32xbf16, #tpu.memory_space<vmem>>, vector<64x32xbf16>
    %10 = arith.truncf %8 : vector<16x64xf32> to vector<16x64xbf16>
    %cst = arith.constant dense<0.000000e+00> : vector<16x32xf32>
    %11 = tpu.matmul %10, %9, %cst {dimension_numbers = #tpu.dot_dimension_numbers<[1], [0], [0], [1], [0, 0, 1, 1], [], []>} : vector<16x64xbf16>, vector<64x32xbf16>, vector<16x32xf32> -> vector<16x32xf32>
    %c0_16 = arith.constant 0 : index
    %c0_17 = arith.constant 0 : index
    %12 = vector.load %arg6[%c0_16, %c0_17] : memref<1x32xf32, #tpu.memory_space<vmem>>, vector<1x32xf32>
    %13 = vector.broadcast %12 : vector<1x32xf32> to vector<16x32xf32>
    %14 = arith.addf %11, %13 : vector<16x32xf32>
    %15 = vector.shape_cast %14 : vector<16x32xf32> to vector<8x2x32xf32>
    %c0_18 = arith.constant 0 : index
    %c0_19 = arith.constant 0 : index
    %16 = vector.load %arg1[%c0_18, %c0_19] : memref<2x32xf32, #tpu.memory_space<vmem>>, vector<2x32xf32>
    %c0_20 = arith.constant 0 : index
    %c0_21 = arith.constant 0 : index
    %17 = vector.load %arg8[%c0_20, %c0_21] : memref<16x96xbf16, #tpu.memory_space<vmem>>, vector<16x96xbf16>
    %c0_22 = arith.constant 0 : index
    %c0_23 = arith.constant 0 : index
    %c0_24 = arith.constant 0 : index
    %18 = vector.load %arg0[%c0_22, %c0_23, %c0_24] : memref<8x2x16xbf16, #tpu.memory_space<vmem>>, vector<8x2x16xbf16>
    %19 = vector.shape_cast %18 : vector<8x2x16xbf16> to vector<16x16xbf16>
    %cst_25 = arith.constant dense<0.000000e+00> : vector<16x96xf32>
    %20 = tpu.matmul %19, %17, %cst_25 {dimension_numbers = #tpu.dot_dimension_numbers<[1], [0], [0], [1], [0, 0, 1, 1], [], []>} : vector<16x16xbf16>, vector<16x96xbf16>, vector<16x96xf32> -> vector<16x96xf32>
    %21 = vector.broadcast %4 : vector<1x96xf32> to vector<16x96xf32>
    %22 = arith.addf %20, %21 : vector<16x96xf32>
    %23 = vector.shape_cast %22 : vector<16x96xf32> to vector<8x2x96xf32>
    %cst_26 = arith.constant 0.000000e+00 : f32
    %24 = vector.broadcast %cst_26 : f32 to vector<2x32xf32>
    %c0_27 = arith.constant 0 : index
    %c0_28 = arith.constant 0 : index
    %c0_29 = arith.constant 0 : index
    %25 = vector.load %arg14[%c0_27, %c0_28, %c0_29] : memref<8x2x32xf32, #tpu.memory_space<vmem>>, vector<1x2x32xf32>
    %26 = vector.shape_cast %25 : vector<1x2x32xf32> to vector<2x32xf32>
    %27 = vector.shape_cast %24 : vector<2x32xf32> to vector<1x2x32xf32>
    tpu.vector_store %arg14[%c0_27, %c0_28, %c0_29], %27 {strides = array<i32>} : memref<8x2x32xf32, #tpu.memory_space<vmem>>, vector<1x2x32xf32>,
    %cst_30 = arith.constant 0.000000e+00 : f32
    %28 = vector.broadcast %cst_30 : f32 to vector<8x2xf32>
    %c0_31 = arith.constant 0 : index
    %c0_32 = arith.constant 0 : index
    %c0_33 = arith.constant 0 : index
    %29 = vector.load %arg15[%c0_31, %c0_32, %c0_33] : memref<8x8x2xf32, #tpu.memory_space<vmem>>, vector<1x8x2xf32>
    %30 = vector.shape_cast %29 : vector<1x8x2xf32> to vector<8x2xf32>
    %31 = vector.shape_cast %28 : vector<8x2xf32> to vector<1x8x2xf32>
    tpu.vector_store %arg15[%c0_31, %c0_32, %c0_33], %31 {strides = array<i32>} : memref<8x8x2xf32, #tpu.memory_space<vmem>>, vector<1x8x2xf32>,
    %32 = arith.truncf %16 : vector<2x32xf32> to vector<2x32xbf16>
    %cst_34 = arith.constant dense<0.000000e+00> : vector<2x128xf32>
    %33 = tpu.matmul %32, %2, %cst_34 {dimension_numbers = #tpu.dot_dimension_numbers<[1], [0], [0], [1], [0, 0, 1, 1], [], []>} : vector<2x32xbf16>, vector<32x128xbf16>, vector<2x128xf32> -> vector<2x128xf32>
    %34 = vector.extract_strided_slice %33 {offsets = [0, 0], sizes = [2, 32], strides = [1, 1]} : vector<2x128xf32> to vector<2x32xf32>
    %35 = vector.extract_strided_slice %33 {offsets = [0, 32], sizes = [2, 96], strides = [1, 1]} : vector<2x128xf32> to vector<2x96xf32>
    %36 = vector.broadcast %5 : vector<1x96xf32> to vector<2x96xf32>
    %37 = arith.addf %35, %36 : vector<2x96xf32>
    %38 = vector.shape_cast %34 : vector<2x32xf32> to vector<1x2x32xf32>
    %39 = vector.broadcast %38 : vector<1x2x32xf32> to vector<8x2x32xf32>
    %40 = arith.addf %15, %39 : vector<8x2x32xf32>
    %41 = math.tanh %40 : vector<8x2x32xf32>
    %42 = vector.broadcast %7 : vector<1x1x32xf32> to vector<8x2x32xf32>
    %43 = arith.mulf %41, %42 : vector<8x2x32xf32>
    %cst_35 = arith.constant dense<0.000000e+00> : vector<8x2xf32>
    %44 = vector.multi_reduction <add>, %43, %cst_35 [2] : vector<8x2x32xf32> to vector<8x2xf32>
    %cst_36 = arith.constant 5.000000e-01 : f32
    %45 = vector.broadcast %cst_36 : f32 to vector<8x2xf32>
    %46 = arith.cmpf ogt, %1, %45 : vector<8x2xf32>
    %cst_37 = arith.constant -1.000000e+10 : f32
    %47 = vector.broadcast %cst_37 : f32 to vector<8x2xf32>
    %48 = arith.select %46, %44, %47 : vector<8x2xi1>, vector<8x2xf32>
    %cst_38 = arith.constant dense<0xFF800000> : vector<2xf32>
    %49 = vector.multi_reduction <maximumf>, %48, %cst_38 [0] : vector<8x2xf32> to vector<2xf32>
    %50 = vector.shape_cast %49 : vector<2xf32> to vector<1x2xf32>
    %51 = vector.broadcast %50 : vector<1x2xf32> to vector<8x2xf32>
    %52 = arith.subf %48, %51 : vector<8x2xf32>
    %53 = math.exp %52 : vector<8x2xf32>
    %cst_39 = arith.constant dense<0.000000e+00> : vector<2xf32>
    %54 = vector.multi_reduction <add>, %53, %cst_39 [0] : vector<8x2xf32> to vector<2xf32>
    %55 = vector.shape_cast %54 : vector<2xf32> to vector<1x2xf32>
    %56 = tpu.reciprocal %55 {approx = true} : vector<1x2xf32> -> vector<1x2xf32>
    %57 = vector.broadcast %56 : vector<1x2xf32> to vector<8x2xf32>
    %58 = arith.mulf %53, %57 : vector<8x2xf32>
    %59 = vector.shape_cast %58 : vector<8x2xf32> to vector<8x2x1xf32>
    %60 = vector.broadcast %59 : vector<8x2x1xf32> to vector<8x2x64xf32>
    %61 = arith.mulf %60, %0 : vector<8x2x64xf32>
    %cst_40 = arith.constant dense<0.000000e+00> : vector<2x64xf32>
    %62 = vector.multi_reduction <add>, %61, %cst_40 [0] : vector<8x2x64xf32> to vector<2x64xf32>
    %c1 = arith.constant 1 : index
    %c0_41 = arith.constant 0 : index
    %c0_42 = arith.constant 0 : index
    %63 = vector.load %arg15[%c1, %c0_41, %c0_42] : memref<8x8x2xf32, #tpu.memory_space<vmem>>, vector<1x8x2xf32>
    %64 = vector.shape_cast %63 : vector<1x8x2xf32> to vector<8x2xf32>
    %65 = vector.shape_cast %58 : vector<8x2xf32> to vector<1x8x2xf32>
    tpu.vector_store %arg15[%c1, %c0_41, %c0_42], %65 {strides = array<i32>} : memref<8x8x2xf32, #tpu.memory_space<vmem>>, vector<1x8x2xf32>,
    %66 = vector.extract_strided_slice %23 {offsets = [0, 0, 0], sizes = [1, 2, 96], strides = [1, 1, 1]} : vector<8x2x96xf32> to vector<1x2x96xf32>
    %67 = vector.shape_cast %66 : vector<1x2x96xf32> to vector<2x96xf32>
    %68 = arith.truncf %62 : vector<2x64xf32> to vector<2x64xbf16>
    %cst_43 = arith.constant dense<0.000000e+00> : vector<2x96xf32>
    %69 = tpu.matmul %68, %3, %cst_43 {dimension_numbers = #tpu.dot_dimension_numbers<[1], [0], [0], [1], [0, 0, 1, 1], [], []>} : vector<2x64xbf16>, vector<64x96xbf16>, vector<2x96xf32> -> vector<2x96xf32>
    %70 = arith.addf %67, %69 : vector<2x96xf32>
    %c0_44 = arith.constant 0 : index
    %c0_45 = arith.constant 0 : index
    %c0_46 = arith.constant 0 : index
    %71 = vector.load %arg0[%c0_44, %c0_45, %c0_46] : memref<8x2x16xbf16, #tpu.memory_space<vmem>>, vector<1x2x16xbf16>
    %72 = vector.shape_cast %71 : vector<1x2x16xbf16> to vector<2x16xbf16>
    %73 = arith.extf %72 : vector<2x16xbf16> to vector<2x16xf32>
    %74 = vector.extract_strided_slice %70 {offsets = [0, 0], sizes = [2, 32], strides = [1, 1]} : vector<2x96xf32> to vector<2x32xf32>
    %75 = vector.extract_strided_slice %37 {offsets = [0, 0], sizes = [2, 32], strides = [1, 1]} : vector<2x96xf32> to vector<2x32xf32>
    %76 = arith.addf %74, %75 : vector<2x32xf32>
    %77 = arith.negf %76 : vector<2x32xf32>
    %78 = math.exp %77 : vector<2x32xf32>
    %cst_47 = arith.constant 1.000000e+00 : f32
    %79 = vector.broadcast %cst_47 : f32 to vector<2x32xf32>
    %80 = arith.addf %79, %78 : vector<2x32xf32>
    %81 = arith.divf %79, %80 : vector<2x32xf32>
    %82 = vector.extract_strided_slice %70 {offsets = [0, 32], sizes = [2, 32], strides = [1, 1]} : vector<2x96xf32> to vector<2x32xf32>
    %83 = vector.extract_strided_slice %37 {offsets = [0, 32], sizes = [2, 32], strides = [1, 1]} : vector<2x96xf32> to vector<2x32xf32>
    %84 = arith.addf %82, %83 : vector<2x32xf32>
    %85 = arith.negf %84 : vector<2x32xf32>
    %86 = math.exp %85 : vector<2x32xf32>
    %cst_48 = arith.constant 1.000000e+00 : f32
    %87 = vector.broadcast %cst_48 : f32 to vector<2x32xf32>
    %88 = arith.addf %87, %86 : vector<2x32xf32>
    %89 = arith.divf %87, %88 : vector<2x32xf32>
    %90 = vector.extract_strided_slice %70 {offsets = [0, 64], sizes = [2, 32], strides = [1, 1]} : vector<2x96xf32> to vector<2x32xf32>
    %91 = vector.extract_strided_slice %37 {offsets = [0, 64], sizes = [2, 32], strides = [1, 1]} : vector<2x96xf32> to vector<2x32xf32>
    %92 = arith.mulf %81, %91 : vector<2x32xf32>
    %93 = arith.addf %90, %92 : vector<2x32xf32>
    %94 = math.tanh %93 : vector<2x32xf32>
    %cst_49 = arith.constant 1.000000e+00 : f32
    %95 = vector.broadcast %cst_49 : f32 to vector<2x32xf32>
    %96 = arith.subf %95, %89 : vector<2x32xf32>
    %97 = arith.mulf %96, %94 : vector<2x32xf32>
    %98 = arith.mulf %89, %16 : vector<2x32xf32>
    %99 = arith.addf %97, %98 : vector<2x32xf32>
    %100 = tpu.concatenate %99, %62, %73 in 1 : vector<2x32xf32>, vector<2x64xf32>, vector<2x16xf32> -> vector<2x112xf32>
    %c0_50 = arith.constant 0 : index
    %c0_51 = arith.constant 0 : index
    %c0_52 = arith.constant 0 : index
    %101 = vector.load %arg16[%c0_50, %c0_51, %c0_52] : memref<7x2x112xf32, #tpu.memory_space<vmem>>, vector<1x2x112xf32>
    %102 = vector.shape_cast %101 : vector<1x2x112xf32> to vector<2x112xf32>
    %103 = vector.shape_cast %100 : vector<2x112xf32> to vector<1x2x112xf32>
    tpu.vector_store %arg16[%c0_50, %c0_51, %c0_52], %103 {strides = array<i32>} : memref<7x2x112xf32, #tpu.memory_space<vmem>>, vector<1x2x112xf32>,
    %104 = arith.truncf %99 : vector<2x32xf32> to vector<2x32xbf16>
    %cst_53 = arith.constant dense<0.000000e+00> : vector<2x128xf32>
    %105 = tpu.matmul %104, %2, %cst_53 {dimension_numbers = #tpu.dot_dimension_numbers<[1], [0], [0], [1], [0, 0, 1, 1], [], []>} : vector<2x32xbf16>, vector<32x128xbf16>, vector<2x128xf32> -> vector<2x128xf32>
    %106 = vector.extract_strided_slice %105 {offsets = [0, 0], sizes = [2, 32], strides = [1, 1]} : vector<2x128xf32> to vector<2x32xf32>
    %107 = vector.extract_strided_slice %105 {offsets = [0, 32], sizes = [2, 96], strides = [1, 1]} : vector<2x128xf32> to vector<2x96xf32>
    %108 = vector.broadcast %5 : vector<1x96xf32> to vector<2x96xf32>
    %109 = arith.addf %107, %108 : vector<2x96xf32>
    %110 = vector.shape_cast %106 : vector<2x32xf32> to vector<1x2x32xf32>
    %111 = vector.broadcast %110 : vector<1x2x32xf32> to vector<8x2x32xf32>
    %112 = arith.addf %15, %111 : vector<8x2x32xf32>
    %113 = math.tanh %112 : vector<8x2x32xf32>
    %114 = vector.broadcast %7 : vector<1x1x32xf32> to vector<8x2x32xf32>
    %115 = arith.mulf %113, %114 : vector<8x2x32xf32>
    %cst_54 = arith.constant dense<0.000000e+00> : vector<8x2xf32>
    %116 = vector.multi_reduction <add>, %115, %cst_54 [2] : vector<8x2x32xf32> to vector<8x2xf32>
    %cst_55 = arith.constant 5.000000e-01 : f32
    %117 = vector.broadcast %cst_55 : f32 to vector<8x2xf32>
    %118 = arith.cmpf ogt, %1, %117 : vector<8x2xf32>
    %cst_56 = arith.constant -1.000000e+10 : f32
    %119 = vector.broadcast %cst_56 : f32 to vector<8x2xf32>
    %120 = arith.select %118, %116, %119 : vector<8x2xi1>, vector<8x2xf32>
    %cst_57 = arith.constant dense<0xFF800000> : vector<2xf32>
    %121 = vector.multi_reduction <maximumf>, %120, %cst_57 [0] : vector<8x2xf32> to vector<2xf32>
    %122 = vector.shape_cast %121 : vector<2xf32> to vector<1x2xf32>
    %123 = vector.broadcast %122 : vector<1x2xf32> to vector<8x2xf32>
    %124 = arith.subf %120, %123 : vector<8x2xf32>
    %125 = math.exp %124 : vector<8x2xf32>
    %cst_58 = arith.constant dense<0.000000e+00> : vector<2xf32>
    %126 = vector.multi_reduction <add>, %125, %cst_58 [0] : vector<8x2xf32> to vector<2xf32>
    %127 = vector.shape_cast %126 : vector<2xf32> to vector<1x2xf32>
    %128 = tpu.reciprocal %127 {approx = true} : vector<1x2xf32> -> vector<1x2xf32>
    %129 = vector.broadcast %128 : vector<1x2xf32> to vector<8x2xf32>
    %130 = arith.mulf %125, %129 : vector<8x2xf32>
    %131 = vector.shape_cast %130 : vector<8x2xf32> to vector<8x2x1xf32>
    %132 = vector.broadcast %131 : vector<8x2x1xf32> to vector<8x2x64xf32>
    %133 = arith.mulf %132, %0 : vector<8x2x64xf32>
    %cst_59 = arith.constant dense<0.000000e+00> : vector<2x64xf32>
    %134 = vector.multi_reduction <add>, %133, %cst_59 [0] : vector<8x2x64xf32> to vector<2x64xf32>
    %c2 = arith.constant 2 : index
    %c0_60 = arith.constant 0 : index
    %c0_61 = arith.constant 0 : index
    %135 = vector.load %arg15[%c2, %c0_60, %c0_61] : memref<8x8x2xf32, #tpu.memory_space<vmem>>, vector<1x8x2xf32>
    %136 = vector.shape_cast %135 : vector<1x8x2xf32> to vector<8x2xf32>
    %137 = vector.shape_cast %130 : vector<8x2xf32> to vector<1x8x2xf32>
    tpu.vector_store %arg15[%c2, %c0_60, %c0_61], %137 {strides = array<i32>} : memref<8x8x2xf32, #tpu.memory_space<vmem>>, vector<1x8x2xf32>,
    %138 = vector.extract_strided_slice %23 {offsets = [1, 0, 0], sizes = [1, 2, 96], strides = [1, 1, 1]} : vector<8x2x96xf32> to vector<1x2x96xf32>
    %139 = vector.shape_cast %138 : vector<1x2x96xf32> to vector<2x96xf32>
    %140 = arith.truncf %134 : vector<2x64xf32> to vector<2x64xbf16>
    %cst_62 = arith.constant dense<0.000000e+00> : vector<2x96xf32>
    %141 = tpu.matmul %140, %3, %cst_62 {dimension_numbers = #tpu.dot_dimension_numbers<[1], [0], [0], [1], [0, 0, 1, 1], [], []>} : vector<2x64xbf16>, vector<64x96xbf16>, vector<2x96xf32> -> vector<2x96xf32>
    %142 = arith.addf %139, %141 : vector<2x96xf32>
    %c1_63 = arith.constant 1 : index
    %c0_64 = arith.constant 0 : index
    %c0_65 = arith.constant 0 : index
    %143 = vector.load %arg0[%c1_63, %c0_64, %c0_65] : memref<8x2x16xbf16, #tpu.memory_space<vmem>>, vector<1x2x16xbf16>
    %144 = vector.shape_cast %143 : vector<1x2x16xbf16> to vector<2x16xbf16>
    %145 = arith.extf %144 : vector<2x16xbf16> to vector<2x16xf32>
    %146 = vector.extract_strided_slice %142 {offsets = [0, 0], sizes = [2, 32], strides = [1, 1]} : vector<2x96xf32> to vector<2x32xf32>
    %147 = vector.extract_strided_slice %109 {offsets = [0, 0], sizes = [2, 32], strides = [1, 1]} : vector<2x96xf32> to vector<2x32xf32>
    %148 = arith.addf %146, %147 : vector<2x32xf32>
    %149 = arith.negf %148 : vector<2x32xf32>
    %150 = math.exp %149 : vector<2x32xf32>
    %cst_66 = arith.constant 1.000000e+00 : f32
    %151 = vector.broadcast %cst_66 : f32 to vector<2x32xf32>
    %152 = arith.addf %151, %150 : vector<2x32xf32>
    %153 = arith.divf %151, %152 : vector<2x32xf32>
    %154 = vector.extract_strided_slice %142 {offsets = [0, 32], sizes = [2, 32], strides = [1, 1]} : vector<2x96xf32> to vector<2x32xf32>
    %155 = vector.extract_strided_slice %109 {offsets = [0, 32], sizes = [2, 32], strides = [1, 1]} : vector<2x96xf32> to vector<2x32xf32>
    %156 = arith.addf %154, %155 : vector<2x32xf32>
    %157 = arith.negf %156 : vector<2x32xf32>
    %158 = math.exp %157 : vector<2x32xf32>
    %cst_67 = arith.constant 1.000000e+00 : f32
    %159 = vector.broadcast %cst_67 : f32 to vector<2x32xf32>
    %160 = arith.addf %159, %158 : vector<2x32xf32>
    %161 = arith.divf %159, %160 : vector<2x32xf32>
    %162 = vector.extract_strided_slice %142 {offsets = [0, 64], sizes = [2, 32], strides = [1, 1]} : vector<2x96xf32> to vector<2x32xf32>
    %163 = vector.extract_strided_slice %109 {offsets = [0, 64], sizes = [2, 32], strides = [1, 1]} : vector<2x96xf32> to vector<2x32xf32>
    %164 = arith.mulf %153, %163 : vector<2x32xf32>
    %165 = arith.addf %162, %164 : vector<2x32xf32>
    %166 = math.tanh %165 : vector<2x32xf32>
    %cst_68 = arith.constant 1.000000e+00 : f32
    %167 = vector.broadcast %cst_68 : f32 to vector<2x32xf32>
    %168 = arith.subf %167, %161 : vector<2x32xf32>
    %169 = arith.mulf %168, %166 : vector<2x32xf32>
    %170 = arith.mulf %161, %99 : vector<2x32xf32>
    %171 = arith.addf %169, %170 : vector<2x32xf32>
    %172 = tpu.concatenate %171, %134, %145 in 1 : vector<2x32xf32>, vector<2x64xf32>, vector<2x16xf32> -> vector<2x112xf32>
    %c1_69 = arith.constant 1 : index
    %c0_70 = arith.constant 0 : index
    %c0_71 = arith.constant 0 : index
    %173 = vector.load %arg16[%c1_69, %c0_70, %c0_71] : memref<7x2x112xf32, #tpu.memory_space<vmem>>, vector<1x2x112xf32>
    %174 = vector.shape_cast %173 : vector<1x2x112xf32> to vector<2x112xf32>
    %175 = vector.shape_cast %172 : vector<2x112xf32> to vector<1x2x112xf32>
    tpu.vector_store %arg16[%c1_69, %c0_70, %c0_71], %175 {strides = array<i32>} : memref<7x2x112xf32, #tpu.memory_space<vmem>>, vector<1x2x112xf32>,
    %176 = arith.truncf %171 : vector<2x32xf32> to vector<2x32xbf16>
    %cst_72 = arith.constant dense<0.000000e+00> : vector<2x128xf32>
    %177 = tpu.matmul %176, %2, %cst_72 {dimension_numbers = #tpu.dot_dimension_numbers<[1], [0], [0], [1], [0, 0, 1, 1], [], []>} : vector<2x32xbf16>, vector<32x128xbf16>, vector<2x128xf32> -> vector<2x128xf32>
    %178 = vector.extract_strided_slice %177 {offsets = [0, 0], sizes = [2, 32], strides = [1, 1]} : vector<2x128xf32> to vector<2x32xf32>
    %179 = vector.extract_strided_slice %177 {offsets = [0, 32], sizes = [2, 96], strides = [1, 1]} : vector<2x128xf32> to vector<2x96xf32>
    %180 = vector.broadcast %5 : vector<1x96xf32> to vector<2x96xf32>
    %181 = arith.addf %179, %180 : vector<2x96xf32>
    %182 = vector.shape_cast %178 : vector<2x32xf32> to vector<1x2x32xf32>
    %183 = vector.broadcast %182 : vector<1x2x32xf32> to vector<8x2x32xf32>
    %184 = arith.addf %15, %183 : vector<8x2x32xf32>
    %185 = math.tanh %184 : vector<8x2x32xf32>
    %186 = vector.broadcast %7 : vector<1x1x32xf32> to vector<8x2x32xf32>
    %187 = arith.mulf %185, %186 : vector<8x2x32xf32>
    %cst_73 = arith.constant dense<0.000000e+00> : vector<8x2xf32>
    %188 = vector.multi_reduction <add>, %187, %cst_73 [2] : vector<8x2x32xf32> to vector<8x2xf32>
    %cst_74 = arith.constant 5.000000e-01 : f32
    %189 = vector.broadcast %cst_74 : f32 to vector<8x2xf32>
    %190 = arith.cmpf ogt, %1, %189 : vector<8x2xf32>
    %cst_75 = arith.constant -1.000000e+10 : f32
    %191 = vector.broadcast %cst_75 : f32 to vector<8x2xf32>
    %192 = arith.select %190, %188, %191 : vector<8x2xi1>, vector<8x2xf32>
    %cst_76 = arith.constant dense<0xFF800000> : vector<2xf32>
    %193 = vector.multi_reduction <maximumf>, %192, %cst_76 [0] : vector<8x2xf32> to vector<2xf32>
    %194 = vector.shape_cast %193 : vector<2xf32> to vector<1x2xf32>
    %195 = vector.broadcast %194 : vector<1x2xf32> to vector<8x2xf32>
    %196 = arith.subf %192, %195 : vector<8x2xf32>
    %197 = math.exp %196 : vector<8x2xf32>
    %cst_77 = arith.constant dense<0.000000e+00> : vector<2xf32>
    %198 = vector.multi_reduction <add>, %197, %cst_77 [0] : vector<8x2xf32> to vector<2xf32>
    %199 = vector.shape_cast %198 : vector<2xf32> to vector<1x2xf32>
    %200 = tpu.reciprocal %199 {approx = true} : vector<1x2xf32> -> vector<1x2xf32>
    %201 = vector.broadcast %200 : vector<1x2xf32> to vector<8x2xf32>
    %202 = arith.mulf %197, %201 : vector<8x2xf32>
    %203 = vector.shape_cast %202 : vector<8x2xf32> to vector<8x2x1xf32>
    %204 = vector.broadcast %203 : vector<8x2x1xf32> to vector<8x2x64xf32>
    %205 = arith.mulf %204, %0 : vector<8x2x64xf32>
    %cst_78 = arith.constant dense<0.000000e+00> : vector<2x64xf32>
    %206 = vector.multi_reduction <add>, %205, %cst_78 [0] : vector<8x2x64xf32> to vector<2x64xf32>
    %c3 = arith.constant 3 : index
    %c0_79 = arith.constant 0 : index
    %c0_80 = arith.constant 0 : index
    %207 = vector.load %arg15[%c3, %c0_79, %c0_80] : memref<8x8x2xf32, #tpu.memory_space<vmem>>, vector<1x8x2xf32>
    %208 = vector.shape_cast %207 : vector<1x8x2xf32> to vector<8x2xf32>
    %209 = vector.shape_cast %202 : vector<8x2xf32> to vector<1x8x2xf32>
    tpu.vector_store %arg15[%c3, %c0_79, %c0_80], %209 {strides = array<i32>} : memref<8x8x2xf32, #tpu.memory_space<vmem>>, vector<1x8x2xf32>,
    %210 = vector.extract_strided_slice %23 {offsets = [2, 0, 0], sizes = [1, 2, 96], strides = [1, 1, 1]} : vector<8x2x96xf32> to vector<1x2x96xf32>
    %211 = vector.shape_cast %210 : vector<1x2x96xf32> to vector<2x96xf32>
    %212 = arith.truncf %206 : vector<2x64xf32> to vector<2x64xbf16>
    %cst_81 = arith.constant dense<0.000000e+00> : vector<2x96xf32>
    %213 = tpu.matmul %212, %3, %cst_81 {dimension_numbers = #tpu.dot_dimension_numbers<[1], [0], [0], [1], [0, 0, 1, 1], [], []>} : vector<2x64xbf16>, vector<64x96xbf16>, vector<2x96xf32> -> vector<2x96xf32>
    %214 = arith.addf %211, %213 : vector<2x96xf32>
    %c2_82 = arith.constant 2 : index
    %c0_83 = arith.constant 0 : index
    %c0_84 = arith.constant 0 : index
    %215 = vector.load %arg0[%c2_82, %c0_83, %c0_84] : memref<8x2x16xbf16, #tpu.memory_space<vmem>>, vector<1x2x16xbf16>
    %216 = vector.shape_cast %215 : vector<1x2x16xbf16> to vector<2x16xbf16>
    %217 = arith.extf %216 : vector<2x16xbf16> to vector<2x16xf32>
    %218 = vector.extract_strided_slice %214 {offsets = [0, 0], sizes = [2, 32], strides = [1, 1]} : vector<2x96xf32> to vector<2x32xf32>
    %219 = vector.extract_strided_slice %181 {offsets = [0, 0], sizes = [2, 32], strides = [1, 1]} : vector<2x96xf32> to vector<2x32xf32>
    %220 = arith.addf %218, %219 : vector<2x32xf32>
    %221 = arith.negf %220 : vector<2x32xf32>
    %222 = math.exp %221 : vector<2x32xf32>
    %cst_85 = arith.constant 1.000000e+00 : f32
    %223 = vector.broadcast %cst_85 : f32 to vector<2x32xf32>
    %224 = arith.addf %223, %222 : vector<2x32xf32>
    %225 = arith.divf %223, %224 : vector<2x32xf32>
    %226 = vector.extract_strided_slice %214 {offsets = [0, 32], sizes = [2, 32], strides = [1, 1]} : vector<2x96xf32> to vector<2x32xf32>
    %227 = vector.extract_strided_slice %181 {offsets = [0, 32], sizes = [2, 32], strides = [1, 1]} : vector<2x96xf32> to vector<2x32xf32>
    %228 = arith.addf %226, %227 : vector<2x32xf32>
    %229 = arith.negf %228 : vector<2x32xf32>
    %230 = math.exp %229 : vector<2x32xf32>
    %cst_86 = arith.constant 1.000000e+00 : f32
    %231 = vector.broadcast %cst_86 : f32 to vector<2x32xf32>
    %232 = arith.addf %231, %230 : vector<2x32xf32>
    %233 = arith.divf %231, %232 : vector<2x32xf32>
    %234 = vector.extract_strided_slice %214 {offsets = [0, 64], sizes = [2, 32], strides = [1, 1]} : vector<2x96xf32> to vector<2x32xf32>
    %235 = vector.extract_strided_slice %181 {offsets = [0, 64], sizes = [2, 32], strides = [1, 1]} : vector<2x96xf32> to vector<2x32xf32>
    %236 = arith.mulf %225, %235 : vector<2x32xf32>
    %237 = arith.addf %234, %236 : vector<2x32xf32>
    %238 = math.tanh %237 : vector<2x32xf32>
    %cst_87 = arith.constant 1.000000e+00 : f32
    %239 = vector.broadcast %cst_87 : f32 to vector<2x32xf32>
    %240 = arith.subf %239, %233 : vector<2x32xf32>
    %241 = arith.mulf %240, %238 : vector<2x32xf32>
    %242 = arith.mulf %233, %171 : vector<2x32xf32>
    %243 = arith.addf %241, %242 : vector<2x32xf32>
    %244 = tpu.concatenate %243, %206, %217 in 1 : vector<2x32xf32>, vector<2x64xf32>, vector<2x16xf32> -> vector<2x112xf32>
    %c2_88 = arith.constant 2 : index
    %c0_89 = arith.constant 0 : index
    %c0_90 = arith.constant 0 : index
    %245 = vector.load %arg16[%c2_88, %c0_89, %c0_90] : memref<7x2x112xf32, #tpu.memory_space<vmem>>, vector<1x2x112xf32>
    %246 = vector.shape_cast %245 : vector<1x2x112xf32> to vector<2x112xf32>
    %247 = vector.shape_cast %244 : vector<2x112xf32> to vector<1x2x112xf32>
    tpu.vector_store %arg16[%c2_88, %c0_89, %c0_90], %247 {strides = array<i32>} : memref<7x2x112xf32, #tpu.memory_space<vmem>>, vector<1x2x112xf32>,
    %248 = arith.truncf %243 : vector<2x32xf32> to vector<2x32xbf16>
    %cst_91 = arith.constant dense<0.000000e+00> : vector<2x128xf32>
    %249 = tpu.matmul %248, %2, %cst_91 {dimension_numbers = #tpu.dot_dimension_numbers<[1], [0], [0], [1], [0, 0, 1, 1], [], []>} : vector<2x32xbf16>, vector<32x128xbf16>, vector<2x128xf32> -> vector<2x128xf32>
    %250 = vector.extract_strided_slice %249 {offsets = [0, 0], sizes = [2, 32], strides = [1, 1]} : vector<2x128xf32> to vector<2x32xf32>
    %251 = vector.extract_strided_slice %249 {offsets = [0, 32], sizes = [2, 96], strides = [1, 1]} : vector<2x128xf32> to vector<2x96xf32>
    %252 = vector.broadcast %5 : vector<1x96xf32> to vector<2x96xf32>
    %253 = arith.addf %251, %252 : vector<2x96xf32>
    %254 = vector.shape_cast %250 : vector<2x32xf32> to vector<1x2x32xf32>
    %255 = vector.broadcast %254 : vector<1x2x32xf32> to vector<8x2x32xf32>
    %256 = arith.addf %15, %255 : vector<8x2x32xf32>
    %257 = math.tanh %256 : vector<8x2x32xf32>
    %258 = vector.broadcast %7 : vector<1x1x32xf32> to vector<8x2x32xf32>
    %259 = arith.mulf %257, %258 : vector<8x2x32xf32>
    %cst_92 = arith.constant dense<0.000000e+00> : vector<8x2xf32>
    %260 = vector.multi_reduction <add>, %259, %cst_92 [2] : vector<8x2x32xf32> to vector<8x2xf32>
    %cst_93 = arith.constant 5.000000e-01 : f32
    %261 = vector.broadcast %cst_93 : f32 to vector<8x2xf32>
    %262 = arith.cmpf ogt, %1, %261 : vector<8x2xf32>
    %cst_94 = arith.constant -1.000000e+10 : f32
    %263 = vector.broadcast %cst_94 : f32 to vector<8x2xf32>
    %264 = arith.select %262, %260, %263 : vector<8x2xi1>, vector<8x2xf32>
    %cst_95 = arith.constant dense<0xFF800000> : vector<2xf32>
    %265 = vector.multi_reduction <maximumf>, %264, %cst_95 [0] : vector<8x2xf32> to vector<2xf32>
    %266 = vector.shape_cast %265 : vector<2xf32> to vector<1x2xf32>
    %267 = vector.broadcast %266 : vector<1x2xf32> to vector<8x2xf32>
    %268 = arith.subf %264, %267 : vector<8x2xf32>
    %269 = math.exp %268 : vector<8x2xf32>
    %cst_96 = arith.constant dense<0.000000e+00> : vector<2xf32>
    %270 = vector.multi_reduction <add>, %269, %cst_96 [0] : vector<8x2xf32> to vector<2xf32>
    %271 = vector.shape_cast %270 : vector<2xf32> to vector<1x2xf32>
    %272 = tpu.reciprocal %271 {approx = true} : vector<1x2xf32> -> vector<1x2xf32>
    %273 = vector.broadcast %272 : vector<1x2xf32> to vector<8x2xf32>
    %274 = arith.mulf %269, %273 : vector<8x2xf32>
    %275 = vector.shape_cast %274 : vector<8x2xf32> to vector<8x2x1xf32>
    %276 = vector.broadcast %275 : vector<8x2x1xf32> to vector<8x2x64xf32>
    %277 = arith.mulf %276, %0 : vector<8x2x64xf32>
    %cst_97 = arith.constant dense<0.000000e+00> : vector<2x64xf32>
    %278 = vector.multi_reduction <add>, %277, %cst_97 [0] : vector<8x2x64xf32> to vector<2x64xf32>
    %c4 = arith.constant 4 : index
    %c0_98 = arith.constant 0 : index
    %c0_99 = arith.constant 0 : index
    %279 = vector.load %arg15[%c4, %c0_98, %c0_99] : memref<8x8x2xf32, #tpu.memory_space<vmem>>, vector<1x8x2xf32>
    %280 = vector.shape_cast %279 : vector<1x8x2xf32> to vector<8x2xf32>
    %281 = vector.shape_cast %274 : vector<8x2xf32> to vector<1x8x2xf32>
    tpu.vector_store %arg15[%c4, %c0_98, %c0_99], %281 {strides = array<i32>} : memref<8x8x2xf32, #tpu.memory_space<vmem>>, vector<1x8x2xf32>,
    %282 = vector.extract_strided_slice %23 {offsets = [3, 0, 0], sizes = [1, 2, 96], strides = [1, 1, 1]} : vector<8x2x96xf32> to vector<1x2x96xf32>
    %283 = vector.shape_cast %282 : vector<1x2x96xf32> to vector<2x96xf32>
    %284 = arith.truncf %278 : vector<2x64xf32> to vector<2x64xbf16>
    %cst_100 = arith.constant dense<0.000000e+00> : vector<2x96xf32>
    %285 = tpu.matmul %284, %3, %cst_100 {dimension_numbers = #tpu.dot_dimension_numbers<[1], [0], [0], [1], [0, 0, 1, 1], [], []>} : vector<2x64xbf16>, vector<64x96xbf16>, vector<2x96xf32> -> vector<2x96xf32>
    %286 = arith.addf %283, %285 : vector<2x96xf32>
    %c3_101 = arith.constant 3 : index
    %c0_102 = arith.constant 0 : index
    %c0_103 = arith.constant 0 : index
    %287 = vector.load %arg0[%c3_101, %c0_102, %c0_103] : memref<8x2x16xbf16, #tpu.memory_space<vmem>>, vector<1x2x16xbf16>
    %288 = vector.shape_cast %287 : vector<1x2x16xbf16> to vector<2x16xbf16>
    %289 = arith.extf %288 : vector<2x16xbf16> to vector<2x16xf32>
    %290 = vector.extract_strided_slice %286 {offsets = [0, 0], sizes = [2, 32], strides = [1, 1]} : vector<2x96xf32> to vector<2x32xf32>
    %291 = vector.extract_strided_slice %253 {offsets = [0, 0], sizes = [2, 32], strides = [1, 1]} : vector<2x96xf32> to vector<2x32xf32>
    %292 = arith.addf %290, %291 : vector<2x32xf32>
    %293 = arith.negf %292 : vector<2x32xf32>
    %294 = math.exp %293 : vector<2x32xf32>
    %cst_104 = arith.constant 1.000000e+00 : f32
    %295 = vector.broadcast %cst_104 : f32 to vector<2x32xf32>
    %296 = arith.addf %295, %294 : vector<2x32xf32>
    %297 = arith.divf %295, %296 : vector<2x32xf32>
    %298 = vector.extract_strided_slice %286 {offsets = [0, 32], sizes = [2, 32], strides = [1, 1]} : vector<2x96xf32> to vector<2x32xf32>
    %299 = vector.extract_strided_slice %253 {offsets = [0, 32], sizes = [2, 32], strides = [1, 1]} : vector<2x96xf32> to vector<2x32xf32>
    %300 = arith.addf %298, %299 : vector<2x32xf32>
    %301 = arith.negf %300 : vector<2x32xf32>
    %302 = math.exp %301 : vector<2x32xf32>
    %cst_105 = arith.constant 1.000000e+00 : f32
    %303 = vector.broadcast %cst_105 : f32 to vector<2x32xf32>
    %304 = arith.addf %303, %302 : vector<2x32xf32>
    %305 = arith.divf %303, %304 : vector<2x32xf32>
    %306 = vector.extract_strided_slice %286 {offsets = [0, 64], sizes = [2, 32], strides = [1, 1]} : vector<2x96xf32> to vector<2x32xf32>
    %307 = vector.extract_strided_slice %253 {offsets = [0, 64], sizes = [2, 32], strides = [1, 1]} : vector<2x96xf32> to vector<2x32xf32>
    %308 = arith.mulf %297, %307 : vector<2x32xf32>
    %309 = arith.addf %306, %308 : vector<2x32xf32>
    %310 = math.tanh %309 : vector<2x32xf32>
    %cst_106 = arith.constant 1.000000e+00 : f32
    %311 = vector.broadcast %cst_106 : f32 to vector<2x32xf32>
    %312 = arith.subf %311, %305 : vector<2x32xf32>
    %313 = arith.mulf %312, %310 : vector<2x32xf32>
    %314 = arith.mulf %305, %243 : vector<2x32xf32>
    %315 = arith.addf %313, %314 : vector<2x32xf32>
    %316 = tpu.concatenate %315, %278, %289 in 1 : vector<2x32xf32>, vector<2x64xf32>, vector<2x16xf32> -> vector<2x112xf32>
    %c3_107 = arith.constant 3 : index
    %c0_108 = arith.constant 0 : index
    %c0_109 = arith.constant 0 : index
    %317 = vector.load %arg16[%c3_107, %c0_108, %c0_109] : memref<7x2x112xf32, #tpu.memory_space<vmem>>, vector<1x2x112xf32>
    %318 = vector.shape_cast %317 : vector<1x2x112xf32> to vector<2x112xf32>
    %319 = vector.shape_cast %316 : vector<2x112xf32> to vector<1x2x112xf32>
    tpu.vector_store %arg16[%c3_107, %c0_108, %c0_109], %319 {strides = array<i32>} : memref<7x2x112xf32, #tpu.memory_space<vmem>>, vector<1x2x112xf32>,
    %320 = arith.truncf %315 : vector<2x32xf32> to vector<2x32xbf16>
    %cst_110 = arith.constant dense<0.000000e+00> : vector<2x128xf32>
    %321 = tpu.matmul %320, %2, %cst_110 {dimension_numbers = #tpu.dot_dimension_numbers<[1], [0], [0], [1], [0, 0, 1, 1], [], []>} : vector<2x32xbf16>, vector<32x128xbf16>, vector<2x128xf32> -> vector<2x128xf32>
    %322 = vector.extract_strided_slice %321 {offsets = [0, 0], sizes = [2, 32], strides = [1, 1]} : vector<2x128xf32> to vector<2x32xf32>
    %323 = vector.extract_strided_slice %321 {offsets = [0, 32], sizes = [2, 96], strides = [1, 1]} : vector<2x128xf32> to vector<2x96xf32>
    %324 = vector.broadcast %5 : vector<1x96xf32> to vector<2x96xf32>
    %325 = arith.addf %323, %324 : vector<2x96xf32>
    %326 = vector.shape_cast %322 : vector<2x32xf32> to vector<1x2x32xf32>
    %327 = vector.broadcast %326 : vector<1x2x32xf32> to vector<8x2x32xf32>
    %328 = arith.addf %15, %327 : vector<8x2x32xf32>
    %329 = math.tanh %328 : vector<8x2x32xf32>
    %330 = vector.broadcast %7 : vector<1x1x32xf32> to vector<8x2x32xf32>
    %331 = arith.mulf %329, %330 : vector<8x2x32xf32>
    %cst_111 = arith.constant dense<0.000000e+00> : vector<8x2xf32>
    %332 = vector.multi_reduction <add>, %331, %cst_111 [2] : vector<8x2x32xf32> to vector<8x2xf32>
    %cst_112 = arith.constant 5.000000e-01 : f32
    %333 = vector.broadcast %cst_112 : f32 to vector<8x2xf32>
    %334 = arith.cmpf ogt, %1, %333 : vector<8x2xf32>
    %cst_113 = arith.constant -1.000000e+10 : f32
    %335 = vector.broadcast %cst_113 : f32 to vector<8x2xf32>
    %336 = arith.select %334, %332, %335 : vector<8x2xi1>, vector<8x2xf32>
    %cst_114 = arith.constant dense<0xFF800000> : vector<2xf32>
    %337 = vector.multi_reduction <maximumf>, %336, %cst_114 [0] : vector<8x2xf32> to vector<2xf32>
    %338 = vector.shape_cast %337 : vector<2xf32> to vector<1x2xf32>
    %339 = vector.broadcast %338 : vector<1x2xf32> to vector<8x2xf32>
    %340 = arith.subf %336, %339 : vector<8x2xf32>
    %341 = math.exp %340 : vector<8x2xf32>
    %cst_115 = arith.constant dense<0.000000e+00> : vector<2xf32>
    %342 = vector.multi_reduction <add>, %341, %cst_115 [0] : vector<8x2xf32> to vector<2xf32>
    %343 = vector.shape_cast %342 : vector<2xf32> to vector<1x2xf32>
    %344 = tpu.reciprocal %343 {approx = true} : vector<1x2xf32> -> vector<1x2xf32>
    %345 = vector.broadcast %344 : vector<1x2xf32> to vector<8x2xf32>
    %346 = arith.mulf %341, %345 : vector<8x2xf32>
    %347 = vector.shape_cast %346 : vector<8x2xf32> to vector<8x2x1xf32>
    %348 = vector.broadcast %347 : vector<8x2x1xf32> to vector<8x2x64xf32>
    %349 = arith.mulf %348, %0 : vector<8x2x64xf32>
    %cst_116 = arith.constant dense<0.000000e+00> : vector<2x64xf32>
    %350 = vector.multi_reduction <add>, %349, %cst_116 [0] : vector<8x2x64xf32> to vector<2x64xf32>
    %c5 = arith.constant 5 : index
    %c0_117 = arith.constant 0 : index
    %c0_118 = arith.constant 0 : index
    %351 = vector.load %arg15[%c5, %c0_117, %c0_118] : memref<8x8x2xf32, #tpu.memory_space<vmem>>, vector<1x8x2xf32>
    %352 = vector.shape_cast %351 : vector<1x8x2xf32> to vector<8x2xf32>
    %353 = vector.shape_cast %346 : vector<8x2xf32> to vector<1x8x2xf32>
    tpu.vector_store %arg15[%c5, %c0_117, %c0_118], %353 {strides = array<i32>} : memref<8x8x2xf32, #tpu.memory_space<vmem>>, vector<1x8x2xf32>,
    %354 = vector.extract_strided_slice %23 {offsets = [4, 0, 0], sizes = [1, 2, 96], strides = [1, 1, 1]} : vector<8x2x96xf32> to vector<1x2x96xf32>
    %355 = vector.shape_cast %354 : vector<1x2x96xf32> to vector<2x96xf32>
    %356 = arith.truncf %350 : vector<2x64xf32> to vector<2x64xbf16>
    %cst_119 = arith.constant dense<0.000000e+00> : vector<2x96xf32>
    %357 = tpu.matmul %356, %3, %cst_119 {dimension_numbers = #tpu.dot_dimension_numbers<[1], [0], [0], [1], [0, 0, 1, 1], [], []>} : vector<2x64xbf16>, vector<64x96xbf16>, vector<2x96xf32> -> vector<2x96xf32>
    %358 = arith.addf %355, %357 : vector<2x96xf32>
    %c4_120 = arith.constant 4 : index
    %c0_121 = arith.constant 0 : index
    %c0_122 = arith.constant 0 : index
    %359 = vector.load %arg0[%c4_120, %c0_121, %c0_122] : memref<8x2x16xbf16, #tpu.memory_space<vmem>>, vector<1x2x16xbf16>
    %360 = vector.shape_cast %359 : vector<1x2x16xbf16> to vector<2x16xbf16>
    %361 = arith.extf %360 : vector<2x16xbf16> to vector<2x16xf32>
    %362 = vector.extract_strided_slice %358 {offsets = [0, 0], sizes = [2, 32], strides = [1, 1]} : vector<2x96xf32> to vector<2x32xf32>
    %363 = vector.extract_strided_slice %325 {offsets = [0, 0], sizes = [2, 32], strides = [1, 1]} : vector<2x96xf32> to vector<2x32xf32>
    %364 = arith.addf %362, %363 : vector<2x32xf32>
    %365 = arith.negf %364 : vector<2x32xf32>
    %366 = math.exp %365 : vector<2x32xf32>
    %cst_123 = arith.constant 1.000000e+00 : f32
    %367 = vector.broadcast %cst_123 : f32 to vector<2x32xf32>
    %368 = arith.addf %367, %366 : vector<2x32xf32>
    %369 = arith.divf %367, %368 : vector<2x32xf32>
    %370 = vector.extract_strided_slice %358 {offsets = [0, 32], sizes = [2, 32], strides = [1, 1]} : vector<2x96xf32> to vector<2x32xf32>
    %371 = vector.extract_strided_slice %325 {offsets = [0, 32], sizes = [2, 32], strides = [1, 1]} : vector<2x96xf32> to vector<2x32xf32>
    %372 = arith.addf %370, %371 : vector<2x32xf32>
    %373 = arith.negf %372 : vector<2x32xf32>
    %374 = math.exp %373 : vector<2x32xf32>
    %cst_124 = arith.constant 1.000000e+00 : f32
    %375 = vector.broadcast %cst_124 : f32 to vector<2x32xf32>
    %376 = arith.addf %375, %374 : vector<2x32xf32>
    %377 = arith.divf %375, %376 : vector<2x32xf32>
    %378 = vector.extract_strided_slice %358 {offsets = [0, 64], sizes = [2, 32], strides = [1, 1]} : vector<2x96xf32> to vector<2x32xf32>
    %379 = vector.extract_strided_slice %325 {offsets = [0, 64], sizes = [2, 32], strides = [1, 1]} : vector<2x96xf32> to vector<2x32xf32>
    %380 = arith.mulf %369, %379 : vector<2x32xf32>
    %381 = arith.addf %378, %380 : vector<2x32xf32>
    %382 = math.tanh %381 : vector<2x32xf32>
    %cst_125 = arith.constant 1.000000e+00 : f32
    %383 = vector.broadcast %cst_125 : f32 to vector<2x32xf32>
    %384 = arith.subf %383, %377 : vector<2x32xf32>
    %385 = arith.mulf %384, %382 : vector<2x32xf32>
    %386 = arith.mulf %377, %315 : vector<2x32xf32>
    %387 = arith.addf %385, %386 : vector<2x32xf32>
    %388 = tpu.concatenate %387, %350, %361 in 1 : vector<2x32xf32>, vector<2x64xf32>, vector<2x16xf32> -> vector<2x112xf32>
    %c4_126 = arith.constant 4 : index
    %c0_127 = arith.constant 0 : index
    %c0_128 = arith.constant 0 : index
    %389 = vector.load %arg16[%c4_126, %c0_127, %c0_128] : memref<7x2x112xf32, #tpu.memory_space<vmem>>, vector<1x2x112xf32>
    %390 = vector.shape_cast %389 : vector<1x2x112xf32> to vector<2x112xf32>
    %391 = vector.shape_cast %388 : vector<2x112xf32> to vector<1x2x112xf32>
    tpu.vector_store %arg16[%c4_126, %c0_127, %c0_128], %391 {strides = array<i32>} : memref<7x2x112xf32, #tpu.memory_space<vmem>>, vector<1x2x112xf32>,
    %392 = arith.truncf %387 : vector<2x32xf32> to vector<2x32xbf16>
    %cst_129 = arith.constant dense<0.000000e+00> : vector<2x128xf32>
    %393 = tpu.matmul %392, %2, %cst_129 {dimension_numbers = #tpu.dot_dimension_numbers<[1], [0], [0], [1], [0, 0, 1, 1], [], []>} : vector<2x32xbf16>, vector<32x128xbf16>, vector<2x128xf32> -> vector<2x128xf32>
    %394 = vector.extract_strided_slice %393 {offsets = [0, 0], sizes = [2, 32], strides = [1, 1]} : vector<2x128xf32> to vector<2x32xf32>
    %395 = vector.extract_strided_slice %393 {offsets = [0, 32], sizes = [2, 96], strides = [1, 1]} : vector<2x128xf32> to vector<2x96xf32>
    %396 = vector.broadcast %5 : vector<1x96xf32> to vector<2x96xf32>
    %397 = arith.addf %395, %396 : vector<2x96xf32>
    %398 = vector.shape_cast %394 : vector<2x32xf32> to vector<1x2x32xf32>
    %399 = vector.broadcast %398 : vector<1x2x32xf32> to vector<8x2x32xf32>
    %400 = arith.addf %15, %399 : vector<8x2x32xf32>
    %401 = math.tanh %400 : vector<8x2x32xf32>
    %402 = vector.broadcast %7 : vector<1x1x32xf32> to vector<8x2x32xf32>
    %403 = arith.mulf %401, %402 : vector<8x2x32xf32>
    %cst_130 = arith.constant dense<0.000000e+00> : vector<8x2xf32>
    %404 = vector.multi_reduction <add>, %403, %cst_130 [2] : vector<8x2x32xf32> to vector<8x2xf32>
    %cst_131 = arith.constant 5.000000e-01 : f32
    %405 = vector.broadcast %cst_131 : f32 to vector<8x2xf32>
    %406 = arith.cmpf ogt, %1, %405 : vector<8x2xf32>
    %cst_132 = arith.constant -1.000000e+10 : f32
    %407 = vector.broadcast %cst_132 : f32 to vector<8x2xf32>
    %408 = arith.select %406, %404, %407 : vector<8x2xi1>, vector<8x2xf32>
    %cst_133 = arith.constant dense<0xFF800000> : vector<2xf32>
    %409 = vector.multi_reduction <maximumf>, %408, %cst_133 [0] : vector<8x2xf32> to vector<2xf32>
    %410 = vector.shape_cast %409 : vector<2xf32> to vector<1x2xf32>
    %411 = vector.broadcast %410 : vector<1x2xf32> to vector<8x2xf32>
    %412 = arith.subf %408, %411 : vector<8x2xf32>
    %413 = math.exp %412 : vector<8x2xf32>
    %cst_134 = arith.constant dense<0.000000e+00> : vector<2xf32>
    %414 = vector.multi_reduction <add>, %413, %cst_134 [0] : vector<8x2xf32> to vector<2xf32>
    %415 = vector.shape_cast %414 : vector<2xf32> to vector<1x2xf32>
    %416 = tpu.reciprocal %415 {approx = true} : vector<1x2xf32> -> vector<1x2xf32>
    %417 = vector.broadcast %416 : vector<1x2xf32> to vector<8x2xf32>
    %418 = arith.mulf %413, %417 : vector<8x2xf32>
    %419 = vector.shape_cast %418 : vector<8x2xf32> to vector<8x2x1xf32>
    %420 = vector.broadcast %419 : vector<8x2x1xf32> to vector<8x2x64xf32>
    %421 = arith.mulf %420, %0 : vector<8x2x64xf32>
    %cst_135 = arith.constant dense<0.000000e+00> : vector<2x64xf32>
    %422 = vector.multi_reduction <add>, %421, %cst_135 [0] : vector<8x2x64xf32> to vector<2x64xf32>
    %c6 = arith.constant 6 : index
    %c0_136 = arith.constant 0 : index
    %c0_137 = arith.constant 0 : index
    %423 = vector.load %arg15[%c6, %c0_136, %c0_137] : memref<8x8x2xf32, #tpu.memory_space<vmem>>, vector<1x8x2xf32>
    %424 = vector.shape_cast %423 : vector<1x8x2xf32> to vector<8x2xf32>
    %425 = vector.shape_cast %418 : vector<8x2xf32> to vector<1x8x2xf32>
    tpu.vector_store %arg15[%c6, %c0_136, %c0_137], %425 {strides = array<i32>} : memref<8x8x2xf32, #tpu.memory_space<vmem>>, vector<1x8x2xf32>,
    %426 = vector.extract_strided_slice %23 {offsets = [5, 0, 0], sizes = [1, 2, 96], strides = [1, 1, 1]} : vector<8x2x96xf32> to vector<1x2x96xf32>
    %427 = vector.shape_cast %426 : vector<1x2x96xf32> to vector<2x96xf32>
    %428 = arith.truncf %422 : vector<2x64xf32> to vector<2x64xbf16>
    %cst_138 = arith.constant dense<0.000000e+00> : vector<2x96xf32>
    %429 = tpu.matmul %428, %3, %cst_138 {dimension_numbers = #tpu.dot_dimension_numbers<[1], [0], [0], [1], [0, 0, 1, 1], [], []>} : vector<2x64xbf16>, vector<64x96xbf16>, vector<2x96xf32> -> vector<2x96xf32>
    %430 = arith.addf %427, %429 : vector<2x96xf32>
    %c5_139 = arith.constant 5 : index
    %c0_140 = arith.constant 0 : index
    %c0_141 = arith.constant 0 : index
    %431 = vector.load %arg0[%c5_139, %c0_140, %c0_141] : memref<8x2x16xbf16, #tpu.memory_space<vmem>>, vector<1x2x16xbf16>
    %432 = vector.shape_cast %431 : vector<1x2x16xbf16> to vector<2x16xbf16>
    %433 = arith.extf %432 : vector<2x16xbf16> to vector<2x16xf32>
    %434 = vector.extract_strided_slice %430 {offsets = [0, 0], sizes = [2, 32], strides = [1, 1]} : vector<2x96xf32> to vector<2x32xf32>
    %435 = vector.extract_strided_slice %397 {offsets = [0, 0], sizes = [2, 32], strides = [1, 1]} : vector<2x96xf32> to vector<2x32xf32>
    %436 = arith.addf %434, %435 : vector<2x32xf32>
    %437 = arith.negf %436 : vector<2x32xf32>
    %438 = math.exp %437 : vector<2x32xf32>
    %cst_142 = arith.constant 1.000000e+00 : f32
    %439 = vector.broadcast %cst_142 : f32 to vector<2x32xf32>
    %440 = arith.addf %439, %438 : vector<2x32xf32>
    %441 = arith.divf %439, %440 : vector<2x32xf32>
    %442 = vector.extract_strided_slice %430 {offsets = [0, 32], sizes = [2, 32], strides = [1, 1]} : vector<2x96xf32> to vector<2x32xf32>
    %443 = vector.extract_strided_slice %397 {offsets = [0, 32], sizes = [2, 32], strides = [1, 1]} : vector<2x96xf32> to vector<2x32xf32>
    %444 = arith.addf %442, %443 : vector<2x32xf32>
    %445 = arith.negf %444 : vector<2x32xf32>
    %446 = math.exp %445 : vector<2x32xf32>
    %cst_143 = arith.constant 1.000000e+00 : f32
    %447 = vector.broadcast %cst_143 : f32 to vector<2x32xf32>
    %448 = arith.addf %447, %446 : vector<2x32xf32>
    %449 = arith.divf %447, %448 : vector<2x32xf32>
    %450 = vector.extract_strided_slice %430 {offsets = [0, 64], sizes = [2, 32], strides = [1, 1]} : vector<2x96xf32> to vector<2x32xf32>
    %451 = vector.extract_strided_slice %397 {offsets = [0, 64], sizes = [2, 32], strides = [1, 1]} : vector<2x96xf32> to vector<2x32xf32>
    %452 = arith.mulf %441, %451 : vector<2x32xf32>
    %453 = arith.addf %450, %452 : vector<2x32xf32>
    %454 = math.tanh %453 : vector<2x32xf32>
    %cst_144 = arith.constant 1.000000e+00 : f32
    %455 = vector.broadcast %cst_144 : f32 to vector<2x32xf32>
    %456 = arith.subf %455, %449 : vector<2x32xf32>
    %457 = arith.mulf %456, %454 : vector<2x32xf32>
    %458 = arith.mulf %449, %387 : vector<2x32xf32>
    %459 = arith.addf %457, %458 : vector<2x32xf32>
    %460 = tpu.concatenate %459, %422, %433 in 1 : vector<2x32xf32>, vector<2x64xf32>, vector<2x16xf32> -> vector<2x112xf32>
    %c5_145 = arith.constant 5 : index
    %c0_146 = arith.constant 0 : index
    %c0_147 = arith.constant 0 : index
    %461 = vector.load %arg16[%c5_145, %c0_146, %c0_147] : memref<7x2x112xf32, #tpu.memory_space<vmem>>, vector<1x2x112xf32>
    %462 = vector.shape_cast %461 : vector<1x2x112xf32> to vector<2x112xf32>
    %463 = vector.shape_cast %460 : vector<2x112xf32> to vector<1x2x112xf32>
    tpu.vector_store %arg16[%c5_145, %c0_146, %c0_147], %463 {strides = array<i32>} : memref<7x2x112xf32, #tpu.memory_space<vmem>>, vector<1x2x112xf32>,
    %464 = arith.truncf %459 : vector<2x32xf32> to vector<2x32xbf16>
    %cst_148 = arith.constant dense<0.000000e+00> : vector<2x128xf32>
    %465 = tpu.matmul %464, %2, %cst_148 {dimension_numbers = #tpu.dot_dimension_numbers<[1], [0], [0], [1], [0, 0, 1, 1], [], []>} : vector<2x32xbf16>, vector<32x128xbf16>, vector<2x128xf32> -> vector<2x128xf32>
    %466 = vector.extract_strided_slice %465 {offsets = [0, 0], sizes = [2, 32], strides = [1, 1]} : vector<2x128xf32> to vector<2x32xf32>
    %467 = vector.extract_strided_slice %465 {offsets = [0, 32], sizes = [2, 96], strides = [1, 1]} : vector<2x128xf32> to vector<2x96xf32>
    %468 = vector.broadcast %5 : vector<1x96xf32> to vector<2x96xf32>
    %469 = arith.addf %467, %468 : vector<2x96xf32>
    %470 = vector.shape_cast %466 : vector<2x32xf32> to vector<1x2x32xf32>
    %471 = vector.broadcast %470 : vector<1x2x32xf32> to vector<8x2x32xf32>
    %472 = arith.addf %15, %471 : vector<8x2x32xf32>
    %473 = math.tanh %472 : vector<8x2x32xf32>
    %474 = vector.broadcast %7 : vector<1x1x32xf32> to vector<8x2x32xf32>
    %475 = arith.mulf %473, %474 : vector<8x2x32xf32>
    %cst_149 = arith.constant dense<0.000000e+00> : vector<8x2xf32>
    %476 = vector.multi_reduction <add>, %475, %cst_149 [2] : vector<8x2x32xf32> to vector<8x2xf32>
    %cst_150 = arith.constant 5.000000e-01 : f32
    %477 = vector.broadcast %cst_150 : f32 to vector<8x2xf32>
    %478 = arith.cmpf ogt, %1, %477 : vector<8x2xf32>
    %cst_151 = arith.constant -1.000000e+10 : f32
    %479 = vector.broadcast %cst_151 : f32 to vector<8x2xf32>
    %480 = arith.select %478, %476, %479 : vector<8x2xi1>, vector<8x2xf32>
    %cst_152 = arith.constant dense<0xFF800000> : vector<2xf32>
    %481 = vector.multi_reduction <maximumf>, %480, %cst_152 [0] : vector<8x2xf32> to vector<2xf32>
    %482 = vector.shape_cast %481 : vector<2xf32> to vector<1x2xf32>
    %483 = vector.broadcast %482 : vector<1x2xf32> to vector<8x2xf32>
    %484 = arith.subf %480, %483 : vector<8x2xf32>
    %485 = math.exp %484 : vector<8x2xf32>
    %cst_153 = arith.constant dense<0.000000e+00> : vector<2xf32>
    %486 = vector.multi_reduction <add>, %485, %cst_153 [0] : vector<8x2xf32> to vector<2xf32>
    %487 = vector.shape_cast %486 : vector<2xf32> to vector<1x2xf32>
    %488 = tpu.reciprocal %487 {approx = true} : vector<1x2xf32> -> vector<1x2xf32>
    %489 = vector.broadcast %488 : vector<1x2xf32> to vector<8x2xf32>
    %490 = arith.mulf %485, %489 : vector<8x2xf32>
    %491 = vector.shape_cast %490 : vector<8x2xf32> to vector<8x2x1xf32>
    %492 = vector.broadcast %491 : vector<8x2x1xf32> to vector<8x2x64xf32>
    %493 = arith.mulf %492, %0 : vector<8x2x64xf32>
    %cst_154 = arith.constant dense<0.000000e+00> : vector<2x64xf32>
    %494 = vector.multi_reduction <add>, %493, %cst_154 [0] : vector<8x2x64xf32> to vector<2x64xf32>
    %c7 = arith.constant 7 : index
    %c0_155 = arith.constant 0 : index
    %c0_156 = arith.constant 0 : index
    %495 = vector.load %arg15[%c7, %c0_155, %c0_156] : memref<8x8x2xf32, #tpu.memory_space<vmem>>, vector<1x8x2xf32>
    %496 = vector.shape_cast %495 : vector<1x8x2xf32> to vector<8x2xf32>
    %497 = vector.shape_cast %490 : vector<8x2xf32> to vector<1x8x2xf32>
    tpu.vector_store %arg15[%c7, %c0_155, %c0_156], %497 {strides = array<i32>} : memref<8x8x2xf32, #tpu.memory_space<vmem>>, vector<1x8x2xf32>,
    %498 = vector.extract_strided_slice %23 {offsets = [6, 0, 0], sizes = [1, 2, 96], strides = [1, 1, 1]} : vector<8x2x96xf32> to vector<1x2x96xf32>
    %499 = vector.shape_cast %498 : vector<1x2x96xf32> to vector<2x96xf32>
    %500 = arith.truncf %494 : vector<2x64xf32> to vector<2x64xbf16>
    %cst_157 = arith.constant dense<0.000000e+00> : vector<2x96xf32>
    %501 = tpu.matmul %500, %3, %cst_157 {dimension_numbers = #tpu.dot_dimension_numbers<[1], [0], [0], [1], [0, 0, 1, 1], [], []>} : vector<2x64xbf16>, vector<64x96xbf16>, vector<2x96xf32> -> vector<2x96xf32>
    %502 = arith.addf %499, %501 : vector<2x96xf32>
    %c6_158 = arith.constant 6 : index
    %c0_159 = arith.constant 0 : index
    %c0_160 = arith.constant 0 : index
    %503 = vector.load %arg0[%c6_158, %c0_159, %c0_160] : memref<8x2x16xbf16, #tpu.memory_space<vmem>>, vector<1x2x16xbf16>
    %504 = vector.shape_cast %503 : vector<1x2x16xbf16> to vector<2x16xbf16>
    %505 = arith.extf %504 : vector<2x16xbf16> to vector<2x16xf32>
    %506 = vector.extract_strided_slice %502 {offsets = [0, 0], sizes = [2, 32], strides = [1, 1]} : vector<2x96xf32> to vector<2x32xf32>
    %507 = vector.extract_strided_slice %469 {offsets = [0, 0], sizes = [2, 32], strides = [1, 1]} : vector<2x96xf32> to vector<2x32xf32>
    %508 = arith.addf %506, %507 : vector<2x32xf32>
    %509 = arith.negf %508 : vector<2x32xf32>
    %510 = math.exp %509 : vector<2x32xf32>
    %cst_161 = arith.constant 1.000000e+00 : f32
    %511 = vector.broadcast %cst_161 : f32 to vector<2x32xf32>
    %512 = arith.addf %511, %510 : vector<2x32xf32>
    %513 = arith.divf %511, %512 : vector<2x32xf32>
    %514 = vector.extract_strided_slice %502 {offsets = [0, 32], sizes = [2, 32], strides = [1, 1]} : vector<2x96xf32> to vector<2x32xf32>
    %515 = vector.extract_strided_slice %469 {offsets = [0, 32], sizes = [2, 32], strides = [1, 1]} : vector<2x96xf32> to vector<2x32xf32>
    %516 = arith.addf %514, %515 : vector<2x32xf32>
    %517 = arith.negf %516 : vector<2x32xf32>
    %518 = math.exp %517 : vector<2x32xf32>
    %cst_162 = arith.constant 1.000000e+00 : f32
    %519 = vector.broadcast %cst_162 : f32 to vector<2x32xf32>
    %520 = arith.addf %519, %518 : vector<2x32xf32>
    %521 = arith.divf %519, %520 : vector<2x32xf32>
    %522 = vector.extract_strided_slice %502 {offsets = [0, 64], sizes = [2, 32], strides = [1, 1]} : vector<2x96xf32> to vector<2x32xf32>
    %523 = vector.extract_strided_slice %469 {offsets = [0, 64], sizes = [2, 32], strides = [1, 1]} : vector<2x96xf32> to vector<2x32xf32>
    %524 = arith.mulf %513, %523 : vector<2x32xf32>
    %525 = arith.addf %522, %524 : vector<2x32xf32>
    %526 = math.tanh %525 : vector<2x32xf32>
    %cst_163 = arith.constant 1.000000e+00 : f32
    %527 = vector.broadcast %cst_163 : f32 to vector<2x32xf32>
    %528 = arith.subf %527, %521 : vector<2x32xf32>
    %529 = arith.mulf %528, %526 : vector<2x32xf32>
    %530 = arith.mulf %521, %459 : vector<2x32xf32>
    %531 = arith.addf %529, %530 : vector<2x32xf32>
    %532 = tpu.concatenate %531, %494, %505 in 1 : vector<2x32xf32>, vector<2x64xf32>, vector<2x16xf32> -> vector<2x112xf32>
    %c6_164 = arith.constant 6 : index
    %c0_165 = arith.constant 0 : index
    %c0_166 = arith.constant 0 : index
    %533 = vector.load %arg16[%c6_164, %c0_165, %c0_166] : memref<7x2x112xf32, #tpu.memory_space<vmem>>, vector<1x2x112xf32>
    %534 = vector.shape_cast %533 : vector<1x2x112xf32> to vector<2x112xf32>
    %535 = vector.shape_cast %532 : vector<2x112xf32> to vector<1x2x112xf32>
    tpu.vector_store %arg16[%c6_164, %c0_165, %c0_166], %535 {strides = array<i32>} : memref<7x2x112xf32, #tpu.memory_space<vmem>>, vector<1x2x112xf32>,
    %c0_167 = arith.constant 0 : index
    %c0_168 = arith.constant 0 : index
    %c0_169 = arith.constant 0 : index
    %536 = vector.load %arg16[%c0_167, %c0_168, %c0_169] : memref<7x2x112xf32, #tpu.memory_space<vmem>>, vector<7x2x112xf32>
    %537 = vector.shape_cast %536 : vector<7x2x112xf32> to vector<14x112xf32>
    %c0_170 = arith.constant 0 : index
    %c0_171 = arith.constant 0 : index
    %538 = vector.load %arg12[%c0_170, %c0_171] : memref<112x32xbf16, #tpu.memory_space<vmem>>, vector<112x32xbf16>
    %539 = arith.truncf %537 : vector<14x112xf32> to vector<14x112xbf16>
    %cst_172 = arith.constant dense<0.000000e+00> : vector<14x32xf32>
    %540 = tpu.matmul %539, %538, %cst_172 {dimension_numbers = #tpu.dot_dimension_numbers<[1], [0], [0], [1], [0, 0, 1, 1], [], []>} : vector<14x112xbf16>, vector<112x32xbf16>, vector<14x32xf32> -> vector<14x32xf32>
    %c0_173 = arith.constant 0 : index
    %c0_174 = arith.constant 0 : index
    %541 = vector.load %arg13[%c0_173, %c0_174] : memref<1x32xf32, #tpu.memory_space<vmem>>, vector<1x32xf32>
    %542 = vector.broadcast %541 : vector<1x32xf32> to vector<14x32xf32>
    %543 = arith.addf %540, %542 : vector<14x32xf32>
    %544 = vector.shape_cast %543 : vector<14x32xf32> to vector<7x2x32xf32>
    %c1_175 = arith.constant 1 : index
    %c0_176 = arith.constant 0 : index
    %c0_177 = arith.constant 0 : index
    %545 = vector.load %arg14[%c1_175, %c0_176, %c0_177] : memref<8x2x32xf32, #tpu.memory_space<vmem>>, vector<7x2x32xf32>
    tpu.vector_store %arg14[%c1_175, %c0_176, %c0_177], %544 {strides = array<i32>} : memref<8x2x32xf32, #tpu.memory_space<vmem>>, vector<7x2x32xf32>,
    return
  }
}

</mosaic_0001>

<bundles_post_ra>
// kernel: _lambda_.2
= control target key start
LH: loop header
LB: loop body
LE: loop exit
PB: predicated region body
PF: predicated region fallthrough
CT: control target
= control target key end

     0   :  { %v2005_v2 = vmov 0   ;;  %vm88_vm0 = vcmask 130048   ;;  %s2006_s27 = smov 64   ;;  %vm145_vm1 = vcmask 1045504   ;;  %vm142_vm2 = vcmask 1045508   ;;  %s2654_s4 = inlined_call_operand.vmem [shape: bf16[32,96], index: 4, kind: input, shape index: {}]   ;;  %s2655_s2 = inlined_call_operand.vmem [shape: bf16[16,192], index: 2, kind: input, shape index: {}]   ;;  %s2656_s0 = inlined_call_operand.vmem [shape: bf16[8,2,16], index: 0, kind: input, shape index: {}]   ;;  %s2657_s5 = inlined_call_operand.vmem [shape: f32[1,96], index: 5, kind: input, shape index: {}]   ;;  %s2658_s3 = inlined_call_operand.vmem [shape: f32[1,192], index: 3, kind: input, shape index: {}]   ;;  %s2659_s1 = inlined_call_operand.vmem [shape: f32[8,2,1], index: 1, kind: input, shape index: {}]   ;;  %s2660_s6 = inlined_call_operand.vmem [shape: bf16[32,96], index: 6, kind: input, shape index: {}]   ;;  %s2661_s10 = inlined_call_operand.vmem [shape: f32[8,2,64], index: 10, kind: output, shape index: {0}]   ;;  %s2662_s7 = inlined_call_operand.vmem [shape: f32[1,96], index: 7, kind: input, shape index: {}]   ;;  %s2663_s9 = inlined_call_operand.vmem [shape: f32[1,32], index: 9, kind: input, shape index: {}]   ;;  %s2664_s8 = inlined_call_operand.vmem [shape: bf16[64,32], index: 8, kind: input, shape index: {}]   ;;  %s2665_s11 = inlined_call_operand.vmem [shape: f32[2,32], index: 11, kind: output, shape index: {1}]  }
   0x1   :  { %v2072_v0 = vld [vmem:[%s2654_s4 + $0x8] sm:$0xff]  ;;  %v1746_v1 = vld [vmem:[%s2655_s2] sm:$0xf]  ;;  %1867 = vset.pattern.permute.xlu1 %v2005_v2  ;;  %1868 = vset.pattern.permute.xlu2 %v2005_v2  ;;  %v1853_v10 = vld [vmem:[%s2655_s2 + $0x4] sm:$0xf]  ;;  %vm139_vm3 = vcmask 1043458  }
   0x2   :  { %v1854_v3 = vld [vmem:[%s2655_s2 + $0x4] sm:$0xf0]  ;;  %v38_v4 = vld [vmem:[%s2656_s0] sm:$0x1]  ;;  %1869 = vset.pattern.permute.xlu0 %v2005_v2  ;;  %199 = vmatpush.bf16.msra.mxu2 %v2072_v0  ;;  %v39_v7 = vld [vmem:[%s2656_s0 + $0x1] sm:$0x1] }
   0x3   :  { %v2090_v5 = vld [vmem:[%s2654_s4] sm:$0xff]  ;;  %v1747_v6 = vor.u32 %v1854_v3, %v1746_v1  ;;  %55 = vst [vmem:[#allocation1] ss:$9 sm:$0xff] %v38_v4  ;;  %v1748_v11 = vld [vmem:[%s2655_s2 + $0x8] sm:$0xf0]  ;;  %vm137_vm4 = vcmask 1041408  }
   0x4   :  { %v40_v8 = vld [vmem:[%s2656_s0 + $0x2] sm:$0x1]  ;;  %v41_v9 = vld [vmem:[%s2656_s0 + $0x3] sm:$0x1]  ;;  %v42_v12 = vld [vmem:[%s2656_s0 + $0x4] sm:$0x1]  ;;  %v1751_v13 = vor.u32 %v1853_v10, %v1748_v11 }
   0x5   :  { %98 = vmatpush.bf16.msra.mxu0 %v1747_v6  ;;  %58 = vst [vmem:[#allocation1 + $0x1] ss:$9 sm:$0xff] %v39_v7  ;;  %v43_v14 = vld [vmem:[%s2656_s0 + $0x5] sm:$0x1]  ;;  %v44_v15 = vld [vmem:[%s2656_s0 + $0x6] sm:$0x1] }
   0x6   :  { %200 = vmatpush.bf16.msra.mxu2 %v2090_v5  ;;  %61 = vst [vmem:[#allocation1 + $0x2] ss:$9 sm:$0xff] %v40_v8  ;;  %112 = vmatpush.bf16.msra.mxu1 %v1751_v13  ;;  %v45_v16 = vld [vmem:[%s2656_s0 + $0x7] sm:$0x1]  ;;  %v2132_v18 = vld [vmem:[%s2657_s5] ss:$0 sm:$0xff] }
   0x7   :  { %64 = vst [vmem:[#allocation1 + $0x3] ss:$9 sm:$0xff] %v41_v9  ;;  %v2137_v19 = vld [vmem:[%s2658_s3] sm:$0x3]  ;;  %s2007_s3 = smov 96   ;;  %v2176_v61 = vld [vmem:[%s2660_s6 + $0x8] sm:$0xff] }
   0x8   :  { %67 = vst [vmem:[#allocation1 + $0x4] ss:$9 sm:$0xff] %v42_v12  ;;  %v51_v22 = vperm.slane %v2137_v19, 1  ;;  %v50_v26 = vperm.slane %v2137_v19, 0  ;;  %v173_v53 = vld [vmem:[%s2659_s1] sm:$0x3]  ;;  %290 = vmatpush.bf16.msra.mxu3 %v2176_v61 }
   0x9   :  { %394 = vmatpush.bf16.msrb.mxu0 %v2072_v0  ;;  %201 = vmatmul.bf16.vlgmr.msra.gmra.mxu2 %v2005_v2  ;;  %70 = vst [vmem:[#allocation1 + $0x5] ss:$9 sm:$0xff] %v43_v14  ;;  %v257_v60 = vsub.f32 1.0, %v173_v53  ;;  %v2182_v62 = vld [vmem:[%s2660_s6] sm:$0xff]  ;;  %vm265_vm9 = vcmask 254976   ;;  %vm189_vm10 = vcmask 261120  }
   0xa   :  { %581 = vmatpush.bf16.msrb.mxu2 %v2072_v0  ;;  %73 = vst [vmem:[#allocation1 + $0x6] ss:$9 sm:$0xff] %v44_v15  ;;  %478 = vmatpush.bf16.msrb.mxu1 %v2176_v61  ;;  %s2008_s4 = smov 32  }
   0xb   :  { %76 = vst [vmem:[#allocation1 + $0x7] ss:$9 sm:$0xff] %v45_v16 }
   0xc   :  { %291 = vmatpush.bf16.msra.mxu3 %v2182_v62 }
   0xd   :  { %395 = vmatpush.bf16.msrb.mxu0 %v2090_v5 }
   0xe   :  { %582 = vmatpush.bf16.msrb.mxu2 %v2090_v5  ;;  %479 = vmatpush.bf16.msrb.mxu1 %v2182_v62 }
   0xf   :  { %292 = vmatmul.bf16.vlgmr.msra.gmra.mxu3 %v2005_v2 }
  0x10   :  { %665 = vmatpush.bf16.msrb.mxu3 %v2176_v61 }
  0x12   :  { %954 = vmatpush.bf16.msra.mxu2 %v2072_v0  ;;  %v77_v17 = vld [vmem:[#allocation1] sm:$0xff] }
  0x13   :  { %1752 = vmatmul.msk.bf16.vlgmr.msra.gmra.mxu0 %vm88_vm0, %v77_v17  ;;  %1753 = vmatmul.msk.bf16.vlgmr.msra.gmra.mxu1 %vm88_vm0, %v77_v17 }
  0x14   :  { %768 = vmatpush.bf16.msra.mxu0 %v2072_v0  ;;  %852 = vmatpush.bf16.msra.mxu1 %v2176_v61 }
  0x15   :  { %666 = vmatpush.bf16.msrb.mxu3 %v2182_v62 }
  0x16   :  { %955 = vmatpush.bf16.msra.mxu2 %v2090_v5 }
  0x18   :  { %769 = vmatpush.bf16.msra.mxu0 %v2090_v5  ;;  %853 = vmatpush.bf16.msra.mxu1 %v2182_v62 }
  0x19   :  { %1036 = vmatpush.bf16.msra.mxu3 %v2176_v61 }
  0x1d   :  { %1037 = vmatpush.bf16.msra.mxu3 %v2182_v62 }
  0x8c   :  { %v202_v20 = vpop.f32.mrf.mxu2 }
  0x8d   :  { %v203_v21 = vadd.f32 %v2132_v18, %v202_v20 }
  0x8f   :  { %227 = vrot.lane.b32.xlu0 %v203_v21, %s2006_s27 }
  0x90   :  { %v114_v23 = vpop.f32.mrf.mxu1  ;;  %v100_v27 = vpop.f32.mrf.mxu0 }
  0x91   :  { %v115_v24 = vadd.f32 %v114_v23, %v51_v22  ;;  %v2147_v29 = vadd.f32 %v100_v27, %v50_v26 }
  0x92   :  { %v293_v17 = vpop.f32.mrf.mxu3 }
  0x93   :  { %v135_v28 = vrot.slane %v115_v24, 6  ;;  %v206_v34 = vadd.f32 %v203_v21, %v2147_v29  ;;  %v121_v12 = vrot.slane %v2147_v29, 2 }
  0x94   :  { %v204_v25 = vpop.f32.mrf.mxu2 }
  0x95   :  { %v2151_v30 = vsel %vm145_vm1, %v135_v28, %v2147_v29  ;;  %v2155_v31 = vsel %vm142_vm2, %v2147_v29, %v135_v28  ;;  %v2159_v32 = vsel %vm139_vm3, %v2147_v29, %v135_v28  ;;  %v2163_v33 = vsel %vm137_vm4, %v2147_v29, %v135_v28 }
  0x96   :  { %v1762_v35 = vmul.f32 -1.442695, %v206_v34 }
  0x98   :  { %1873 = vpow2.f32 %v1762_v35  ;;  %v102_v8 = vpop.f32.mrf.mxu0 }
  0x9a   :  { %v295_v21 = vpop.f32.mrf.mxu3 }
  0x9e   :  { %v1874_v36 = vpop.eup %1873 }
  0x9f   :  { %v210_v37 = vadd.f32 1.0, %v1874_v36 }
  0xa1   :  { %1875 = vrcp.f32 %v210_v37  ;;  %v222_v43 = vand.u32 2147483648, %v210_v37  ;;  %vm216_vm6 = vweird.f32 %v210_v37  ;;  %v220_v44 = vand.u32 2147483647, %v210_v37 }
  0xa3   :  { %v223_v46 = vor.u32 1.1754944e-38, %v222_v43  ;;  %vm221_vm8 = vcmp.eq.f32.partialorder %v220_v44, 8.507059e+37 }
  0xa7   :  { %v1876_v38 = vpop.eup %1875 }
  0xa8   :  { %v212_v39 = vmul.f32 %v1876_v38, %v210_v37  ;;  %vm217_vm5 = vweird.f32 %v1876_v38 }
  0xa9   :  { %vm218_vm7 = vmor %vm216_vm6, %vm217_vm5 }
  0xaa   :  { %v213_v40 = vsub.f32 1.0, %v212_v39 }
  0xac   :  { %v214_v41 = vmul.f32 %v1876_v38, %v213_v40  ;;  %v2214_v40 = vld [vmem:[%s2662_s7] ss:$0 sm:$0xff] }
  0xae   :  { %v215_v42 = vadd.f32 %v1876_v38, %v214_v41  ;;  %v294_v41 = vadd.f32 %v2214_v40, %v293_v17 }
  0xb0   :  { %v219_v45 = vsel %vm218_vm7, %v1876_v38, %v215_v42  ;;  %v1775_v42 = vld [vmem:[%s2659_s1 + $0x2] sm:$0x3] }
  0xb1   :  { %v224_v48 = vsel %vm221_vm8, %v223_v46, %v219_v45  ;;  %v456_v46 = vsub.f32 1.0, %v1775_v42 }
  0xb2   :  { %v237_v54 = vsub.f32 1.0, %v224_v48  ;;  %v243_v56 = vmul.f32 0.0, %v224_v48 }
 0x101   :  { %v228_v47 = vpop.permute.xlu0 %227 }
 0x102   :  { %v230_v49 = vmul.f32 %v228_v47, %v224_v48  ;;  %v116_v47 = vpop.f32.mrf.mxu1 }
 0x103   :  { %v117_v48 = vadd.f32 %v116_v47, %v51_v22  ;;  %v1763_v22 = vld [vmem:[%s2659_s1 + $0xe] sm:$0x3] }
 0x104   :  { %232 = vrot.lane.b32.xlu0 %v230_v49, %s2006_s27 }
 0x105   :  { %v2225_v49 = vrot.slane %v117_v48, 6 }
 0x176   :  { %v233_v50 = vpop.permute.xlu0 %232 }
 0x177   :  { %v235_v51 = vadd.f32 %v233_v50, %v2147_v29  ;;  %v2229_v50 = vadd.f32 %v102_v8, %v50_v26 }
 0x179   :  { %1877 = vtanh.f32 %v235_v51  ;;  %v153_v51 = vsel %vm145_vm1, %v2225_v49, %v2229_v50 }
 0x17f   :  { %v1878_v52 = vpop.eup %1877 }
 0x180   :  { %239 = vrot.lane.b32.xlu1 %v1878_v52, %s2007_s3 }
 0x188   :  { %247 = vperm.xlu1 %1867, %v173_v53   ;;  %v154_v53 = vrot.slane %v153_v51, 6 }
 0x18a   :  { %v321_v17 = vrot.slane %v154_v53, 2 }
 0x1f2   :  { %v240_v55 = vpop.permute.xlu1 %239 }
 0x1f3   :  { %v242_v57 = vmul.f32 %v240_v55, %v237_v54 }
 0x1f5   :  { %v244_v58 = vadd.f32 %v243_v56, %v242_v57 }
 0x1f7   :  { %251 = vst [vmem:[#allocation1] ss:$4 sm:$0xff] %v244_v58 }
 0x1fa   :  { %v248_v63 = vpop.permute.xlu1 %247 }
 0x1fe   :  { %v252_v59 = vld.sshfl [vmem:[#allocation1] sm:$0xff pattern:$0x73625140] }
 0x1ff   :  { %253 = vrot.lane.b32.xlu2 %v252_v59, %s2007_s3 }
 0x207   :  { %260 = vperm.xlu2 %1868, %v257_v60  }
 0x259   :  { %v254_v1 = vpop.permute.xlu2 %253 }
 0x25a   :  { %v256_v3 = vmul.f32 %v254_v1, %v248_v63 }
 0x25c   :  { %266 = vst.msk [vmem:[%s2661_s10] sm:$0x3] %vm265_vm9, %v256_v3 }
 0x261   :  { %v261_v4 = vpop.permute.xlu2 %260 }
 0x262   :  { %v263_v6 = vmul.f32 0.0, %v261_v4 }
 0x264   :  { %v2198_v2 = vadd.f32 %v263_v6, %v256_v3 }
 0x266   :  { %v384_v7 = vpack.c.bf16 %v2198_v2, %v2198_v2 }
 0x268   :  { %1776 = vmatmul.msk.bf16.vlgmr.msrb.gmra.mxu0 %vm189_vm10, %v384_v7 }
 0x269   :  { %1137 = vmatpush.bf16.msrb.mxu0 %v2072_v0 }
 0x26d   :  { %1138 = vmatpush.bf16.msrb.mxu0 %v2090_v5 }
 0x2e5   :  { %v397_v9 = vpop.f32.mrf.mxu0 }
 0x2e6   :  { %v398_v10 = vadd.f32 %v2132_v18, %v397_v9 }
 0x2e8   :  { %422 = vrot.lane.b32.xlu0 %v398_v10, %s2006_s27  ;;  %v401_v13 = vadd.f32 %v398_v10, %v121_v12 }
 0x2ea   :  { %v1777_v14 = vmul.f32 -1.442695, %v401_v13 }
 0x2ec   :  { %1879 = vpow2.f32 %v1777_v14 }
 0x2ed   :  { %v399_v11 = vpop.f32.mrf.mxu0 }
 0x2f0   :  { %439 = vrot.lane.b32.xlu0 %v2198_v2, %s2008_s4 }
 0x2f2   :  { %v1880_v15 = vpop.eup %1879 }
 0x2f3   :  { %v405_v16 = vadd.f32 1.0, %v1880_v15 }
 0x2f5   :  { %1881 = vrcp.f32 %v405_v16  ;;  %v417_v28 = vand.u32 2147483648, %v405_v16  ;;  %vm411_vm12 = vweird.f32 %v405_v16  ;;  %v415_v34 = vand.u32 2147483647, %v405_v16 }
 0x2f7   :  { %v418_v36 = vor.u32 1.1754944e-38, %v417_v28  ;;  %vm416_vm14 = vcmp.eq.f32.partialorder %v415_v34, 8.507059e+37 }
 0x2f8   :  { %446 = vperm.xlu0 %1869, %v1775_v42  }
 0x2fb   :  { %v1882_v20 = vpop.eup %1881 }
 0x2fc   :  { %v407_v23 = vmul.f32 %v1882_v20, %v405_v16  ;;  %vm412_vm11 = vweird.f32 %v1882_v20  ;;  %v367_v16 = vsub.f32 1.0, %v1763_v22 }
 0x2fd   :  { %vm413_vm13 = vmor %vm411_vm12, %vm412_vm11 }
 0x2fe   :  { %v408_v24 = vsub.f32 1.0, %v407_v23 }
 0x300   :  { %v409_v25 = vmul.f32 %v1882_v20, %v408_v24  ;;  %363 = vperm.xlu0 %1869, %v1763_v22  }
 0x302   :  { %v410_v27 = vadd.f32 %v1882_v20, %v409_v25 }
 0x304   :  { %v414_v35 = vsel %vm413_vm13, %v1882_v20, %v410_v27 }
 0x305   :  { %v419_v38 = vsel %vm416_vm14, %v418_v36, %v414_v35 }
 0x306   :  { %v432_v63 = vsub.f32 1.0, %v419_v38 }
 0x35a   :  { %v423_v37 = vpop.permute.xlu0 %422 }
 0x35b   :  { %v425_v39 = vmul.f32 %v423_v37, %v419_v38 }
 0x35d   :  { %427 = vrot.lane.b32.xlu1 %v425_v39, %s2006_s27 }
 0x362   :  { %v440_v60 = vpop.permute.xlu0 %439 }
 0x363   :  { %v442_v3 = vmul.f32 %v440_v60, %v419_v38 }
 0x365   :  { %298 = vrot.lane.b32.xlu1 %v294_v41, %s2007_s3 }
 0x36a   :  { %v447_v35 = vpop.permute.xlu0 %446 }
 0x3cf   :  { %v428_v43 = vpop.permute.xlu1 %427 }
 0x3d0   :  { %v430_v44 = vadd.f32 %v428_v43, %v121_v12 }
 0x3d2   :  { %1883 = vtanh.f32 %v430_v44 }
 0x3d7   :  { %v299_v52 = vpop.permute.xlu1 %298 }
 0x3d8   :  { %v1884_v45 = vpop.eup %1883  ;;  %v301_v54 = vadd.f32 %v299_v52, %v154_v53  ;;  %v323_v20 = vadd.f32 %v321_v17, %v299_v52 }
 0x3d9   :  { %434 = vrot.lane.b32.xlu2 %v1884_v45, %s2007_s3 }
 0x3da   :  { %v1772_v55 = vmul.f32 -1.442695, %v301_v54  ;;  %v1773_v21 = vmul.f32 -1.442695, %v323_v20 }
 0x3dc   :  { %1885 = vpow2.f32 %v1772_v55 }
 0x3e1   :  { %343 = vrot.lane.b32.xlu2 %v294_v41, %s2008_s4 }
 0x3e2   :  { %v1886_v56 = vpop.eup %1885 }
 0x3e3   :  { %v305_v57 = vadd.f32 1.0, %v1886_v56 }
 0x3e5   :  { %1887 = vrcp.f32 %v305_v57  ;;  %v317_v7 = vand.u32 2147483648, %v305_v57  ;;  %vm311_vm0 = vweird.f32 %v305_v57  ;;  %v315_v9 = vand.u32 2147483647, %v305_v57 }
 0x3e6   :  { %1889 = vpow2.f32 %v1773_v21 }
 0x3e7   :  { %v318_v11 = vor.u32 1.1754944e-38, %v317_v7  ;;  %vm316_vm5 = vcmp.eq.f32.partialorder %v315_v9, 8.507059e+37 }
 0x3e9   :  { %459 = vperm.xlu2 %1868, %v456_v46  }
 0x3eb   :  { %v1888_v19 = vpop.eup %1887 }
 0x3ec   :  { %v307_v26 = vmul.f32 %v1888_v19, %v305_v57  ;;  %vm312_vm15 = vweird.f32 %v1888_v19  ;;  %v1890_v23 = vpop.eup %1889 }
 0x3ed   :  { %vm313_vm1 = vmor %vm311_vm0, %vm312_vm15  ;;  %v327_v24 = vadd.f32 1.0, %v1890_v23 }
 0x3ee   :  { %v308_v58 = vsub.f32 1.0, %v307_v26  ;;  %v364_v26 = vpop.permute.xlu0 %363 }
 0x3ef   :  { %1891 = vrcp.f32 %v327_v24  ;;  %v339_v45 = vand.u32 2147483648, %v327_v24  ;;  %vm333_vm7 = vweird.f32 %v327_v24  ;;  %v337_v47 = vand.u32 2147483647, %v327_v24 }
 0x3f0   :  { %v309_v59 = vmul.f32 %v1888_v19, %v308_v58 }
 0x3f1   :  { %v340_v52 = vor.u32 1.1754944e-38, %v339_v45  ;;  %vm338_vm11 = vcmp.eq.f32.partialorder %v337_v47, 8.507059e+37 }
 0x3f2   :  { %v310_v6 = vadd.f32 %v1888_v19, %v309_v59 }
 0x3f4   :  { %v314_v10 = vsel %vm313_vm1, %v1888_v19, %v310_v6 }
 0x3f5   :  { %v319_v13 = vsel %vm316_vm5, %v318_v11, %v314_v10  ;;  %v1892_v25 = vpop.eup %1891  ;;  %v1779_v11 = vld [vmem:[%s2659_s1 + $0xc] sm:$0x3] }
 0x3f6   :  { %v329_v27 = vmul.f32 %v1892_v25, %v327_v24  ;;  %vm334_vm6 = vweird.f32 %v1892_v25 }
 0x3f7   :  { %vm335_vm8 = vmor %vm333_vm7, %vm334_vm6 }
 0x3f8   :  { %v330_v34 = vsub.f32 1.0, %v329_v27 }
 0x3fa   :  { %v331_v41 = vmul.f32 %v1892_v25, %v330_v34 }
 0x3fc   :  { %v332_v44 = vadd.f32 %v1892_v25, %v331_v41 }
 0x3fe   :  { %v336_v51 = vsel %vm335_vm8, %v1892_v25, %v332_v44 }
 0x433   :  { %v435_v1 = vpop.permute.xlu2 %434 }
 0x434   :  { %v437_v4 = vmul.f32 %v435_v1, %v432_v63 }
 0x436   :  { %v443_v8 = vadd.f32 %v442_v3, %v437_v4 }
 0x438   :  { %450 = vst [vmem:[#allocation1] ss:$4 sm:$0xff] %v443_v8  ;;  %v151_v8 = vsel %vm142_vm2, %v2229_v50, %v2225_v49 }
 0x439   :  { %v2270_v10 = vrot.slane %v151_v8, 4 }
 0x43b   :  { %v344_v12 = vpop.permute.xlu2 %343 }
 0x43c   :  { %v346_v14 = vmul.f32 %v344_v12, %v319_v13  ;;  %v555_v12 = vsub.f32 1.0, %v1779_v11  ;;  %v1784_v13 = vld [vmem:[%s2659_s1 + $0x4] sm:$0x3] }
 0x43e   :  { %352 = vrot.lane.b32.xlu2 %v346_v14, %s2008_s4  ;;  %v643_v14 = vsub.f32 1.0, %v1784_v13 }
 0x43f   :  { %v451_v15 = vld.sshfl [vmem:[#allocation1] sm:$0xff pattern:$0x73625140] }
 0x440   :  { %452 = vrot.lane.b32.xlu1 %v451_v15, %s2007_s3  ;;  %v122_v15 = vrot.slane %v2147_v29, 4 }
 0x443   :  { %v460_v28 = vpop.permute.xlu2 %459 }
 0x444   :  { %v462_v37 = vmul.f32 %v460_v28, %v2198_v2 }
 0x448   :  { %347 = vrot.lane.b32.xlu1 %v154_v53, %s2007_s3  ;;  %v341_v53 = vsel %vm338_vm11, %v340_v52, %v336_v51 }
 0x449   :  { %v357_v54 = vsub.f32 1.0, %v341_v53  ;;  %v359_v57 = vmul.f32 0.0, %v341_v53 }
 0x450   :  { %370 = vperm.xlu1 %1867, %v367_v16  }
 0x498   :  { %v353_v46 = vpop.permute.xlu2 %352 }
 0x4b2   :  { %v453_v36 = vpop.permute.xlu1 %452 }
 0x4b3   :  { %v455_v38 = vmul.f32 %v453_v36, %v447_v35 }
 0x4b5   :  { %v2241_v39 = vadd.f32 %v462_v37, %v455_v38  ;;  %1778 = vst.msk [vmem:[%s2661_s10 + $0x2] sm:$0x3] %vm265_vm9, %v455_v38 }
 0x4b7   :  { %v571_v42 = vpack.c.bf16 %v2241_v39, %v2241_v39 }
 0x4b9   :  { %1785 = vmatmul.msk.bf16.vlgmr.msrb.gmra.mxu2 %vm189_vm10, %v571_v42 }
 0x4ba   :  { %v348_v43 = vpop.permute.xlu1 %347  ;;  %1320 = vmatpush.bf16.msrb.mxu2 %v2072_v0 }
 0x4bb   :  { %v349_v2 = vrot.slane %v348_v43, 2 }
 0x4bd   :  { %v355_v48 = vadd.f32 %v353_v46, %v349_v2 }
 0x4be   :  { %1321 = vmatpush.bf16.msrb.mxu2 %v2090_v5 }
 0x4bf   :  { %1893 = vtanh.f32 %v355_v48 }
 0x4c2   :  { %v371_v22 = vpop.permute.xlu1 %370 }
 0x4c3   :  { %v373_v59 = vmul.f32 0.0, %v371_v22 }
 0x4c5   :  { %v1894_v55 = vpop.eup %1893 }
 0x4c6   :  { %v358_v56 = vmul.f32 %v1894_v55, %v357_v54 }
 0x4c8   :  { %v360_v19 = vadd.f32 %v359_v57, %v358_v56 }
 0x4ca   :  { %v2252_v58 = vmul.f32 %v364_v26, %v360_v19 }
 0x4cc   :  { %v2255_v60 = vadd.f32 %v373_v59, %v2252_v58 }
 0x4ce   :  { %v468_v63 = vpack.c.bf16 %v2255_v60, %v2255_v60 }
 0x4d0   :  { %1780 = vmatmul.msk.bf16.vlgmr.msrb.gmra.mxu1 %vm189_vm10, %v468_v63 }
 0x4d1   :  { %1219 = vmatpush.bf16.msrb.mxu1 %v2176_v61 }
 0x4d5   :  { %1220 = vmatpush.bf16.msrb.mxu1 %v2182_v62 }
 0x53c   :  { %v584_v1 = vpop.f32.mrf.mxu2 }
 0x53d   :  { %v585_v3 = vadd.f32 %v2132_v18, %v584_v1 }
 0x53f   :  { %609 = vrot.lane.b32.xlu2 %v585_v3, %s2006_s27  ;;  %v588_v16 = vadd.f32 %v585_v3, %v122_v15  ;;  %v509_v3 = vrot.slane %v2270_v10, 2 }
 0x541   :  { %v1786_v17 = vmul.f32 -1.442695, %v588_v16 }
 0x543   :  { %1895 = vpow2.f32 %v1786_v17 }
 0x544   :  { %v586_v4 = vpop.f32.mrf.mxu2 }
 0x549   :  { %v1896_v20 = vpop.eup %1895 }
 0x54a   :  { %v592_v21 = vadd.f32 1.0, %v1896_v20 }
 0x54c   :  { %1897 = vrcp.f32 %v592_v21  ;;  %v604_v34 = vand.u32 2147483648, %v592_v21  ;;  %vm598_vm12 = vweird.f32 %v592_v21  ;;  %v602_v35 = vand.u32 2147483647, %v592_v21 }
 0x54d   :  { %v481_v6 = vpop.f32.mrf.mxu1 }
 0x54e   :  { %v482_v7 = vadd.f32 %v2214_v40, %v481_v6  ;;  %v605_v37 = vor.u32 1.1754944e-38, %v604_v34  ;;  %vm603_vm14 = vcmp.eq.f32.partialorder %v602_v35, 8.507059e+37 }
 0x550   :  { %531 = vrot.lane.b32.xlu2 %v482_v7, %s2008_s4  ;;  %486 = vrot.lane.b32.xlu0 %v482_v7, %s2007_s3 }
 0x552   :  { %v1898_v23 = vpop.eup %1897 }
 0x553   :  { %v594_v24 = vmul.f32 %v1898_v23, %v592_v21  ;;  %vm599_vm2 = vweird.f32 %v1898_v23 }
 0x554   :  { %vm600_vm13 = vmor %vm598_vm12, %vm599_vm2 }
 0x555   :  { %v483_v9 = vpop.f32.mrf.mxu1  ;;  %v595_v25 = vsub.f32 1.0, %v594_v24 }
 0x557   :  { %v596_v27 = vmul.f32 %v1898_v23, %v595_v25 }
 0x558   :  { %535 = vrot.lane.b32.xlu2 %v2270_v10, %s2007_s3 }
 0x559   :  { %v597_v28 = vadd.f32 %v1898_v23, %v596_v27 }
 0x55b   :  { %v601_v36 = vsel %vm600_vm13, %v1898_v23, %v597_v28 }
 0x55c   :  { %v606_v41 = vsel %vm603_vm14, %v605_v37, %v601_v36 }
 0x560   :  { %558 = vperm.xlu2 %1868, %v555_v12  }
 0x568   :  { %646 = vperm.xlu2 %1868, %v643_v14  }
 0x599   :  { %v610_v38 = vpop.permute.xlu2 %609 }
 0x59a   :  { %v612_v42 = vmul.f32 %v610_v38, %v606_v41 }
 0x59c   :  { %614 = vrot.lane.b32.xlu1 %v612_v42, %s2006_s27 }
 0x5a4   :  { %626 = vrot.lane.b32.xlu1 %v2241_v39, %s2008_s4 }
 0x5aa   :  { %v532_v63 = vpop.permute.xlu2 %531 }
 0x5ac   :  { %551 = vperm.xlu1 %1867, %v1779_v11  }
 0x5b2   :  { %v536_v24 = vpop.permute.xlu2 %535 }
 0x5c2   :  { %v487_v43 = vpop.permute.xlu0 %486 }
 0x5c3   :  { %v489_v44 = vadd.f32 %v487_v43, %v2270_v10  ;;  %v511_v4 = vadd.f32 %v509_v3, %v487_v43  ;;  %v537_v10 = vrot.slane %v536_v24, 2 }
 0x5c5   :  { %v1781_v2 = vmul.f32 -1.442695, %v489_v44  ;;  %v1782_v6 = vmul.f32 -1.442695, %v511_v4 }
 0x5c7   :  { %1899 = vpow2.f32 %v1781_v2  ;;  %v559_v2 = vpop.permute.xlu2 %558 }
 0x5cd   :  { %v1900_v45 = vpop.eup %1899 }
 0x5ce   :  { %v493_v46 = vadd.f32 1.0, %v1900_v45 }
 0x5d0   :  { %1901 = vrcp.f32 %v493_v46  ;;  %v505_v56 = vand.u32 2147483648, %v493_v46  ;;  %vm499_vm0 = vweird.f32 %v493_v46  ;;  %v503_v57 = vand.u32 2147483647, %v493_v46 }
 0x5d2   :  { %v506_v26 = vor.u32 1.1754944e-38, %v505_v56  ;;  %vm504_vm5 = vcmp.eq.f32.partialorder %v503_v57, 8.507059e+37 }
 0x5d6   :  { %v1902_v47 = vpop.eup %1901 }
 0x5d7   :  { %v495_v48 = vmul.f32 %v1902_v47, %v493_v46  ;;  %vm500_vm15 = vweird.f32 %v1902_v47 }
 0x5d8   :  { %vm501_vm1 = vmor %vm499_vm0, %vm500_vm15 }
 0x5d9   :  { %v496_v51 = vsub.f32 1.0, %v495_v48 }
 0x5db   :  { %v497_v54 = vmul.f32 %v1902_v47, %v496_v51 }
 0x5dd   :  { %v498_v55 = vadd.f32 %v1902_v47, %v497_v54 }
 0x5df   :  { %v502_v19 = vsel %vm501_vm1, %v1902_v47, %v498_v55  ;;  %v561_v47 = vmul.f32 %v559_v2, %v2255_v60 }
 0x5e0   :  { %v507_v59 = vsel %vm504_vm5, %v506_v26, %v502_v19 }
 0x5e1   :  { %v534_v1 = vmul.f32 %v532_v63, %v507_v59 }
 0x60e   :  { %v615_v52 = vpop.permute.xlu1 %614 }
 0x60f   :  { %v617_v53 = vadd.f32 %v615_v52, %v122_v15  ;;  %v619_v15 = vsub.f32 1.0, %v606_v41 }
 0x611   :  { %1903 = vtanh.f32 %v617_v53  ;;  %v647_v53 = vpop.permute.xlu2 %646 }
 0x612   :  { %1905 = vpow2.f32 %v1782_v6  ;;  %v649_v56 = vmul.f32 %v647_v53, %v2241_v39 }
 0x616   :  { %v627_v14 = vpop.permute.xlu1 %626 }
 0x617   :  { %v1904_v22 = vpop.eup %1903  ;;  %v629_v17 = vmul.f32 %v627_v14, %v606_v41 }
 0x618   :  { %621 = vrot.lane.b32.xlu0 %v1904_v22, %s2007_s3  ;;  %v1906_v7 = vpop.eup %1905 }
 0x619   :  { %v515_v8 = vadd.f32 1.0, %v1906_v7 }
 0x61b   :  { %1907 = vrcp.f32 %v515_v8  ;;  %v527_v25 = vand.u32 2147483648, %v515_v8  ;;  %vm521_vm7 = vweird.f32 %v515_v8  ;;  %v525_v27 = vand.u32 2147483647, %v515_v8 }
 0x61d   :  { %v528_v36 = vor.u32 1.1754944e-38, %v527_v25  ;;  %vm526_vm11 = vcmp.eq.f32.partialorder %v525_v27, 8.507059e+37  ;;  %v123_v27 = vrot.slane %v2147_v29, 6 }
 0x61e   :  { %v552_v46 = vpop.permute.xlu1 %551 }
 0x620   :  { %540 = vrot.lane.b32.xlu0 %v534_v1, %s2008_s4  ;;  %v149_v1 = vsel %vm139_vm3, %v2229_v50, %v2225_v49 }
 0x621   :  { %v1908_v9 = vpop.eup %1907  ;;  %v2321_v3 = vrot.slane %v149_v1, 2 }
 0x622   :  { %v517_v11 = vmul.f32 %v1908_v9, %v515_v8  ;;  %vm522_vm6 = vweird.f32 %v1908_v9  ;;  %v1793_v8 = vld [vmem:[%s2659_s1 + $0x6] sm:$0x3] }
 0x623   :  { %vm523_vm8 = vmor %vm521_vm7, %vm522_vm6  ;;  %v830_v53 = vsub.f32 1.0, %v1793_v8 }
 0x624   :  { %v518_v12 = vsub.f32 1.0, %v517_v11 }
 0x626   :  { %v519_v21 = vmul.f32 %v1908_v9, %v518_v12 }
 0x628   :  { %633 = vperm.xlu0 %1869, %v1784_v13   ;;  %v520_v13 = vadd.f32 %v1908_v9, %v519_v21 }
 0x62a   :  { %v524_v35 = vsel %vm523_vm8, %v1908_v9, %v520_v13 }
 0x62b   :  { %v529_v38 = vsel %vm526_vm11, %v528_v36, %v524_v35 }
 0x62c   :  { %v545_v41 = vsub.f32 1.0, %v529_v38  ;;  %v547_v43 = vmul.f32 %v529_v38, %v2255_v60 }
 0x68a   :  { %v622_v16 = vpop.permute.xlu0 %621 }
 0x68b   :  { %v624_v20 = vmul.f32 %v622_v16, %v619_v15 }
 0x68d   :  { %v630_v23 = vadd.f32 %v629_v17, %v624_v20 }
 0x68f   :  { %637 = vst [vmem:[#allocation1] ss:$4 sm:$0xff] %v630_v23 }
 0x692   :  { %v541_v28 = vpop.permute.xlu0 %540 }
 0x693   :  { %v543_v34 = vadd.f32 %v541_v28, %v537_v10 }
 0x695   :  { %1909 = vtanh.f32 %v543_v34 }
 0x696   :  { %v638_v37 = vld.sshfl [vmem:[#allocation1] sm:$0xff pattern:$0x73625140] }
 0x697   :  { %639 = vrot.lane.b32.xlu1 %v638_v37, %s2007_s3 }
 0x69a   :  { %v634_v54 = vpop.permute.xlu0 %633 }
 0x69b   :  { %v1910_v42 = vpop.eup %1909 }
 0x69c   :  { %v546_v44 = vmul.f32 %v1910_v42, %v545_v41 }
 0x69e   :  { %v548_v45 = vadd.f32 %v547_v43, %v546_v44 }
 0x6a0   :  { %v2291_v48 = vmul.f32 %v552_v46, %v548_v45 }
 0x6a2   :  { %v2294_v51 = vadd.f32 %v561_v47, %v2291_v48 }
 0x6a4   :  { %v655_v52 = vpack.c.bf16 %v2294_v51, %v2294_v51 }
 0x6a6   :  { %1789 = vmatmul.msk.bf16.vlgmr.msrb.gmra.mxu3 %vm189_vm10, %v655_v52 }
 0x6a7   :  { %1402 = vmatpush.bf16.msrb.mxu3 %v2176_v61 }
 0x6ab   :  { %1403 = vmatpush.bf16.msrb.mxu3 %v2182_v62 }
 0x709   :  { %v640_v55 = vpop.permute.xlu1 %639 }
 0x70a   :  { %v642_v60 = vmul.f32 %v640_v55, %v634_v54  ;;  %v2340_v54 = vsel %vm137_vm4, %v2229_v50, %v2225_v49  ;;  %v2347_v55 = vld [vmem:[%s2659_s1 + $0x8] sm:$0x3] }
 0x70c   :  { %v2302_v57 = vadd.f32 %v649_v56, %v642_v60  ;;  %1787 = vst.msk [vmem:[%s2661_s10 + $0x4] sm:$0x3] %vm265_vm9, %v642_v60  ;;  %v696_v56 = vrot.slane %v2321_v3, 2 }
 0x70e   :  { %v758_v22 = vpack.c.bf16 %v2302_v57, %v2302_v57 }
 0x710   :  { %1794 = vmatmul.msk.bf16.vlgmr.msra.gmra.mxu0 %vm189_vm10, %v758_v22 }
 0x711   :  { %1503 = vmatpush.bf16.msra.mxu0 %v2072_v0 }
 0x715   :  { %1504 = vmatpush.bf16.msra.mxu0 %v2090_v5  ;;  %v1788_v5 = vld [vmem:[%s2659_s1 + $0xa] sm:$0x3] }
 0x716   :  { %v742_v4 = vsub.f32 1.0, %v1788_v5 }
 0x729   :  { %v668_v19 = vpop.f32.mrf.mxu3 }
 0x72a   :  { %v669_v39 = vadd.f32 %v2214_v40, %v668_v19 }
 0x72c   :  { %718 = vrot.lane.b32.xlu2 %v669_v39, %s2008_s4  ;;  %673 = vrot.lane.b32.xlu0 %v669_v39, %s2007_s3 }
 0x731   :  { %v670_v26 = vpop.f32.mrf.mxu3 }
 0x786   :  { %v719_v13 = vpop.permute.xlu2 %718 }
 0x78d   :  { %v771_v59 = vpop.f32.mrf.mxu0 }
 0x78e   :  { %v772_v63 = vadd.f32 %v2132_v18, %v771_v59 }
 0x790   :  { %796 = vrot.lane.b32.xlu1 %v772_v63, %s2006_s27  ;;  %v775_v28 = vadd.f32 %v772_v63, %v123_v27 }
 0x792   :  { %v1795_v34 = vmul.f32 -1.442695, %v775_v28 }
 0x795   :  { %v773_v0 = vpop.f32.mrf.mxu0 }
 0x798   :  { %722 = vrot.lane.b32.xlu1 %v2321_v3, %s2007_s3 }
 0x79e   :  { %v674_v6 = vpop.permute.xlu0 %673 }
 0x79f   :  { %v676_v18 = vadd.f32 %v674_v6, %v2321_v3  ;;  %v698_v60 = vadd.f32 %v696_v56, %v674_v6 }
 0x7a0   :  { %745 = vperm.xlu1 %1867, %v742_v4  }
 0x7a1   :  { %v1790_v7 = vmul.f32 -1.442695, %v676_v18  ;;  %v1791_v22 = vmul.f32 -1.442695, %v698_v60 }
 0x7a3   :  { %1911 = vpow2.f32 %v1790_v7 }
 0x7a8   :  { %820 = vperm.xlu1 %1867, %v1793_v8  }
 0x7a9   :  { %v1912_v9 = vpop.eup %1911 }
 0x7aa   :  { %v680_v11 = vadd.f32 1.0, %v1912_v9 }
 0x7ac   :  { %1913 = vrcp.f32 %v680_v11  ;;  %v692_v16 = vand.u32 2147483648, %v680_v11  ;;  %v690_v20 = vand.u32 2147483647, %v680_v11  ;;  %vm686_vm2 = vweird.f32 %v680_v11 }
 0x7ad   :  { %1915 = vpow2.f32 %v1795_v34 }
 0x7ae   :  { %v693_v23 = vor.u32 1.1754944e-38, %v692_v16  ;;  %vm691_vm13 = vcmp.eq.f32.partialorder %v690_v20, 8.507059e+37 }
 0x7b2   :  { %v1914_v12 = vpop.eup %1913 }
 0x7b3   :  { %v682_v14 = vmul.f32 %v1914_v12, %v680_v11  ;;  %vm687_vm3 = vweird.f32 %v1914_v12  ;;  %v1916_v35 = vpop.eup %1915 }
 0x7b4   :  { %vm688_vm12 = vmor %vm686_vm2, %vm687_vm3  ;;  %v779_v36 = vadd.f32 1.0, %v1916_v35 }
 0x7b5   :  { %v683_v15 = vsub.f32 1.0, %v682_v14 }
 0x7b6   :  { %1917 = vrcp.f32 %v779_v36  ;;  %v791_v44 = vand.u32 2147483648, %v779_v36  ;;  %vm785_vm15 = vweird.f32 %v779_v36  ;;  %v789_v2 = vand.u32 2147483647, %v779_v36 }
 0x7b7   :  { %v684_v17 = vmul.f32 %v1914_v12, %v683_v15  ;;  %1919 = vpow2.f32 %v1791_v22 }
 0x7b8   :  { %v792_v46 = vor.u32 1.1754944e-38, %v791_v44  ;;  %vm790_vm1 = vcmp.eq.f32.partialorder %v789_v2, 8.507059e+37 }
 0x7b9   :  { %v685_v21 = vadd.f32 %v1914_v12, %v684_v17 }
 0x7bb   :  { %v689_v24 = vsel %vm688_vm12, %v1914_v12, %v685_v21 }
 0x7bc   :  { %v694_v10 = vsel %vm691_vm13, %v693_v23, %v689_v24  ;;  %v1918_v37 = vpop.eup %1917 }
 0x7bd   :  { %v721_v25 = vmul.f32 %v719_v13, %v694_v10  ;;  %v781_v38 = vmul.f32 %v1918_v37, %v779_v36  ;;  %vm786_vm14 = vweird.f32 %v1918_v37  ;;  %v1920_v19 = vpop.eup %1919 }
 0x7be   :  { %vm787_vm0 = vmor %vm785_vm15, %vm786_vm14  ;;  %v702_v39 = vadd.f32 1.0, %v1920_v19 }
 0x7bf   :  { %727 = vrot.lane.b32.xlu2 %v721_v25, %s2008_s4  ;;  %v782_v41 = vsub.f32 1.0, %v781_v38 }
 0x7c0   :  { %1921 = vrcp.f32 %v702_v39  ;;  %v714_v7 = vand.u32 2147483648, %v702_v39  ;;  %vm708_vm5 = vweird.f32 %v702_v39  ;;  %v712_v8 = vand.u32 2147483647, %v702_v39 }
 0x7c1   :  { %v783_v42 = vmul.f32 %v1918_v37, %v782_v41 }
 0x7c2   :  { %v715_v6 = vor.u32 1.1754944e-38, %v714_v7  ;;  %vm713_vm7 = vcmp.eq.f32.partialorder %v712_v8, 8.507059e+37  ;;  %v2386_v7 = vld [vmem:[%s2659_s1 + $0x8] sm:$0x3] }
 0x7c3   :  { %v784_v43 = vadd.f32 %v1918_v37, %v783_v42  ;;  %v1016_v8 = vsub.f32 1.0, %v2386_v7 }
 0x7c5   :  { %v788_v45 = vsel %vm787_vm0, %v1918_v37, %v784_v43 }
 0x7c6   :  { %v793_v47 = vsel %vm790_vm1, %v792_v46, %v788_v45  ;;  %v1922_v49 = vpop.eup %1921 }
 0x7c7   :  { %v704_v26 = vmul.f32 %v1922_v49, %v702_v39  ;;  %vm709_vm4 = vweird.f32 %v1922_v49  ;;  %v806_v34 = vsub.f32 1.0, %v793_v47 }
 0x7c8   :  { %vm710_vm6 = vmor %vm708_vm5, %vm709_vm4 }
 0x7c9   :  { %v705_v59 = vsub.f32 1.0, %v704_v26 }
 0x7cb   :  { %v706_v0 = vmul.f32 %v1922_v49, %v705_v59 }
 0x7cd   :  { %v707_v18 = vadd.f32 %v1922_v49, %v706_v0 }
 0x7cf   :  { %v711_v3 = vsel %vm710_vm6, %v1922_v49, %v707_v18  ;;  %v929_v18 = vsub.f32 1.0, %v2347_v55 }
 0x7d0   :  { %v716_v9 = vsel %vm713_vm7, %v715_v6, %v711_v3  ;;  %v2390_v3 = vrot.slane %v2151_v30, 6 }
 0x7d1   :  { %v732_v15 = vsub.f32 1.0, %v716_v9  ;;  %v734_v17 = vmul.f32 %v716_v9, %v2294_v51 }
 0x802   :  { %v797_v29 = vpop.permute.xlu1 %796 }
 0x803   :  { %v799_v52 = vmul.f32 %v797_v29, %v793_v47 }
 0x805   :  { %801 = vrot.lane.b32.xlu0 %v799_v52, %s2006_s27 }
 0x80a   :  { %v723_v63 = vpop.permute.xlu1 %722 }
 0x80d   :  { %738 = vperm.xlu0 %1869, %v1788_v5   ;;  %v724_v5 = vrot.slane %v723_v63, 2 }
 0x812   :  { %v746_v20 = vpop.permute.xlu1 %745 }
 0x813   :  { %v748_v13 = vmul.f32 %v746_v20, %v2294_v51 }
 0x815   :  { %813 = vrot.lane.b32.xlu0 %v2302_v57, %s2008_s4 }
 0x819   :  { %v728_v1 = vpop.permute.xlu2 %727 }
 0x81a   :  { %v730_v4 = vadd.f32 %v728_v1, %v724_v5 }
 0x81c   :  { %1923 = vtanh.f32 %v730_v4 }
 0x81d   :  { %833 = vperm.xlu0 %1869, %v830_v53  }
 0x822   :  { %v1924_v11 = vpop.eup %1923 }
 0x823   :  { %v733_v16 = vmul.f32 %v1924_v11, %v732_v15  ;;  %v2403_v11 = vld [vmem:[%s2657_s5] ss:$0 sm:$0xff] }
 0x825   :  { %909 = vrot.lane.b32.xlu0 %v2340_v54, %s2007_s3  ;;  %v735_v21 = vadd.f32 %v734_v17, %v733_v16 }
 0x82d   :  { %925 = vperm.xlu0 %1869, %v2347_v55   ;;  %v2397_v55 = vld [vmem:[%s2659_s1 + $0x6] sm:$0x3] }
 0x82e   :  { %v1113_v6 = vsub.f32 1.0, %v2397_v55 }
 0x877   :  { %v802_v12 = vpop.permute.xlu0 %801 }
 0x878   :  { %v804_v14 = vadd.f32 %v802_v12, %v123_v27 }
 0x87a   :  { %1925 = vtanh.f32 %v804_v14  ;;  %v883_v14 = vrot.slane %v2340_v54, 2 }
 0x87f   :  { %v739_v23 = vpop.permute.xlu0 %738 }
 0x880   :  { %v1926_v24 = vpop.eup %1925  ;;  %v2353_v10 = vmul.f32 %v739_v23, %v735_v21 }
 0x881   :  { %808 = vrot.lane.b32.xlu2 %v1926_v24, %s2007_s3 }
 0x882   :  { %v2357_v25 = vadd.f32 %v748_v13, %v2353_v10 }
 0x884   :  { %v842_v27 = vpack.c.bf16 %v2357_v25, %v2357_v25 }
 0x886   :  { %1798 = vmatmul.msk.bf16.vlgmr.msra.gmra.mxu1 %vm189_vm10, %v842_v27 }
 0x887   :  { %1585 = vmatpush.bf16.msra.mxu1 %v2176_v61  ;;  %v814_v28 = vpop.permute.xlu0 %813 }
 0x888   :  { %v816_v51 = vmul.f32 %v814_v28, %v793_v47 }
 0x88b   :  { %1586 = vmatpush.bf16.msra.mxu1 %v2182_v62  ;;  %v821_v62 = vpop.permute.xlu1 %820 }
 0x88f   :  { %v834_v43 = vpop.permute.xlu0 %833 }
 0x890   :  { %v836_v2 = vmul.f32 %v834_v43, %v2302_v57 }
 0x8db   :  { %v809_v35 = vpop.permute.xlu2 %808 }
 0x8dc   :  { %v811_v36 = vmul.f32 %v809_v35, %v806_v34  ;;  %v910_v35 = vpop.permute.xlu0 %909 }
 0x8de   :  { %v817_v37 = vadd.f32 %v816_v51, %v811_v36 }
 0x8e0   :  { %824 = vst [vmem:[#allocation1] ss:$4 sm:$0xff] %v817_v37 }
 0x8e7   :  { %v825_v38 = vld.sshfl [vmem:[#allocation1] sm:$0xff pattern:$0x73625140] }
 0x8e8   :  { %826 = vrot.lane.b32.xlu2 %v825_v38, %s2007_s3 }
 0x903   :  { %v855_v41 = vpop.f32.mrf.mxu1 }
 0x904   :  { %v856_v42 = vadd.f32 %v2214_v40, %v855_v41 }
 0x906   :  { %860 = vrot.lane.b32.xlu1 %v856_v42, %s2007_s3  ;;  %905 = vrot.lane.b32.xlu2 %v856_v42, %s2008_s4 }
 0x90b   :  { %v857_v61 = vpop.f32.mrf.mxu1 }
 0x942   :  { %v827_v44 = vpop.permute.xlu2 %826 }
 0x943   :  { %v829_v45 = vmul.f32 %v827_v44, %v821_v62 }
 0x945   :  { %v2369_v46 = vadd.f32 %v836_v2, %v829_v45  ;;  %1796 = vst.msk [vmem:[%s2661_s10 + $0x6] sm:$0x3] %vm265_vm9, %v829_v45 }
 0x947   :  { %v944_v29 = vpack.c.bf16 %v2369_v46, %v2369_v46 }
 0x949   :  { %1803 = vmatmul.msk.bf16.vlgmr.msra.gmra.mxu2 %vm189_vm10, %v944_v29 }
 0x960   :  { %v906_v0 = vpop.permute.xlu2 %905 }
 0x978   :  { %v861_v47 = vpop.permute.xlu1 %860 }
 0x979   :  { %v863_v52 = vadd.f32 %v861_v47, %v2340_v54  ;;  %v885_v15 = vadd.f32 %v883_v14, %v861_v47  ;;  %v911_v54 = vrot.slane %v910_v35, 2 }
 0x97b   :  { %v1799_v53 = vmul.f32 -1.442695, %v863_v52  ;;  %v1800_v16 = vmul.f32 -1.442695, %v885_v15 }
 0x97d   :  { %1927 = vpow2.f32 %v1799_v53 }
 0x983   :  { %v1928_v56 = vpop.eup %1927 }
 0x984   :  { %v867_v57 = vadd.f32 1.0, %v1928_v56 }
 0x986   :  { %1929 = vrcp.f32 %v867_v57  ;;  %v879_v39 = vand.u32 2147483648, %v867_v57  ;;  %v877_v26 = vand.u32 2147483647, %v867_v57  ;;  %vm873_vm11 = vweird.f32 %v867_v57 }
 0x987   :  { %1931 = vpow2.f32 %v1800_v16 }
 0x988   :  { %v880_v63 = vor.u32 1.1754944e-38, %v879_v39  ;;  %vm878_vm2 = vcmp.eq.f32.partialorder %v877_v26, 8.507059e+37 }
 0x98c   :  { %v1930_v60 = vpop.eup %1929 }
 0x98d   :  { %v869_v22 = vmul.f32 %v1930_v60, %v867_v57  ;;  %vm874_vm8 = vweird.f32 %v1930_v60  ;;  %v1932_v17 = vpop.eup %1931  ;;  %v926_v57 = vpop.permute.xlu0 %925 }
 0x98e   :  { %vm875_vm3 = vmor %vm873_vm11, %vm874_vm8  ;;  %v889_v20 = vadd.f32 1.0, %v1932_v17 }
 0x98f   :  { %v870_v19 = vsub.f32 1.0, %v869_v22 }
 0x990   :  { %1933 = vrcp.f32 %v889_v20  ;;  %v901_v37 = vand.u32 2147483648, %v889_v20  ;;  %vm895_vm13 = vweird.f32 %v889_v20  ;;  %v899_v38 = vand.u32 2147483647, %v889_v20 }
 0x991   :  { %v871_v49 = vmul.f32 %v1930_v60, %v870_v19 }
 0x992   :  { %v902_v43 = vor.u32 1.1754944e-38, %v901_v37  ;;  %vm900_vm15 = vcmp.eq.f32.partialorder %v899_v38, 8.507059e+37 }
 0x993   :  { %v872_v59 = vadd.f32 %v1930_v60, %v871_v49 }
 0x995   :  { %v876_v1 = vsel %vm875_vm3, %v1930_v60, %v872_v59 }
 0x996   :  { %v881_v5 = vsel %vm878_vm2, %v880_v63, %v876_v1  ;;  %v1934_v23 = vpop.eup %1933 }
 0x997   :  { %v908_v4 = vmul.f32 %v906_v0, %v881_v5  ;;  %v891_v13 = vmul.f32 %v1934_v23, %v889_v20  ;;  %vm896_vm12 = vweird.f32 %v1934_v23 }
 0x998   :  { %vm897_vm14 = vmor %vm895_vm13, %vm896_vm12 }
 0x999   :  { %914 = vrot.lane.b32.xlu1 %v908_v4, %s2008_s4  ;;  %v892_v27 = vsub.f32 1.0, %v891_v13 }
 0x99b   :  { %v893_v28 = vmul.f32 %v1934_v23, %v892_v27 }
 0x99d   :  { %v894_v36 = vadd.f32 %v1934_v23, %v893_v28 }
 0x99f   :  { %v898_v61 = vsel %vm897_vm14, %v1934_v23, %v894_v36 }
 0x9a0   :  { %v903_v62 = vsel %vm900_vm15, %v902_v43, %v898_v61 }
 0x9a1   :  { %932 = vperm.xlu1 %1867, %v929_v18   ;;  %v919_v2 = vsub.f32 1.0, %v903_v62  ;;  %v921_v47 = vmul.f32 %v903_v62, %v2357_v25 }
 0x9a9   :  { %999 = vrot.lane.b32.xlu1 %v2369_v46, %s2008_s4 }
 0x9b1   :  { %1019 = vperm.xlu1 %1867, %v1016_v8  }
 0x9b9   :  { %1093 = vrot.lane.b32.xlu1 %v2390_v3, %s2007_s3 }
 0x9c1   :  { %1116 = vperm.xlu1 %1867, %v1113_v6  }
 0x9cc   :  { %v957_v9 = vpop.f32.mrf.mxu2 }
 0x9cd   :  { %v958_v30 = vadd.f32 %v2403_v11, %v957_v9 }
 0x9cf   :  { %982 = vrot.lane.b32.xlu2 %v958_v30, %s2006_s27  ;;  %v961_v21 = vadd.f32 %v958_v30, %v2229_v50 }
 0x9d1   :  { %v1804_v24 = vmul.f32 -1.442695, %v961_v21 }
 0x9d3   :  { %1935 = vpow2.f32 %v1804_v24 }
 0x9d4   :  { %v959_v12 = vpop.f32.mrf.mxu2 }
 0x9d9   :  { %v1936_v34 = vpop.eup %1935 }
 0x9da   :  { %v965_v51 = vadd.f32 1.0, %v1936_v34 }
 0x9dc   :  { %1937 = vrcp.f32 %v965_v51  ;;  %v977_v63 = vand.u32 2147483648, %v965_v51  ;;  %vm971_vm1 = vweird.f32 %v965_v51  ;;  %v975_v1 = vand.u32 2147483647, %v965_v51 }
 0x9de   :  { %v978_v5 = vor.u32 1.1754944e-38, %v977_v63  ;;  %vm976_vm5 = vcmp.eq.f32.partialorder %v975_v1, 8.507059e+37 }
 0x9e2   :  { %v1938_v44 = vpop.eup %1937 }
 0x9e3   :  { %v967_v53 = vmul.f32 %v1938_v44, %v965_v51  ;;  %vm972_vm0 = vweird.f32 %v1938_v44 }
 0x9e4   :  { %vm973_vm4 = vmor %vm971_vm1, %vm972_vm0 }
 0x9e5   :  { %v968_v19 = vsub.f32 1.0, %v967_v53 }
 0x9e7   :  { %v969_v26 = vmul.f32 %v1938_v44, %v968_v19 }
 0x9e9   :  { %v970_v59 = vadd.f32 %v1938_v44, %v969_v26 }
 0x9eb   :  { %v974_v0 = vsel %vm973_vm4, %v1938_v44, %v970_v59 }
 0xa0b   :  { %v915_v41 = vpop.permute.xlu1 %914 }
 0xa0c   :  { %v917_v42 = vadd.f32 %v915_v41, %v911_v54 }
 0xa0e   :  { %1939 = vtanh.f32 %v917_v42 }
 0xa13   :  { %v933_v52 = vpop.permute.xlu1 %932 }
 0xa14   :  { %v1940_v45 = vpop.eup %1939  ;;  %v935_v22 = vmul.f32 %v933_v52, %v2357_v25  ;;  %v979_v25 = vsel %vm976_vm5, %v978_v5, %v974_v0  ;;  %v1067_v52 = vrot.slane %v2390_v3, 2 }
 0xa15   :  { %v920_v29 = vmul.f32 %v1940_v45, %v919_v2  ;;  %v992_v16 = vsub.f32 1.0, %v979_v25 }
 0xa17   :  { %v922_v56 = vadd.f32 %v921_v47, %v920_v29 }
 0xa19   :  { %v2410_v60 = vmul.f32 %v926_v57, %v922_v56 }
 0xa1b   :  { %v2414_v39 = vadd.f32 %v935_v22, %v2410_v60  ;;  %v1000_v15 = vpop.permute.xlu1 %999 }
 0xa1c   :  { %v1002_v20 = vmul.f32 %v1000_v15, %v979_v25 }
 0xa1d   :  { %v1026_v49 = vpack.c.bf16 %v2414_v39, %v2414_v39 }
 0xa1f   :  { %1807 = vmatmul.msk.bf16.vlgmr.msra.gmra.mxu3 %vm189_vm10, %v1026_v49 }
 0xa23   :  { %v1020_v37 = vpop.permute.xlu1 %1019 }
 0xa24   :  { %v1022_v41 = vmul.f32 %v1020_v37, %v2369_v46 }
 0xa29   :  { %v983_v4 = vpop.permute.xlu2 %982 }
 0xa2a   :  { %v985_v18 = vmul.f32 %v983_v4, %v979_v25 }
 0xa2b   :  { %v1094_v63 = vpop.permute.xlu1 %1093 }
 0xa2c   :  { %987 = vrot.lane.b32.xlu2 %v985_v18, %s2006_s27  ;;  %v1095_v0 = vrot.slane %v1094_v63, 2 }
 0xa33   :  { %v1117_v15 = vpop.permute.xlu1 %1116 }
 0xa34   :  { %1006 = vperm.xlu2 %1868, %v2386_v7  }
 0xa86   :  { %v988_v8 = vpop.permute.xlu2 %987 }
 0xa87   :  { %v990_v6 = vadd.f32 %v988_v8, %v2229_v50 }
 0xa89   :  { %1941 = vtanh.f32 %v990_v6 }
 0xa8e   :  { %v1007_v24 = vpop.permute.xlu2 %1006 }
 0xa8f   :  { %v1942_v9 = vpop.eup %1941 }
 0xa90   :  { %994 = vrot.lane.b32.xlu0 %v1942_v9, %s2007_s3 }
 0xaa2   :  { %v1039_v30 = vpop.f32.mrf.mxu3 }
 0xaa3   :  { %v1040_v12 = vadd.f32 %v2214_v40, %v1039_v30 }
 0xaa5   :  { %1044 = vrot.lane.b32.xlu2 %v1040_v12, %s2007_s3 }
 0xaaa   :  { %v1041_v14 = vpop.f32.mrf.mxu3 }
 0xaff   :  { %v1045_v13 = vpop.permute.xlu2 %1044 }
 0xb00   :  { %v1047_v40 = vadd.f32 %v1045_v13, %v2390_v3  ;;  %v1069_v53 = vadd.f32 %v1067_v52, %v1045_v13  ;;  %v1811_v52 = vld [vmem:[%s2659_s1 + $0xa] sm:$0x3] }
 0xb02   :  { %v995_v17 = vpop.permute.xlu0 %994  ;;  %v1808_v27 = vmul.f32 -1.442695, %v1047_v40  ;;  %v1809_v56 = vmul.f32 -1.442695, %v1069_v53  ;;  %v1199_v53 = vsub.f32 1.0, %v1811_v52 }
 0xb03   :  { %v997_v21 = vmul.f32 %v995_v17, %v992_v16 }
 0xb04   :  { %1943 = vpow2.f32 %v1808_v27 }
 0xb05   :  { %v1003_v23 = vadd.f32 %v1002_v20, %v997_v21  ;;  %v1119_v20 = vmul.f32 %v1117_v15, %v2414_v39 }
 0xb07   :  { %1010 = vst [vmem:[#allocation1] ss:$4 sm:$0xff] %v1003_v23 }
 0xb0a   :  { %v1944_v28 = vpop.eup %1943 }
 0xb0b   :  { %v1051_v34 = vadd.f32 1.0, %v1944_v28 }
 0xb0d   :  { %1945 = vrcp.f32 %v1051_v34  ;;  %v1063_v61 = vand.u32 2147483648, %v1051_v34  ;;  %vm1057_vm7 = vweird.f32 %v1051_v34  ;;  %v1061_v62 = vand.u32 2147483647, %v1051_v34 }
 0xb0e   :  { %v1011_v7 = vld.sshfl [vmem:[#allocation1] sm:$0xff pattern:$0x73625140]  ;;  %1947 = vpow2.f32 %v1809_v56 }
 0xb0f   :  { %1012 = vrot.lane.b32.xlu0 %v1011_v7, %s2007_s3  ;;  %v1064_v45 = vor.u32 1.1754944e-38, %v1063_v61  ;;  %vm1062_vm11 = vcmp.eq.f32.partialorder %v1061_v62, 8.507059e+37 }
 0xb13   :  { %v1946_v35 = vpop.eup %1945 }
 0xb14   :  { %v1053_v51 = vmul.f32 %v1946_v35, %v1051_v34  ;;  %vm1058_vm6 = vweird.f32 %v1946_v35  ;;  %v1948_v57 = vpop.eup %1947 }
 0xb15   :  { %vm1059_vm8 = vmor %vm1057_vm7, %vm1058_vm6  ;;  %v1073_v22 = vadd.f32 1.0, %v1948_v57 }
 0xb16   :  { %v1054_v36 = vsub.f32 1.0, %v1053_v51 }
 0xb17   :  { %1089 = vrot.lane.b32.xlu0 %v1040_v12, %s2008_s4  ;;  %1949 = vrcp.f32 %v1073_v22  ;;  %v1085_v5 = vand.u32 2147483648, %v1073_v22  ;;  %vm1079_vm2 = vweird.f32 %v1073_v22  ;;  %v1083_v25 = vand.u32 2147483647, %v1073_v22 }
 0xb18   :  { %v1055_v54 = vmul.f32 %v1946_v35, %v1054_v36 }
 0xb19   :  { %v1086_v8 = vor.u32 1.1754944e-38, %v1085_v5  ;;  %vm1084_vm13 = vcmp.eq.f32.partialorder %v1083_v25, 8.507059e+37 }
 0xb1d   :  { %v1950_v19 = vpop.eup %1949 }
 0xb1e   :  { %v1075_v49 = vmul.f32 %v1950_v19, %v1073_v22  ;;  %vm1080_vm3 = vweird.f32 %v1950_v19 }
 0xb1f   :  { %1109 = vperm.xlu0 %1869, %v2397_v55   ;;  %v1056_v55 = vadd.f32 %v1946_v35, %v1055_v54  ;;  %vm1081_vm12 = vmor %vm1079_vm2, %vm1080_vm3 }
 0xb20   :  { %v1076_v26 = vsub.f32 1.0, %v1075_v49  ;;  %v1815_v49 = vld [vmem:[%s2659_s1 + $0x4] sm:$0x3] }
 0xb21   :  { %v1060_v2 = vsel %vm1059_vm8, %v1946_v35, %v1056_v55 }
 0xb22   :  { %v1065_v46 = vsel %vm1062_vm11, %v1064_v45, %v1060_v2  ;;  %v1077_v59 = vmul.f32 %v1950_v19, %v1076_v26 }
 0xb24   :  { %v1078_v1 = vadd.f32 %v1950_v19, %v1077_v59  ;;  %v144_v59 = vrot.slane %v2155_v31, 4 }
 0xb26   :  { %v1082_v18 = vsel %vm1081_vm12, %v1950_v19, %v1078_v1 }
 0xb27   :  { %v1087_v6 = vsel %vm1084_vm13, %v1086_v8, %v1082_v18 }
 0xb28   :  { %v1103_v9 = vsub.f32 1.0, %v1087_v6  ;;  %v1105_v12 = vmul.f32 %v1087_v6, %v2414_v39  ;;  %v124_v39 = vrot.slane %v2229_v50, 2 }
 0xb81   :  { %v1013_v38 = vpop.permute.xlu0 %1012 }
 0xb82   :  { %v2430_v42 = vmul.f32 %v1013_v38, %v1007_v24 }
 0xb84   :  { %v2433_v43 = vadd.f32 %v1022_v41, %v2430_v42 }
 0xb86   :  { %v1127_v44 = vpack.c.bf16 %v2433_v43, %v2433_v43 }
 0xb88   :  { %1812 = vmatmul.msk.bf16.vlgmr.msrb.gmra.mxu0 %vm189_vm10, %v1127_v44 }
 0xb89   :  { %v1090_v29 = vpop.permute.xlu0 %1089 }
 0xb8a   :  { %v1092_v47 = vmul.f32 %v1090_v29, %v1065_v46  ;;  %v2459_v29 = vld [vmem:[%s2662_s7] ss:$0 sm:$0xff] }
 0xb8c   :  { %1098 = vrot.lane.b32.xlu2 %v1092_v47, %s2008_s4 }
 0xb91   :  { %v1110_v17 = vpop.permute.xlu0 %1109 }
 0xbe6   :  { %v1099_v4 = vpop.permute.xlu2 %1098 }
 0xbe7   :  { %v1101_v3 = vadd.f32 %v1099_v4, %v1095_v0 }
 0xbe9   :  { %1951 = vtanh.f32 %v1101_v3 }
 0xbef   :  { %v1952_v30 = vpop.eup %1951 }
 0xbf0   :  { %v1104_v14 = vmul.f32 %v1952_v30, %v1103_v9 }
 0xbf2   :  { %v1106_v16 = vadd.f32 %v1105_v12, %v1104_v14 }
 0xbf4   :  { %v2442_v21 = vmul.f32 %v1110_v17, %v1106_v16 }
 0xbf6   :  { %v2445_v23 = vadd.f32 %v1119_v20, %v2442_v21 }
 0xbf8   :  { %v1209_v7 = vpack.c.bf16 %v2445_v23, %v2445_v23 }
 0xbfa   :  { %1816 = vmatmul.msk.bf16.vlgmr.msrb.gmra.mxu1 %vm189_vm10, %v1209_v7 }
 0xc05   :  { %v1140_v24 = vpop.f32.mrf.mxu0 }
 0xc06   :  { %v1141_v13 = vadd.f32 %v2403_v11, %v1140_v24 }
 0xc08   :  { %1165 = vrot.lane.b32.xlu2 %v1141_v13, %s2006_s27  ;;  %v1144_v27 = vadd.f32 %v1141_v13, %v124_v39 }
 0xc0a   :  { %v1813_v28 = vmul.f32 -1.442695, %v1144_v27  ;;  %v1296_v27 = vsub.f32 1.0, %v1815_v49 }
 0xc0c   :  { %1953 = vpow2.f32 %v1813_v28  ;;  %v1250_v28 = vrot.slane %v144_v59, 2 }
 0xc0d   :  { %v1142_v40 = vpop.f32.mrf.mxu0 }
 0xc10   :  { %1182 = vrot.lane.b32.xlu2 %v2433_v43, %s2008_s4 }
 0xc12   :  { %v1954_v34 = vpop.eup %1953 }
 0xc13   :  { %v1148_v35 = vadd.f32 1.0, %v1954_v34 }
 0xc15   :  { %1955 = vrcp.f32 %v1148_v35  ;;  %v1160_v41 = vand.u32 2147483648, %v1148_v35  ;;  %vm1154_vm15 = vweird.f32 %v1148_v35  ;;  %v1158_v55 = vand.u32 2147483647, %v1148_v35 }
 0xc17   :  { %v1161_v62 = vor.u32 1.1754944e-38, %v1160_v41  ;;  %vm1159_vm1 = vcmp.eq.f32.partialorder %v1158_v55, 8.507059e+37 }
 0xc1b   :  { %v1956_v51 = vpop.eup %1955 }
 0xc1c   :  { %v1150_v36 = vmul.f32 %v1956_v51, %v1148_v35  ;;  %vm1155_vm14 = vweird.f32 %v1956_v51 }
 0xc1d   :  { %vm1156_vm0 = vmor %vm1154_vm15, %vm1155_vm14 }
 0xc1e   :  { %v1151_v54 = vsub.f32 1.0, %v1150_v36 }
 0xc20   :  { %v1152_v37 = vmul.f32 %v1956_v51, %v1151_v54 }
 0xc22   :  { %v1153_v38 = vadd.f32 %v1956_v51, %v1152_v37 }
 0xc24   :  { %v1157_v61 = vsel %vm1156_vm0, %v1956_v51, %v1153_v38 }
 0xc25   :  { %v1162_v44 = vsel %vm1159_vm1, %v1161_v62, %v1157_v61 }
 0xc26   :  { %v1175_v18 = vsub.f32 1.0, %v1162_v44 }
 0xc62   :  { %v1166_v2 = vpop.permute.xlu2 %1165 }
 0xc63   :  { %v1168_v45 = vmul.f32 %v1166_v2, %v1162_v44 }
 0xc65   :  { %1170 = vrot.lane.b32.xlu0 %v1168_v45, %s2006_s27 }
 0xc6a   :  { %v1183_v3 = vpop.permute.xlu2 %1182 }
 0xc6b   :  { %v1185_v6 = vmul.f32 %v1183_v3, %v1162_v44 }
 0xc77   :  { %v1222_v46 = vpop.f32.mrf.mxu1 }
 0xc78   :  { %v1223_v47 = vadd.f32 %v2459_v29, %v1222_v46 }
 0xc7a   :  { %1227 = vrot.lane.b32.xlu0 %v1223_v47, %s2007_s3 }
 0xc7f   :  { %v1224_v56 = vpop.f32.mrf.mxu1 }
 0xc82   :  { %1202 = vperm.xlu0 %1869, %v1199_v53  }
 0xcd7   :  { %v1171_v57 = vpop.permute.xlu0 %1170 }
 0xcd8   :  { %v1173_v22 = vadd.f32 %v1171_v57, %v124_v39 }
 0xcda   :  { %1957 = vtanh.f32 %v1173_v22 }
 0xce0   :  { %v1958_v19 = vpop.eup %1957 }
 0xce1   :  { %1177 = vrot.lane.b32.xlu1 %v1958_v19, %s2007_s3 }
 0xce9   :  { %1189 = vperm.xlu1 %1867, %v1811_v52  }
 0xcec   :  { %v1228_v26 = vpop.permute.xlu0 %1227 }
 0xced   :  { %v1230_v63 = vadd.f32 %v1228_v26, %v144_v59  ;;  %v1252_v34 = vadd.f32 %v1250_v28, %v1228_v26 }
 0xcef   :  { %v1817_v1 = vmul.f32 -1.442695, %v1230_v63  ;;  %v1818_v35 = vmul.f32 -1.442695, %v1252_v34 }
 0xcf1   :  { %1272 = vrot.lane.b32.xlu1 %v1223_v47, %s2008_s4  ;;  %1959 = vpow2.f32 %v1817_v1 }
 0xcf4   :  { %v1203_v51 = vpop.permute.xlu0 %1202 }
 0xcf5   :  { %v1205_v37 = vmul.f32 %v1203_v51, %v2433_v43 }
 0xcf7   :  { %v1960_v0 = vpop.eup %1959 }
 0xcf8   :  { %v1234_v5 = vadd.f32 1.0, %v1960_v0 }
 0xcf9   :  { %1292 = vperm.xlu1 %1867, %v1815_v49  }
 0xcfa   :  { %1961 = vrcp.f32 %v1234_v5  ;;  %v1246_v31 = vand.u32 2147483648, %v1234_v5  ;;  %vm1240_vm5 = vweird.f32 %v1234_v5  ;;  %v1244_v17 = vand.u32 2147483647, %v1234_v5 }
 0xcfb   :  { %1963 = vpow2.f32 %v1818_v35 }
 0xcfc   :  { %v1247_v24 = vor.u32 1.1754944e-38, %v1246_v31  ;;  %vm1245_vm7 = vcmp.eq.f32.partialorder %v1244_v17, 8.507059e+37  ;;  %v125_v31 = vrot.slane %v2229_v50, 4  ;;  %v1824_v17 = vld [vmem:[%s2659_s1 + $0x2] sm:$0x3] }
 0xd00   :  { %v1962_v25 = vpop.eup %1961 }
 0xd01   :  { %v1236_v4 = vmul.f32 %v1962_v25, %v1234_v5  ;;  %vm1241_vm4 = vweird.f32 %v1962_v25  ;;  %v1964_v36 = vpop.eup %1963 }
 0xd02   :  { %vm1242_vm6 = vmor %vm1240_vm5, %vm1241_vm4  ;;  %v1256_v41 = vadd.f32 1.0, %v1964_v36 }
 0xd03   :  { %v1237_v30 = vsub.f32 1.0, %v1236_v4 }
 0xd04   :  { %1965 = vrcp.f32 %v1256_v41  ;;  %v1268_v52 = vand.u32 2147483648, %v1256_v41  ;;  %vm1262_vm11 = vweird.f32 %v1256_v41  ;;  %v1266_v53 = vand.u32 2147483647, %v1256_v41 }
 0xd05   :  { %v1238_v14 = vmul.f32 %v1962_v25, %v1237_v30 }
 0xd06   :  { %v1269_v19 = vor.u32 1.1754944e-38, %v1268_v52  ;;  %vm1267_vm2 = vcmp.eq.f32.partialorder %v1266_v53, 8.507059e+37 }
 0xd07   :  { %v1239_v16 = vadd.f32 %v1962_v25, %v1238_v14 }
 0xd09   :  { %v1243_v7 = vsel %vm1242_vm6, %v1962_v25, %v1239_v16 }
 0xd0a   :  { %v1248_v40 = vsel %vm1245_vm7, %v1247_v24, %v1243_v7  ;;  %v1966_v62 = vpop.eup %1965 }
 0xd0b   :  { %v1258_v44 = vmul.f32 %v1966_v62, %v1256_v41  ;;  %vm1263_vm8 = vweird.f32 %v1966_v62 }
 0xd0c   :  { %vm1264_vm3 = vmor %vm1262_vm11, %vm1263_vm8 }
 0xd0d   :  { %v1259_v2 = vsub.f32 1.0, %v1258_v44 }
 0xd0f   :  { %v1260_v45 = vmul.f32 %v1966_v62, %v1259_v2 }
 0xd11   :  { %v1261_v47 = vadd.f32 %v1966_v62, %v1260_v45  ;;  %v141_v45 = vrot.slane %v2159_v32, 2 }
 0xd13   :  { %v1265_v22 = vsel %vm1264_vm3, %v1966_v62, %v1261_v47 }
 0xd14   :  { %v1270_v49 = vsel %vm1267_vm2, %v1269_v19, %v1265_v22 }
 0xd15   :  { %v1286_v26 = vsub.f32 1.0, %v1270_v49  ;;  %v1288_v63 = vmul.f32 %v1270_v49, %v2445_v23 }
 0xd53   :  { %v1178_v8 = vpop.permute.xlu1 %1177 }
 0xd54   :  { %v1180_v9 = vmul.f32 %v1178_v8, %v1175_v18 }
 0xd56   :  { %v1186_v12 = vadd.f32 %v1185_v6, %v1180_v9 }
 0xd58   :  { %1193 = vst [vmem:[#allocation1] ss:$4 sm:$0xff] %v1186_v12 }
 0xd5b   :  { %v1190_v15 = vpop.permute.xlu1 %1189 }
 0xd5f   :  { %v1194_v20 = vld.sshfl [vmem:[#allocation1] sm:$0xff pattern:$0x73625140] }
 0xd60   :  { %1195 = vrot.lane.b32.xlu2 %v1194_v20, %s2007_s3 }
 0xd63   :  { %v1273_v13 = vpop.permute.xlu1 %1272 }
 0xd64   :  { %v1275_v39 = vmul.f32 %v1273_v13, %v1248_v40 }
 0xd66   :  { %1281 = vrot.lane.b32.xlu0 %v1275_v39, %s2008_s4 }
 0xd68   :  { %1276 = vrot.lane.b32.xlu2 %v144_v59, %s2007_s3 }
 0xd6b   :  { %v1293_v25 = vpop.permute.xlu1 %1292 }
 0xd70   :  { %1299 = vperm.xlu2 %1868, %v1296_v27  }
 0xdba   :  { %v1196_v54 = vpop.permute.xlu2 %1195 }
 0xdbb   :  { %v2476_v38 = vmul.f32 %v1196_v54, %v1190_v15  ;;  %v1820_v15 = vld [vmem:[%s2659_s1 + $0xc] sm:$0x3] }
 0xdbc   :  { %v1382_v16 = vsub.f32 1.0, %v1820_v15 }
 0xdbd   :  { %v2479_v55 = vadd.f32 %v1205_v37, %v2476_v38 }
 0xdbf   :  { %v1310_v61 = vpack.c.bf16 %v2479_v55, %v2479_v55 }
 0xdc1   :  { %1821 = vmatmul.msk.bf16.vlgmr.msrb.gmra.mxu2 %vm189_vm10, %v1310_v61 }
 0xdc2   :  { %v1277_v46 = vpop.permute.xlu2 %1276 }
 0xdc3   :  { %v1278_v43 = vrot.slane %v1277_v46, 2  ;;  %v1479_v46 = vsub.f32 1.0, %v1824_v17 }
 0xdca   :  { %v1300_v0 = vpop.permute.xlu2 %1299 }
 0xdcb   :  { %v1302_v4 = vmul.f32 %v1300_v0, %v2445_v23 }
 0xdd8   :  { %v1282_v56 = vpop.permute.xlu0 %1281 }
 0xdd9   :  { %v1284_v57 = vadd.f32 %v1282_v56, %v1278_v43 }
 0xddb   :  { %1967 = vtanh.f32 %v1284_v57 }
 0xde1   :  { %v1968_v59 = vpop.eup %1967 }
 0xde2   :  { %v1287_v1 = vmul.f32 %v1968_v59, %v1286_v26 }
 0xde4   :  { %v1289_v5 = vadd.f32 %v1288_v63, %v1287_v1 }
 0xde6   :  { %v2486_v3 = vmul.f32 %v1293_v25, %v1289_v5 }
 0xde8   :  { %v2489_v18 = vadd.f32 %v1302_v4, %v2486_v3 }
 0xdea   :  { %v1392_v8 = vpack.c.bf16 %v2489_v18, %v2489_v18 }
 0xdec   :  { %1825 = vmatmul.msk.bf16.vlgmr.msrb.gmra.mxu3 %vm189_vm10, %v1392_v8 }
 0xe44   :  { %v1323_v6 = vpop.f32.mrf.mxu2 }
 0xe45   :  { %v1324_v9 = vadd.f32 %v2403_v11, %v1323_v6 }
 0xe47   :  { %1348 = vrot.lane.b32.xlu0 %v1324_v9, %s2006_s27  ;;  %v1327_v20 = vadd.f32 %v1324_v9, %v125_v31 }
 0xe49   :  { %v1822_v7 = vmul.f32 -1.442695, %v1327_v20 }
 0xe4b   :  { %1969 = vpow2.f32 %v1822_v7 }
 0xe4c   :  { %v1325_v30 = vpop.f32.mrf.mxu2 }
 0xe51   :  { %v1970_v24 = vpop.eup %1969 }
 0xe52   :  { %v1331_v13 = vadd.f32 1.0, %v1970_v24 }
 0xe54   :  { %1971 = vrcp.f32 %v1331_v13  ;;  %v1343_v35 = vand.u32 2147483648, %v1331_v13  ;;  %vm1337_vm13 = vweird.f32 %v1331_v13  ;;  %v1341_v51 = vand.u32 2147483647, %v1331_v13 }
 0xe56   :  { %v1344_v54 = vor.u32 1.1754944e-38, %v1343_v35  ;;  %vm1342_vm15 = vcmp.eq.f32.partialorder %v1341_v51, 8.507059e+37 }
 0xe5a   :  { %v1972_v40 = vpop.eup %1971 }
 0xe5b   :  { %v1333_v39 = vmul.f32 %v1972_v40, %v1331_v13  ;;  %vm1338_vm12 = vweird.f32 %v1972_v40 }
 0xe5c   :  { %vm1339_vm14 = vmor %vm1337_vm13, %vm1338_vm12 }
 0xe5d   :  { %v1334_v27 = vsub.f32 1.0, %v1333_v39 }
 0xe5f   :  { %v1335_v28 = vmul.f32 %v1972_v40, %v1334_v27 }
 0xe61   :  { %v1336_v34 = vadd.f32 %v1972_v40, %v1335_v28 }
 0xe63   :  { %v1340_v36 = vsel %vm1339_vm14, %v1972_v40, %v1336_v34 }
 0xe64   :  { %v1345_v37 = vsel %vm1342_vm15, %v1344_v54, %v1340_v36 }
 0xe65   :  { %v1358_v49 = vsub.f32 1.0, %v1345_v37 }
 0xe6f   :  { %v1405_v12 = vpop.f32.mrf.mxu3 }
 0xe70   :  { %v1406_v14 = vadd.f32 %v2459_v29, %v1405_v12 }
 0xe72   :  { %1410 = vrot.lane.b32.xlu2 %v1406_v14, %s2007_s3 }
 0xe77   :  { %v1407_v23 = vpop.f32.mrf.mxu3 }
 0xe78   :  { %v1433_v23 = vrot.slane %v141_v45, 2 }
 0xe7a   :  { %1455 = vrot.lane.b32.xlu2 %v1406_v14, %s2008_s4 }
 0xe82   :  { %1385 = vperm.xlu2 %1868, %v1382_v16  }
 0xe8a   :  { %1475 = vperm.xlu2 %1868, %v1824_v17  }
 0xeb9   :  { %v1349_v41 = vpop.permute.xlu0 %1348 }
 0xeba   :  { %v1351_v61 = vmul.f32 %v1349_v41, %v1345_v37 }
 0xebc   :  { %1353 = vrot.lane.b32.xlu1 %v1351_v61, %s2006_s27 }
 0xec4   :  { %1365 = vrot.lane.b32.xlu1 %v2479_v55, %s2008_s4 }
 0xecc   :  { %v1411_v47 = vpop.permute.xlu2 %1410 }
 0xecd   :  { %v1413_v43 = vadd.f32 %v1411_v47, %v141_v45 }
 0xecf   :  { %v1826_v52 = vmul.f32 -1.442695, %v1413_v43 }
 0xed4   :  { %v1456_v12 = vpop.permute.xlu2 %1455 }
 0xedc   :  { %v1386_v40 = vpop.permute.xlu2 %1385 }
 0xedd   :  { %v1388_v27 = vmul.f32 %v1386_v40, %v2479_v55 }
 0xf2e   :  { %v1354_v62 = vpop.permute.xlu1 %1353 }
 0xf2f   :  { %v1356_v44 = vadd.f32 %v1354_v62, %v125_v31 }
 0xf31   :  { %1973 = vtanh.f32 %v1356_v44 }
 0xf32   :  { %1975 = vpow2.f32 %v1826_v52 }
 0xf36   :  { %v1366_v19 = vpop.permute.xlu1 %1365 }
 0xf37   :  { %v1974_v2 = vpop.eup %1973  ;;  %v1368_v63 = vmul.f32 %v1366_v19, %v1345_v37 }
 0xf38   :  { %1360 = vrot.lane.b32.xlu0 %v1974_v2, %s2007_s3  ;;  %v1976_v53 = vpop.eup %1975 }
 0xf39   :  { %v1417_v56 = vadd.f32 1.0, %v1976_v53 }
 0xf3b   :  { %1977 = vrcp.f32 %v1417_v56  ;;  %v1429_v25 = vand.u32 2147483648, %v1417_v56  ;;  %vm1423_vm1 = vweird.f32 %v1417_v56  ;;  %v1427_v4 = vand.u32 2147483647, %v1417_v56 }
 0xf3d   :  { %v1430_v9 = vor.u32 1.1754944e-38, %v1429_v25  ;;  %vm1428_vm5 = vcmp.eq.f32.partialorder %v1427_v4, 8.507059e+37 }
 0xf40   :  { %1372 = vperm.xlu0 %1869, %v1820_v15   ;;  %v1435_v15 = vadd.f32 %v1433_v23, %v1411_v47 }
 0xf41   :  { %v1978_v57 = vpop.eup %1977 }
 0xf42   :  { %v1419_v22 = vmul.f32 %v1978_v57, %v1417_v56  ;;  %vm1424_vm0 = vweird.f32 %v1978_v57  ;;  %v1827_v16 = vmul.f32 -1.442695, %v1435_v15 }
 0xf43   :  { %vm1425_vm4 = vmor %vm1423_vm1, %vm1424_vm0 }
 0xf44   :  { %v1420_v59 = vsub.f32 1.0, %v1419_v22  ;;  %1979 = vpow2.f32 %v1827_v16 }
 0xf46   :  { %v1421_v0 = vmul.f32 %v1978_v57, %v1420_v59 }
 0xf48   :  { %1459 = vrot.lane.b32.xlu0 %v141_v45, %s2007_s3  ;;  %v1422_v5 = vadd.f32 %v1978_v57, %v1421_v0 }
 0xf4a   :  { %v1426_v6 = vsel %vm1425_vm4, %v1978_v57, %v1422_v5  ;;  %v1980_v31 = vpop.eup %1979  ;;  %v1476_v57 = vpop.permute.xlu2 %1475 }
 0xf4b   :  { %v1431_v30 = vsel %vm1428_vm5, %v1430_v9, %v1426_v6  ;;  %v1439_v17 = vadd.f32 1.0, %v1980_v31 }
 0xf4c   :  { %v1458_v14 = vmul.f32 %v1456_v12, %v1431_v30 }
 0xf4d   :  { %1981 = vrcp.f32 %v1439_v17  ;;  %v1451_v41 = vand.u32 2147483648, %v1439_v17  ;;  %vm1445_vm7 = vweird.f32 %v1439_v17  ;;  %v1449_v61 = vand.u32 2147483647, %v1439_v17 }
 0xf4f   :  { %v1452_v2 = vor.u32 1.1754944e-38, %v1451_v41  ;;  %vm1450_vm11 = vcmp.eq.f32.partialorder %v1449_v61, 8.507059e+37 }
 0xf50   :  { %1482 = vperm.xlu0 %1869, %v1479_v46  }
 0xf53   :  { %v1982_v20 = vpop.eup %1981 }
 0xf54   :  { %v1441_v7 = vmul.f32 %v1982_v20, %v1439_v17  ;;  %vm1446_vm6 = vweird.f32 %v1982_v20 }
 0xf55   :  { %vm1447_vm8 = vmor %vm1445_vm7, %vm1446_vm6 }
 0xf56   :  { %v1442_v13 = vsub.f32 1.0, %v1441_v7 }
 0xf58   :  { %v1443_v34 = vmul.f32 %v1982_v20, %v1442_v13 }
 0xf5a   :  { %v1444_v54 = vadd.f32 %v1982_v20, %v1443_v34 }
 0xf5c   :  { %v1448_v44 = vsel %vm1447_vm8, %v1982_v20, %v1444_v54  ;;  %vm380_vm8 = vcmask 517376  }
 0xf5d   :  { %v1453_v45 = vsel %vm1450_vm11, %v1452_v2, %v1448_v44  ;;  %vm1717_vm11 = vcmask 523264  }
 0xf5e   :  { %v1469_v46 = vsub.f32 1.0, %v1453_v45  ;;  %v1471_v43 = vmul.f32 %v1453_v45, %v2489_v18  ;;  %v1574_v45 = vld [vmem:[%s2659_s1] sm:$0x3] }
 0xfaa   :  { %v1361_v26 = vpop.permute.xlu0 %1360 }
 0xfab   :  { %v1363_v1 = vmul.f32 %v1361_v26, %v1358_v49 }
 0xfad   :  { %v1369_v32 = vadd.f32 %v1368_v63, %v1363_v1 }
 0xfaf   :  { %1376 = vst [vmem:[#allocation1] ss:$4 sm:$0xff] %v1369_v32 }
 0xfb2   :  { %v1373_v24 = vpop.permute.xlu0 %1372 }
 0xfb6   :  { %v1377_v8 = vld.sshfl [vmem:[#allocation1] sm:$0xff pattern:$0x73625140] }
 0xfb7   :  { %1378 = vrot.lane.b32.xlu1 %v1377_v8, %s2007_s3 }
 0xfba   :  { %v1460_v51 = vpop.permute.xlu0 %1459 }
 0xfbb   :  { %v1461_v37 = vrot.slane %v1460_v51, 2 }
 0xfbf   :  { %1464 = vrot.lane.b32.xlu1 %v1458_v14, %s2008_s4 }
 0xfc2   :  { %v1483_v53 = vpop.permute.xlu0 %1482 }
 0xfc3   :  { %v1485_v22 = vmul.f32 %v1483_v53, %v2489_v18 }
0x1029   :  { %v1379_v39 = vpop.permute.xlu1 %1378 }
0x102a   :  { %v2515_v28 = vmul.f32 %v1379_v39, %v1373_v24 }
0x102c   :  { %v2518_v35 = vadd.f32 %v1388_v27, %v2515_v28 }
0x102e   :  { %v1493_v36 = vpack.c.bf16 %v2518_v35, %v2518_v35 }
0x1030   :  { %1830 = vmatmul.msk.bf16.vlgmr.msra.gmra.mxu0 %vm189_vm10, %v1493_v36 }
0x1031   :  { %v1465_v62 = vpop.permute.xlu1 %1464 }
0x1032   :  { %v1467_v55 = vadd.f32 %v1465_v62, %v1461_v37 }
0x1034   :  { %1983 = vtanh.f32 %v1467_v55 }
0x103a   :  { %v1984_v47 = vpop.eup %1983 }
0x103b   :  { %v1470_v52 = vmul.f32 %v1984_v47, %v1469_v46  ;;  %v1616_v46 = vrot.slane %v2163_v33, 2 }
0x103d   :  { %v1472_v56 = vadd.f32 %v1471_v43, %v1470_v52 }
0x103f   :  { %v2525_v19 = vmul.f32 %v1476_v57, %v1472_v56 }
0x1041   :  { %v2528_v49 = vadd.f32 %v1485_v22, %v2525_v19 }
0x1043   :  { %v1575_v26 = vpack.c.bf16 %v2528_v49, %v2528_v49 }
0x1045   :  { %1833 = vmatmul.msk.bf16.vlgmr.msra.gmra.mxu1 %vm189_vm10, %v1575_v26 }
0x10ad   :  { %v1506_v59 = vpop.f32.mrf.mxu0 }
0x10ae   :  { %v1507_v63 = vadd.f32 %v2403_v11, %v1506_v59  ;;  %v2545_v11 = vld [vmem:[%s2659_s1 + $0xe] sm:$0x3]  ;;  %v1662_v59 = vsub.f32 1.0, %v1574_v45 }
0x10b0   :  { %1531 = vrot.lane.b32.xlu1 %v1507_v63, %s2006_s27 }
0x10b5   :  { %v1508_v1 = vpop.f32.mrf.mxu0 }
0x10c2   :  { %v1588_v32 = vpop.f32.mrf.mxu1 }
0x10c3   :  { %v1589_v0 = vadd.f32 %v2459_v29, %v1588_v32  ;;  %v126_v29 = vrot.slane %v2229_v50, 6  ;;  %v1565_v32 = vsub.f32 1.0, %v2545_v11 }
0x10c5   :  { %1638 = vrot.lane.b32.xlu1 %v1589_v0, %s2008_s4  ;;  %1593 = vrot.lane.b32.xlu2 %v1589_v0, %s2007_s3  ;;  %v1510_v5 = vadd.f32 %v1507_v63, %v126_v29 }
0x10c7   :  { %v1831_v25 = vmul.f32 -1.442695, %v1510_v5 }
0x10c9   :  { %1985 = vpow2.f32 %v1831_v25 }
0x10ca   :  { %v1590_v18 = vpop.f32.mrf.mxu1 }
0x10cd   :  { %1642 = vrot.lane.b32.xlu2 %v2163_v33, %s2007_s3 }
0x10cf   :  { %v1986_v4 = vpop.eup %1985 }
0x10d0   :  { %v1514_v8 = vadd.f32 1.0, %v1986_v4 }
0x10d2   :  { %1987 = vrcp.f32 %v1514_v8  ;;  %v1526_v23 = vand.u32 2147483648, %v1514_v8  ;;  %vm1520_vm2 = vweird.f32 %v1514_v8  ;;  %v1524_v15 = vand.u32 2147483647, %v1514_v8 }
0x10d4   :  { %v1527_v17 = vor.u32 1.1754944e-38, %v1526_v23  ;;  %vm1525_vm13 = vcmp.eq.f32.partialorder %v1524_v15, 8.507059e+37 }
0x10d5   :  { %1548 = vrot.lane.b32.xlu2 %v2518_v35, %s2008_s4 }
0x10d8   :  { %v1988_v6 = vpop.eup %1987 }
0x10d9   :  { %v1516_v9 = vmul.f32 %v1988_v6, %v1514_v8  ;;  %vm1521_vm3 = vweird.f32 %v1988_v6 }
0x10da   :  { %vm1522_vm12 = vmor %vm1520_vm2, %vm1521_vm3 }
0x10db   :  { %v1517_v30 = vsub.f32 1.0, %v1516_v9 }
0x10dd   :  { %1555 = vperm.xlu2 %1868, %v2545_v11   ;;  %v1518_v12 = vmul.f32 %v1988_v6, %v1517_v30 }
0x10df   :  { %v1519_v14 = vadd.f32 %v1988_v6, %v1518_v12 }
0x10e1   :  { %v1523_v31 = vsel %vm1522_vm12, %v1988_v6, %v1519_v14 }
0x10e2   :  { %v2550_v7 = vsel %vm1525_vm13, %v1527_v17, %v1523_v31 }
0x10e3   :  { %v1541_v17 = vsub.f32 1.0, %v2550_v7 }
0x111f   :  { %v1594_v16 = vpop.permute.xlu2 %1593 }
0x1120   :  { %v1596_v50 = vadd.f32 %v1594_v16, %v2163_v33  ;;  %v1618_v47 = vadd.f32 %v1616_v46, %v1594_v16 }
0x1122   :  { %v1834_v20 = vmul.f32 -1.442695, %v1596_v50  ;;  %v1532_v24 = vpop.permute.xlu1 %1531  ;;  %v1835_v43 = vmul.f32 -1.442695, %v1618_v47 }
0x1123   :  { %v1534_v13 = vmul.f32 %v1532_v24, %v2550_v7 }
0x1124   :  { %1989 = vpow2.f32 %v1834_v20 }
0x1125   :  { %1536 = vrot.lane.b32.xlu0 %v1534_v13, %s2006_s27 }
0x1127   :  { %v1643_v33 = vpop.permute.xlu2 %1642 }
0x1128   :  { %v1644_v18 = vrot.slane %v1643_v33, 2 }
0x112a   :  { %v1990_v40 = vpop.eup %1989 }
0x112b   :  { %v1600_v39 = vadd.f32 1.0, %v1990_v40 }
0x112d   :  { %1991 = vrcp.f32 %v1600_v39  ;;  %v1612_v36 = vand.u32 2147483648, %v1600_v39  ;;  %v1610_v37 = vand.u32 2147483647, %v1600_v39  ;;  %vm1606_vm15 = vweird.f32 %v1600_v39 }
0x112e   :  { %1993 = vpow2.f32 %v1835_v43 }
0x112f   :  { %v1613_v61 = vor.u32 1.1754944e-38, %v1612_v36  ;;  %vm1611_vm1 = vcmp.eq.f32.partialorder %v1610_v37, 8.507059e+37  ;;  %v1549_v50 = vpop.permute.xlu2 %1548 }
0x1133   :  { %v1992_v27 = vpop.eup %1991 }
0x1134   :  { %v1602_v34 = vmul.f32 %v1992_v27, %v1600_v39  ;;  %vm1607_vm14 = vweird.f32 %v1992_v27  ;;  %v1994_v52 = vpop.eup %1993 }
0x1135   :  { %vm1608_vm0 = vmor %vm1606_vm15, %vm1607_vm14  ;;  %v1622_v57 = vadd.f32 1.0, %v1994_v52 }
0x1136   :  { %v1603_v51 = vsub.f32 1.0, %v1602_v34 }
0x1137   :  { %v1639_v44 = vpop.permute.xlu1 %1638  ;;  %v1634_v4 = vand.u32 2147483648, %v1622_v57  ;;  %vm1628_vm5 = vweird.f32 %v1622_v57  ;;  %v1632_v8 = vand.u32 2147483647, %v1622_v57 }
0x1138   :  { %v1604_v54 = vmul.f32 %v1992_v27, %v1603_v51 }
0x1139   :  { %v1635_v9 = vor.u32 1.1754944e-38, %v1634_v4  ;;  %vm1633_vm7 = vcmp.eq.f32.partialorder %v1632_v8, 8.507059e+37 }
0x113a   :  { %v1605_v41 = vadd.f32 %v1992_v27, %v1604_v54 }
0x113c   :  { %v1609_v62 = vsel %vm1608_vm0, %v1992_v27, %v1605_v41 }
0x113d   :  { %v1614_v55 = vsel %vm1611_vm1, %v1613_v61, %v1609_v62 }
0x113e   :  { %v1641_v2 = vmul.f32 %v1639_v44, %v1614_v55 }
0x1140   :  { %1647 = vrot.lane.b32.xlu0 %v1641_v2, %s2008_s4 }
0x1148   :  { %1658 = vperm.xlu0 %1869, %v1574_v45   ;;  %v1872_v45 = vld [vmem:[%s2663_s9] ss:$0 sm:$0xff] }
0x1197   :  { %v1537_v53 = vpop.permute.xlu0 %1536 }
0x1198   :  { %v1539_v56 = vadd.f32 %v1537_v53, %v126_v29 }
0x119a   :  { %1995 = vtanh.f32 %v1539_v56 }
0x119b   :  { %1997 = vrcp.f32 %v1622_v57 }
0x11a0   :  { %v1996_v22 = vpop.eup %1995 }
0x11a1   :  { %1543 = vrot.lane.b32.xlu1 %v1996_v22, %s2007_s3  ;;  %v1998_v26 = vpop.eup %1997 }
0x11a2   :  { %v1624_v63 = vmul.f32 %v1998_v26, %v1622_v57  ;;  %vm1629_vm4 = vweird.f32 %v1998_v26 }
0x11a3   :  { %vm1630_vm6 = vmor %vm1628_vm5, %vm1629_vm4 }
0x11a4   :  { %v1625_v1 = vsub.f32 1.0, %v1624_v63 }
0x11a6   :  { %v1626_v0 = vmul.f32 %v1998_v26, %v1625_v1 }
0x11a8   :  { %v1627_v29 = vadd.f32 %v1998_v26, %v1626_v0 }
0x11a9   :  { %1665 = vperm.xlu1 %1867, %v1662_v59  }
0x11aa   :  { %v1631_v6 = vsel %vm1630_vm6, %v1998_v26, %v1627_v29 }
0x11ab   :  { %v1636_v11 = vsel %vm1633_vm7, %v1635_v9, %v1631_v6 }
0x11ac   :  { %v1652_v12 = vsub.f32 1.0, %v1636_v11  ;;  %v1654_v23 = vmul.f32 %v1636_v11, %v2528_v49 }
0x11b1   :  { %1568 = vperm.xlu1 %1867, %v1565_v32  }
0x11b2   :  { %v1648_v5 = vpop.permute.xlu0 %1647 }
0x11b3   :  { %v1650_v25 = vadd.f32 %v1648_v5, %v1644_v18 }
0x11b5   :  { %1999 = vtanh.f32 %v1650_v25 }
0x11b9   :  { %564 = vrot.lane.b32.xlu1 %v2291_v48, %s2008_s4  ;;  %v1551_v48 = vmul.f32 %v1549_v50, %v2550_v7 }
0x11ba   :  { %v1659_v16 = vpop.permute.xlu0 %1658 }
0x11bb   :  { %v2000_v30 = vpop.eup %1999 }
0x11bc   :  { %v1653_v14 = vmul.f32 %v2000_v30, %v1652_v12 }
0x11be   :  { %v1655_v15 = vadd.f32 %v1654_v23, %v1653_v14 }
0x11c0   :  { %v1661_v31 = vmul.f32 %v1659_v16, %v1655_v15 }
0x11c1   :  { %1122 = vrot.lane.b32.xlu1 %v2442_v21, %s2008_s4 }
0x11c9   :  { %1671 = vrot.lane.b32.xlu1 %v1661_v31, %s2008_s4 }
0x1213   :  { %v1544_v20 = vpop.permute.xlu1 %1543 }
0x1214   :  { %v1546_v24 = vmul.f32 %v1544_v20, %v1541_v17 }
0x1216   :  { %v1552_v13 = vadd.f32 %v1551_v48, %v1546_v24 }
0x1218   :  { %1559 = vst [vmem:[#allocation1] ss:$4 sm:$0xff] %v1552_v13 }
0x121b   :  { %v1666_v40 = vpop.permute.xlu1 %1665 }
0x121c   :  { %v1668_v39 = vmul.f32 %v1666_v40, %v2528_v49  ;;  %v1859_v49 = vld [vmem:[%s2664_s8] sm:$0xff] }
0x121e   :  { %v1669_v27 = vadd.f32 %v1668_v39, %v1661_v31 }
0x121f   :  { %v1560_v34 = vld.sshfl [vmem:[#allocation1] sm:$0xff pattern:$0x73625140] }
0x1220   :  { %1561 = vrot.lane.b32.xlu0 %v1560_v34, %s2007_s3  ;;  %1676 = vrot.lane.b32.xlu2 %v1669_v27, %s2008_s4 }
0x1223   :  { %v1569_v21 = vpop.permute.xlu1 %1568 }
0x1224   :  { %v1571_v41 = vmul.f32 %v1569_v21, %v2518_v35 }
0x1228   :  { %376 = vrot.lane.b32.xlu0 %v2252_v58, %s2008_s4  ;;  %751 = vrot.lane.b32.xlu2 %v2353_v10, %s2008_s4 }
0x122b   :  { %v565_v7 = vpop.permute.xlu1 %564 }
0x122c   :  { %1783 = vst.msk [vmem:[%s2661_s10 + $0xc] sm:$0x3] %vm380_vm8, %v565_v7 }
0x122d   :  { %1823 = vst.msk [vmem:[%s2661_s10 + $0xc] sm:$0x3] %vm265_vm9, %v2515_v28  ;;  %v1860_v28 = vld [vmem:[%s2664_s8 + $0x8] sm:$0xff] }
0x1230   :  { %938 = vrot.lane.b32.xlu0 %v2410_v60, %s2008_s4  ;;  %1305 = vrot.lane.b32.xlu2 %v2486_v3, %s2008_s4  ;;  %v1862_v60 = vld [vmem:[%s2664_s8 + $0x18] sm:$0xff]  ;;  %v1861_v3 = vld [vmem:[%s2664_s8 + $0x10] sm:$0xff] }
0x1231   :  { %1725 = vmatpush.bf16.msra.mxu2 %v1862_v60 }
0x1233   :  { %v1123_v58 = vpop.permute.xlu1 %1122 }
0x1234   :  { %1810 = vst.msk [vmem:[%s2661_s10 + $0x6] sm:$0x3] %vm380_vm8, %v1123_v58 }
0x1235   :  { %1726 = vmatpush.bf16.msra.mxu2 %v1861_v3 }
0x1238   :  { %1488 = vrot.lane.b32.xlu0 %v2525_v19, %s2008_s4  ;;  %v1556_v19 = vpop.permute.xlu2 %1555 }
0x1239   :  { %1727 = vmatpush.bf16.msra.mxu2 %v1860_v28 }
0x123b   :  { %v1672_v10 = vpop.permute.xlu1 %1671 }
0x123c   :  { %1674 = vst.msk [vmem:[%s2661_s10] sm:$0x3] %vm380_vm8, %v1672_v10 }
0x123d   :  { %1728 = vmatpush.bf16.msra.mxu2 %v1859_v49 }
0x127a   :  { %v1677_v51 = vpop.permute.xlu2 %1676 }
0x1282   :  { %v752_v36 = vpop.permute.xlu2 %751 }
0x1283   :  { %1792 = vst.msk [vmem:[%s2661_s10 + $0xa] sm:$0x3] %vm380_vm8, %v752_v36 }
0x1284   :  { %1814 = vst.msk [vmem:[%s2661_s10 + $0xa] sm:$0x3] %vm265_vm9, %v2476_v38 }
0x128a   :  { %v1306_v54 = vpop.permute.xlu2 %1305 }
0x128b   :  { %1819 = vst.msk [vmem:[%s2661_s10 + $0x4] sm:$0x3] %vm380_vm8, %v1306_v54 }
0x1292   :  { %v1562_v37 = vpop.permute.xlu0 %1561 }
0x1293   :  { %v1564_v61 = vmul.f32 %v1562_v37, %v1556_v19 }
0x1295   :  { %v1572_v62 = vadd.f32 %v1571_v41, %v1564_v61 }
0x1297   :  { %v1679_v55 = vsel %vm189_vm10, %v1572_v62, %v1677_v51 }
0x1298   :  { %v1688_v44 = vpack.c.bf16 %v1679_v55, %v1679_v55 }
0x129a   :  { %v377_v2 = vpop.permute.xlu0 %376  ;;  %1852 = vmatmul.msk.bf16.vlgmr.msra.gmra.mxu2 %vm1717_vm11, %v1688_v44 }
0x129b   :  { %1774 = vst.msk [vmem:[%s2661_s10 + $0xe] sm:$0x3] %vm380_vm8, %v377_v2 }
0x129c   :  { %1832 = vst.msk [vmem:[%s2661_s10 + $0xe] sm:$0x3] %vm265_vm9, %v1564_v61 }
0x12a2   :  { %v939_v38 = vpop.permute.xlu0 %938 }
0x12a3   :  { %1801 = vst.msk [vmem:[%s2661_s10 + $0x8] sm:$0x3] %vm380_vm8, %v939_v38 }
0x12a4   :  { %1805 = vst.msk [vmem:[%s2661_s10 + $0x8] sm:$0x3] %vm265_vm9, %v2430_v42 }
0x12aa   :  { %v1489_v35 = vpop.permute.xlu0 %1488 }
0x12ab   :  { %1828 = vst.msk [vmem:[%s2661_s10 + $0x2] sm:$0x3] %vm380_vm8, %v1489_v35 }
0x131d   :  { %v1730_v46 = vpop.f32.mrf.mxu2 }
0x131e   :  { %v1731_v47 = vadd.f32 %v1872_v45, %v1730_v46 }
0x1320   :  { %2001 = vtanh.f32 %v1731_v47 }
0x1325   :  { %v1732_v43 = vpop.f32.mrf.mxu2 }
0x1326   :  { %v2002_v52 = vpop.eup %2001 }
0x1327   :  { %1735 = vst.msk [vmem:[%s2665_s11] sm:$0x3] %vm265_vm9, %v2002_v52 }

// kernel: _lambda_.3
= control target key start
LH: loop header
LB: loop body
LE: loop exit
PB: predicated region body
PF: predicated region fallthrough
CT: control target
= control target key end

     0   :  { %s3843_s0 = inlined_call_operand.vmem [shape: bf16[8,2,16], index: 0, kind: input, shape index: {}]   ;;  %s3844_s1 = inlined_call_operand.vmem [shape: f32[2,32], index: 1, kind: input, shape index: {}]   ;;  %s3845_s2 = inlined_call_operand.vmem [shape: f32[8,2,64], index: 2, kind: input, shape index: {}]   ;;  %s3846_s3 = inlined_call_operand.vmem [shape: f32[8,2], index: 3, kind: input, shape index: {}]   ;;  %s3847_s4 = inlined_call_operand.vmem [shape: bf16[32,128], index: 4, kind: input, shape index: {}]   ;;  %s3848_s5 = inlined_call_operand.vmem [shape: bf16[64,32], index: 5, kind: input, shape index: {}]   ;;  %s3849_s6 = inlined_call_operand.vmem [shape: f32[1,32], index: 6, kind: input, shape index: {}]   ;;  %s3850_s7 = inlined_call_operand.vmem [shape: f32[1,32], index: 7, kind: input, shape index: {}]   ;;  %s3851_s8 = inlined_call_operand.vmem [shape: bf16[16,96], index: 8, kind: input, shape index: {}]   ;;  %s3852_s9 = inlined_call_operand.vmem [shape: bf16[64,96], index: 9, kind: input, shape index: {}]   ;;  %s3853_s10 = inlined_call_operand.vmem [shape: f32[1,96], index: 10, kind: input, shape index: {}]   ;;  %s3854_s11 = inlined_call_operand.vmem [shape: f32[1,96], index: 11, kind: input, shape index: {}]   ;;  %s3855_s12 = inlined_call_operand.vmem [shape: bf16[112,32], index: 12, kind: input, shape index: {}]   ;;  %s3856_s13 = inlined_call_operand.vmem [shape: f32[1,32], index: 13, kind: input, shape index: {}]   ;;  %s3857_s14 = inlined_call_operand.hbm [shape: f32[8,2,32], index: 14, kind: output, shape index: {0}]   ;;  %s3858_s15 = inlined_call_operand.vmem [shape: f32[8,8,2], index: 15, kind: output, shape index: {1}]  }
   0x1   :  { %v2514_v0 = vld [vmem:[%s3848_s5 + $0x18] sm:$0xff]  ;;  %v2515_v1 = vld [vmem:[%s3851_s8] sm:$0xff]  ;;  %v2513_v4 = vld [vmem:[%s3848_s5 + $0x10] sm:$0xff] }
   0x2   :  { %v2843_v2 = vld [vmem:[%s3845_s2] sm:$0x3]  ;;  %v2848_v3 = vld [vmem:[%s3845_s2 + $0x2] sm:$0x3]  ;;  %147 = vmatpush.bf16.msra.mxu0 %v2514_v0  ;;  %225 = vmatpush.bf16.msra.mxu2 %v2515_v1  ;;  %v2856_v5 = vld [vmem:[%s3845_s2 + $0x4] sm:$0x3] }
   0x3   :  { %v2861_v6 = vld [vmem:[%s3845_s2 + $0x6] sm:$0x3]  ;;  %91 = vst [vmem:[#allocation1] ss:$4 sm:$0xff] %v2843_v2  ;;  %v2867_v7 = vld [vmem:[%s3845_s2 + $0x8] sm:$0x3] }
   0x4   :  { %93 = vst [vmem:[#allocation1 + $0x1] ss:$4 sm:$0xff] %v2848_v3  ;;  %v2873_v8 = vld [vmem:[%s3845_s2 + $0xa] sm:$0x3]  ;;  %v2879_v9 = vld [vmem:[%s3845_s2 + $0xc] sm:$0x3] }
   0x5   :  { %95 = vst [vmem:[#allocation1 + $0x2] ss:$4 sm:$0xff] %v2856_v5  ;;  %v2885_v10 = vld [vmem:[%s3845_s2 + $0xe] sm:$0x3]  ;;  %v178_v13 = vld [vmem:[%s3843_s0 + $0x4] sm:$0x1] }
   0x6   :  { %148 = vmatpush.bf16.msra.mxu0 %v2513_v4  ;;  %97 = vst [vmem:[#allocation1 + $0x3] ss:$4 sm:$0xff] %v2861_v6  ;;  %v2892_v11 = vld [vmem:[%s3847_s4 + $0x8] sm:$0xff]  ;;  %v2511_v14 = vld [vmem:[%s3848_s5] sm:$0xff] }
   0x7   :  { %99 = vst [vmem:[#allocation1 + $0x20] ss:$4 sm:$0xff] %v2867_v7  ;;  %v2512_v12 = vld [vmem:[%s3848_s5 + $0x8] sm:$0xff]  ;;  %v2907_v15 = vld [vmem:[%s3847_s4] sm:$0xff]  ;;  %271 = vmatpush.bf16.msrb.mxu2 %v2892_v11  ;;  %595 = vmatpush.bf16.msra.mxu1 %v2892_v11 }
   0x8   :  { %101 = vst [vmem:[#allocation1 + $0x21] ss:$4 sm:$0xff] %v2873_v8 }
   0x9   :  { %103 = vst [vmem:[#allocation1 + $0x22] ss:$4 sm:$0xff] %v2879_v9 }
   0xa   :  { %105 = vst [vmem:[#allocation1 + $0x23] ss:$4 sm:$0xff] %v2885_v10  ;;  %149 = vmatpush.bf16.msra.mxu0 %v2512_v12 }
   0xb   :  { %21 = vsyncpa [#allocation4], 0  ;;  %272 = vmatpush.bf16.msrb.mxu2 %v2907_v15  ;;  %v174_v17 = vld [vmem:[%s3843_s0] sm:$0x1]  ;;  %596 = vmatpush.bf16.msra.mxu1 %v2907_v15  ;;  %v175_v18 = vld [vmem:[%s3843_s0 + $0x1] sm:$0x1] }
   0xc   :  { %v176_v20 = vld [vmem:[%s3843_s0 + $0x2] sm:$0x1]  ;;  %vm3859_vm0 = vcmask 523264   ;;  %v177_v21 = vld [vmem:[%s3843_s0 + $0x3] sm:$0x1]  ;;  %vm215_vm1 = vcmask 130048  }
   0xd   :  { %v106_v16 = vld.sshfl [vmem:[#allocation1] sm:$0xff pattern:$0x73625140]  ;;  %vm261_vm2 = vcmask 261120   ;;  %vm244_vm3 = vcmask 254976   ;;  %vm354_vm4 = vcmask 1041409  }
   0xe   :  { %198 = vst [vmem:[#allocation1 + $0x4] ss:$9 sm:$0xff] %v178_v13  ;;  %150 = vmatpush.bf16.msra.mxu0 %v2511_v14  ;;  %v179_v23 = vld [vmem:[%s3843_s0 + $0x5] sm:$0x1]  ;;  %v180_v24 = vld [vmem:[%s3843_s0 + $0x6] sm:$0x1] }
   0xf   :  { %1149 = vmatpush.bf16.msrb.mxu1 %v2892_v11  ;;  %v181_v25 = vld [vmem:[%s3843_s0 + $0x7] sm:$0x1]  ;;  %v2945_v27 = vld [vmem:[%s3844_s1] sm:$0x3]  ;;  %vm356_vm5 = vcmask 1042434   ;;  %vm358_vm6 = vcmask 1043459  }
  0x10   :  { %v248_v28 = vpack.c.bf16 %v2945_v27, %v2945_v27  ;;  %v2533_v31 = vld [vmem:[%s3849_s6] ss:$0 sm:$0xff]  ;;  %vm360_vm7 = vcmask 1044484   ;;  %vm362_vm8 = vcmask 1045509   ;;  %vm364_vm9 = vcmask 1046534   ;;  %s2748_s22 = smov 32  }
  0x11   :  { %v107_v19 = vld.sshfl [vmem:[#allocation1 + $0x20] sm:$0xff pattern:$0x73625140]  ;;  %vm366_vm10 = vcmask 1047559   ;;  %vm246_vm12 = vcmask 15360   ;;  %vm453_vm13 = vcmask 517120  }
  0x12   :  { %872 = vmatpush.bf16.msrb.mxu0 %v2892_v11  ;;  %186 = vst [vmem:[#allocation1] ss:$9 sm:$0xff] %v174_v17  ;;  %v110_v22 = vpack.c.bf16 %v107_v19, %v106_v16  ;;  %v2958_v32 = vld [vmem:[%s3853_s10] ss:$0 sm:$0xff]  ;;  %s2750_s2 = smov 64   ;;  %s2380_s16 = sshll.u32 %s3857_s14, 4  ;;  %s2381_s16 = int_to_ptr.hbm [resolvable:$true] %s2380_s16 }
  0x13   :  { %189 = vst [vmem:[#allocation1 + $0x1] ss:$9 sm:$0xff] %v175_v18  ;;  %1150 = vmatpush.bf16.msrb.mxu1 %v2907_v15  ;;  %v2996_v49 = vld [vmem:[%s3850_s7] ss:$0 sm:$0xff] }
  0x14   :  { %192 = vst [vmem:[#allocation1 + $0x2] ss:$9 sm:$0xff] %v176_v20  ;;  %2412 = vmatmul.msk.bf16.vlgmr.msra.gmra.mxu0 %vm3859_vm0, %v110_v22 }
  0x15   :  { %195 = vst [vmem:[#allocation1 + $0x3] ss:$9 sm:$0xff] %v177_v21 }
  0x16   :  { %873 = vmatpush.bf16.msrb.mxu0 %v2907_v15  ;;  %201 = vst [vmem:[#allocation1 + $0x5] ss:$9 sm:$0xff] %v179_v23 }
  0x17   :  { %204 = vst [vmem:[#allocation1 + $0x6] ss:$9 sm:$0xff] %v180_v24 }
  0x18   :  { %207 = vst [vmem:[#allocation1 + $0x7] ss:$9 sm:$0xff] %v181_v25 }
  0x1a   :  { %1426 = vmatpush.bf16.msra.mxu0 %v2892_v11 }
  0x1e   :  { %1427 = vmatpush.bf16.msra.mxu0 %v2907_v15 }
  0x1f   :  { %v208_v26 = vld [vmem:[#allocation1] sm:$0xff] }
  0x20   :  { %2417 = vmatmul.msk.bf16.vlgmr.msra.gmra.mxu2 %vm215_vm1, %v208_v26  ;;  %v344_v26 = vlaneseq }
  0x30   :  { %2426 = vmatmul.msk.bf16.vlgmr.msrb.gmra.mxu2 %vm261_vm2, %v248_v28 }
  0x91   :  { %v152_v29 = vpop.f32.mrf.mxu0 }
  0x92   :  { %v2960_v35 = vadd.f32 %v2533_v31, %v152_v29 }
  0x94   :  { %v2968_v38 = vrot.slane %v2960_v35, 4  ;;  %v2976_v41 = vrot.slane %v2960_v35, 2  ;;  %v2985_v45 = vrot.slane %v2960_v35, 6 }
  0x99   :  { %v154_v34 = vpop.f32.mrf.mxu0 }
  0x9a   :  { %v2965_v37 = vadd.f32 %v2533_v31, %v154_v34  ;;  %v3024_v31 = vand.u32 127, %v344_v26 }
  0x9c   :  { %v2971_v39 = vrot.slane %v2965_v37, 2  ;;  %v2999_v51 = vrot.slane %v2965_v37, 4  ;;  %v3002_v53 = vrot.slane %v2965_v37, 6 }
  0xa3   :  { %v2950_v30 = vpop.f32.mrf.mxu2 }
  0xab   :  { %v229_v33 = vpop.f32.mrf.mxu2 }
  0xac   :  { %v2963_v36 = vadd.f32 %v2958_v32, %v229_v33 }
  0xb3   :  { %v2973_v40 = vpop.f32.mrf.mxu2 }
  0xb4   :  { %v288_v42 = vadd.f32 %v2973_v40, %v2965_v37  ;;  %v284_v43 = vadd.f32 %v2973_v40, %v2960_v35  ;;  %v286_v44 = vadd.f32 %v2973_v40, %v2968_v38  ;;  %v289_v46 = vadd.f32 %v2973_v40, %v2971_v39 }
  0xb5   :  { %v285_v47 = vadd.f32 %v2973_v40, %v2976_v41  ;;  %v287_v48 = vadd.f32 %v2973_v40, %v2985_v45  ;;  %v290_v60 = vadd.f32 %v2973_v40, %v2999_v51  ;;  %v291_v63 = vadd.f32 %v2973_v40, %v3002_v53 }
  0xb6   :  { %2537 = vtanh.f32 %v288_v42 }
  0xb7   :  { %2539 = vtanh.f32 %v284_v43 }
  0xb8   :  { %2541 = vtanh.f32 %v286_v44 }
  0xb9   :  { %2543 = vtanh.f32 %v289_v46 }
  0xba   :  { %2545 = vtanh.f32 %v285_v47 }
  0xbb   :  { %v276_v50 = vpop.f32.mrf.mxu2  ;;  %2547 = vtanh.f32 %v287_v48 }
  0xbc   :  { %v2538_v52 = vpop.eup %2537  ;;  %2549 = vtanh.f32 %v290_v60 }
  0xbd   :  { %v2540_v54 = vpop.eup %2539  ;;  %v307_v55 = vmul.f32 %v2538_v52, %v2996_v49  ;;  %2551 = vtanh.f32 %v291_v63 }
  0xbe   :  { %v2542_v56 = vpop.eup %2541  ;;  %v303_v57 = vmul.f32 %v2540_v54, %v2996_v49 }
  0xbf   :  { %v323_v58 = vsel %vm244_vm3, %v307_v55, 0.0  ;;  %v305_v59 = vmul.f32 %v2542_v56, %v2996_v49  ;;  %v2544_v61 = vpop.eup %2543  ;;  %v3037_v55 = vld [vmem:[%s3846_s3] sm:$0xff] }
  0xc0   :  { %324 = vadd.xlane.f32.xlu2 %v323_v58  ;;  %v311_v62 = vsel %vm244_vm3, %v303_v57, 0.0  ;;  %v2546_v0 = vpop.eup %2545  ;;  %v308_v12 = vmul.f32 %v2544_v61, %v2996_v49  ;;  %vm335_vm11 = vcmp.gt.f32.partialorder %v3037_v55, 0.5 }
  0xc1   :  { %312 = vadd.xlane.f32.xlu0 %v311_v62  ;;  %v317_v1 = vsel %vm244_vm3, %v305_v59, 0.0  ;;  %v2548_v4 = vpop.eup %2547  ;;  %v304_v13 = vmul.f32 %v2546_v0, %v2996_v49 }
  0xc2   :  { %318 = vadd.xlane.f32.xlu1 %v317_v1  ;;  %v306_v14 = vmul.f32 %v2548_v4, %v2996_v49  ;;  %v326_v16 = vsel %vm244_vm3, %v308_v12, 0.0  ;;  %v2550_v18 = vpop.eup %2549 }
  0xc3   :  { %v314_v17 = vsel %vm244_vm3, %v304_v13, 0.0  ;;  %v2552_v20 = vpop.eup %2551  ;;  %v309_v21 = vmul.f32 %v2550_v18, %v2996_v49 }
  0xc4   :  { %v320_v19 = vsel %vm244_vm3, %v306_v14, 0.0  ;;  %v310_v22 = vmul.f32 %v2552_v20, %v2996_v49 }
  0xc5   :  { %v329_v23 = vsel %vm244_vm3, %v309_v21, 0.0 }
  0xc6   :  { %v332_v24 = vsel %vm244_vm3, %v310_v22, 0.0 }
  0xc8   :  { %327 = vadd.xlane.f32.xlu2 %v326_v16 }
  0xc9   :  { %315 = vadd.xlane.f32.xlu0 %v314_v17 }
  0xca   :  { %321 = vadd.xlane.f32.xlu1 %v320_v19  ;;  %v391_v19 = vshrl.u32 %v344_v26, 7 }
  0xcc   :  { %2531 = vset.pattern.permute.xlu1 %v391_v19  ;;  %2530 = vset.pattern.permute.xlu0 %v391_v19 }
  0xcd   :  { %2529 = vset.pattern.permute.xlu2 %v391_v19 }
  0xd1   :  { %330 = vadd.xlane.f32.xlu0 %v329_v23 }
  0xd2   :  { %333 = vadd.xlane.f32.xlu1 %v332_v24 }
 0x133   :  { %v325_v29 = vpop.xlane.xlu2 %324 }
 0x134   :  { %v313_v25 = vpop.xlane.xlu0 %312  ;;  %v350_v50 = vperm.slane %v325_v29, %v3024_v31 }
 0x135   :  { %v319_v28 = vpop.xlane.xlu1 %318  ;;  %v346_v34 = vperm.slane %v313_v25, %v3024_v31 }
 0x136   :  { %v348_v44 = vperm.slane %v319_v28, %v3024_v31 }
 0x13b   :  { %v328_v52 = vpop.xlane.xlu2 %327 }
 0x13c   :  { %v316_v33 = vpop.xlane.xlu0 %315  ;;  %v351_v57 = vperm.slane %v328_v52, %v3024_v31 }
 0x13d   :  { %v322_v42 = vpop.xlane.xlu1 %321  ;;  %v347_v43 = vperm.slane %v316_v33, %v3024_v31 }
 0x13e   :  { %v349_v46 = vperm.slane %v322_v42, %v3024_v31 }
 0x13f   :  { %v355_v47 = vsel %vm354_vm4, %v347_v43, %v346_v34 }
 0x140   :  { %v357_v48 = vsel %vm356_vm5, %v348_v44, %v355_v47  ;;  %v2535_v47 = vld [vmem:[%s3854_s11] ss:$0 sm:$0xff] }
 0x141   :  { %v359_v54 = vsel %vm358_vm6, %v349_v46, %v357_v48 }
 0x142   :  { %v361_v56 = vsel %vm360_vm7, %v350_v50, %v359_v54 }
 0x143   :  { %v363_v62 = vsel %vm362_vm8, %v351_v57, %v361_v56 }
 0x144   :  { %v331_v58 = vpop.xlane.xlu0 %330 }
 0x145   :  { %v334_v59 = vpop.xlane.xlu1 %333  ;;  %v352_v60 = vperm.slane %v331_v58, %v3024_v31  ;;  %v3062_v58 = vld [vmem:[%s3852_s9 + $0x18] sm:$0xff] }
 0x146   :  { %v353_v61 = vperm.slane %v334_v59, %v3024_v31  ;;  %503 = vmatpush.bf16.msra.mxu3 %v3062_v58  ;;  %v3068_v59 = vld [vmem:[%s3852_s9 + $0x10] sm:$0xff]  ;;  %784 = vmatpush.bf16.msra.mxu2 %v3062_v58 }
 0x147   :  { %v365_v63 = vsel %vm364_vm9, %v352_v60, %v363_v62  ;;  %v3076_v60 = vld [vmem:[%s3852_s9 + $0x8] sm:$0xff]  ;;  %v3082_v62 = vld [vmem:[%s3852_s9] sm:$0xff]  ;;  %s2749_s9 = smov 96  }
 0x148   :  { %v367_v0 = vsel %vm366_vm10, %v353_v61, %v365_v63 }
 0x149   :  { %v369_v1 = vsel %vm335_vm11, %v367_v0, -1e+10 }
 0x14a   :  { %v370_v4 = vsel %vm246_vm12, %v369_v1, -inf  ;;  %504 = vmatpush.bf16.msra.mxu3 %v3068_v59  ;;  %785 = vmatpush.bf16.msra.mxu2 %v3068_v59 }
 0x14b   :  { %v371_v12 = vrot.slane %v370_v4, 4 }
 0x14d   :  { %v372_v13 = vmax.f32 %v370_v4, %v371_v12 }
 0x14e   :  { %505 = vmatpush.bf16.msra.mxu3 %v3076_v60  ;;  %786 = vmatpush.bf16.msra.mxu2 %v3076_v60 }
 0x14f   :  { %v373_v14 = vrot.slane %v372_v13, 2 }
 0x151   :  { %v374_v16 = vmax.f32 %v372_v13, %v373_v14 }
 0x152   :  { %506 = vmatpush.bf16.msra.mxu3 %v3082_v62  ;;  %787 = vmatpush.bf16.msra.mxu2 %v3082_v62 }
 0x153   :  { %v375_v17 = vrot.slane %v374_v16, 1 }
 0x155   :  { %v376_v18 = vmax.f32 %v374_v16, %v375_v17 }
 0x156   :  { %1061 = vmatpush.bf16.msrb.mxu3 %v3062_v58  ;;  %1338 = vmatpush.bf16.msrb.mxu2 %v3062_v58 }
 0x157   :  { %v377_v20 = vsub.f32 %v369_v1, %v376_v18 }
 0x159   :  { %v378_v21 = vmul.f32 1.442695, %v377_v20 }
 0x15a   :  { %1062 = vmatpush.bf16.msrb.mxu3 %v3068_v59  ;;  %1339 = vmatpush.bf16.msrb.mxu2 %v3068_v59 }
 0x15b   :  { %2553 = vpow2.f32 %v378_v21 }
 0x15e   :  { %1063 = vmatpush.bf16.msrb.mxu3 %v3076_v60  ;;  %1340 = vmatpush.bf16.msrb.mxu2 %v3076_v60 }
 0x161   :  { %v2554_v22 = vpop.eup %2553 }
 0x162   :  { %v380_v23 = vsel %vm246_vm12, %v2554_v22, 0.0  ;;  %1064 = vmatpush.bf16.msrb.mxu3 %v3082_v62  ;;  %1341 = vmatpush.bf16.msrb.mxu2 %v3082_v62 }
 0x163   :  { %v381_v24 = vrot.slane %v380_v23, 4 }
 0x165   :  { %v382_v25 = vadd.f32 %v381_v24, %v380_v23 }
 0x167   :  { %v383_v28 = vrot.slane %v382_v25, 2 }
 0x169   :  { %v384_v29 = vadd.f32 %v383_v28, %v382_v25 }
 0x16b   :  { %v385_v33 = vrot.slane %v384_v29, 1 }
 0x16d   :  { %v386_v34 = vadd.f32 %v385_v33, %v384_v29 }
 0x16f   :  { %2555 = vrcp.f32 %v386_v34 }
 0x175   :  { %v2556_v42 = vpop.eup %2555 }
 0x176   :  { %v388_v43 = vmul.f32 %v2556_v42, %v2554_v22 }
 0x178   :  { %2427 = vst.msk [vmem:[%s3858_s15 + $0x8] sm:$0xff] %vm246_vm12, %v388_v43  ;;  %v403_v26 = vperm.slane %v388_v43, 2  ;;  %v396_v44 = vperm.slane %v388_v43, 1  ;;  %v389_v46 = vperm.slane %v388_v43, 0  ;;  %v424_v48 = vperm.slane %v388_v43, 5 }
 0x179   :  { %v410_v50 = vperm.slane %v388_v43, 3  ;;  %v438_v52 = vperm.slane %v388_v43, 7  ;;  %v417_v54 = vperm.slane %v388_v43, 4  ;;  %v431_v56 = vperm.slane %v388_v43, 6 }
 0x17a   :  { %408 = vperm.xlu1 %2531, %v403_v26   ;;  %401 = vperm.xlu0 %2530, %v396_v44  }
 0x17b   :  { %394 = vperm.xlu2 %2529, %v389_v46  }
 0x182   :  { %429 = vperm.xlu1 %2531, %v424_v48   ;;  %280 = vrot.lane.b32.xlu0 %v2535_v47, %s2748_s22 }
 0x183   :  { %415 = vperm.xlu2 %2529, %v410_v50  }
 0x18a   :  { %443 = vperm.xlu1 %2531, %v438_v52  }
 0x18b   :  { %422 = vperm.xlu2 %2529, %v417_v54  }
 0x193   :  { %436 = vperm.xlu2 %2529, %v431_v56   ;;  %v3130_v56 = vadd.f32 %v2958_v32, %v2950_v30 }
 0x1d5   :  { %v395_v57 = vpop.permute.xlu2 %394 }
 0x1d6   :  { %v445_v63 = vmul.f32 %v395_v57, %v2843_v2 }
 0x1d8   :  { %v454_v14 = vsel %vm453_vm13, %v445_v63, 0.0 }
 0x1dd   :  { %v416_v61 = vpop.permute.xlu2 %415 }
 0x1de   :  { %v448_v16 = vmul.f32 %v416_v61, %v2861_v6 }
 0x1e0   :  { %v459_v22 = vsel %vm453_vm13, %v448_v16, 0.0 }
 0x1e5   :  { %v423_v0 = vpop.permute.xlu2 %422 }
 0x1e6   :  { %v449_v19 = vmul.f32 %v423_v0, %v2867_v7 }
 0x1e8   :  { %v461_v28 = vsel %vm453_vm13, %v449_v19, 0.0 }
 0x1ec   :  { %v409_v1 = vpop.permute.xlu1 %408  ;;  %v402_v4 = vpop.permute.xlu0 %401 }
 0x1ed   :  { %v447_v12 = vmul.f32 %v409_v1, %v2856_v5  ;;  %v446_v13 = vmul.f32 %v402_v4, %v2848_v3  ;;  %v437_v34 = vpop.permute.xlu2 %436 }
 0x1ee   :  { %v451_v26 = vmul.f32 %v437_v34, %v2879_v9 }
 0x1ef   :  { %v455_v17 = vsel %vm453_vm13, %v446_v13, 0.0  ;;  %v457_v20 = vsel %vm453_vm13, %v447_v12, 0.0 }
 0x1f0   :  { %v456_v18 = vadd.f32 %v455_v17, %v454_v14  ;;  %v465_v47 = vsel %vm453_vm13, %v451_v26, 0.0 }
 0x1f2   :  { %v458_v21 = vadd.f32 %v457_v20, %v456_v18 }
 0x1f4   :  { %v430_v23 = vpop.permute.xlu1 %429  ;;  %v460_v24 = vadd.f32 %v459_v22, %v458_v21  ;;  %v3104_v25 = vpop.permute.xlu0 %280 }
 0x1f5   :  { %v450_v29 = vmul.f32 %v430_v23, %v2873_v8  ;;  %v283_v33 = vadd.f32 %v3104_v25, %v2973_v40 }
 0x1f6   :  { %v462_v42 = vadd.f32 %v461_v28, %v460_v24 }
 0x1f7   :  { %v463_v43 = vsel %vm453_vm13, %v450_v29, 0.0  ;;  %539 = vrot.lane.b32.xlu1 %v283_v33, %s2748_s22  ;;  %516 = vrot.lane.b32.xlu2 %v283_v33, %s2749_s9 }
 0x1f8   :  { %v464_v44 = vadd.f32 %v463_v43, %v462_v42 }
 0x1fa   :  { %v466_v50 = vadd.f32 %v465_v47, %v464_v44 }
 0x1fc   :  { %v444_v46 = vpop.permute.xlu1 %443 }
 0x1fd   :  { %v452_v48 = vmul.f32 %v444_v46, %v2885_v10 }
 0x1ff   :  { %v467_v40 = vsel %vm453_vm13, %v452_v48, 0.0  ;;  %556 = vrot.lane.b32.xlu1 %v2945_v27, %s2748_s22 }
 0x200   :  { %v3119_v52 = vadd.f32 %v467_v40, %v466_v50 }
 0x202   :  { %v471_v54 = vpack.c.bf16 %v3119_v52, %v3119_v52 }
 0x204   :  { %2444 = vmatmul.msk.bf16.vlgmr.msra.gmra.mxu3 %vm3859_vm0, %v471_v54 }
 0x205   :  { %1615 = vmatpush.bf16.msra.mxu3 %v3062_v58 }
 0x209   :  { %1616 = vmatpush.bf16.msra.mxu3 %v3068_v59 }
 0x20d   :  { %1617 = vmatpush.bf16.msra.mxu3 %v3076_v60 }
 0x211   :  { %1618 = vmatpush.bf16.msra.mxu3 %v3082_v62 }
 0x251   :  { %v517_v61 = vpop.permute.xlu2 %516 }
 0x269   :  { %v540_v21 = vpop.permute.xlu1 %539 }
 0x271   :  { %v557_v33 = vpop.permute.xlu1 %556 }
 0x287   :  { %v508_v27 = vpop.f32.mrf.mxu3 }
 0x288   :  { %v512_v57 = vadd.f32 %v508_v27, %v3130_v56 }
 0x28a   :  { %v519_v63 = vadd.f32 %v517_v61, %v512_v57 }
 0x28c   :  { %v2445_v0 = vmul.f32 -1.442695, %v519_v63 }
 0x28e   :  { %2557 = vpow2.f32 %v2445_v0 }
 0x28f   :  { %v510_v1 = vpop.f32.mrf.mxu3 }
 0x294   :  { %v2558_v4 = vpop.eup %2557 }
 0x295   :  { %v523_v12 = vadd.f32 1.0, %v2558_v4 }
 0x297   :  { %2559 = vrcp.f32 %v523_v12  ;;  %v535_v17 = vand.u32 2147483648, %v523_v12  ;;  %v533_v19 = vand.u32 2147483647, %v523_v12  ;;  %vm529_vm15 = vweird.f32 %v523_v12 }
 0x299   :  { %v536_v32 = vor.u32 1.1754944e-38, %v535_v17  ;;  %vm534_vm0 = vcmp.eq.f32.partialorder %v533_v19, 8.507059e+37 }
 0x29d   :  { %v2560_v13 = vpop.eup %2559 }
 0x29e   :  { %v525_v14 = vmul.f32 %v2560_v13, %v523_v12  ;;  %vm530_vm14 = vweird.f32 %v2560_v13 }
 0x29f   :  { %vm531_vm1 = vmor %vm529_vm15, %vm530_vm14 }
 0x2a0   :  { %v526_v16 = vsub.f32 1.0, %v525_v14 }
 0x2a2   :  { %v527_v18 = vmul.f32 %v2560_v13, %v526_v16 }
 0x2a4   :  { %v528_v30 = vadd.f32 %v2560_v13, %v527_v18 }
 0x2a6   :  { %v532_v20 = vsel %vm531_vm1, %v2560_v13, %v528_v30 }
 0x2a7   :  { %v537_v22 = vsel %vm534_vm0, %v536_v32, %v532_v20  ;;  %vm3860_vm0 = vcmask 523264  }
 0x2a8   :  { %v542_v23 = vmul.f32 %v540_v21, %v537_v22  ;;  %v549_v34 = vsub.f32 1.0, %v537_v22  ;;  %v559_v43 = vmul.f32 %v557_v33, %v537_v22 }
 0x2aa   :  { %544 = vrot.lane.b32.xlu0 %v542_v23, %s2750_s2 }
 0x31c   :  { %v545_v24 = vpop.permute.xlu0 %544 }
 0x31d   :  { %v547_v28 = vadd.f32 %v545_v24, %v512_v57 }
 0x31f   :  { %2561 = vtanh.f32 %v547_v28 }
 0x325   :  { %v2562_v29 = vpop.eup %2561 }
 0x326   :  { %551 = vrot.lane.b32.xlu2 %v2562_v29, %s2749_s9 }
 0x380   :  { %v552_v42 = vpop.permute.xlu2 %551 }
 0x381   :  { %v554_v26 = vmul.f32 %v552_v42, %v549_v34 }
 0x383   :  { %v3135_v44 = vadd.f32 %v559_v43, %v554_v26 }
 0x385   :  { %562 = vst [vmem:[#allocation1] ss:$4 sm:$0xff] %v3135_v44  ;;  %v582_v46 = vpack.c.bf16 %v3135_v44, %v3135_v44 }
 0x387   :  { %584 = vrot.lane.b32.xlu0 %v582_v46, %s2749_s9 }
 0x3f9   :  { %v585_v47 = vpop.permute.xlu0 %584 }
 0x3fa   :  { %2446 = vmatmul.msk.bf16.vlgmr.msra.gmra.mxu1 %vm261_vm2, %v585_v47 }
 0x3fb   :  { %1703 = vmatpush.bf16.msra.mxu1 %v2892_v11 }
 0x3ff   :  { %1704 = vmatpush.bf16.msra.mxu1 %v2907_v15 }
 0x477   :  { %v3144_v48 = vpop.f32.mrf.mxu1 }
 0x478   :  { %v605_v50 = vadd.f32 %v3144_v48, %v2968_v38  ;;  %v604_v40 = vadd.f32 %v3144_v48, %v2976_v41  ;;  %v603_v54 = vadd.f32 %v3144_v48, %v2960_v35  ;;  %v609_v27 = vadd.f32 %v3144_v48, %v2999_v51 }
 0x479   :  { %v607_v11 = vadd.f32 %v3144_v48, %v2965_v37  ;;  %v606_v57 = vadd.f32 %v3144_v48, %v2985_v45  ;;  %v610_v16 = vadd.f32 %v3144_v48, %v3002_v53  ;;  %v608_v19 = vadd.f32 %v3144_v48, %v2971_v39 }
 0x47a   :  { %2563 = vtanh.f32 %v605_v50 }
 0x47b   :  { %2565 = vtanh.f32 %v604_v40 }
 0x47c   :  { %2567 = vtanh.f32 %v603_v54 }
 0x47d   :  { %2569 = vtanh.f32 %v609_v27 }
 0x47e   :  { %2571 = vtanh.f32 %v607_v11 }
 0x47f   :  { %v600_v61 = vpop.f32.mrf.mxu1  ;;  %2573 = vtanh.f32 %v606_v57 }
 0x480   :  { %v2564_v63 = vpop.eup %2563  ;;  %2575 = vtanh.f32 %v610_v16 }
 0x481   :  { %v2566_v0 = vpop.eup %2565  ;;  %v621_v1 = vmul.f32 %v2564_v63, %v2996_v49  ;;  %2577 = vtanh.f32 %v608_v19 }
 0x482   :  { %v2568_v4 = vpop.eup %2567  ;;  %v620_v12 = vmul.f32 %v2566_v0, %v2996_v49 }
 0x483   :  { %v633_v13 = vsel %vm244_vm3, %v621_v1, 0.0  ;;  %v619_v14 = vmul.f32 %v2568_v4, %v2996_v49  ;;  %v2570_v17 = vpop.eup %2569 }
 0x484   :  { %634 = vadd.xlane.f32.xlu0 %v633_v13  ;;  %v630_v18 = vsel %vm244_vm3, %v620_v12, 0.0  ;;  %v2572_v30 = vpop.eup %2571  ;;  %v625_v21 = vmul.f32 %v2570_v17, %v2996_v49 }
 0x485   :  { %631 = vadd.xlane.f32.xlu1 %v630_v18  ;;  %v627_v32 = vsel %vm244_vm3, %v619_v14, 0.0  ;;  %v2574_v20 = vpop.eup %2573  ;;  %v623_v22 = vmul.f32 %v2572_v30, %v2996_v49 }
 0x486   :  { %628 = vadd.xlane.f32.xlu2 %v627_v32  ;;  %v622_v23 = vmul.f32 %v2574_v20, %v2996_v49  ;;  %v645_v24 = vsel %vm244_vm3, %v625_v21, 0.0  ;;  %v2576_v29 = vpop.eup %2575 }
 0x487   :  { %v639_v28 = vsel %vm244_vm3, %v623_v22, 0.0  ;;  %v2578_v34 = vpop.eup %2577  ;;  %v626_v42 = vmul.f32 %v2576_v29, %v2996_v49 }
 0x488   :  { %v636_v33 = vsel %vm244_vm3, %v622_v23, 0.0  ;;  %v624_v43 = vmul.f32 %v2578_v34, %v2996_v49 }
 0x489   :  { %v648_v26 = vsel %vm244_vm3, %v626_v42, 0.0 }
 0x48a   :  { %v642_v46 = vsel %vm244_vm3, %v624_v43, 0.0 }
 0x48c   :  { %646 = vadd.xlane.f32.xlu0 %v645_v24 }
 0x48d   :  { %640 = vadd.xlane.f32.xlu1 %v639_v28 }
 0x48e   :  { %637 = vadd.xlane.f32.xlu2 %v636_v33 }
 0x495   :  { %649 = vadd.xlane.f32.xlu1 %v648_v26 }
 0x496   :  { %643 = vadd.xlane.f32.xlu2 %v642_v46 }
 0x4f7   :  { %v635_v40 = vpop.xlane.xlu0 %634 }
 0x4f8   :  { %v632_v47 = vpop.xlane.xlu1 %631  ;;  %v661_v61 = vperm.slane %v635_v40, %v3024_v31 }
 0x4f9   :  { %v629_v50 = vpop.xlane.xlu2 %628  ;;  %v660_v54 = vperm.slane %v632_v47, %v3024_v31 }
 0x4fa   :  { %v659_v27 = vperm.slane %v629_v50, %v3024_v31 }
 0x4fc   :  { %v667_v63 = vsel %vm354_vm4, %v660_v54, %v659_v27 }
 0x4fd   :  { %v668_v4 = vsel %vm356_vm5, %v661_v61, %v667_v63 }
 0x4ff   :  { %v647_v12 = vpop.xlane.xlu0 %646 }
 0x500   :  { %v641_v11 = vpop.xlane.xlu1 %640  ;;  %v665_v18 = vperm.slane %v647_v12, %v3024_v31 }
 0x501   :  { %v638_v57 = vpop.xlane.xlu2 %637  ;;  %v663_v1 = vperm.slane %v641_v11, %v3024_v31 }
 0x502   :  { %v662_v0 = vperm.slane %v638_v57, %v3024_v31 }
 0x504   :  { %v669_v13 = vsel %vm358_vm6, %v662_v0, %v668_v4 }
 0x505   :  { %v670_v19 = vsel %vm360_vm7, %v663_v1, %v669_v13 }
 0x508   :  { %v650_v14 = vpop.xlane.xlu1 %649 }
 0x509   :  { %v644_v16 = vpop.xlane.xlu2 %643  ;;  %v666_v30 = vperm.slane %v650_v14, %v3024_v31 }
 0x50a   :  { %v664_v17 = vperm.slane %v644_v16, %v3024_v31 }
 0x50c   :  { %v671_v32 = vsel %vm362_vm8, %v664_v17, %v670_v19  ;;  %v602_v17 = vadd.f32 %v3144_v48, %v3104_v25 }
 0x50d   :  { %v672_v20 = vsel %vm364_vm9, %v665_v18, %v671_v32 }
 0x50e   :  { %v673_v21 = vsel %vm366_vm10, %v666_v30, %v672_v20 }
 0x50f   :  { %v675_v22 = vsel %vm335_vm11, %v673_v21, -1e+10 }
 0x510   :  { %v676_v23 = vsel %vm246_vm12, %v675_v22, -inf }
 0x511   :  { %v677_v24 = vrot.slane %v676_v23, 4 }
 0x513   :  { %v678_v28 = vmax.f32 %v676_v23, %v677_v24 }
 0x515   :  { %v679_v29 = vrot.slane %v678_v28, 2 }
 0x517   :  { %v680_v33 = vmax.f32 %v678_v28, %v679_v29 }
 0x519   :  { %v681_v34 = vrot.slane %v680_v33, 1 }
 0x51b   :  { %v682_v42 = vmax.f32 %v680_v33, %v681_v34 }
 0x51d   :  { %v683_v43 = vsub.f32 %v675_v22, %v682_v42 }
 0x51f   :  { %v684_v26 = vmul.f32 1.442695, %v683_v43 }
 0x521   :  { %2579 = vpow2.f32 %v684_v26 }
 0x527   :  { %v2580_v46 = vpop.eup %2579 }
 0x528   :  { %v686_v47 = vsel %vm246_vm12, %v2580_v46, 0.0 }
 0x529   :  { %v687_v50 = vrot.slane %v686_v47, 4 }
 0x52b   :  { %v688_v40 = vadd.f32 %v687_v50, %v686_v47 }
 0x52d   :  { %v689_v54 = vrot.slane %v688_v40, 2 }
 0x52f   :  { %v690_v27 = vadd.f32 %v689_v54, %v688_v40 }
 0x531   :  { %v691_v11 = vrot.slane %v690_v27, 1 }
 0x533   :  { %v692_v57 = vadd.f32 %v691_v11, %v690_v27 }
 0x535   :  { %2581 = vrcp.f32 %v692_v57 }
 0x53b   :  { %v2582_v61 = vpop.eup %2581 }
 0x53c   :  { %v694_v63 = vmul.f32 %v2582_v61, %v2580_v46 }
 0x53e   :  { %2447 = vst.msk [vmem:[%s3858_s15 + $0x10] sm:$0xff] %vm246_vm12, %v694_v63  ;;  %v709_v0 = vperm.slane %v694_v63, 2  ;;  %v702_v1 = vperm.slane %v694_v63, 1  ;;  %v695_v4 = vperm.slane %v694_v63, 0  ;;  %v730_v12 = vperm.slane %v694_v63, 5 }
 0x53f   :  { %v716_v13 = vperm.slane %v694_v63, 3  ;;  %v723_v14 = vperm.slane %v694_v63, 4  ;;  %v737_v16 = vperm.slane %v694_v63, 6  ;;  %v744_v18 = vperm.slane %v694_v63, 7 }
 0x540   :  { %714 = vperm.xlu1 %2531, %v709_v0   ;;  %707 = vperm.xlu0 %2530, %v702_v1  }
 0x541   :  { %700 = vperm.xlu2 %2529, %v695_v4  }
 0x548   :  { %735 = vperm.xlu1 %2531, %v730_v12   ;;  %721 = vperm.xlu0 %2530, %v716_v13  }
 0x549   :  { %728 = vperm.xlu2 %2529, %v723_v14  }
 0x550   :  { %742 = vperm.xlu0 %2530, %v737_v16   ;;  %798 = vrot.lane.b32.xlu1 %v602_v17, %s2749_s9  ;;  %v234_v16 = vrot.slane %v3130_v56, 2 }
 0x551   :  { %749 = vperm.xlu2 %2529, %v744_v18  }
 0x558   :  { %821 = vrot.lane.b32.xlu0 %v602_v17, %s2748_s22 }
 0x59b   :  { %v701_v19 = vpop.permute.xlu2 %700 }
 0x59c   :  { %v751_v20 = vmul.f32 %v701_v19, %v2843_v2 }
 0x59e   :  { %v759_v24 = vsel %vm453_vm13, %v751_v20, 0.0 }
 0x5a3   :  { %v729_v23 = vpop.permute.xlu2 %728 }
 0x5a4   :  { %v755_v33 = vmul.f32 %v729_v23, %v2867_v7 }
 0x5a6   :  { %v766_v50 = vsel %vm453_vm13, %v755_v33, 0.0 }
 0x5ab   :  { %v750_v54 = vpop.permute.xlu2 %749 }
 0x5ac   :  { %v758_v57 = vmul.f32 %v750_v54, %v2885_v10  ;;  %v3235_v54 = vld.sshfl [vmem:[#allocation1] sm:$0xff pattern:$0x73625140] }
 0x5ae   :  { %v772_v12 = vsel %vm453_vm13, %v758_v57, 0.0 }
 0x5b2   :  { %v715_v30 = vpop.permute.xlu1 %714  ;;  %v708_v32 = vpop.permute.xlu0 %707 }
 0x5b3   :  { %v752_v21 = vmul.f32 %v708_v32, %v2848_v3  ;;  %v753_v48 = vmul.f32 %v715_v30, %v2856_v5 }
 0x5b5   :  { %v760_v22 = vsel %vm453_vm13, %v752_v21, 0.0  ;;  %v762_v34 = vsel %vm453_vm13, %v753_v48, 0.0 }
 0x5b6   :  { %v761_v28 = vadd.f32 %v760_v22, %v759_v24 }
 0x5b8   :  { %v763_v26 = vadd.f32 %v762_v34, %v761_v28 }
 0x5ba   :  { %v722_v29 = vpop.permute.xlu0 %721  ;;  %v736_v43 = vpop.permute.xlu1 %735 }
 0x5bb   :  { %v754_v42 = vmul.f32 %v722_v29, %v2861_v6  ;;  %v756_v40 = vmul.f32 %v736_v43, %v2873_v8 }
 0x5bd   :  { %v764_v46 = vsel %vm453_vm13, %v754_v42, 0.0  ;;  %v768_v61 = vsel %vm453_vm13, %v756_v40, 0.0 }
 0x5be   :  { %v765_v47 = vadd.f32 %v764_v46, %v763_v26 }
 0x5c0   :  { %v767_v27 = vadd.f32 %v766_v50, %v765_v47  ;;  %v513_v50 = vld [vmem:[%s3843_s0] sm:$0x1] }
 0x5c1   :  { %v514_v40 = vunpack.c.l.bf16 %v513_v50 }
 0x5c2   :  { %v743_v11 = vpop.permute.xlu0 %742  ;;  %v769_v0 = vadd.f32 %v768_v61, %v767_v27  ;;  %v799_v19 = vpop.permute.xlu1 %798 }
 0x5c3   :  { %v757_v63 = vmul.f32 %v743_v11, %v2879_v9  ;;  %572 = vst [vmem:[#allocation1] ss:$4 sm:$0xff] %v514_v40 }
 0x5c5   :  { %v770_v1 = vsel %vm453_vm13, %v757_v63, 0.0 }
 0x5c6   :  { %v771_v4 = vadd.f32 %v770_v1, %v769_v0 }
 0x5c8   :  { %v3221_v13 = vadd.f32 %v772_v12, %v771_v4 }
 0x5ca   :  { %v776_v14 = vpack.c.bf16 %v3221_v13, %v3221_v13  ;;  %v822_v26 = vpop.permute.xlu0 %821  ;;  %v3239_v4 = vld.sshfl [vmem:[#allocation1] sm:$0xff pattern:$0x73625140] }
 0x5cc   :  { %2448 = vmatmul.msk.bf16.vlgmr.msra.gmra.mxu2 %vm3860_vm0, %v776_v14 }
 0x5cd   :  { %1892 = vmatpush.bf16.msra.mxu2 %v3062_v58 }
 0x5d1   :  { %1893 = vmatpush.bf16.msra.mxu2 %v3068_v59 }
 0x5d5   :  { %1894 = vmatpush.bf16.msra.mxu2 %v3076_v60 }
 0x5d9   :  { %1895 = vmatpush.bf16.msra.mxu2 %v3082_v62 }
 0x64f   :  { %v789_v17 = vpop.f32.mrf.mxu2 }
 0x650   :  { %v793_v18 = vadd.f32 %v789_v17, %v234_v16  ;;  %v2449_v16 = vld [vmem:[%s3843_s0 + $0x1] sm:$0x1] }
 0x651   :  { %v796_v17 = vunpack.c.l.bf16 %v2449_v16 }
 0x652   :  { %v801_v30 = vadd.f32 %v799_v19, %v793_v18  ;;  %v2719_v19 = vld [vmem:[%s3847_s4 + $0x8] sm:$0xff] }
 0x654   :  { %v2450_v32 = vmul.f32 -1.442695, %v801_v30 }
 0x656   :  { %2583 = vpow2.f32 %v2450_v32 }
 0x657   :  { %v791_v20 = vpop.f32.mrf.mxu2 }
 0x65c   :  { %v2584_v21 = vpop.eup %2583 }
 0x65d   :  { %v805_v22 = vadd.f32 1.0, %v2584_v21 }
 0x65f   :  { %2585 = vrcp.f32 %v805_v22  ;;  %v817_v28 = vand.u32 2147483648, %v805_v22  ;;  %v815_v33 = vand.u32 2147483647, %v805_v22  ;;  %vm811_vm15 = vweird.f32 %v805_v22 }
 0x661   :  { %v818_v42 = vor.u32 1.1754944e-38, %v817_v28  ;;  %vm816_vm0 = vcmp.eq.f32.partialorder %v815_v33, 8.507059e+37 }
 0x665   :  { %v2586_v23 = vpop.eup %2585 }
 0x666   :  { %v807_v24 = vmul.f32 %v2586_v23, %v805_v22  ;;  %vm812_vm14 = vweird.f32 %v2586_v23 }
 0x667   :  { %vm813_vm1 = vmor %vm811_vm15, %vm812_vm14  ;;  %vm3861_vm14 = vcmask 523264  }
 0x668   :  { %v808_v48 = vsub.f32 1.0, %v807_v24 }
 0x66a   :  { %v809_v29 = vmul.f32 %v2586_v23, %v808_v48 }
 0x66c   :  { %v810_v34 = vadd.f32 %v2586_v23, %v809_v29 }
 0x66e   :  { %v814_v43 = vsel %vm813_vm1, %v2586_v23, %v810_v34 }
 0x66f   :  { %v819_v46 = vsel %vm816_vm0, %v818_v42, %v814_v43 }
 0x670   :  { %v824_v47 = vmul.f32 %v822_v26, %v819_v46  ;;  %v831_v61 = vsub.f32 1.0, %v819_v46  ;;  %v837_v0 = vmul.f32 %v819_v46, %v3135_v44 }
 0x672   :  { %826 = vrot.lane.b32.xlu2 %v824_v47, %s2750_s2 }
 0x6cc   :  { %v827_v27 = vpop.permute.xlu2 %826 }
 0x6cd   :  { %v829_v11 = vadd.f32 %v827_v27, %v793_v18 }
 0x6cf   :  { %2587 = vtanh.f32 %v829_v11 }
 0x6d5   :  { %v2588_v57 = vpop.eup %2587 }
 0x6d6   :  { %833 = vrot.lane.b32.xlu1 %v2588_v57, %s2749_s9 }
 0x748   :  { %v834_v63 = vpop.permute.xlu1 %833 }
 0x749   :  { %v836_v1 = vmul.f32 %v834_v63, %v831_v61 }
 0x74b   :  { %v3241_v12 = vadd.f32 %v837_v0, %v836_v1 }
 0x74d   :  { %840 = vst [vmem:[#allocation1] ss:$4 sm:$0xff] %v3241_v12  ;;  %v859_v14 = vpack.c.bf16 %v3241_v12, %v3241_v12 }
 0x74f   :  { %861 = vrot.lane.b32.xlu0 %v859_v14, %s2749_s9 }
 0x754   :  { %v3250_v18 = vld.sshfl [vmem:[#allocation1] sm:$0xff pattern:$0x73625140] }
 0x755   :  { %850 = vst [vmem:[#allocation1] ss:$4 sm:$0xff] %v796_v17 }
 0x7c1   :  { %v862_v44 = vpop.permute.xlu0 %861 }
 0x7c2   :  { %2451 = vmatmul.msk.bf16.vlgmr.msrb.gmra.mxu0 %vm261_vm2, %v862_v44 }
 0x7c3   :  { %1980 = vmatpush.bf16.msrb.mxu0 %v2719_v19 }
 0x7c7   :  { %1981 = vmatpush.bf16.msrb.mxu0 %v2907_v15 }
 0x83f   :  { %v3257_v30 = vpop.f32.mrf.mxu0 }
 0x840   :  { %v882_v32 = vadd.f32 %v3257_v30, %v2968_v38  ;;  %v881_v20 = vadd.f32 %v3257_v30, %v2976_v41  ;;  %v880_v21 = vadd.f32 %v3257_v30, %v2960_v35  ;;  %v885_v22 = vadd.f32 %v3257_v30, %v2971_v39 }
 0x841   :  { %v884_v23 = vadd.f32 %v3257_v30, %v2965_v37  ;;  %v883_v15 = vadd.f32 %v3257_v30, %v2985_v45  ;;  %v887_v26 = vadd.f32 %v3257_v30, %v3002_v53  ;;  %v886_v50 = vadd.f32 %v3257_v30, %v2999_v51 }
 0x842   :  { %2589 = vtanh.f32 %v882_v32 }
 0x843   :  { %2591 = vtanh.f32 %v881_v20 }
 0x844   :  { %2593 = vtanh.f32 %v880_v21 }
 0x845   :  { %2595 = vtanh.f32 %v885_v22 }
 0x846   :  { %2597 = vtanh.f32 %v884_v23 }
 0x847   :  { %v877_v24 = vpop.f32.mrf.mxu0  ;;  %2599 = vtanh.f32 %v883_v15 }
 0x848   :  { %v2590_v48 = vpop.eup %2589  ;;  %2601 = vtanh.f32 %v887_v26 }
 0x849   :  { %v2592_v28 = vpop.eup %2591  ;;  %v898_v29 = vmul.f32 %v2590_v48, %v2996_v49  ;;  %2603 = vtanh.f32 %v886_v50 }
 0x84a   :  { %v2594_v33 = vpop.eup %2593  ;;  %v897_v34 = vmul.f32 %v2592_v28, %v2996_v49 }
 0x84b   :  { %v910_v42 = vsel %vm244_vm3, %v898_v29, 0.0  ;;  %v896_v43 = vmul.f32 %v2594_v33, %v2996_v49  ;;  %v2596_v46 = vpop.eup %2595 }
 0x84c   :  { %911 = vadd.xlane.f32.xlu0 %v910_v42  ;;  %v907_v47 = vsel %vm244_vm3, %v897_v34, 0.0  ;;  %v2598_v40 = vpop.eup %2597  ;;  %v901_v57 = vmul.f32 %v2596_v46, %v2996_v49 }
 0x84d   :  { %908 = vadd.xlane.f32.xlu1 %v907_v47  ;;  %v904_v27 = vsel %vm244_vm3, %v896_v43, 0.0  ;;  %v2600_v11 = vpop.eup %2599  ;;  %v900_v61 = vmul.f32 %v2598_v40, %v2996_v49 }
 0x84e   :  { %905 = vadd.xlane.f32.xlu2 %v904_v27  ;;  %v899_v63 = vmul.f32 %v2600_v11, %v2996_v49  ;;  %v919_v0 = vsel %vm244_vm3, %v901_v57, 0.0  ;;  %v2602_v14 = vpop.eup %2601 }
 0x84f   :  { %v916_v1 = vsel %vm244_vm3, %v900_v61, 0.0  ;;  %v2604_v17 = vpop.eup %2603  ;;  %v903_v44 = vmul.f32 %v2602_v14, %v2996_v49 }
 0x850   :  { %v913_v16 = vsel %vm244_vm3, %v899_v63, 0.0  ;;  %v902_v19 = vmul.f32 %v2604_v17, %v2996_v49 }
 0x851   :  { %v925_v32 = vsel %vm244_vm3, %v903_v44, 0.0 }
 0x852   :  { %v922_v20 = vsel %vm244_vm3, %v902_v19, 0.0 }
 0x854   :  { %920 = vadd.xlane.f32.xlu0 %v919_v0 }
 0x855   :  { %917 = vadd.xlane.f32.xlu1 %v916_v1 }
 0x856   :  { %914 = vadd.xlane.f32.xlu2 %v913_v16 }
 0x85d   :  { %926 = vadd.xlane.f32.xlu1 %v925_v32 }
 0x85e   :  { %923 = vadd.xlane.f32.xlu2 %v922_v20 }
 0x8bf   :  { %v912_v23 = vpop.xlane.xlu0 %911 }
 0x8c0   :  { %v909_v21 = vpop.xlane.xlu1 %908  ;;  %v938_v48 = vperm.slane %v912_v23, %v3024_v31 }
 0x8c1   :  { %v906_v22 = vpop.xlane.xlu2 %905  ;;  %v937_v15 = vperm.slane %v909_v21, %v3024_v31 }
 0x8c2   :  { %v936_v24 = vperm.slane %v906_v22, %v3024_v31 }
 0x8c4   :  { %v944_v29 = vsel %vm354_vm4, %v937_v15, %v936_v24 }
 0x8c5   :  { %v945_v42 = vsel %vm356_vm5, %v938_v48, %v944_v29 }
 0x8c7   :  { %v921_v26 = vpop.xlane.xlu0 %920 }
 0x8c8   :  { %v918_v28 = vpop.xlane.xlu1 %917  ;;  %v941_v50 = vperm.slane %v921_v26, %v3024_v31 }
 0x8c9   :  { %v915_v33 = vpop.xlane.xlu2 %914  ;;  %v940_v34 = vperm.slane %v918_v28, %v3024_v31 }
 0x8ca   :  { %v939_v49 = vperm.slane %v915_v33, %v3024_v31 }
 0x8cc   :  { %v946_v43 = vsel %vm358_vm6, %v939_v49, %v945_v42 }
 0x8cd   :  { %v947_v46 = vsel %vm360_vm7, %v940_v34, %v946_v43 }
 0x8ce   :  { %v948_v57 = vsel %vm362_vm8, %v941_v50, %v947_v46 }
 0x8d0   :  { %v927_v47 = vpop.xlane.xlu1 %926 }
 0x8d1   :  { %v943_v40 = vperm.slane %v927_v47, %v3024_v31  ;;  %v924_v27 = vpop.xlane.xlu2 %923 }
 0x8d2   :  { %v942_v11 = vperm.slane %v924_v27, %v3024_v31  ;;  %v879_v27 = vadd.f32 %v3257_v30, %v3104_v25 }
 0x8d4   :  { %v949_v61 = vsel %vm364_vm9, %v942_v11, %v948_v57 }
 0x8d5   :  { %v950_v63 = vsel %vm366_vm10, %v943_v40, %v949_v61 }
 0x8d6   :  { %v952_v0 = vsel %vm335_vm11, %v950_v63, -1e+10 }
 0x8d7   :  { %v953_v1 = vsel %vm246_vm12, %v952_v0, -inf }
 0x8d8   :  { %v954_v14 = vrot.slane %v953_v1, 4 }
 0x8da   :  { %v955_v16 = vmax.f32 %v953_v1, %v954_v14 }
 0x8dc   :  { %v956_v17 = vrot.slane %v955_v16, 2 }
 0x8de   :  { %v957_v44 = vmax.f32 %v955_v16, %v956_v17 }
 0x8e0   :  { %v958_v19 = vrot.slane %v957_v44, 1 }
 0x8e2   :  { %v959_v32 = vmax.f32 %v957_v44, %v958_v19 }
 0x8e4   :  { %v960_v20 = vsub.f32 %v952_v0, %v959_v32 }
 0x8e6   :  { %v961_v21 = vmul.f32 1.442695, %v960_v20 }
 0x8e8   :  { %2605 = vpow2.f32 %v961_v21 }
 0x8ee   :  { %v2606_v22 = vpop.eup %2605 }
 0x8ef   :  { %v963_v23 = vsel %vm246_vm12, %v2606_v22, 0.0 }
 0x8f0   :  { %v964_v15 = vrot.slane %v963_v23, 4 }
 0x8f2   :  { %v965_v24 = vadd.f32 %v964_v15, %v963_v23 }
 0x8f4   :  { %v966_v48 = vrot.slane %v965_v24, 2 }
 0x8f6   :  { %v967_v28 = vadd.f32 %v966_v48, %v965_v24 }
 0x8f8   :  { %v968_v29 = vrot.slane %v967_v28, 1 }
 0x8fa   :  { %v969_v33 = vadd.f32 %v968_v29, %v967_v28 }
 0x8fc   :  { %2607 = vrcp.f32 %v969_v33 }
 0x902   :  { %v2608_v49 = vpop.eup %2607 }
 0x903   :  { %v971_v34 = vmul.f32 %v2608_v49, %v2606_v22 }
 0x905   :  { %2452 = vst.msk [vmem:[%s3858_s15 + $0x18] sm:$0xff] %vm246_vm12, %v971_v34  ;;  %v986_v42 = vperm.slane %v971_v34, 2  ;;  %v979_v43 = vperm.slane %v971_v34, 1  ;;  %v972_v26 = vperm.slane %v971_v34, 0  ;;  %v1014_v46 = vperm.slane %v971_v34, 6 }
 0x906   :  { %v1000_v47 = vperm.slane %v971_v34, 4  ;;  %v993_v50 = vperm.slane %v971_v34, 3  ;;  %v1021_v40 = vperm.slane %v971_v34, 7  ;;  %v1007_v11 = vperm.slane %v971_v34, 5 }
 0x907   :  { %991 = vperm.xlu1 %2531, %v986_v42   ;;  %984 = vperm.xlu2 %2529, %v979_v43  }
 0x908   :  { %977 = vperm.xlu0 %2530, %v972_v26  }
 0x90f   :  { %1019 = vperm.xlu1 %2531, %v1014_v46   ;;  %1005 = vperm.xlu2 %2529, %v1000_v47  }
 0x910   :  { %998 = vperm.xlu0 %2530, %v993_v50  }
 0x917   :  { %1026 = vperm.xlu2 %2529, %v1021_v40   ;;  %1098 = vrot.lane.b32.xlu1 %v879_v27, %s2748_s22 }
 0x918   :  { %1012 = vperm.xlu0 %2530, %v1007_v11   ;;  %v235_v11 = vrot.slane %v3130_v56, 4 }
 0x920   :  { %1075 = vrot.lane.b32.xlu0 %v879_v27, %s2749_s9 }
 0x961   :  { %v985_v57 = vpop.permute.xlu2 %984 }
 0x962   :  { %v1029_v0 = vmul.f32 %v985_v57, %v2848_v3 }
 0x964   :  { %v1037_v17 = vsel %vm453_vm13, %v1029_v0, 0.0 }
 0x969   :  { %v1006_v16 = vpop.permute.xlu2 %1005 }
 0x96a   :  { %v1032_v23 = vmul.f32 %v1006_v16, %v2867_v7 }
 0x96c   :  { %v1043_v29 = vsel %vm453_vm13, %v1032_v23, 0.0 }
 0x971   :  { %v1027_v48 = vpop.permute.xlu2 %1026 }
 0x972   :  { %v1035_v42 = vmul.f32 %v1027_v48, %v2885_v10 }
 0x974   :  { %v1049_v50 = vsel %vm453_vm13, %v1035_v42, 0.0 }
 0x979   :  { %v992_v1 = vpop.permute.xlu1 %991 }
 0x97a   :  { %v978_v61 = vpop.permute.xlu0 %977  ;;  %v1030_v30 = vmul.f32 %v992_v1, %v2856_v5 }
 0x97b   :  { %v1028_v63 = vmul.f32 %v978_v61, %v2843_v2 }
 0x97c   :  { %v1039_v20 = vsel %vm453_vm13, %v1030_v30, 0.0 }
 0x97d   :  { %v1036_v14 = vsel %vm453_vm13, %v1028_v63, 0.0 }
 0x97e   :  { %v1038_v44 = vadd.f32 %v1037_v17, %v1036_v14 }
 0x980   :  { %v1040_v22 = vadd.f32 %v1039_v20, %v1038_v44 }
 0x981   :  { %v1020_v15 = vpop.permute.xlu1 %1019 }
 0x982   :  { %v999_v19 = vpop.permute.xlu0 %998  ;;  %v1034_v33 = vmul.f32 %v1020_v15, %v2879_v9 }
 0x983   :  { %v1031_v32 = vmul.f32 %v999_v19, %v2861_v6 }
 0x984   :  { %v1047_v46 = vsel %vm453_vm13, %v1034_v33, 0.0 }
 0x985   :  { %v1041_v21 = vsel %vm453_vm13, %v1031_v32, 0.0 }
 0x986   :  { %v1042_v24 = vadd.f32 %v1041_v21, %v1040_v22 }
 0x988   :  { %v1044_v34 = vadd.f32 %v1043_v29, %v1042_v24 }
 0x989   :  { %v1099_v21 = vpop.permute.xlu1 %1098 }
 0x98a   :  { %v1013_v28 = vpop.permute.xlu0 %1012 }
 0x98b   :  { %v1033_v49 = vmul.f32 %v1013_v28, %v2873_v8 }
 0x98d   :  { %v1045_v43 = vsel %vm453_vm13, %v1033_v49, 0.0 }
 0x98e   :  { %v1046_v26 = vadd.f32 %v1045_v43, %v1044_v34  ;;  %v3347_v34 = vld.sshfl [vmem:[#allocation1] sm:$0xff pattern:$0x73625140] }
 0x990   :  { %v1048_v47 = vadd.f32 %v1047_v46, %v1046_v26  ;;  %v2454_v26 = vld [vmem:[%s3843_s0 + $0x2] sm:$0x1] }
 0x991   :  { %v1073_v46 = vunpack.c.l.bf16 %v2454_v26 }
 0x992   :  { %v3334_v40 = vadd.f32 %v1049_v50, %v1048_v47  ;;  %v1076_v63 = vpop.permute.xlu0 %1075 }
 0x994   :  { %v1053_v27 = vpack.c.bf16 %v3334_v40, %v3334_v40 }
 0x996   :  { %2453 = vmatmul.msk.bf16.vlgmr.msrb.gmra.mxu3 %vm3861_vm14, %v1053_v27 }
 0x997   :  { %2169 = vmatpush.bf16.msrb.mxu3 %v3062_v58 }
 0x99b   :  { %2170 = vmatpush.bf16.msrb.mxu3 %v3068_v59 }
 0x99f   :  { %2171 = vmatpush.bf16.msrb.mxu3 %v3076_v60 }
 0x9a3   :  { %2172 = vmatpush.bf16.msrb.mxu3 %v3082_v62 }
 0xa19   :  { %v1066_v57 = vpop.f32.mrf.mxu3 }
 0xa1a   :  { %v1070_v61 = vadd.f32 %v1066_v57, %v235_v11 }
 0xa1c   :  { %v1078_v0 = vadd.f32 %v1076_v63, %v1070_v61 }
 0xa1e   :  { %v2455_v1 = vmul.f32 -1.442695, %v1078_v0 }
 0xa20   :  { %2609 = vpow2.f32 %v2455_v1 }
 0xa21   :  { %v1068_v14 = vpop.f32.mrf.mxu3 }
 0xa26   :  { %v2610_v16 = vpop.eup %2609 }
 0xa27   :  { %v1082_v17 = vadd.f32 1.0, %v2610_v16 }
 0xa29   :  { %2611 = vrcp.f32 %v1082_v17  ;;  %v1094_v59 = vand.u32 2147483648, %v1082_v17  ;;  %v1092_v60 = vand.u32 2147483647, %v1082_v17  ;;  %vm1088_vm1 = vweird.f32 %v1082_v17 }
 0xa2b   :  { %v1095_v32 = vor.u32 1.1754944e-38, %v1094_v59  ;;  %vm1093_vm14 = vcmp.eq.f32.partialorder %v1092_v60, 8.507059e+37 }
 0xa2f   :  { %v2612_v30 = vpop.eup %2611 }
 0xa30   :  { %v1084_v58 = vmul.f32 %v2612_v30, %v1082_v17  ;;  %vm1089_vm15 = vweird.f32 %v2612_v30  ;;  %v3378_v17 = vld [vmem:[%s3850_s7] ss:$0 sm:$0xff] }
 0xa31   :  { %vm1090_vm0 = vmor %vm1088_vm1, %vm1089_vm15  ;;  %vm3862_vm15 = vcmask 523264  }
 0xa32   :  { %v1085_v44 = vsub.f32 1.0, %v1084_v58 }
 0xa34   :  { %v1086_v19 = vmul.f32 %v2612_v30, %v1085_v44 }
 0xa36   :  { %v1087_v62 = vadd.f32 %v2612_v30, %v1086_v19 }
 0xa38   :  { %v1091_v20 = vsel %vm1090_vm0, %v2612_v30, %v1087_v62 }
 0xa39   :  { %v1096_v22 = vsel %vm1093_vm14, %v1095_v32, %v1091_v20 }
 0xa3a   :  { %v1101_v23 = vmul.f32 %v1099_v21, %v1096_v22  ;;  %v1108_v28 = vsub.f32 1.0, %v1096_v22  ;;  %v1114_v33 = vmul.f32 %v1096_v22, %v3241_v12 }
 0xa3c   :  { %1103 = vrot.lane.b32.xlu2 %v1101_v23, %s2750_s2 }
 0xa96   :  { %v1104_v15 = vpop.permute.xlu2 %1103 }
 0xa97   :  { %v1106_v24 = vadd.f32 %v1104_v15, %v1070_v61 }
 0xa99   :  { %2613 = vtanh.f32 %v1106_v24 }
 0xa9f   :  { %v2614_v48 = vpop.eup %2613 }
 0xaa0   :  { %1110 = vrot.lane.b32.xlu0 %v2614_v48, %s2749_s9 }
 0xb12   :  { %v1111_v29 = vpop.permute.xlu0 %1110 }
 0xb13   :  { %v1113_v49 = vmul.f32 %v1111_v29, %v1108_v28 }
 0xb15   :  { %v3349_v42 = vadd.f32 %v1114_v33, %v1113_v49 }
 0xb17   :  { %1117 = vst [vmem:[#allocation1] ss:$4 sm:$0xff] %v3349_v42  ;;  %v1136_v43 = vpack.c.bf16 %v3349_v42, %v3349_v42 }
 0xb19   :  { %1138 = vrot.lane.b32.xlu1 %v1136_v43, %s2749_s9 }
 0xb1e   :  { %v3358_v47 = vld.sshfl [vmem:[#allocation1] sm:$0xff pattern:$0x73625140] }
 0xb1f   :  { %1127 = vst [vmem:[#allocation1] ss:$4 sm:$0xff] %v1073_v46 }
 0xb8b   :  { %v1139_v12 = vpop.permute.xlu1 %1138 }
 0xb8c   :  { %2456 = vmatmul.msk.bf16.vlgmr.msrb.gmra.mxu1 %vm261_vm2, %v1139_v12 }
 0xc09   :  { %v3361_v50 = vpop.f32.mrf.mxu1 }
 0xc0a   :  { %v1159_v27 = vadd.f32 %v3361_v50, %v2968_v38  ;;  %v1158_v11 = vadd.f32 %v3361_v50, %v2976_v41  ;;  %v1157_v57 = vadd.f32 %v3361_v50, %v2960_v35  ;;  %v1162_v61 = vadd.f32 %v3361_v50, %v2971_v39 }
 0xc0b   :  { %v1161_v63 = vadd.f32 %v3361_v50, %v2965_v37  ;;  %v1160_v0 = vadd.f32 %v3361_v50, %v2985_v45  ;;  %v1164_v60 = vadd.f32 %v3361_v50, %v3002_v53  ;;  %v1163_v20 = vadd.f32 %v3361_v50, %v2999_v51 }
 0xc0c   :  { %2615 = vtanh.f32 %v1159_v27 }
 0xc0d   :  { %2617 = vtanh.f32 %v1158_v11 }
 0xc0e   :  { %2619 = vtanh.f32 %v1157_v57 }
 0xc0f   :  { %2621 = vtanh.f32 %v1162_v61 }
 0xc10   :  { %2623 = vtanh.f32 %v1161_v63 }
 0xc11   :  { %v1154_v1 = vpop.f32.mrf.mxu1  ;;  %2625 = vtanh.f32 %v1160_v0 }
 0xc12   :  { %v2616_v14 = vpop.eup %2615  ;;  %2627 = vtanh.f32 %v1164_v60 }
 0xc13   :  { %v2618_v16 = vpop.eup %2617  ;;  %v1175_v30 = vmul.f32 %v3378_v17, %v2616_v14  ;;  %2629 = vtanh.f32 %v1163_v20 }
 0xc14   :  { %v2620_v58 = vpop.eup %2619  ;;  %v1174_v44 = vmul.f32 %v3378_v17, %v2618_v16 }
 0xc15   :  { %v1187_v59 = vsel %vm244_vm3, %v1175_v30, 0.0  ;;  %v1173_v19 = vmul.f32 %v3378_v17, %v2620_v58  ;;  %v2622_v62 = vpop.eup %2621 }
 0xc16   :  { %1188 = vadd.xlane.f32.xlu1 %v1187_v59  ;;  %v1184_v32 = vsel %vm244_vm3, %v1174_v44, 0.0  ;;  %v2624_v21 = vpop.eup %2623  ;;  %v1178_v15 = vmul.f32 %v3378_v17, %v2622_v62 }
 0xc17   :  { %1185 = vadd.xlane.f32.xlu0 %v1184_v32  ;;  %v1181_v22 = vsel %vm244_vm3, %v1173_v19, 0.0  ;;  %v2626_v23 = vpop.eup %2625  ;;  %v1177_v24 = vmul.f32 %v3378_v17, %v2624_v21 }
 0xc18   :  { %1182 = vadd.xlane.f32.xlu2 %v1181_v22  ;;  %v1176_v48 = vmul.f32 %v3378_v17, %v2626_v23  ;;  %v1196_v28 = vsel %vm244_vm3, %v1178_v15, 0.0  ;;  %v2628_v33 = vpop.eup %2627 }
 0xc19   :  { %v1193_v29 = vsel %vm244_vm3, %v1177_v24, 0.0  ;;  %v2630_v43 = vpop.eup %2629  ;;  %v1180_v26 = vmul.f32 %v3378_v17, %v2628_v33 }
 0xc1a   :  { %v1190_v49 = vsel %vm244_vm3, %v1176_v48, 0.0  ;;  %v1179_v46 = vmul.f32 %v3378_v17, %v2630_v43 }
 0xc1b   :  { %v1202_v12 = vsel %vm244_vm3, %v1180_v26, 0.0 }
 0xc1c   :  { %v1199_v27 = vsel %vm244_vm3, %v1179_v46, 0.0 }
 0xc1e   :  { %1197 = vadd.xlane.f32.xlu1 %v1196_v28 }
 0xc1f   :  { %1194 = vadd.xlane.f32.xlu0 %v1193_v29 }
 0xc20   :  { %1191 = vadd.xlane.f32.xlu2 %v1190_v49 }
 0xc27   :  { %1203 = vadd.xlane.f32.xlu0 %v1202_v12 }
 0xc28   :  { %1200 = vadd.xlane.f32.xlu2 %v1199_v27 }
 0xc89   :  { %v1189_v61 = vpop.xlane.xlu1 %1188 }
 0xc8a   :  { %v1186_v11 = vpop.xlane.xlu0 %1185  ;;  %v1215_v1 = vperm.slane %v1189_v61, %v3024_v31 }
 0xc8b   :  { %v1183_v57 = vpop.xlane.xlu2 %1182  ;;  %v1214_v63 = vperm.slane %v1186_v11, %v3024_v31 }
 0xc8c   :  { %v1213_v0 = vperm.slane %v1183_v57, %v3024_v31 }
 0xc8e   :  { %v1221_v16 = vsel %vm354_vm4, %v1214_v63, %v1213_v0 }
 0xc8f   :  { %v1222_v59 = vsel %vm356_vm5, %v1215_v1, %v1221_v16 }
 0xc91   :  { %v1198_v60 = vpop.xlane.xlu1 %1197 }
 0xc92   :  { %v1195_v14 = vpop.xlane.xlu0 %1194  ;;  %v1218_v20 = vperm.slane %v1198_v60, %v3024_v31 }
 0xc93   :  { %v1192_v30 = vpop.xlane.xlu2 %1191  ;;  %v1217_v44 = vperm.slane %v1195_v14, %v3024_v31 }
 0xc94   :  { %v1216_v58 = vperm.slane %v1192_v30, %v3024_v31 }
 0xc96   :  { %v1223_v19 = vsel %vm358_vm6, %v1216_v58, %v1222_v59 }
 0xc97   :  { %v1224_v62 = vsel %vm360_vm7, %v1217_v44, %v1223_v19 }
 0xc98   :  { %v1225_v15 = vsel %vm362_vm8, %v1218_v20, %v1224_v62 }
 0xc9a   :  { %v1204_v32 = vpop.xlane.xlu0 %1203 }
 0xc9b   :  { %v1220_v21 = vperm.slane %v1204_v32, %v3024_v31  ;;  %v1201_v22 = vpop.xlane.xlu2 %1200 }
 0xc9c   :  { %v1219_v23 = vperm.slane %v1201_v22, %v3024_v31  ;;  %v1156_v22 = vadd.f32 %v3361_v50, %v3104_v25 }
 0xc9e   :  { %v1226_v24 = vsel %vm364_vm9, %v1219_v23, %v1225_v15 }
 0xc9f   :  { %v1227_v48 = vsel %vm366_vm10, %v1220_v21, %v1226_v24 }
 0xca0   :  { %v1229_v28 = vsel %vm335_vm11, %v1227_v48, -1e+10 }
 0xca1   :  { %v1230_v29 = vsel %vm246_vm12, %v1229_v28, -inf }
 0xca2   :  { %v1231_v33 = vrot.slane %v1230_v29, 4 }
 0xca4   :  { %v1232_v49 = vmax.f32 %v1230_v29, %v1231_v33 }
 0xca6   :  { %v1233_v43 = vrot.slane %v1232_v49, 2 }
 0xca8   :  { %v1234_v26 = vmax.f32 %v1232_v49, %v1233_v43 }
 0xcaa   :  { %v1235_v46 = vrot.slane %v1234_v26, 1 }
 0xcac   :  { %v1236_v12 = vmax.f32 %v1234_v26, %v1235_v46 }
 0xcae   :  { %v1237_v27 = vsub.f32 %v1229_v28, %v1236_v12 }
 0xcb0   :  { %v1238_v11 = vmul.f32 1.442695, %v1237_v27 }
 0xcb2   :  { %2631 = vpow2.f32 %v1238_v11 }
 0xcb8   :  { %v2632_v57 = vpop.eup %2631 }
 0xcb9   :  { %v1240_v61 = vsel %vm246_vm12, %v2632_v57, 0.0 }
 0xcba   :  { %v1241_v63 = vrot.slane %v1240_v61, 4 }
 0xcbc   :  { %v1242_v0 = vadd.f32 %v1241_v63, %v1240_v61 }
 0xcbe   :  { %v1243_v1 = vrot.slane %v1242_v0, 2 }
 0xcc0   :  { %v1244_v14 = vadd.f32 %v1243_v1, %v1242_v0 }
 0xcc2   :  { %v1245_v16 = vrot.slane %v1244_v14, 1 }
 0xcc4   :  { %v1246_v30 = vadd.f32 %v1245_v16, %v1244_v14 }
 0xcc6   :  { %2633 = vrcp.f32 %v1246_v30 }
 0xccc   :  { %v2634_v58 = vpop.eup %2633 }
 0xccd   :  { %v1248_v44 = vmul.f32 %v2634_v58, %v2632_v57 }
 0xccf   :  { %2457 = vst.msk [vmem:[%s3858_s15 + $0x20] sm:$0xff] %vm246_vm12, %v1248_v44  ;;  %v1263_v59 = vperm.slane %v1248_v44, 2  ;;  %v1256_v19 = vperm.slane %v1248_v44, 1  ;;  %v1249_v60 = vperm.slane %v1248_v44, 0  ;;  %v1270_v62 = vperm.slane %v1248_v44, 3 }
 0xcd0   :  { %v1284_v32 = vperm.slane %v1248_v44, 5  ;;  %v1277_v20 = vperm.slane %v1248_v44, 4  ;;  %v1291_v21 = vperm.slane %v1248_v44, 6  ;;  %v1298_v23 = vperm.slane %v1248_v44, 7 }
 0xcd1   :  { %1268 = vperm.xlu0 %2530, %v1263_v59   ;;  %1261 = vperm.xlu2 %2529, %v1256_v19  }
 0xcd2   :  { %1254 = vperm.xlu1 %2531, %v1249_v60  }
 0xcd9   :  { %1275 = vperm.xlu0 %2530, %v1270_v62   ;;  %1289 = vperm.xlu2 %2529, %v1284_v32  }
 0xcda   :  { %1282 = vperm.xlu1 %2531, %v1277_v20  }
 0xce1   :  { %1296 = vperm.xlu0 %2530, %v1291_v21   ;;  %1352 = vrot.lane.b32.xlu2 %v1156_v22, %s2749_s9 }
 0xce2   :  { %1303 = vperm.xlu1 %2531, %v1298_v23   ;;  %v236_v23 = vrot.slane %v3130_v56, 6 }
 0xce9   :  { %1375 = vrot.lane.b32.xlu0 %v1156_v22, %s2748_s22 }
 0xd2b   :  { %v1262_v15 = vpop.permute.xlu2 %1261 }
 0xd2c   :  { %v1306_v48 = vmul.f32 %v1262_v15, %v2848_v3 }
 0xd2e   :  { %v1314_v49 = vsel %vm453_vm13, %v1306_v48, 0.0 }
 0xd33   :  { %v1290_v11 = vpop.permute.xlu2 %1289 }
 0xd34   :  { %v1310_v1 = vmul.f32 %v1290_v11, %v2873_v8 }
 0xd36   :  { %v1322_v58 = vsel %vm453_vm13, %v1310_v1, 0.0 }
 0xd3b   :  { %v1353_v48 = vpop.permute.xlu2 %1352 }
 0xd43   :  { %v1269_v24 = vpop.permute.xlu0 %1268 }
 0xd44   :  { %v1255_v28 = vpop.permute.xlu1 %1254  ;;  %v1307_v50 = vmul.f32 %v1269_v24, %v2856_v5 }
 0xd45   :  { %v1305_v29 = vmul.f32 %v1255_v28, %v2843_v2 }
 0xd46   :  { %v1316_v46 = vsel %vm453_vm13, %v1307_v50, 0.0 }
 0xd47   :  { %v1313_v33 = vsel %vm453_vm13, %v1305_v29, 0.0 }
 0xd48   :  { %v1315_v43 = vadd.f32 %v1314_v49, %v1313_v33 }
 0xd4a   :  { %v1317_v57 = vadd.f32 %v1316_v46, %v1315_v43 }
 0xd4b   :  { %v1276_v26 = vpop.permute.xlu0 %1275 }
 0xd4c   :  { %v1308_v12 = vmul.f32 %v1276_v26, %v2861_v6  ;;  %v1283_v27 = vpop.permute.xlu1 %1282 }
 0xd4d   :  { %v1309_v61 = vmul.f32 %v1283_v27, %v2867_v7 }
 0xd4e   :  { %v1318_v63 = vsel %vm453_vm13, %v1308_v12, 0.0 }
 0xd4f   :  { %v1319_v0 = vadd.f32 %v1318_v63, %v1317_v57  ;;  %v1320_v14 = vsel %vm453_vm13, %v1309_v61, 0.0 }
 0xd51   :  { %v1321_v16 = vadd.f32 %v1320_v14, %v1319_v0 }
 0xd53   :  { %v1297_v30 = vpop.permute.xlu0 %1296  ;;  %v1323_v19 = vadd.f32 %v1322_v58, %v1321_v16 }
 0xd54   :  { %v1311_v44 = vmul.f32 %v1297_v30, %v2879_v9  ;;  %v1304_v59 = vpop.permute.xlu1 %1303 }
 0xd55   :  { %v1312_v60 = vmul.f32 %v1304_v59, %v2885_v10 }
 0xd56   :  { %v1324_v62 = vsel %vm453_vm13, %v1311_v44, 0.0 }
 0xd57   :  { %v1325_v32 = vadd.f32 %v1324_v62, %v1323_v19  ;;  %v1326_v20 = vsel %vm453_vm13, %v1312_v60, 0.0  ;;  %v3452_v60 = vld.sshfl [vmem:[#allocation1] sm:$0xff pattern:$0x73625140] }
 0xd59   :  { %v3443_v21 = vadd.f32 %v1326_v20, %v1325_v32 }
 0xd5b   :  { %v1330_v22 = vpack.c.bf16 %v3443_v21, %v3443_v21  ;;  %v1376_v63 = vpop.permute.xlu0 %1375 }
 0xd5d   :  { %2458 = vmatmul.msk.bf16.vlgmr.msrb.gmra.mxu2 %vm3862_vm15, %v1330_v22 }
 0xde0   :  { %v1343_v15 = vpop.f32.mrf.mxu2 }
 0xde1   :  { %v1347_v24 = vadd.f32 %v1343_v15, %v236_v23 }
 0xde3   :  { %v1355_v28 = vadd.f32 %v1353_v48, %v1347_v24 }
 0xde5   :  { %v2460_v29 = vmul.f32 -1.442695, %v1355_v28 }
 0xde7   :  { %2635 = vpow2.f32 %v2460_v29 }
 0xde8   :  { %v1345_v33 = vpop.f32.mrf.mxu2 }
 0xded   :  { %v2636_v49 = vpop.eup %2635 }
 0xdee   :  { %v1359_v50 = vadd.f32 1.0, %v2636_v49 }
 0xdf0   :  { %2637 = vrcp.f32 %v1359_v50  ;;  %v1371_v12 = vand.u32 2147483648, %v1359_v50  ;;  %v1369_v11 = vand.u32 2147483647, %v1359_v50  ;;  %vm1365_vm0 = vweird.f32 %v1359_v50 }
 0xdf2   :  { %v1372_v56 = vor.u32 1.1754944e-38, %v1371_v12  ;;  %vm1370_vm15 = vcmp.eq.f32.partialorder %v1369_v11, 8.507059e+37 }
 0xdf6   :  { %v2638_v43 = vpop.eup %2637 }
 0xdf7   :  { %v1361_v26 = vmul.f32 %v2638_v43, %v1359_v50  ;;  %vm1366_vm1 = vweird.f32 %v2638_v43 }
 0xdf8   :  { %vm1367_vm14 = vmor %vm1365_vm0, %vm1366_vm1  ;;  %vm3863_vm1 = vcmask 523264  }
 0xdf9   :  { %v1362_v46 = vsub.f32 1.0, %v1361_v26 }
 0xdfb   :  { %v1363_v27 = vmul.f32 %v2638_v43, %v1362_v46 }
 0xdfd   :  { %v1364_v57 = vadd.f32 %v2638_v43, %v1363_v27 }
 0xdff   :  { %v1368_v61 = vsel %vm1367_vm14, %v2638_v43, %v1364_v57 }
 0xe00   :  { %v1373_v0 = vsel %vm1370_vm15, %v1372_v56, %v1368_v61 }
 0xe01   :  { %v1378_v1 = vmul.f32 %v1376_v63, %v1373_v0  ;;  %v1385_v58 = vsub.f32 1.0, %v1373_v0  ;;  %v1391_v59 = vmul.f32 %v1373_v0, %v3349_v42 }
 0xe03   :  { %1380 = vrot.lane.b32.xlu1 %v1378_v1, %s2750_s2 }
 0xe75   :  { %v1381_v14 = vpop.permute.xlu1 %1380 }
 0xe76   :  { %v1383_v16 = vadd.f32 %v1381_v14, %v1347_v24 }
 0xe78   :  { %2639 = vtanh.f32 %v1383_v16 }
 0xe7e   :  { %v2640_v30 = vpop.eup %2639 }
 0xe7f   :  { %1387 = vrot.lane.b32.xlu2 %v2640_v30, %s2749_s9 }
 0xed9   :  { %v1388_v44 = vpop.permute.xlu2 %1387 }
 0xeda   :  { %v1390_v19 = vmul.f32 %v1388_v44, %v1385_v58 }
 0xedc   :  { %v3454_v62 = vadd.f32 %v1391_v59, %v1390_v19 }
 0xede   :  { %1394 = vst [vmem:[#allocation1] ss:$4 sm:$0xff] %v3454_v62  ;;  %v1413_v32 = vpack.c.bf16 %v3454_v62, %v3454_v62 }
 0xee0   :  { %1415 = vrot.lane.b32.xlu0 %v1413_v32, %s2749_s9 }
 0xf52   :  { %v1416_v20 = vpop.permute.xlu0 %1415 }
 0xf53   :  { %2461 = vmatmul.msk.bf16.vlgmr.msra.gmra.mxu0 %vm261_vm2, %v1416_v20 }
 0xfd0   :  { %v3461_v22 = vpop.f32.mrf.mxu0 }
 0xfd1   :  { %v1436_v42 = vadd.f32 %v3461_v22, %v2968_v38  ;;  %v1435_v23 = vadd.f32 %v3461_v22, %v2976_v41  ;;  %v1434_v15 = vadd.f32 %v3461_v22, %v2960_v35  ;;  %v1439_v24 = vadd.f32 %v3461_v22, %v2971_v39 }
 0xfd2   :  { %v1438_v48 = vadd.f32 %v3461_v22, %v2965_v37  ;;  %v1437_v28 = vadd.f32 %v3461_v22, %v2985_v45  ;;  %v1441_v27 = vadd.f32 %v3461_v22, %v3002_v53  ;;  %v1440_v56 = vadd.f32 %v3461_v22, %v2999_v51 }
 0xfd3   :  { %2641 = vtanh.f32 %v1436_v42 }
 0xfd4   :  { %2643 = vtanh.f32 %v1435_v23 }
 0xfd5   :  { %2645 = vtanh.f32 %v1434_v15 }
 0xfd6   :  { %2647 = vtanh.f32 %v1439_v24 }
 0xfd7   :  { %2649 = vtanh.f32 %v1438_v48 }
 0xfd8   :  { %v1431_v29 = vpop.f32.mrf.mxu0  ;;  %2651 = vtanh.f32 %v1437_v28 }
 0xfd9   :  { %v2642_v33 = vpop.eup %2641  ;;  %2653 = vtanh.f32 %v1441_v27 }
 0xfda   :  { %v2644_v49 = vpop.eup %2643  ;;  %v1452_v50 = vmul.f32 %v3378_v17, %v2642_v33  ;;  %2655 = vtanh.f32 %v1440_v56 }
 0xfdb   :  { %v2646_v43 = vpop.eup %2645  ;;  %v1451_v26 = vmul.f32 %v3378_v17, %v2644_v49 }
 0xfdc   :  { %v1464_v46 = vsel %vm244_vm3, %v1452_v50, 0.0  ;;  %v1450_v12 = vmul.f32 %v3378_v17, %v2646_v43  ;;  %v2648_v11 = vpop.eup %2647 }
 0xfdd   :  { %1465 = vadd.xlane.f32.xlu0 %v1464_v46  ;;  %v1461_v57 = vsel %vm244_vm3, %v1451_v26, 0.0  ;;  %v2650_v61 = vpop.eup %2649  ;;  %v1455_v1 = vmul.f32 %v3378_v17, %v2648_v11 }
 0xfde   :  { %1462 = vadd.xlane.f32.xlu2 %v1461_v57  ;;  %v1458_v63 = vsel %vm244_vm3, %v1450_v12, 0.0  ;;  %v2652_v0 = vpop.eup %2651  ;;  %v1454_v14 = vmul.f32 %v3378_v17, %v2650_v61 }
 0xfdf   :  { %1459 = vadd.xlane.f32.xlu1 %v1458_v63  ;;  %v1453_v16 = vmul.f32 %v3378_v17, %v2652_v0  ;;  %v1473_v30 = vsel %vm244_vm3, %v1455_v1, 0.0  ;;  %v2654_v44 = vpop.eup %2653 }
 0xfe0   :  { %v1470_v58 = vsel %vm244_vm3, %v1454_v14, 0.0  ;;  %v2656_v19 = vpop.eup %2655  ;;  %v1457_v32 = vmul.f32 %v3378_v17, %v2654_v44 }
 0xfe1   :  { %v1467_v59 = vsel %vm244_vm3, %v1453_v16, 0.0  ;;  %v1456_v20 = vmul.f32 %v3378_v17, %v2656_v19 }
 0xfe2   :  { %v1479_v42 = vsel %vm244_vm3, %v1457_v32, 0.0 }
 0xfe3   :  { %v1476_v23 = vsel %vm244_vm3, %v1456_v20, 0.0 }
 0xfe5   :  { %1474 = vadd.xlane.f32.xlu0 %v1473_v30 }
 0xfe6   :  { %1471 = vadd.xlane.f32.xlu2 %v1470_v58 }
 0xfe7   :  { %1468 = vadd.xlane.f32.xlu1 %v1467_v59 }
 0xfee   :  { %1480 = vadd.xlane.f32.xlu2 %v1479_v42 }
 0xfef   :  { %1477 = vadd.xlane.f32.xlu1 %v1476_v23 }
0x1050   :  { %v1466_v48 = vpop.xlane.xlu0 %1465 }
0x1051   :  { %v1463_v15 = vpop.xlane.xlu2 %1462  ;;  %v1492_v33 = vperm.slane %v1466_v48, %v3024_v31 }
0x1052   :  { %v1460_v24 = vpop.xlane.xlu1 %1459  ;;  %v1491_v28 = vperm.slane %v1463_v15, %v3024_v31 }
0x1053   :  { %v1490_v29 = vperm.slane %v1460_v24, %v3024_v31 }
0x1055   :  { %v1498_v50 = vsel %vm354_vm4, %v1491_v28, %v1490_v29 }
0x1056   :  { %v1499_v12 = vsel %vm356_vm5, %v1492_v33, %v1498_v50 }
0x1058   :  { %v1475_v11 = vpop.xlane.xlu0 %1474 }
0x1059   :  { %v1472_v49 = vpop.xlane.xlu2 %1471  ;;  %v1495_v61 = vperm.slane %v1475_v11, %v3024_v31 }
0x105a   :  { %v1469_v43 = vpop.xlane.xlu1 %1468  ;;  %v1494_v46 = vperm.slane %v1472_v49, %v3024_v31 }
0x105b   :  { %v1493_v26 = vperm.slane %v1469_v43, %v3024_v31 }
0x105d   :  { %v1500_v27 = vsel %vm358_vm6, %v1493_v26, %v1499_v12 }
0x105e   :  { %v1501_v57 = vsel %vm360_vm7, %v1494_v46, %v1500_v27 }
0x105f   :  { %v1502_v14 = vsel %vm362_vm8, %v1495_v61, %v1501_v57 }
0x1061   :  { %v1481_v56 = vpop.xlane.xlu2 %1480 }
0x1062   :  { %v1497_v63 = vperm.slane %v1481_v56, %v3024_v31  ;;  %v1478_v0 = vpop.xlane.xlu1 %1477 }
0x1063   :  { %v1496_v1 = vperm.slane %v1478_v0, %v3024_v31 }
0x1065   :  { %v1503_v16 = vsel %vm364_vm9, %v1496_v1, %v1502_v14  ;;  %v1433_v1 = vadd.f32 %v3461_v22, %v3104_v25 }
0x1066   :  { %v1504_v30 = vsel %vm366_vm10, %v1497_v63, %v1503_v16 }
0x1067   :  { %v1506_v58 = vsel %vm335_vm11, %v1504_v30, -1e+10 }
0x1068   :  { %v1507_v44 = vsel %vm246_vm12, %v1506_v58, -inf }
0x1069   :  { %v1508_v59 = vrot.slane %v1507_v44, 4 }
0x106b   :  { %v1509_v19 = vmax.f32 %v1507_v44, %v1508_v59 }
0x106d   :  { %v1510_v32 = vrot.slane %v1509_v19, 2 }
0x106f   :  { %v1511_v20 = vmax.f32 %v1509_v19, %v1510_v32 }
0x1071   :  { %v1512_v42 = vrot.slane %v1511_v20, 1 }
0x1073   :  { %v1513_v23 = vmax.f32 %v1511_v20, %v1512_v42 }
0x1075   :  { %v1514_v15 = vsub.f32 %v1506_v58, %v1513_v23 }
0x1077   :  { %v1515_v24 = vmul.f32 1.442695, %v1514_v15 }
0x1079   :  { %2657 = vpow2.f32 %v1515_v24 }
0x107f   :  { %v2658_v48 = vpop.eup %2657 }
0x1080   :  { %v1517_v28 = vsel %vm246_vm12, %v2658_v48, 0.0 }
0x1081   :  { %v1518_v29 = vrot.slane %v1517_v28, 4 }
0x1083   :  { %v1519_v33 = vadd.f32 %v1518_v29, %v1517_v28 }
0x1085   :  { %v1520_v49 = vrot.slane %v1519_v33, 2 }
0x1087   :  { %v1521_v50 = vadd.f32 %v1520_v49, %v1519_v33 }
0x1089   :  { %v1522_v43 = vrot.slane %v1521_v50, 1 }
0x108b   :  { %v1523_v26 = vadd.f32 %v1522_v43, %v1521_v50 }
0x108d   :  { %2659 = vrcp.f32 %v1523_v26 }
0x1093   :  { %v2660_v46 = vpop.eup %2659 }
0x1094   :  { %v1525_v12 = vmul.f32 %v2660_v46, %v2658_v48 }
0x1096   :  { %2462 = vst.msk [vmem:[%s3858_s15 + $0x28] sm:$0xff] %vm246_vm12, %v1525_v12  ;;  %v1540_v27 = vperm.slane %v1525_v12, 2  ;;  %v1533_v11 = vperm.slane %v1525_v12, 1  ;;  %v1526_v57 = vperm.slane %v1525_v12, 0  ;;  %v1554_v56 = vperm.slane %v1525_v12, 4 }
0x1097   :  { %v1561_v61 = vperm.slane %v1525_v12, 5  ;;  %v1547_v63 = vperm.slane %v1525_v12, 3  ;;  %v1575_v0 = vperm.slane %v1525_v12, 7  ;;  %v1568_v14 = vperm.slane %v1525_v12, 6 }
0x1098   :  { %1545 = vperm.xlu2 %2529, %v1540_v27   ;;  %1538 = vperm.xlu1 %2531, %v1533_v11  }
0x1099   :  { %1531 = vperm.xlu0 %2530, %v1526_v57  }
0x10a0   :  { %1559 = vperm.xlu2 %2529, %v1554_v56   ;;  %1566 = vperm.xlu1 %2531, %v1561_v61  }
0x10a1   :  { %1552 = vperm.xlu0 %2530, %v1547_v63  }
0x10a8   :  { %1580 = vperm.xlu2 %2529, %v1575_v0   ;;  %1629 = vrot.lane.b32.xlu1 %v1433_v1, %s2749_s9 }
0x10a9   :  { %1573 = vperm.xlu0 %2530, %v1568_v14  }
0x10b1   :  { %1652 = vrot.lane.b32.xlu0 %v1433_v1, %s2748_s22 }
0x10f2   :  { %v1546_v16 = vpop.permute.xlu2 %1545 }
0x10f3   :  { %v1584_v22 = vmul.f32 %v1546_v16, %v2856_v5 }
0x10f5   :  { %v1593_v15 = vsel %vm453_vm13, %v1584_v22, 0.0 }
0x10fa   :  { %v1560_v20 = vpop.permute.xlu2 %1559 }
0x10fb   :  { %v1586_v24 = vmul.f32 %v1560_v20, %v2867_v7 }
0x10fd   :  { %v1597_v50 = vsel %vm453_vm13, %v1586_v24, 0.0 }
0x1102   :  { %v1581_v26 = vpop.permute.xlu2 %1580 }
0x1103   :  { %v1589_v27 = vmul.f32 %v1581_v26, %v2885_v10 }
0x1105   :  { %v1603_v0 = vsel %vm453_vm13, %v1589_v27, 0.0  ;;  %v2459_v27 = vld [vmem:[%s3843_s0 + $0x3] sm:$0x1] }
0x110a   :  { %v1539_v30 = vpop.permute.xlu1 %1538 }
0x110b   :  { %v1583_v58 = vmul.f32 %v1539_v30, %v2848_v3  ;;  %v1532_v44 = vpop.permute.xlu0 %1531 }
0x110c   :  { %v1582_v59 = vmul.f32 %v1532_v44, %v2843_v2 }
0x110d   :  { %v1591_v19 = vsel %vm453_vm13, %v1583_v58, 0.0 }
0x110e   :  { %v1590_v32 = vsel %vm453_vm13, %v1582_v59, 0.0 }
0x110f   :  { %v1592_v42 = vadd.f32 %v1591_v19, %v1590_v32 }
0x1111   :  { %v1594_v29 = vadd.f32 %v1593_v15, %v1592_v42 }
0x1112   :  { %v1567_v28 = vpop.permute.xlu1 %1566 }
0x1113   :  { %v1553_v23 = vpop.permute.xlu0 %1552  ;;  %v1587_v43 = vmul.f32 %v1567_v28, %v2873_v8 }
0x1114   :  { %v1585_v48 = vmul.f32 %v1553_v23, %v2861_v6 }
0x1115   :  { %v1599_v11 = vsel %vm453_vm13, %v1587_v43, 0.0 }
0x1116   :  { %v1595_v33 = vsel %vm453_vm13, %v1585_v48, 0.0 }
0x1117   :  { %v1596_v49 = vadd.f32 %v1595_v33, %v1594_v29 }
0x1119   :  { %v1598_v46 = vadd.f32 %v1597_v50, %v1596_v49 }
0x111a   :  { %v1630_v58 = vpop.permute.xlu1 %1629 }
0x111b   :  { %v1574_v12 = vpop.permute.xlu0 %1573  ;;  %v1600_v56 = vadd.f32 %v1599_v11, %v1598_v46  ;;  %v1350_v11 = vunpack.c.l.bf16 %v2459_v27 }
0x111c   :  { %v1588_v57 = vmul.f32 %v1574_v12, %v2879_v9 }
0x111e   :  { %v1601_v61 = vsel %vm453_vm13, %v1588_v57, 0.0  ;;  %v3549_v57 = vld.sshfl [vmem:[#allocation1] sm:$0xff pattern:$0x73625140] }
0x111f   :  { %v1602_v63 = vadd.f32 %v1601_v61, %v1600_v56  ;;  %1404 = vst [vmem:[#allocation1] ss:$4 sm:$0xff] %v1350_v11 }
0x1121   :  { %v3538_v1 = vadd.f32 %v1603_v0, %v1602_v63 }
0x1123   :  { %v1607_v14 = vpack.c.bf16 %v3538_v1, %v3538_v1  ;;  %v1653_v49 = vpop.permute.xlu0 %1652 }
0x1125   :  { %2463 = vmatmul.msk.bf16.vlgmr.msra.gmra.mxu3 %vm3863_vm1, %v1607_v14 }
0x1126   :  { %v3552_v14 = vld.sshfl [vmem:[#allocation1] sm:$0xff pattern:$0x73625140] }
0x11a8   :  { %v1620_v16 = vpop.f32.mrf.mxu3 }
0x11a9   :  { %v1624_v30 = vadd.f32 %v1620_v16, %v2963_v36 }
0x11ab   :  { %v1632_v44 = vadd.f32 %v1630_v58, %v1624_v30 }
0x11ad   :  { %v2465_v59 = vmul.f32 -1.442695, %v1632_v44 }
0x11af   :  { %2661 = vpow2.f32 %v2465_v59 }
0x11b0   :  { %v1622_v19 = vpop.f32.mrf.mxu3 }
0x11b5   :  { %v2662_v32 = vpop.eup %2661 }
0x11b6   :  { %v1636_v20 = vadd.f32 1.0, %v2662_v32 }
0x11b8   :  { %2663 = vrcp.f32 %v1636_v20  ;;  %v1648_v15 = vand.u32 2147483648, %v1636_v20  ;;  %v1646_v48 = vand.u32 2147483647, %v1636_v20  ;;  %vm1642_vm14 = vweird.f32 %v1636_v20 }
0x11ba   :  { %v1649_v29 = vor.u32 1.1754944e-38, %v1648_v15  ;;  %vm1647_vm1 = vcmp.eq.f32.partialorder %v1646_v48, 8.507059e+37 }
0x11be   :  { %v2664_v22 = vpop.eup %2663 }
0x11bf   :  { %v1638_v42 = vmul.f32 %v2664_v22, %v1636_v20  ;;  %vm1643_vm0 = vweird.f32 %v2664_v22 }
0x11c0   :  { %vm1644_vm15 = vmor %vm1642_vm14, %vm1643_vm0  ;;  %vm3864_vm0 = vcmask 523264  }
0x11c1   :  { %v1639_v23 = vsub.f32 1.0, %v1638_v42 }
0x11c3   :  { %v1640_v24 = vmul.f32 %v2664_v22, %v1639_v23 }
0x11c5   :  { %v1641_v28 = vadd.f32 %v2664_v22, %v1640_v24 }
0x11c7   :  { %v1645_v33 = vsel %vm1644_vm15, %v2664_v22, %v1641_v28 }
0x11c8   :  { %v1650_v50 = vsel %vm1647_vm1, %v1649_v29, %v1645_v33 }
0x11c9   :  { %v1655_v43 = vmul.f32 %v1653_v49, %v1650_v50  ;;  %v1662_v56 = vsub.f32 1.0, %v1650_v50  ;;  %v1668_v63 = vmul.f32 %v1650_v50, %v3454_v62 }
0x11cb   :  { %1657 = vrot.lane.b32.xlu2 %v1655_v43, %s2750_s2 }
0x1225   :  { %v1658_v26 = vpop.permute.xlu2 %1657 }
0x1226   :  { %v1660_v46 = vadd.f32 %v1658_v26, %v1624_v30 }
0x1228   :  { %2665 = vtanh.f32 %v1660_v46 }
0x122e   :  { %v2666_v12 = vpop.eup %2665 }
0x122f   :  { %1664 = vrot.lane.b32.xlu1 %v2666_v12, %s2749_s9 }
0x12a1   :  { %v1665_v61 = vpop.permute.xlu1 %1664 }
0x12a2   :  { %v1667_v0 = vmul.f32 %v1665_v61, %v1662_v56 }
0x12a4   :  { %v3554_v16 = vadd.f32 %v1668_v63, %v1667_v0 }
0x12a6   :  { %v1690_v30 = vpack.c.bf16 %v3554_v16, %v3554_v16  ;;  %1671 = vst [vmem:[#allocation1] ss:$4 sm:$0xff] %v3554_v16 }
0x12a8   :  { %1692 = vrot.lane.b32.xlu0 %v1690_v30, %s2749_s9 }
0x131a   :  { %v1693_v58 = vpop.permute.xlu0 %1692 }
0x131b   :  { %2466 = vmatmul.msk.bf16.vlgmr.msra.gmra.mxu1 %vm261_vm2, %v1693_v58 }
0x1398   :  { %v3561_v44 = vpop.f32.mrf.mxu1 }
0x1399   :  { %v1713_v62 = vadd.f32 %v3561_v44, %v2968_v38  ;;  %v1712_v59 = vadd.f32 %v3561_v44, %v2976_v41  ;;  %v1711_v19 = vadd.f32 %v3561_v44, %v2960_v35  ;;  %v1716_v32 = vadd.f32 %v3561_v44, %v2971_v39 }
0x139a   :  { %v1715_v20 = vadd.f32 %v3561_v44, %v2965_v37  ;;  %v1714_v22 = vadd.f32 %v3561_v44, %v2985_v45  ;;  %v1718_v49 = vadd.f32 %v3561_v44, %v3002_v53  ;;  %v1717_v26 = vadd.f32 %v3561_v44, %v2999_v51 }
0x139b   :  { %2667 = vtanh.f32 %v1713_v62 }
0x139c   :  { %2669 = vtanh.f32 %v1712_v59 }
0x139d   :  { %2671 = vtanh.f32 %v1711_v19 }
0x139e   :  { %2673 = vtanh.f32 %v1716_v32 }
0x139f   :  { %2675 = vtanh.f32 %v1715_v20 }
0x13a0   :  { %v1708_v42 = vpop.f32.mrf.mxu1  ;;  %2677 = vtanh.f32 %v1714_v22 }
0x13a1   :  { %v2668_v23 = vpop.eup %2667  ;;  %2679 = vtanh.f32 %v1718_v49 }
0x13a2   :  { %v2670_v15 = vpop.eup %2669  ;;  %v1729_v24 = vmul.f32 %v3378_v17, %v2668_v23  ;;  %2681 = vtanh.f32 %v1717_v26 }
0x13a3   :  { %v2672_v48 = vpop.eup %2671  ;;  %v1728_v28 = vmul.f32 %v3378_v17, %v2670_v15 }
0x13a4   :  { %v1741_v29 = vsel %vm244_vm3, %v1729_v24, 0.0  ;;  %v1727_v33 = vmul.f32 %v3378_v17, %v2672_v48  ;;  %v2674_v50 = vpop.eup %2673 }
0x13a5   :  { %1742 = vadd.xlane.f32.xlu0 %v1741_v29  ;;  %v1738_v43 = vsel %vm244_vm3, %v1728_v28, 0.0  ;;  %v2676_v46 = vpop.eup %2675  ;;  %v1732_v11 = vmul.f32 %v3378_v17, %v2674_v50 }
0x13a6   :  { %1739 = vadd.xlane.f32.xlu1 %v1738_v43  ;;  %v1735_v12 = vsel %vm244_vm3, %v1727_v33, 0.0  ;;  %v2678_v27 = vpop.eup %2677  ;;  %v1731_v56 = vmul.f32 %v3378_v17, %v2676_v46 }
0x13a7   :  { %1736 = vadd.xlane.f32.xlu2 %v1735_v12  ;;  %v1730_v61 = vmul.f32 %v3378_v17, %v2678_v27  ;;  %v1750_v63 = vsel %vm244_vm3, %v1732_v11, 0.0  ;;  %v2680_v30 = vpop.eup %2679 }
0x13a8   :  { %v1747_v0 = vsel %vm244_vm3, %v1731_v56, 0.0  ;;  %v2682_v62 = vpop.eup %2681  ;;  %v1734_v59 = vmul.f32 %v3378_v17, %v2680_v30 }
0x13a9   :  { %v1744_v58 = vsel %vm244_vm3, %v1730_v61, 0.0  ;;  %v1733_v19 = vmul.f32 %v3378_v17, %v2682_v62 }
0x13aa   :  { %v1756_v32 = vsel %vm244_vm3, %v1734_v59, 0.0 }
0x13ab   :  { %v1753_v20 = vsel %vm244_vm3, %v1733_v19, 0.0 }
0x13ad   :  { %1751 = vadd.xlane.f32.xlu0 %v1750_v63 }
0x13ae   :  { %1748 = vadd.xlane.f32.xlu1 %v1747_v0 }
0x13af   :  { %1745 = vadd.xlane.f32.xlu2 %v1744_v58 }
0x13b6   :  { %1757 = vadd.xlane.f32.xlu1 %v1756_v32 }
0x13b7   :  { %1754 = vadd.xlane.f32.xlu2 %v1753_v20 }
0x1418   :  { %v1743_v23 = vpop.xlane.xlu0 %1742 }
0x1419   :  { %v1740_v22 = vpop.xlane.xlu1 %1739  ;;  %v1769_v48 = vperm.slane %v1743_v23, %v3024_v31 }
0x141a   :  { %v1737_v42 = vpop.xlane.xlu2 %1736  ;;  %v1768_v15 = vperm.slane %v1740_v22, %v3024_v31 }
0x141b   :  { %v1767_v24 = vperm.slane %v1737_v42, %v3024_v31 }
0x141d   :  { %v1775_v29 = vsel %vm354_vm4, %v1768_v15, %v1767_v24 }
0x141e   :  { %v1776_v50 = vsel %vm356_vm5, %v1769_v48, %v1775_v29 }
0x1420   :  { %v1752_v26 = vpop.xlane.xlu0 %1751 }
0x1421   :  { %v1749_v28 = vpop.xlane.xlu1 %1748  ;;  %v1772_v27 = vperm.slane %v1752_v26, %v3024_v31 }
0x1422   :  { %v1746_v33 = vpop.xlane.xlu2 %1745  ;;  %v1771_v49 = vperm.slane %v1749_v28, %v3024_v31 }
0x1423   :  { %v1770_v17 = vperm.slane %v1746_v33, %v3024_v31 }
0x1425   :  { %v1777_v43 = vsel %vm358_vm6, %v1770_v17, %v1776_v50 }
0x1426   :  { %v1778_v46 = vsel %vm360_vm7, %v1771_v49, %v1777_v43 }
0x1427   :  { %v1779_v63 = vsel %vm362_vm8, %v1772_v27, %v1778_v46 }
0x1429   :  { %v1758_v12 = vpop.xlane.xlu1 %1757 }
0x142a   :  { %v1774_v11 = vperm.slane %v1758_v12, %v3024_v31  ;;  %v1755_v56 = vpop.xlane.xlu2 %1754 }
0x142b   :  { %v1773_v61 = vperm.slane %v1755_v56, %v3024_v31 }
0x142d   :  { %v1780_v0 = vsel %vm364_vm9, %v1773_v61, %v1779_v63 }
0x142e   :  { %v1781_v30 = vsel %vm366_vm10, %v1774_v11, %v1780_v0  ;;  %v1710_v0 = vadd.f32 %v3561_v44, %v3104_v25 }
0x142f   :  { %v1783_v58 = vsel %vm335_vm11, %v1781_v30, -1e+10 }
0x1430   :  { %v1784_v62 = vsel %vm246_vm12, %v1783_v58, -inf }
0x1431   :  { %v1785_v59 = vrot.slane %v1784_v62, 4 }
0x1433   :  { %v1786_v19 = vmax.f32 %v1784_v62, %v1785_v59 }
0x1435   :  { %v1787_v32 = vrot.slane %v1786_v19, 2 }
0x1437   :  { %v1788_v20 = vmax.f32 %v1786_v19, %v1787_v32 }
0x1439   :  { %v1789_v22 = vrot.slane %v1788_v20, 1 }
0x143b   :  { %v1790_v42 = vmax.f32 %v1788_v20, %v1789_v22 }
0x143d   :  { %v1791_v23 = vsub.f32 %v1783_v58, %v1790_v42 }
0x143f   :  { %v1792_v15 = vmul.f32 1.442695, %v1791_v23 }
0x1441   :  { %2683 = vpow2.f32 %v1792_v15 }
0x1447   :  { %v2684_v24 = vpop.eup %2683 }
0x1448   :  { %v1794_v48 = vsel %vm246_vm12, %v2684_v24, 0.0 }
0x1449   :  { %v1795_v28 = vrot.slane %v1794_v48, 4 }
0x144b   :  { %v1796_v29 = vadd.f32 %v1795_v28, %v1794_v48 }
0x144d   :  { %v1797_v33 = vrot.slane %v1796_v29, 2 }
0x144f   :  { %v1798_v17 = vadd.f32 %v1797_v33, %v1796_v29 }
0x1451   :  { %v1799_v49 = vrot.slane %v1798_v17, 1 }
0x1453   :  { %v1800_v50 = vadd.f32 %v1799_v49, %v1798_v17 }
0x1455   :  { %2685 = vrcp.f32 %v1800_v50 }
0x145b   :  { %v2686_v43 = vpop.eup %2685 }
0x145c   :  { %v1802_v26 = vmul.f32 %v2686_v43, %v2684_v24 }
0x145e   :  { %2467 = vst.msk [vmem:[%s3858_s15 + $0x30] sm:$0xff] %vm246_vm12, %v1802_v26  ;;  %v1817_v46 = vperm.slane %v1802_v26, 2  ;;  %v1810_v12 = vperm.slane %v1802_v26, 1  ;;  %v1803_v27 = vperm.slane %v1802_v26, 0  ;;  %v1845_v11 = vperm.slane %v1802_v26, 6 }
0x145f   :  { %v1831_v56 = vperm.slane %v1802_v26, 4  ;;  %v1824_v61 = vperm.slane %v1802_v26, 3  ;;  %v1852_v63 = vperm.slane %v1802_v26, 7  ;;  %v1838_v30 = vperm.slane %v1802_v26, 5 }
0x1460   :  { %1822 = vperm.xlu1 %2531, %v1817_v46   ;;  %1815 = vperm.xlu2 %2529, %v1810_v12  }
0x1461   :  { %1808 = vperm.xlu0 %2530, %v1803_v27  }
0x1468   :  { %1850 = vperm.xlu1 %2531, %v1845_v11   ;;  %1836 = vperm.xlu2 %2529, %v1831_v56  }
0x1469   :  { %1829 = vperm.xlu0 %2530, %v1824_v61  }
0x1470   :  { %1857 = vperm.xlu2 %2529, %v1852_v63   ;;  %1929 = vrot.lane.b32.xlu1 %v1710_v0, %s2748_s22 }
0x1471   :  { %1843 = vperm.xlu0 %2530, %v1838_v30  }
0x1479   :  { %1906 = vrot.lane.b32.xlu0 %v1710_v0, %s2749_s9 }
0x14ba   :  { %v1816_v58 = vpop.permute.xlu2 %1815 }
0x14bb   :  { %v1860_v19 = vmul.f32 %v1816_v58, %v2848_v3 }
0x14bd   :  { %v1868_v42 = vsel %vm453_vm13, %v1860_v19, 0.0 }
0x14c2   :  { %v1837_v22 = vpop.permute.xlu2 %1836 }
0x14c3   :  { %v1863_v33 = vmul.f32 %v1837_v22, %v2867_v7 }
0x14c5   :  { %v1874_v26 = vsel %vm453_vm13, %v1863_v33, 0.0 }
0x14ca   :  { %v1858_v50 = vpop.permute.xlu2 %1857 }
0x14cb   :  { %v1866_v11 = vmul.f32 %v1858_v50, %v2885_v10 }
0x14cd   :  { %v1880_v30 = vsel %vm453_vm13, %v1866_v11, 0.0 }
0x14d2   :  { %v1823_v32 = vpop.permute.xlu1 %1822 }
0x14d3   :  { %v1809_v62 = vpop.permute.xlu0 %1808  ;;  %v1861_v44 = vmul.f32 %v1823_v32, %v2856_v5 }
0x14d4   :  { %v1859_v59 = vmul.f32 %v1809_v62, %v2843_v2 }
0x14d5   :  { %v1870_v48 = vsel %vm453_vm13, %v1861_v44, 0.0 }
0x14d6   :  { %v1867_v20 = vsel %vm453_vm13, %v1859_v59, 0.0  ;;  %v237_v59 = vrot.slane %v2963_v36, 2 }
0x14d7   :  { %v1869_v23 = vadd.f32 %v1868_v42, %v1867_v20 }
0x14d9   :  { %v1871_v29 = vadd.f32 %v1870_v48, %v1869_v23 }
0x14da   :  { %v1851_v17 = vpop.permute.xlu1 %1850 }
0x14db   :  { %v1830_v15 = vpop.permute.xlu0 %1829  ;;  %v1865_v46 = vmul.f32 %v1851_v17, %v2879_v9 }
0x14dc   :  { %v1862_v24 = vmul.f32 %v1830_v15, %v2861_v6 }
0x14dd   :  { %v1878_v63 = vsel %vm453_vm13, %v1865_v46, 0.0 }
0x14de   :  { %v1872_v28 = vsel %vm453_vm13, %v1862_v24, 0.0 }
0x14df   :  { %v1873_v49 = vadd.f32 %v1872_v28, %v1871_v29 }
0x14e1   :  { %v1875_v27 = vadd.f32 %v1874_v26, %v1873_v49 }
0x14e2   :  { %v1930_v26 = vpop.permute.xlu1 %1929 }
0x14e3   :  { %v1844_v43 = vpop.permute.xlu0 %1843 }
0x14e4   :  { %v1864_v12 = vmul.f32 %v1844_v43, %v2873_v8 }
0x14e6   :  { %v1876_v56 = vsel %vm453_vm13, %v1864_v12, 0.0 }
0x14e7   :  { %v1877_v61 = vadd.f32 %v1876_v56, %v1875_v27 }
0x14e9   :  { %v1879_v0 = vadd.f32 %v1878_v63, %v1877_v61  ;;  %v2464_v61 = vld [vmem:[%s3843_s0 + $0x4] sm:$0x1] }
0x14ea   :  { %v1627_v63 = vunpack.c.l.bf16 %v2464_v61 }
0x14eb   :  { %v3638_v58 = vadd.f32 %v1880_v30, %v1879_v0  ;;  %v1907_v20 = vpop.permute.xlu0 %1906  ;;  %v3649_v0 = vld.sshfl [vmem:[#allocation1] sm:$0xff pattern:$0x73625140] }
0x14ec   :  { %1681 = vst [vmem:[#allocation1] ss:$4 sm:$0xff] %v1627_v63 }
0x14ed   :  { %v1884_v62 = vpack.c.bf16 %v3638_v58, %v3638_v58 }
0x14ef   :  { %2468 = vmatmul.msk.bf16.vlgmr.msra.gmra.mxu2 %vm3864_vm0, %v1884_v62 }
0x1572   :  { %v1897_v19 = vpop.f32.mrf.mxu2 }
0x1573   :  { %v1901_v32 = vadd.f32 %v1897_v19, %v237_v59 }
0x1575   :  { %v1909_v22 = vadd.f32 %v1907_v20, %v1901_v32  ;;  %v3652_v20 = vld.sshfl [vmem:[#allocation1] sm:$0xff pattern:$0x73625140] }
0x1577   :  { %v2470_v42 = vmul.f32 -1.442695, %v1909_v22 }
0x1579   :  { %2687 = vpow2.f32 %v2470_v42 }
0x157a   :  { %v1899_v44 = vpop.f32.mrf.mxu2 }
0x157f   :  { %v2688_v23 = vpop.eup %2687 }
0x1580   :  { %v1913_v15 = vadd.f32 1.0, %v2688_v23 }
0x1582   :  { %2689 = vrcp.f32 %v1913_v15  ;;  %v1925_v29 = vand.u32 2147483648, %v1913_v15  ;;  %v1923_v17 = vand.u32 2147483647, %v1913_v15  ;;  %vm1919_vm15 = vweird.f32 %v1913_v15 }
0x1584   :  { %v1926_v50 = vor.u32 1.1754944e-38, %v1925_v29  ;;  %vm1924_vm0 = vcmp.eq.f32.partialorder %v1923_v17, 8.507059e+37 }
0x1588   :  { %v2690_v24 = vpop.eup %2689 }
0x1589   :  { %v1915_v48 = vmul.f32 %v2690_v24, %v1913_v15  ;;  %vm1920_vm14 = vweird.f32 %v2690_v24 }
0x158a   :  { %vm1921_vm1 = vmor %vm1919_vm15, %vm1920_vm14 }
0x158b   :  { %v1916_v28 = vsub.f32 1.0, %v1915_v48 }
0x158d   :  { %v1917_v33 = vmul.f32 %v2690_v24, %v1916_v28 }
0x158f   :  { %v1918_v49 = vadd.f32 %v2690_v24, %v1917_v33 }
0x1591   :  { %v1922_v43 = vsel %vm1921_vm1, %v2690_v24, %v1918_v49 }
0x1592   :  { %v1927_v46 = vsel %vm1924_vm0, %v1926_v50, %v1922_v43 }
0x1593   :  { %v1932_v12 = vmul.f32 %v1930_v26, %v1927_v46  ;;  %v1939_v30 = vsub.f32 1.0, %v1927_v46  ;;  %v1945_v59 = vmul.f32 %v1927_v46, %v3554_v16 }
0x1595   :  { %1934 = vrot.lane.b32.xlu2 %v1932_v12, %s2750_s2 }
0x15ef   :  { %v1935_v27 = vpop.permute.xlu2 %1934 }
0x15f0   :  { %v1937_v11 = vadd.f32 %v1935_v27, %v1901_v32 }
0x15f2   :  { %2691 = vtanh.f32 %v1937_v11 }
0x15f8   :  { %v2692_v56 = vpop.eup %2691 }
0x15f9   :  { %1941 = vrot.lane.b32.xlu0 %v2692_v56, %s2749_s9 }
0x166b   :  { %v1942_v62 = vpop.permute.xlu0 %1941 }
0x166c   :  { %v1944_v19 = vmul.f32 %v1942_v62, %v1939_v30 }
0x166e   :  { %v3654_v32 = vadd.f32 %v1945_v59, %v1944_v19 }
0x1670   :  { %v1967_v22 = vpack.c.bf16 %v3654_v32, %v3654_v32  ;;  %1948 = vst [vmem:[#allocation1] ss:$4 sm:$0xff] %v3654_v32 }
0x1672   :  { %1969 = vrot.lane.b32.xlu1 %v1967_v22, %s2749_s9 }
0x16e4   :  { %v1970_v42 = vpop.permute.xlu1 %1969 }
0x16e5   :  { %2471 = vmatmul.msk.bf16.vlgmr.msrb.gmra.mxu0 %vm261_vm2, %v1970_v42 }
0x1762   :  { %v3661_v44 = vpop.f32.mrf.mxu0 }
0x1763   :  { %v1990_v16 = vadd.f32 %v3661_v44, %v2968_v38  ;;  %v1989_v23 = vadd.f32 %v3661_v44, %v2976_v41  ;;  %v1988_v15 = vadd.f32 %v3661_v44, %v2960_v35  ;;  %v1993_v24 = vadd.f32 %v3661_v44, %v2971_v39  ;;  %v2721_v35 = vld [vmem:[%s3850_s7] ss:$0 sm:$0xff]  ;;  %s2753_s7 = smov 2  }
0x1764   :  { %v1992_v48 = vadd.f32 %v3661_v44, %v2965_v37  ;;  %v1991_v28 = vadd.f32 %v3661_v44, %v2985_v45  ;;  %v1995_v50 = vadd.f32 %v3661_v44, %v3002_v53  ;;  %v1994_v26 = vadd.f32 %v3661_v44, %v2999_v51 }
0x1765   :  { %2693 = vtanh.f32 %v1990_v16 }
0x1766   :  { %2695 = vtanh.f32 %v1989_v23 }
0x1767   :  { %2697 = vtanh.f32 %v1988_v15 }
0x1768   :  { %2699 = vtanh.f32 %v1993_v24 }
0x1769   :  { %2701 = vtanh.f32 %v1992_v48 }
0x176a   :  { %v1985_v38 = vpop.f32.mrf.mxu0  ;;  %2703 = vtanh.f32 %v1991_v28 }
0x176b   :  { %v2694_v29 = vpop.eup %2693  ;;  %2705 = vtanh.f32 %v1995_v50 }
0x176c   :  { %v2696_v41 = vpop.eup %2695  ;;  %v2006_v33 = vmul.f32 %v2721_v35, %v2694_v29  ;;  %2707 = vtanh.f32 %v1994_v26 }
0x176d   :  { %v2698_v39 = vpop.eup %2697  ;;  %v2005_v17 = vmul.f32 %v2721_v35, %v2696_v41 }
0x176e   :  { %v2018_v49 = vsel %vm244_vm3, %v2006_v33, 0.0  ;;  %v2004_v37 = vmul.f32 %v2721_v35, %v2698_v39  ;;  %v2700_v45 = vpop.eup %2699 }
0x176f   :  { %2019 = vadd.xlane.f32.xlu1 %v2018_v49  ;;  %v2015_v43 = vsel %vm244_vm3, %v2005_v17, 0.0  ;;  %v2702_v46 = vpop.eup %2701  ;;  %v2009_v11 = vmul.f32 %v2721_v35, %v2700_v45 }
0x1770   :  { %2016 = vadd.xlane.f32.xlu0 %v2015_v43  ;;  %v2012_v12 = vsel %vm244_vm3, %v2004_v37, 0.0  ;;  %v2704_v27 = vpop.eup %2703  ;;  %v2008_v56 = vmul.f32 %v2721_v35, %v2702_v46 }
0x1771   :  { %2013 = vadd.xlane.f32.xlu2 %v2012_v12  ;;  %v2007_v61 = vmul.f32 %v2721_v35, %v2704_v27  ;;  %v2027_v53 = vsel %vm244_vm3, %v2009_v11, 0.0  ;;  %v2706_v30 = vpop.eup %2705 }
0x1772   :  { %v2024_v63 = vsel %vm244_vm3, %v2008_v56, 0.0  ;;  %v2708_v62 = vpop.eup %2707  ;;  %v2011_v59 = vmul.f32 %v2721_v35, %v2706_v30 }
0x1773   :  { %v2021_v51 = vsel %vm244_vm3, %v2007_v61, 0.0  ;;  %v2010_v19 = vmul.f32 %v2721_v35, %v2708_v62 }
0x1774   :  { %v2033_v22 = vsel %vm244_vm3, %v2011_v59, 0.0 }
0x1775   :  { %v2030_v42 = vsel %vm244_vm3, %v2010_v19, 0.0 }
0x1777   :  { %2028 = vadd.xlane.f32.xlu1 %v2027_v53 }
0x1778   :  { %2025 = vadd.xlane.f32.xlu0 %v2024_v63 }
0x1779   :  { %2022 = vadd.xlane.f32.xlu2 %v2021_v51 }
0x1780   :  { %2034 = vadd.xlane.f32.xlu0 %v2033_v22 }
0x1781   :  { %2031 = vadd.xlane.f32.xlu2 %v2030_v42 }
0x17e2   :  { %v2020_v15 = vpop.xlane.xlu1 %2019 }
0x17e3   :  { %v2017_v16 = vpop.xlane.xlu0 %2016  ;;  %v2046_v28 = vperm.slane %v2020_v15, %v3024_v31 }
0x17e4   :  { %v2014_v23 = vpop.xlane.xlu2 %2013  ;;  %v2045_v24 = vperm.slane %v2017_v16, %v3024_v31 }
0x17e5   :  { %v2044_v48 = vperm.slane %v2014_v23, %v3024_v31 }
0x17e7   :  { %v2052_v29 = vsel %vm354_vm4, %v2045_v24, %v2044_v48  ;;  %vm3865_vm4 = vcmask 523264  }
0x17e8   :  { %v2053_v39 = vsel %vm356_vm5, %v2046_v28, %v2052_v29 }
0x17ea   :  { %v2029_v49 = vpop.xlane.xlu1 %2028 }
0x17eb   :  { %v2026_v38 = vpop.xlane.xlu0 %2025  ;;  %v2049_v45 = vperm.slane %v2029_v49, %v3024_v31 }
0x17ec   :  { %v2023_v41 = vpop.xlane.xlu2 %2022  ;;  %v2048_v33 = vperm.slane %v2026_v38, %v3024_v31 }
0x17ed   :  { %v2047_v35 = vperm.slane %v2023_v41, %v3024_v31 }
0x17ef   :  { %v2054_v17 = vsel %vm358_vm6, %v2047_v35, %v2053_v39 }
0x17f0   :  { %v2055_v37 = vsel %vm360_vm7, %v2048_v33, %v2054_v17 }
0x17f1   :  { %v2056_v12 = vsel %vm362_vm8, %v2049_v45, %v2055_v37  ;;  %v1987_v37 = vadd.f32 %v3661_v44, %v3104_v25 }
0x17f3   :  { %v2035_v50 = vpop.xlane.xlu0 %2034 }
0x17f4   :  { %v2051_v43 = vperm.slane %v2035_v50, %v3024_v31  ;;  %v2032_v26 = vpop.xlane.xlu2 %2031 }
0x17f5   :  { %v2050_v46 = vperm.slane %v2032_v26, %v3024_v31 }
0x17f7   :  { %v2057_v27 = vsel %vm364_vm9, %v2050_v46, %v2056_v12  ;;  %vm578_vm9 = vcmask 785408  }
0x17f8   :  { %v2058_v11 = vsel %vm366_vm10, %v2051_v43, %v2057_v27  ;;  %vm580_vm10 = vcmask 910336  }
0x17f9   :  { %v2060_v56 = vsel %vm335_vm11, %v2058_v11, -1e+10  ;;  %vm2336_vm11 = vcmask 916480  }
0x17fa   :  { %v2061_v61 = vsel %vm246_vm12, %v2060_v56, -inf }
0x17fb   :  { %v2062_v53 = vrot.slane %v2061_v61, 4 }
0x17fd   :  { %v2063_v63 = vmax.f32 %v2061_v61, %v2062_v53 }
0x17ff   :  { %v2064_v30 = vrot.slane %v2063_v63, 2 }
0x1801   :  { %v2065_v51 = vmax.f32 %v2063_v63, %v2064_v30 }
0x1803   :  { %v2066_v62 = vrot.slane %v2065_v51, 1 }
0x1805   :  { %v2067_v59 = vmax.f32 %v2065_v51, %v2066_v62 }
0x1807   :  { %v2068_v19 = vsub.f32 %v2060_v56, %v2067_v59 }
0x1809   :  { %v2069_v22 = vmul.f32 1.442695, %v2068_v19 }
0x180b   :  { %2709 = vpow2.f32 %v2069_v22 }
0x1811   :  { %v2710_v31 = vpop.eup %2709 }
0x1812   :  { %v2071_v42 = vsel %vm246_vm12, %v2710_v31, 0.0 }
0x1813   :  { %v2072_v16 = vrot.slane %v2071_v42, 4 }
0x1815   :  { %v2073_v23 = vadd.f32 %v2072_v16, %v2071_v42 }
0x1817   :  { %v2074_v15 = vrot.slane %v2073_v23, 2 }
0x1819   :  { %v2075_v24 = vadd.f32 %v2074_v15, %v2073_v23 }
0x181b   :  { %v2076_v55 = vrot.slane %v2075_v24, 1 }
0x181d   :  { %v2077_v48 = vadd.f32 %v2076_v55, %v2075_v24 }
0x181f   :  { %2711 = vrcp.f32 %v2077_v48 }
0x1825   :  { %v2712_v28 = vpop.eup %2711 }
0x1826   :  { %v2079_v38 = vmul.f32 %v2712_v28, %v2710_v31 }
0x1828   :  { %2472 = vst.msk [vmem:[%s3858_s15 + $0x38] sm:$0xff] %vm246_vm12, %v2079_v38  ;;  %v2094_v29 = vperm.slane %v2079_v38, 2  ;;  %v2087_v41 = vperm.slane %v2079_v38, 1  ;;  %v2080_v35 = vperm.slane %v2079_v38, 0  ;;  %v2108_v33 = vperm.slane %v2079_v38, 4 }
0x1829   :  { %v2115_v39 = vperm.slane %v2079_v38, 5  ;;  %v2101_v17 = vperm.slane %v2079_v38, 3  ;;  %v2129_v49 = vperm.slane %v2079_v38, 7  ;;  %v2122_v50 = vperm.slane %v2079_v38, 6 }
0x182a   :  { %2099 = vperm.xlu0 %2530, %v2094_v29   ;;  %2092 = vperm.xlu2 %2529, %v2087_v41  }
0x182b   :  { %2085 = vperm.xlu1 %2531, %v2080_v35  }
0x1832   :  { %2113 = vperm.xlu0 %2530, %v2108_v33   ;;  %2120 = vperm.xlu2 %2529, %v2115_v39  }
0x1833   :  { %2106 = vperm.xlu1 %2531, %v2101_v17  }
0x183a   :  { %2134 = vperm.xlu0 %2530, %v2129_v49   ;;  %2183 = vrot.lane.b32.xlu2 %v1987_v37, %s2749_s9 }
0x183b   :  { %2127 = vperm.xlu1 %2531, %v2122_v50  }
0x1843   :  { %2206 = vrot.lane.b32.xlu1 %v1987_v37, %s2748_s22 }
0x184b   :  { %564 = vrot.lane.b32.xlu1 %v3235_v54, %s2749_s9 }
0x1853   :  { %846 = vrot.lane.b32.xlu1 %v3221_v13, %s2748_s22 }
0x185b   :  { %1396 = vrot.lane.b32.xlu1 %v3549_v57, %s2749_s9 }
0x1863   :  { %1677 = vrot.lane.b32.xlu1 %v3538_v1, %s2748_s22 }
0x186b   :  { %852 = vrot.lane.b32.xlu1 %v3347_v34, %s2749_s9 }
0x1884   :  { %v2093_v25 = vpop.permute.xlu2 %2092 }
0x1885   :  { %v2137_v43 = vmul.f32 %v2093_v25, %v2848_v3 }
0x1887   :  { %v2145_v13 = vsel %vm453_vm13, %v2137_v43, 0.0 }
0x188c   :  { %v2121_v56 = vpop.permute.xlu2 %2120 }
0x188d   :  { %v2141_v53 = vmul.f32 %v2121_v56, %v2873_v8  ;;  %v238_v8 = vrot.slane %v2963_v36, 4 }
0x188f   :  { %v2153_v62 = vsel %vm453_vm13, %v2141_v53, 0.0 }
0x1894   :  { %v2184_v24 = vpop.permute.xlu2 %2183 }
0x189c   :  { %v2100_v44 = vpop.permute.xlu0 %2099 }
0x189d   :  { %v2086_v45 = vpop.permute.xlu1 %2085  ;;  %v2138_v46 = vmul.f32 %v2100_v44, %v2856_v5  ;;  %v1949_v44 = vld.sshfl [vmem:[#allocation1] sm:$0xff pattern:$0x73625140] }
0x189e   :  { %v2136_v26 = vmul.f32 %v2086_v45, %v2843_v2  ;;  %v2469_v45 = vld [vmem:[%s3843_s0 + $0x5] sm:$0x1] }
0x189f   :  { %v2147_v1 = vsel %vm453_vm13, %v2138_v46, 0.0  ;;  %v1904_v43 = vunpack.c.l.bf16 %v2469_v45 }
0x18a0   :  { %v2144_v54 = vsel %vm453_vm13, %v2136_v26, 0.0 }
0x18a1   :  { %v2146_v57 = vadd.f32 %v2145_v13, %v2144_v54  ;;  %1958 = vst [vmem:[#allocation1] ss:$4 sm:$0xff] %v1904_v43 }
0x18a3   :  { %v2148_v61 = vadd.f32 %v2147_v1, %v2146_v57 }
0x18a4   :  { %v2114_v12 = vpop.permute.xlu0 %2113 }
0x18a5   :  { %v2107_v27 = vpop.permute.xlu1 %2106  ;;  %v2140_v34 = vmul.f32 %v2114_v12, %v2867_v7 }
0x18a6   :  { %v2139_v11 = vmul.f32 %v2107_v27, %v2861_v6 }
0x18a7   :  { %v2151_v63 = vsel %vm453_vm13, %v2140_v34, 0.0 }
0x18a8   :  { %v2149_v3 = vsel %vm453_vm13, %v2139_v11, 0.0 }
0x18a9   :  { %v2150_v2 = vadd.f32 %v2149_v3, %v2148_v61 }
0x18ab   :  { %v2152_v30 = vadd.f32 %v2151_v63, %v2150_v2 }
0x18ac   :  { %v2135_v5 = vpop.permute.xlu0 %2134 }
0x18ad   :  { %v2128_v51 = vpop.permute.xlu1 %2127  ;;  %v2143_v59 = vmul.f32 %v2135_v5, %v2885_v10  ;;  %v2154_v19 = vadd.f32 %v2153_v62, %v2152_v30 }
0x18ae   :  { %v2142_v7 = vmul.f32 %v2128_v51, %v2879_v9 }
0x18af   :  { %v2157_v31 = vsel %vm453_vm13, %v2143_v59, 0.0 }
0x18b0   :  { %v2155_v6 = vsel %vm453_vm13, %v2142_v7, 0.0 }
0x18b1   :  { %v2156_v22 = vadd.f32 %v2155_v6, %v2154_v19 }
0x18b3   :  { %v2158_v42 = vadd.f32 %v2157_v31, %v2156_v22 }
0x18b5   :  { %v2161_v16 = vpack.c.bf16 %v2158_v42, %v2158_v42  ;;  %v2207_v37 = vpop.permute.xlu1 %2206 }
0x18b7   :  { %2473 = vmatmul.msk.bf16.vlgmr.msrb.gmra.mxu3 %vm3865_vm4, %v2161_v16 }
0x18bd   :  { %v565_v54 = vpop.permute.xlu1 %564 }
0x18c5   :  { %v847_v46 = vpop.permute.xlu1 %846 }
0x18cd   :  { %v1397_v57 = vpop.permute.xlu1 %1396 }
0x193a   :  { %v2174_v23 = vpop.f32.mrf.mxu3 }
0x193b   :  { %v2178_v15 = vadd.f32 %v2174_v23, %v238_v8 }
0x193d   :  { %v2186_v55 = vadd.f32 %v2184_v24, %v2178_v15 }
0x193f   :  { %v2475_v48 = vmul.f32 -1.442695, %v2186_v55 }
0x1941   :  { %2713 = vpow2.f32 %v2475_v48 }
0x1942   :  { %v2176_v10 = vpop.f32.mrf.mxu3 }
0x1947   :  { %v2714_v9 = vpop.eup %2713 }
0x1948   :  { %v2190_v28 = vadd.f32 1.0, %v2714_v9  ;;  %v2522_v9 = vld [vmem:[%s3855_s12 + $0x30] sm:$0xff] }
0x1949   :  { %2341 = vmatpush.bf16.msrb.mxu1 %v2522_v9 }
0x194a   :  { %2715 = vrcp.f32 %v2190_v28  ;;  %v2202_v35 = vand.u32 2147483648, %v2190_v28  ;;  %v2200_v39 = vand.u32 2147483647, %v2190_v28  ;;  %vm2196_vm6 = vweird.f32 %v2190_v28 }
0x194c   :  { %v2203_v36 = vor.u32 1.1754944e-38, %v2202_v35  ;;  %vm2201_vm8 = vcmp.eq.f32.partialorder %v2200_v39, 8.507059e+37  ;;  %v2517_v35 = vld [vmem:[%s3855_s12 + $0x8] sm:$0xff] }
0x1950   :  { %v2716_v38 = vpop.eup %2715 }
0x1951   :  { %v2192_v29 = vmul.f32 %v2716_v38, %v2190_v28  ;;  %vm2197_vm5 = vweird.f32 %v2716_v38  ;;  %v2521_v28 = vld [vmem:[%s3855_s12 + $0x28] sm:$0xff] }
0x1952   :  { %vm2198_vm7 = vmor %vm2196_vm6, %vm2197_vm5  ;;  %2342 = vmatpush.bf16.msrb.mxu1 %v2521_v28 }
0x1953   :  { %v2193_v41 = vsub.f32 1.0, %v2192_v29  ;;  %v2519_v29 = vld [vmem:[%s3855_s12 + $0x18] sm:$0xff] }
0x1955   :  { %v2194_v33 = vmul.f32 %v2716_v38, %v2193_v41  ;;  %v2518_v41 = vld [vmem:[%s3855_s12 + $0x10] sm:$0xff] }
0x1957   :  { %v2195_v17 = vadd.f32 %v2716_v38, %v2194_v33  ;;  %v2516_v33 = vld [vmem:[%s3855_s12] sm:$0xff] }
0x1959   :  { %v2199_v49 = vsel %vm2198_vm7, %v2716_v38, %v2195_v17  ;;  %v2520_v38 = vld [vmem:[%s3855_s12 + $0x20] sm:$0xff] }
0x195a   :  { %v2204_v50 = vsel %vm2201_vm8, %v2203_v36, %v2199_v49  ;;  %2343 = vmatpush.bf16.msrb.mxu1 %v2520_v38 }
0x195b   :  { %v2209_v25 = vmul.f32 %v2207_v37, %v2204_v50  ;;  %v2216_v27 = vsub.f32 1.0, %v2204_v50 }
0x195d   :  { %2211 = vrot.lane.b32.xlu0 %v2209_v25, %s2750_s2 }
0x195e   :  { %2344 = vmatpush.bf16.msrb.mxu1 %v2519_v29 }
0x1962   :  { %2345 = vmatpush.bf16.msrb.mxu1 %v2518_v41 }
0x1965   :  { %568 = vrot.lane.b32.xlu0 %v3119_v52, %s2748_s22  ;;  %v1959_v52 = vld.sshfl [vmem:[#allocation1] sm:$0xff pattern:$0x73625140] }
0x1966   :  { %2346 = vmatpush.bf16.msrb.mxu1 %v2517_v35 }
0x196a   :  { %2347 = vmatpush.bf16.msrb.mxu1 %v2516_v33 }
0x196d   :  { %1119 = vrot.lane.b32.xlu0 %v3358_v47, %s2749_s9 }
0x1975   :  { %1400 = vrot.lane.b32.xlu0 %v3443_v21, %s2748_s22 }
0x197d   :  { %1950 = vrot.lane.b32.xlu0 %v1949_v44, %s2749_s9 }
0x1985   :  { %2231 = vrot.lane.b32.xlu0 %v2158_v42, %s2748_s22 }
0x198d   :  { %1129 = vrot.lane.b32.xlu0 %v3452_v60, %s2749_s9 }
0x1995   :  { %1960 = vrot.lane.b32.xlu0 %v1959_v52, %s2749_s9 }
0x19cf   :  { %v2212_v47 = vpop.permute.xlu0 %2211 }
0x19d0   :  { %v2214_v26 = vadd.f32 %v2212_v47, %v2178_v15  ;;  %v2751_v47 = vmov 0.0  }
0x19d1   :  { %245 = vst.msk [vmem:[#allocation3] sm:$0x3] %vm244_vm3, %v2751_v47 }
0x19d2   :  { %2717 = vtanh.f32 %v2214_v26  ;;  %247 = vst.msk [vmem:[%s3858_s15] sm:$0xff] %vm246_vm12, %v2751_v47  ;;  %v2536_v26 = vld [vmem:[%s3856_s13] ss:$0 sm:$0xff]  ;;  %s2752_s13 = smov [#allocation3]  }
0x19d3   :  { %s2378_s17 = sshll.u32 %s2752_s13, 4  ;;  %s2379_s17 = int_to_ptr.vmem [resolvable:$true] %s2378_s17 }
0x19d7   :  { %v569_v60 = vpop.permute.xlu0 %568 }
0x19d8   :  { %v2718_v21 = vpop.eup %2717  ;;  %v577_v16 = vsel %vm261_vm2, %v565_v54, %v569_v60 }
0x19d9   :  { %2218 = vrot.lane.b32.xlu2 %v2718_v21, %s2749_s9 }
0x19df   :  { %v1120_v13 = vpop.permute.xlu0 %1119 }
0x19e1   :  { %842 = vrot.lane.b32.xlu2 %v3250_v18, %s2749_s9 }
0x19e7   :  { %v1401_v18 = vpop.permute.xlu0 %1400 }
0x19e8   :  { %v1409_v15 = vsel %vm261_vm2, %v1397_v57, %v1401_v18 }
0x19e9   :  { %1123 = vrot.lane.b32.xlu2 %v3334_v40, %s2748_s22  ;;  %v1678_v40 = vpop.permute.xlu1 %1677 }
0x19ef   :  { %v1951_v12 = vpop.permute.xlu0 %1950 }
0x19f1   :  { %1673 = vrot.lane.b32.xlu2 %v3649_v0, %s2749_s9  ;;  %v2222_v0 = vmul.f32 %v2204_v50, %v3654_v32  ;;  %v853_v11 = vpop.permute.xlu1 %852 }
0x19f9   :  { %1954 = vrot.lane.b32.xlu2 %v3638_v58, %s2748_s22 }
0x1a01   :  { %574 = vrot.lane.b32.xlu2 %v3239_v4, %s2749_s9  ;;  %v2474_v4 = vld [vmem:[%s3843_s0 + $0x6] sm:$0x1] }
0x1a02   :  { %v2181_v3 = vunpack.c.l.bf16 %v2474_v4 }
0x1a09   :  { %1406 = vrot.lane.b32.xlu2 %v3552_v14, %s2749_s9  ;;  %v2232_v14 = vpop.permute.xlu0 %2231 }
0x1a11   :  { %v1130_v53 = vpop.permute.xlu0 %1129 }
0x1a19   :  { %v1961_v6 = vpop.permute.xlu0 %1960 }
0x1a33   :  { %v2219_v1 = vpop.permute.xlu2 %2218 }
0x1a34   :  { %v2221_v34 = vmul.f32 %v2219_v1, %v2216_v27 }
0x1a36   :  { %v2223_v58 = vadd.f32 %v2222_v0, %v2221_v34 }
0x1a38   :  { %2225 = vst [vmem:[#allocation1] ss:$4 sm:$0xff] %v2223_v58 }
0x1a3b   :  { %v843_v56 = vpop.permute.xlu2 %842 }
0x1a3c   :  { %v855_v61 = vsel %vm261_vm2, %v843_v56, %v847_v46 }
0x1a3d   :  { %v856_v2 = vsel %vm578_vm9, %v855_v61, %v853_v11 }
0x1a3e   :  { %858 = vst.msk [vmem:[#allocation2 + $0x2] sm:$0x3] %vm580_vm10, %v856_v2 }
0x1a3f   :  { %v2226_v32 = vld.sshfl [vmem:[#allocation1] sm:$0xff pattern:$0x73625140] }
0x1a40   :  { %2227 = vrot.lane.b32.xlu1 %v2226_v32, %s2749_s9  ;;  %2235 = vst [vmem:[#allocation1] ss:$4 sm:$0xff] %v2181_v3 }
0x1a43   :  { %v1124_v63 = vpop.permute.xlu2 %1123 }
0x1a44   :  { %v1132_v30 = vsel %vm261_vm2, %v1120_v13, %v1124_v63 }
0x1a45   :  { %v1133_v5 = vsel %vm578_vm9, %v1132_v30, %v1130_v53  ;;  %v2245_v51 = vld [vmem:[#allocation2 + $0x2] sm:$0x3] }
0x1a46   :  { %1135 = vst.msk [vmem:[#allocation2 + $0x4] sm:$0x3] %vm580_vm10, %v1133_v5 }
0x1a47   :  { %v2236_v62 = vld.sshfl [vmem:[#allocation1] sm:$0xff pattern:$0x73625140] }
0x1a48   :  { %1683 = vrot.lane.b32.xlu1 %v3652_v20, %s2749_s9  ;;  %2237 = vrot.lane.b32.xlu2 %v2236_v62, %s2749_s9  ;;  %2274 = vst [vmem:[#allocation1 + $0x1] ss:$4 sm:$0xff] %v2245_v51 }
0x1a4b   :  { %v1674_v59 = vpop.permute.xlu2 %1673 }
0x1a4c   :  { %v1686_v7 = vsel %vm261_vm2, %v1674_v59, %v1678_v40 }
0x1a4d   :  { %v2246_v19 = vld [vmem:[#allocation2 + $0x4] sm:$0x3] }
0x1a4e   :  { %2276 = vst [vmem:[#allocation1 + $0x2] ss:$4 sm:$0xff] %v2246_v19 }
0x1a53   :  { %v1955_v22 = vpop.permute.xlu2 %1954 }
0x1a54   :  { %v1963_v31 = vsel %vm261_vm2, %v1951_v12, %v1955_v22 }
0x1a55   :  { %v1964_v42 = vsel %vm578_vm9, %v1963_v31, %v1961_v6 }
0x1a56   :  { %1966 = vst.msk [vmem:[#allocation2 + $0xa] sm:$0x3] %vm580_vm10, %v1964_v42 }
0x1a5b   :  { %v575_v8 = vpop.permute.xlu2 %574 }
0x1a5c   :  { %v579_v20 = vsel %vm578_vm9, %v577_v16, %v575_v8 }
0x1a5d   :  { %v2249_v23 = vld [vmem:[#allocation2 + $0xa] sm:$0x3]  ;;  %581 = vst.msk [vmem:[#allocation2] sm:$0x3] %vm580_vm10, %v579_v20 }
0x1a5e   :  { %2282 = vst [vmem:[#allocation1 + $0x21] ss:$4 sm:$0xff] %v2249_v23 }
0x1a63   :  { %v1407_v24 = vpop.permute.xlu2 %1406 }
0x1a64   :  { %v2244_v55 = vld [vmem:[#allocation2] sm:$0x3]  ;;  %v1410_v48 = vsel %vm578_vm9, %v1409_v15, %v1407_v24 }
0x1a65   :  { %2272 = vst [vmem:[#allocation1] ss:$4 sm:$0xff] %v2244_v55 }
0x1a66   :  { %1412 = vst.msk [vmem:[#allocation2 + $0x6] sm:$0x3] %vm580_vm10, %v1410_v48 }
0x1a6d   :  { %v2247_v10 = vld [vmem:[#allocation2 + $0x6] sm:$0x3] }
0x1a6e   :  { %2278 = vst [vmem:[#allocation1 + $0x3] ss:$4 sm:$0xff] %v2247_v10 }
0x1a75   :  { %v2285_v45 = vld.sshfl [vmem:[#allocation1] sm:$0xff pattern:$0x73625140] }
0x1aa2   :  { %v2238_v39 = vpop.permute.xlu2 %2237 }
0x1ab2   :  { %v2228_v17 = vpop.permute.xlu1 %2227 }
0x1ab3   :  { %v2240_v36 = vsel %vm261_vm2, %v2228_v17, %v2232_v14 }
0x1ab4   :  { %v2241_v49 = vsel %vm578_vm9, %v2240_v36, %v2238_v39 }
0x1ab5   :  { %2243 = vst.msk [vmem:[#allocation2 + $0xc] sm:$0x3] %vm580_vm10, %v2241_v49 }
0x1aba   :  { %v1684_v37 = vpop.permute.xlu1 %1683 }
0x1abb   :  { %v1687_v50 = vsel %vm578_vm9, %v1686_v7, %v1684_v37 }
0x1abc   :  { %v2250_v25 = vld [vmem:[#allocation2 + $0xc] sm:$0x3]  ;;  %1689 = vst.msk [vmem:[#allocation2 + $0x8] sm:$0x3] %vm580_vm10, %v1687_v50 }
0x1abd   :  { %2284 = vst [vmem:[#allocation1 + $0x22] ss:$4 sm:$0xff] %v2250_v25 }
0x1ac3   :  { %v2248_v44 = vld [vmem:[#allocation2 + $0x8] sm:$0x3] }
0x1ac4   :  { %2280 = vst [vmem:[#allocation1 + $0x20] ss:$4 sm:$0xff] %v2248_v44 }
0x1acb   :  { %v2286_v43 = vld.sshfl [vmem:[#allocation1 + $0x20] sm:$0xff pattern:$0x73625140] }
0x1acc   :  { %v2289_v52 = vpack.c.bf16 %v2286_v43, %v2285_v45 }
0x1ace   :  { %2504 = vmatmul.msk.bf16.vlgmr.msrb.gmra.mxu1 %vm2336_vm11, %v2289_v52 }
0x1b4b   :  { %v2349_v21 = vpop.f32.mrf.mxu1 }
0x1b4c   :  { %v2350_v60 = vadd.f32 %v2536_v26, %v2349_v21 }
0x1b4e   :  { %v2356_v54 = vrot.slane %v2350_v60, 2  ;;  %v2357_v13 = vrot.slane %v2350_v60, 4  ;;  %v2358_v46 = vrot.slane %v2350_v60, 6  ;;  %2367 = vst.msk [vmem:[#allocation3 + $0x2] sm:$0x3] %vm244_vm3, %v2350_v60 }
0x1b50   :  { %2368 = vst.msk [vmem:[#allocation3 + $0x4] sm:$0x3] %vm244_vm3, %v2356_v54 }
0x1b51   :  { %2369 = vst.msk [vmem:[#allocation3 + $0x6] sm:$0x3] %vm244_vm3, %v2357_v13 }
0x1b52   :  { %2370 = vst.msk [vmem:[#allocation3 + $0x8] sm:$0x3] %vm244_vm3, %v2358_v46 }
0x1b53   :  { %v2351_v18 = vpop.f32.mrf.mxu1 }
0x1b54   :  { %v2352_v57 = vadd.f32 %v2536_v26, %v2351_v18 }
0x1b56   :  { %v2359_v12 = vrot.slane %v2352_v57, 2  ;;  %v2360_v40 = vrot.slane %v2352_v57, 4  ;;  %2371 = vst.msk [vmem:[#allocation3 + $0xa] sm:$0x3] %vm244_vm3, %v2352_v57 }
0x1b58   :  { %2372 = vst.msk [vmem:[#allocation3 + $0xc] sm:$0x3] %vm244_vm3, %v2359_v12 }
0x1b59   :  { %2373 = vst.msk [vmem:[#allocation3 + $0xe] sm:$0x3] %vm244_vm3, %v2360_v40 }
0x1b5a   :  { %2386 = dma.vmem_to_hbm [thread:$0]  %s2379_s17, 256, %s2381_s16, [#allocation4], %s2748_s22, %s2748_s22, %s2753_s7  }
0x1b5b   :  { %2746 = dma.done.wait [#allocation4], 256  }
0x1b5c   :  { %2747 = vsyncadd [#allocation4], 4294967040 }
0x1b5d   :  { %2395 = vsyncpa [#allocation4], 1 }

</bundles_post_ra>
